<compile_context>
chip_gen: v7x
topology: tpu7x:2x2x1
jax: 0.10.0
libtpu: 0.0.40
codegen_flags: <defaults>
</compile_context>

<pallas_src>
import functools
import math

import jax
import jax.numpy as jnp
from jax.experimental import pallas as pl
from jax.experimental.pallas import tpu as pltpu


# ----------------------------------------------------------------------------
# Pallas kernels
# ----------------------------------------------------------------------------
def _matmul_bias_kernel(a_ref, w_ref, b_ref, o_ref, *, relu):
    # a: (tm, K) bf16, w: (K, tn) bf16, b: (1, tn) f32 -> o: (tm, tn)
    acc = jnp.dot(a_ref[...], w_ref[...], preferred_element_type=jnp.float32)
    acc = acc + b_ref[...]
    if relu:
        acc = jnp.maximum(acc, 0.0)
    o_ref[...] = acc.astype(o_ref.dtype)


def _dueling_head_kernel(h_ref, w_ref, b_ref, q_ref, *, n_actions):
    # h: (B, 1024) bf16, w: (1024, A+1) bf16 block-diagonal [act_fc2 | value_fc2],
    # b: (1, A+1) f32.  Epilogue fuses the dueling combine: q = V + A - mean(A).
    out = jnp.dot(h_ref[...], w_ref[...], preferred_element_type=jnp.float32)
    out = out + b_ref[...]
    act = out[:, :n_actions]
    val = out[:, n_actions:n_actions + 1]
    q = val + act - jnp.mean(act, axis=1, keepdims=True)
    q_ref[...] = q.astype(q_ref.dtype)


# ----------------------------------------------------------------------------
# Pallas wrappers
# ----------------------------------------------------------------------------
def linear_pallas(a, w, b, *, relu, out_dtype, block_m=512, block_n=512):
    """a: (M, K) bf16, w: (K, N) bf16, b: (N,) f32 -> (M, N) out_dtype.

    Tiled over M and N (K kept whole: K <= 3136 fits VMEM easily); both grid
    axes are independent -> "parallel" semantics (dual-TC sharding on v7x).
    """
    M, K = a.shape
    K2, N = w.shape
    assert K == K2
    tm = M if M <= block_m else block_m      # block_m is a multiple of 8
    tn = N if N <= block_n else block_n      # block_n is a multiple of 128
    grid = (pl.cdiv(M, tm), pl.cdiv(N, tn))
    kernel = functools.partial(_matmul_bias_kernel, relu=relu)
    return pl.pallas_call(
        kernel,
        out_shape=jax.ShapeDtypeStruct((M, N), out_dtype),
        grid=grid,
        in_specs=[
            pl.BlockSpec((tm, K), lambda i, j: (i, 0)),
            pl.BlockSpec((K, tn), lambda i, j: (0, j)),
            pl.BlockSpec((1, tn), lambda i, j: (0, j)),
        ],
        out_specs=pl.BlockSpec((tm, tn), lambda i, j: (i, j)),
        compiler_params=pltpu.CompilerParams(
            dimension_semantics=("parallel", "parallel")),
    )(a, w, b.reshape(1, N).astype(jnp.float32))


def dueling_head_pallas(h, w2, b2, n_actions):
    """h: (B, 1024) bf16, w2: (1024, A+1) bf16, b2: (A+1,) f32 -> q: (B, A) f32."""
    B, K = h.shape
    N = w2.shape[1]
    kernel = functools.partial(_dueling_head_kernel, n_actions=n_actions)
    return pl.pallas_call(
        kernel,
        out_shape=jax.ShapeDtypeStruct((B, n_actions), jnp.float32),
        in_specs=[
            pl.BlockSpec((B, K), lambda: (0, 0)),
            pl.BlockSpec((K, N), lambda: (0, 0)),
            pl.BlockSpec((1, N), lambda: (0, 0)),
        ],
        out_specs=pl.BlockSpec((B, n_actions), lambda: (0, 0)),
    )(h, w2, b2.reshape(1, N).astype(jnp.float32))


def conv2d_relu_nhwc(x, w_mat, b, *, ksize, stride):
    """Valid strided conv + ReLU via NHWC im2col + the tiled Pallas matmul.

    x: (B, H, W, C) bf16, w_mat: (KH*KW*C, OC) bf16 (feature order kh, kw, c),
    b: (OC,) f32 -> (B, OH, OW, OC) bf16.
    """
    B, H, W, C = x.shape
    KH = KW = ksize
    OH = (H - KH) // stride + 1
    OW = (W - KW) // stride + 1
    # TODO(synk): patch extraction could be moved inside the Pallas kernel (one
    # whole image fits VMEM) to avoid materializing the expanded im2col in HBM.
    cols = []
    for kh in range(KH):
        for kw in range(KW):
            cols.append(
                x[:, kh:kh + stride * OH:stride, kw:kw + stride * OW:stride, :])
    patches = jnp.stack(cols, axis=3)                       # (B, OH, OW, KH*KW, C)
    patches = patches.reshape(B * OH * OW, KH * KW * C)
    OC = w_mat.shape[1]
    out = linear_pallas(patches, w_mat, b, relu=True, out_dtype=jnp.bfloat16)
    return out.reshape(B, OH, OW, OC)


# ----------------------------------------------------------------------------
# Parameter init (torch layout) and one-time prep into NHWC/bf16 matmul layout
# ----------------------------------------------------------------------------
def kaiming_normal(key, shape, fan_in):
    std = math.sqrt(2.0 / fan_in)
    return std * jax.random.normal(key, shape, dtype=jnp.float32)


def bias_uniform(key, shape, fan_in):
    bound = 1.0 / math.sqrt(fan_in)
    return jax.random.uniform(key, shape, minval=-bound, maxval=bound,
                              dtype=jnp.float32)


def init_torch_params(key, n_frame, n_actions):
    ks = jax.random.split(key, 14)
    p = {}
    p["conv1_w"] = kaiming_normal(ks[0], (32, n_frame, 8, 8), n_frame * 8 * 8)
    p["conv1_b"] = bias_uniform(ks[1], (32,), n_frame * 8 * 8)
    p["conv2_w"] = kaiming_normal(ks[2], (64, 32, 4, 4), 32 * 4 * 4)
    p["conv2_b"] = bias_uniform(ks[3], (64,), 32 * 4 * 4)
    p["conv3_w"] = kaiming_normal(ks[4], (64, 64, 3, 3), 64 * 3 * 3)
    p["conv3_b"] = bias_uniform(ks[5], (64,), 64 * 3 * 3)
    p["act_fc_w"] = kaiming_normal(ks[6], (512, 3136), 3136)
    p["act_fc_b"] = bias_uniform(ks[7], (512,), 3136)
    p["act_fc2_w"] = kaiming_normal(ks[8], (n_actions, 512), 512)
    p["act_fc2_b"] = bias_uniform(ks[9], (n_actions,), 512)
    p["value_fc_w"] = kaiming_normal(ks[10], (512, 3136), 3136)
    p["value_fc_b"] = bias_uniform(ks[11], (512,), 3136)
    p["value_fc2_w"] = kaiming_normal(ks[12], (1, 512), 512)
    p["value_fc2_b"] = bias_uniform(ks[13], (1,), 512)
    return p


def prepare_params(tp, n_actions):
    """Torch-layout params -> NHWC / fused-head / bf16 matmul layout (one-time)."""

    def conv_mat(w):  # (OC, IC, KH, KW) -> (KH*KW*IC, OC), feature order (kh, kw, c)
        OC, IC, KH, KW = w.shape
        return jnp.transpose(w, (2, 3, 1, 0)).reshape(KH * KW * IC, OC).astype(jnp.bfloat16)

    def fc_head_mat(w):  # torch (512, 3136) with inputs in (C=64, H=7, W=7) order
        w = w.reshape(512, 64, 7, 7).transpose(0, 2, 3, 1).reshape(512, 3136)
        return w.T.astype(jnp.bfloat16)  # (3136, 512), rows in NHWC flatten order

    A = n_actions
    p = {}
    p["conv1_w"], p["conv1_b"] = conv_mat(tp["conv1_w"]), tp["conv1_b"]
    p["conv2_w"], p["conv2_b"] = conv_mat(tp["conv2_w"]), tp["conv2_b"]
    p["conv3_w"], p["conv3_b"] = conv_mat(tp["conv3_w"]), tp["conv3_b"]
    # Fused head stage 1: [act_fc | value_fc] -> (3136, 1024)
    p["head1_w"] = jnp.concatenate(
        [fc_head_mat(tp["act_fc_w"]), fc_head_mat(tp["value_fc_w"])], axis=1)
    p["head1_b"] = jnp.concatenate([tp["act_fc_b"], tp["value_fc_b"]])
    # Fused head stage 2: block-diagonal [[act_fc2, 0], [0, value_fc2]] -> (1024, A+1)
    w2 = jnp.zeros((1024, A + 1), jnp.float32)
    w2 = w2.at[:512, :A].set(tp["act_fc2_w"].T)
    w2 = w2.at[512:, A:].set(tp["value_fc2_w"].T)
    p["head2_w"] = w2.astype(jnp.bfloat16)
    p["head2_b"] = jnp.concatenate([tp["act_fc2_b"], tp["value_fc2_b"]])
    return p


# ----------------------------------------------------------------------------
# Forward pass
# ----------------------------------------------------------------------------
def dueling_network_forward(params, x, *, n_actions):
    """x: (B, n_frame, 84, 84) float32 (NCHW) -> q: (B, n_actions) float32."""
    B = x.shape[0]
    # Single layout change at the boundary; all conv layers stay NHWC after this.
    x = jnp.transpose(x, (0, 2, 3, 1)).astype(jnp.bfloat16)            # (B, 84, 84, C)

    h = conv2d_relu_nhwc(x, params["conv1_w"], params["conv1_b"], ksize=8, stride=4)  # (B,20,20,32)
    h = conv2d_relu_nhwc(h, params["conv2_w"], params["conv2_b"], ksize=4, stride=2)  # (B, 9, 9,64)
    h = conv2d_relu_nhwc(h, params["conv3_w"], params["conv3_b"], ksize=3, stride=1)  # (B, 7, 7,64)

    # NHWC flatten; head1_w rows were permuted so this matches torch's NCHW Flatten.
    flat = h.reshape(B, 7 * 7 * 64)                                     # (B, 3136) bf16

    # Fused act/value heads: one (3136,1024) matmul + one (1024,A+1) matmul whose
    # epilogue performs the dueling combine.
    h1 = linear_pallas(flat, params["head1_w"], params["head1_b"],
                       relu=True, out_dtype=jnp.bfloat16)               # (B, 1024)
    q = dueling_head_pallas(h1, params["head2_w"], params["head2_b"], n_actions)
    return q


# ----------------------------------------------------------------------------
# Main
# ----------------------------------------------------------------------------
if __name__ == "__main__":
    n_frame = 4
    n_actions = 6
    batch = 2

    key = jax.random.PRNGKey(0)
    pkey, xkey = jax.random.split(key)
    torch_params = init_torch_params(pkey, n_frame, n_actions)
    params = prepare_params(torch_params, n_actions)

    # 84x84 spatial size is implied by act_fc's 3136 = 64*7*7 input features.
    x = jax.random.normal(xkey, (batch, n_frame, 84, 84), dtype=jnp.float32)

    fwd = jax.jit(functools.partial(dueling_network_forward, n_actions=n_actions))
    q = fwd(params, x)
    jax.block_until_ready(q)

    assert q.shape == (batch, n_actions), q.shape
    assert q.dtype == jnp.float32
    assert bool(jnp.all(jnp.isfinite(q)))
    print("KERNEL_OK")
</pallas_src>

<mosaic_0001>
module attributes {stable_mosaic.version = 11 : i64} {
  func.func @_matmul_bias_kernel(%arg0: i32, %arg1: i32, %arg2: memref<512x256xbf16, #tpu.memory_space<vmem>>, %arg3: memref<256x32xbf16, #tpu.memory_space<vmem>>, %arg4: memref<1x32xf32, #tpu.memory_space<vmem>>, %arg5: memref<512x32xbf16, #tpu.memory_space<vmem>>) attributes {dimension_semantics = [#tpu.dimension_semantics<parallel>, #tpu.dimension_semantics<parallel>], iteration_bounds = array<i64: 2, 1>, scalar_prefetch = 0 : i64, scratch_operands = 0 : i64, tpu.core_type = #tpu.core_type<tc>, window_params = [{transform_indices = @transform_0, window_bounds = array<i64: 512, 256>}, {transform_indices = @transform_1, window_bounds = array<i64: 256, 32>}, {transform_indices = @transform_2, window_bounds = array<i64: 1, 32>}, {transform_indices = @transform_3, window_bounds = array<i64: 512, 32>}]} {
    %c0 = arith.constant 0 : index
    %c0_0 = arith.constant 0 : index
    %0 = vector.load %arg2[%c0, %c0_0] : memref<512x256xbf16, #tpu.memory_space<vmem>>, vector<512x256xbf16>
    %c0_1 = arith.constant 0 : index
    %c0_2 = arith.constant 0 : index
    %1 = vector.load %arg3[%c0_1, %c0_2] : memref<256x32xbf16, #tpu.memory_space<vmem>>, vector<256x32xbf16>
    %cst = arith.constant dense<0.000000e+00> : vector<512x32xf32>
    %2 = tpu.matmul %0, %1, %cst {dimension_numbers = #tpu.dot_dimension_numbers<[1], [0], [0], [1], [0, 0, 1, 1], [], []>} : vector<512x256xbf16>, vector<256x32xbf16>, vector<512x32xf32> -> vector<512x32xf32>
    %c0_3 = arith.constant 0 : index
    %c0_4 = arith.constant 0 : index
    %3 = vector.load %arg4[%c0_3, %c0_4] : memref<1x32xf32, #tpu.memory_space<vmem>>, vector<1x32xf32>
    %4 = vector.broadcast %3 : vector<1x32xf32> to vector<512x32xf32>
    %5 = arith.addf %2, %4 : vector<512x32xf32>
    %cst_5 = arith.constant 0.000000e+00 : f32
    %6 = vector.broadcast %cst_5 : f32 to vector<512x32xf32>
    %7 = arith.maximumf %5, %6 : vector<512x32xf32>
    %8 = arith.truncf %7 : vector<512x32xf32> to vector<512x32xbf16>
    %c0_6 = arith.constant 0 : index
    %c0_7 = arith.constant 0 : index
    %9 = vector.load %arg5[%c0_6, %c0_7] : memref<512x32xbf16, #tpu.memory_space<vmem>>, vector<512x32xbf16>
    tpu.vector_store %arg5[%c0_6, %c0_7], %8 {strides = array<i32>} : memref<512x32xbf16, #tpu.memory_space<vmem>>, vector<512x32xbf16>,
    return
  }
  func.func @transform_0(%arg0: i32, %arg1: i32) -> (i32, i32) {
    %c0_i32 = arith.constant 0 : i32
    %c0_i32_0 = arith.constant 0 : i32
    return %arg0, %c0_i32 : i32, i32
  }
  func.func @transform_1(%arg0: i32, %arg1: i32) -> (i32, i32) {
    %c0_i32 = arith.constant 0 : i32
    %c0_i32_0 = arith.constant 0 : i32
    return %c0_i32, %arg1 : i32, i32
  }
  func.func @transform_2(%arg0: i32, %arg1: i32) -> (i32, i32) {
    %c0_i32 = arith.constant 0 : i32
    %c0_i32_0 = arith.constant 0 : i32
    return %c0_i32, %arg1 : i32, i32
  }
  func.func @transform_3(%arg0: i32, %arg1: i32) -> (i32, i32) {
    %c0_i32 = arith.constant 0 : i32
    return %arg0, %arg1 : i32, i32
  }
}

module attributes {stable_mosaic.version = 11 : i64} {
  func.func @_matmul_bias_kernel(%arg0: i32, %arg1: i32, %arg2: memref<162x512xbf16, #tpu.memory_space<vmem>>, %arg3: memref<512x64xbf16, #tpu.memory_space<vmem>>, %arg4: memref<1x64xf32, #tpu.memory_space<vmem>>, %arg5: memref<162x64xbf16, #tpu.memory_space<vmem>>) attributes {dimension_semantics = [#tpu.dimension_semantics<parallel>, #tpu.dimension_semantics<parallel>], iteration_bounds = array<i64: 1, 1>, scalar_prefetch = 0 : i64, scratch_operands = 0 : i64, tpu.core_type = #tpu.core_type<tc>, window_params = [{transform_indices = @transform_0, window_bounds = array<i64: 162, 512>}, {transform_indices = @transform_1, window_bounds = array<i64: 512, 64>}, {transform_indices = @transform_2, window_bounds = array<i64: 1, 64>}, {transform_indices = @transform_3, window_bounds = array<i64: 162, 64>}]} {
    %c0 = arith.constant 0 : index
    %c0_0 = arith.constant 0 : index
    %0 = vector.load %arg2[%c0, %c0_0] : memref<162x512xbf16, #tpu.memory_space<vmem>>, vector<162x512xbf16>
    %c0_1 = arith.constant 0 : index
    %c0_2 = arith.constant 0 : index
    %1 = vector.load %arg3[%c0_1, %c0_2] : memref<512x64xbf16, #tpu.memory_space<vmem>>, vector<512x64xbf16>
    %cst = arith.constant dense<0.000000e+00> : vector<162x64xf32>
    %2 = tpu.matmul %0, %1, %cst {dimension_numbers = #tpu.dot_dimension_numbers<[1], [0], [0], [1], [0, 0, 1, 1], [], []>} : vector<162x512xbf16>, vector<512x64xbf16>, vector<162x64xf32> -> vector<162x64xf32>
    %c0_3 = arith.constant 0 : index
    %c0_4 = arith.constant 0 : index
    %3 = vector.load %arg4[%c0_3, %c0_4] : memref<1x64xf32, #tpu.memory_space<vmem>>, vector<1x64xf32>
    %4 = vector.broadcast %3 : vector<1x64xf32> to vector<162x64xf32>
    %5 = arith.addf %2, %4 : vector<162x64xf32>
    %cst_5 = arith.constant 0.000000e+00 : f32
    %6 = vector.broadcast %cst_5 : f32 to vector<162x64xf32>
    %7 = arith.maximumf %5, %6 : vector<162x64xf32>
    %8 = arith.truncf %7 : vector<162x64xf32> to vector<162x64xbf16>
    %c0_6 = arith.constant 0 : index
    %c0_7 = arith.constant 0 : index
    %9 = vector.load %arg5[%c0_6, %c0_7] : memref<162x64xbf16, #tpu.memory_space<vmem>>, vector<162x64xbf16>
    tpu.vector_store %arg5[%c0_6, %c0_7], %8 {strides = array<i32>} : memref<162x64xbf16, #tpu.memory_space<vmem>>, vector<162x64xbf16>,
    return
  }
  func.func @transform_0(%arg0: i32, %arg1: i32) -> (i32, i32) {
    %c0_i32 = arith.constant 0 : i32
    %c0_i32_0 = arith.constant 0 : i32
    return %arg0, %c0_i32 : i32, i32
  }
  func.func @transform_1(%arg0: i32, %arg1: i32) -> (i32, i32) {
    %c0_i32 = arith.constant 0 : i32
    %c0_i32_0 = arith.constant 0 : i32
    return %c0_i32, %arg1 : i32, i32
  }
  func.func @transform_2(%arg0: i32, %arg1: i32) -> (i32, i32) {
    %c0_i32 = arith.constant 0 : i32
    %c0_i32_0 = arith.constant 0 : i32
    return %c0_i32, %arg1 : i32, i32
  }
  func.func @transform_3(%arg0: i32, %arg1: i32) -> (i32, i32) {
    %c0_i32 = arith.constant 0 : i32
    return %arg0, %arg1 : i32, i32
  }
}

module attributes {stable_mosaic.version = 11 : i64} {
  func.func @_matmul_bias_kernel(%arg0: i32, %arg1: i32, %arg2: memref<98x576xbf16, #tpu.memory_space<vmem>>, %arg3: memref<576x64xbf16, #tpu.memory_space<vmem>>, %arg4: memref<1x64xf32, #tpu.memory_space<vmem>>, %arg5: memref<98x64xbf16, #tpu.memory_space<vmem>>) attributes {dimension_semantics = [#tpu.dimension_semantics<parallel>, #tpu.dimension_semantics<parallel>], iteration_bounds = array<i64: 1, 1>, scalar_prefetch = 0 : i64, scratch_operands = 0 : i64, tpu.core_type = #tpu.core_type<tc>, window_params = [{transform_indices = @transform_0, window_bounds = array<i64: 98, 576>}, {transform_indices = @transform_1, window_bounds = array<i64: 576, 64>}, {transform_indices = @transform_2, window_bounds = array<i64: 1, 64>}, {transform_indices = @transform_3, window_bounds = array<i64: 98, 64>}]} {
    %c0 = arith.constant 0 : index
    %c0_0 = arith.constant 0 : index
    %0 = vector.load %arg2[%c0, %c0_0] : memref<98x576xbf16, #tpu.memory_space<vmem>>, vector<98x576xbf16>
    %c0_1 = arith.constant 0 : index
    %c0_2 = arith.constant 0 : index
    %1 = vector.load %arg3[%c0_1, %c0_2] : memref<576x64xbf16, #tpu.memory_space<vmem>>, vector<576x64xbf16>
    %cst = arith.constant dense<0.000000e+00> : vector<98x64xf32>
    %2 = tpu.matmul %0, %1, %cst {dimension_numbers = #tpu.dot_dimension_numbers<[1], [0], [0], [1], [0, 0, 1, 1], [], []>} : vector<98x576xbf16>, vector<576x64xbf16>, vector<98x64xf32> -> vector<98x64xf32>
    %c0_3 = arith.constant 0 : index
    %c0_4 = arith.constant 0 : index
    %3 = vector.load %arg4[%c0_3, %c0_4] : memref<1x64xf32, #tpu.memory_space<vmem>>, vector<1x64xf32>
    %4 = vector.broadcast %3 : vector<1x64xf32> to vector<98x64xf32>
    %5 = arith.addf %2, %4 : vector<98x64xf32>
    %cst_5 = arith.constant 0.000000e+00 : f32
    %6 = vector.broadcast %cst_5 : f32 to vector<98x64xf32>
    %7 = arith.maximumf %5, %6 : vector<98x64xf32>
    %8 = arith.truncf %7 : vector<98x64xf32> to vector<98x64xbf16>
    %c0_6 = arith.constant 0 : index
    %c0_7 = arith.constant 0 : index
    %9 = vector.load %arg5[%c0_6, %c0_7] : memref<98x64xbf16, #tpu.memory_space<vmem>>, vector<98x64xbf16>
    tpu.vector_store %arg5[%c0_6, %c0_7], %8 {strides = array<i32>} : memref<98x64xbf16, #tpu.memory_space<vmem>>, vector<98x64xbf16>,
    return
  }
  func.func @transform_0(%arg0: i32, %arg1: i32) -> (i32, i32) {
    %c0_i32 = arith.constant 0 : i32
    %c0_i32_0 = arith.constant 0 : i32
    return %arg0, %c0_i32 : i32, i32
  }
  func.func @transform_1(%arg0: i32, %arg1: i32) -> (i32, i32) {
    %c0_i32 = arith.constant 0 : i32
    %c0_i32_0 = arith.constant 0 : i32
    return %c0_i32, %arg1 : i32, i32
  }
  func.func @transform_2(%arg0: i32, %arg1: i32) -> (i32, i32) {
    %c0_i32 = arith.constant 0 : i32
    %c0_i32_0 = arith.constant 0 : i32
    return %c0_i32, %arg1 : i32, i32
  }
  func.func @transform_3(%arg0: i32, %arg1: i32) -> (i32, i32) {
    %c0_i32 = arith.constant 0 : i32
    return %arg0, %arg1 : i32, i32
  }
}

module attributes {stable_mosaic.version = 11 : i64} {
  func.func @_matmul_bias_kernel(%arg0: i32, %arg1: i32, %arg2: memref<2x3136xbf16, #tpu.memory_space<vmem>>, %arg3: memref<3136x512xbf16, #tpu.memory_space<vmem>>, %arg4: memref<1x512xf32, #tpu.memory_space<vmem>>, %arg5: memref<2x512xbf16, #tpu.memory_space<vmem>>) attributes {dimension_semantics = [#tpu.dimension_semantics<parallel>, #tpu.dimension_semantics<parallel>], iteration_bounds = array<i64: 1, 2>, scalar_prefetch = 0 : i64, scratch_operands = 0 : i64, tpu.core_type = #tpu.core_type<tc>, window_params = [{transform_indices = @transform_0, window_bounds = array<i64: 2, 3136>}, {transform_indices = @transform_1, window_bounds = array<i64: 3136, 512>}, {transform_indices = @transform_2, window_bounds = array<i64: 1, 512>}, {transform_indices = @transform_3, window_bounds = array<i64: 2, 512>}]} {
    %c0 = arith.constant 0 : index
    %c0_0 = arith.constant 0 : index
    %0 = vector.load %arg2[%c0, %c0_0] : memref<2x3136xbf16, #tpu.memory_space<vmem>>, vector<2x3136xbf16>
    %c0_1 = arith.constant 0 : index
    %c0_2 = arith.constant 0 : index
    %1 = vector.load %arg3[%c0_1, %c0_2] : memref<3136x512xbf16, #tpu.memory_space<vmem>>, vector<3136x512xbf16>
    %cst = arith.constant dense<0.000000e+00> : vector<2x512xf32>
    %2 = tpu.matmul %0, %1, %cst {dimension_numbers = #tpu.dot_dimension_numbers<[1], [0], [0], [1], [0, 0, 1, 1], [], []>} : vector<2x3136xbf16>, vector<3136x512xbf16>, vector<2x512xf32> -> vector<2x512xf32>
    %c0_3 = arith.constant 0 : index
    %c0_4 = arith.constant 0 : index
    %3 = vector.load %arg4[%c0_3, %c0_4] : memref<1x512xf32, #tpu.memory_space<vmem>>, vector<1x512xf32>
    %4 = vector.broadcast %3 : vector<1x512xf32> to vector<2x512xf32>
    %5 = arith.addf %2, %4 : vector<2x512xf32>
    %cst_5 = arith.constant 0.000000e+00 : f32
    %6 = vector.broadcast %cst_5 : f32 to vector<2x512xf32>
    %7 = arith.maximumf %5, %6 : vector<2x512xf32>
    %8 = arith.truncf %7 : vector<2x512xf32> to vector<2x512xbf16>
    %c0_6 = arith.constant 0 : index
    %c0_7 = arith.constant 0 : index
    %9 = vector.load %arg5[%c0_6, %c0_7] : memref<2x512xbf16, #tpu.memory_space<vmem>>, vector<2x512xbf16>
    tpu.vector_store %arg5[%c0_6, %c0_7], %8 {strides = array<i32>} : memref<2x512xbf16, #tpu.memory_space<vmem>>, vector<2x512xbf16>,
    return
  }
  func.func @transform_0(%arg0: i32, %arg1: i32) -> (i32, i32) {
    %c0_i32 = arith.constant 0 : i32
    %c0_i32_0 = arith.constant 0 : i32
    return %arg0, %c0_i32 : i32, i32
  }
  func.func @transform_1(%arg0: i32, %arg1: i32) -> (i32, i32) {
    %c0_i32 = arith.constant 0 : i32
    %c0_i32_0 = arith.constant 0 : i32
    return %c0_i32, %arg1 : i32, i32
  }
  func.func @transform_2(%arg0: i32, %arg1: i32) -> (i32, i32) {
    %c0_i32 = arith.constant 0 : i32
    %c0_i32_0 = arith.constant 0 : i32
    return %c0_i32, %arg1 : i32, i32
  }
  func.func @transform_3(%arg0: i32, %arg1: i32) -> (i32, i32) {
    %c0_i32 = arith.constant 0 : i32
    return %arg0, %arg1 : i32, i32
  }
}

module attributes {stable_mosaic.version = 11 : i64} {
  func.func @_dueling_head_kernel(%arg0: memref<2x1024xbf16, #tpu.memory_space<vmem>>, %arg1: memref<1024x7xbf16, #tpu.memory_space<vmem>>, %arg2: memref<1x7xf32, #tpu.memory_space<vmem>>, %arg3: memref<2x6xf32, #tpu.memory_space<vmem>>) attributes {dimension_semantics = [], scalar_prefetch = 0 : i64, scratch_operands = 0 : i64, tpu.core_type = #tpu.core_type<tc>} {
    %c0 = arith.constant 0 : index
    %c0_0 = arith.constant 0 : index
    %0 = vector.load %arg0[%c0, %c0_0] : memref<2x1024xbf16, #tpu.memory_space<vmem>>, vector<2x1024xbf16>
    %c0_1 = arith.constant 0 : index
    %c0_2 = arith.constant 0 : index
    %1 = vector.load %arg1[%c0_1, %c0_2] : memref<1024x7xbf16, #tpu.memory_space<vmem>>, vector<1024x7xbf16>
    %cst = arith.constant dense<0.000000e+00> : vector<2x7xf32>
    %2 = tpu.matmul %0, %1, %cst {dimension_numbers = #tpu.dot_dimension_numbers<[1], [0], [0], [1], [0, 0, 1, 1], [], []>} : vector<2x1024xbf16>, vector<1024x7xbf16>, vector<2x7xf32> -> vector<2x7xf32>
    %c0_3 = arith.constant 0 : index
    %c0_4 = arith.constant 0 : index
    %3 = vector.load %arg2[%c0_3, %c0_4] : memref<1x7xf32, #tpu.memory_space<vmem>>, vector<1x7xf32>
    %4 = vector.broadcast %3 : vector<1x7xf32> to vector<2x7xf32>
    %5 = arith.addf %2, %4 : vector<2x7xf32>
    %6 = vector.extract_strided_slice %5 {offsets = [0, 0], sizes = [2, 6], strides = [1, 1]} : vector<2x7xf32> to vector<2x6xf32>
    %7 = vector.extract_strided_slice %5 {offsets = [0, 6], sizes = [2, 1], strides = [1, 1]} : vector<2x7xf32> to vector<2x1xf32>
    %8 = vector.broadcast %7 : vector<2x1xf32> to vector<2x6xf32>
    %9 = arith.addf %8, %6 : vector<2x6xf32>
    %cst_5 = arith.constant dense<0.000000e+00> : vector<2xf32>
    %10 = vector.multi_reduction <add>, %6, %cst_5 [1] : vector<2x6xf32> to vector<2xf32>
    %11 = vector.shape_cast %10 : vector<2xf32> to vector<2x1xf32>
    %cst_6 = arith.constant 6.000000e+00 : f32
    %12 = vector.broadcast %cst_6 : f32 to vector<2x1xf32>
    %13 = arith.divf %11, %12 : vector<2x1xf32>
    %14 = vector.broadcast %13 : vector<2x1xf32> to vector<2x6xf32>
    %15 = arith.subf %9, %14 : vector<2x6xf32>
    %c0_7 = arith.constant 0 : index
    %c0_8 = arith.constant 0 : index
    %16 = vector.load %arg3[%c0_7, %c0_8] : memref<2x6xf32, #tpu.memory_space<vmem>>, vector<2x6xf32>
    tpu.vector_store %arg3[%c0_7, %c0_8], %15 {strides = array<i32>} : memref<2x6xf32, #tpu.memory_space<vmem>>, vector<2x6xf32>,
    return
  }
}

</mosaic_0001>

<bundles_post_ra>
// kernel: dueling_network_forward.5
= control target key start
LH: loop header
LB: loop body
LE: loop exit
PB: predicated region body
PF: predicated region fallthrough
CT: control target
= control target key end

     0   :  { %s2558_s12 = smov 0   ;;  %s2560_s13 = smov 0   ;;  %s3159_s0 = inlined_call_operand.vmem [shape: bf16[800,256], index: 0, kind: input, shape index: {}]   ;;  %s3160_s1 = inlined_call_operand.vmem [shape: bf16[256,32], index: 1, kind: input, shape index: {}]   ;;  %s3161_s2 = inlined_call_operand.vmem [shape: f32[1,32], index: 2, kind: input, shape index: {}]   ;;  %s3162_s3 = inlined_call_operand.vmem [shape: bf16[800,32], index: 3, kind: output, shape index: {}]  }
   0x1   :  { %s2562_s14 = smov 0   ;;  %s2564_s15 = smov 0  }
   0x2   :  { %s2566_s16 = smov 0  }
   0x3 LB: > { %s1943_s17 = sadd.s32 4294967295, %s2503_s16   ;;  %s25_s18 = sadd.s32 1, %s2499_s15  ;;  %s2503_s16 = sphi %s2566_s16, %s13_s16   ;;  %s2499_s15 = sphi %s2564_s15, %s3170_s15   ;;  %s2495_s14 = sphi %s2562_s14, %s3169_s14   ;;  %s2491_s13 = sphi %s2560_s13, %s3168_s13   ;;  %s2487_s12 = sphi %s2558_s12, %s3167_s12  }
   0x4   : > { %p27_p0 = scmp.ge.s32.totalorder %s25_s18, 2  ;;  %s112_s19 = sadd.s32 1, %s2491_s13 }
   0x5   : > { %p122_p1 = scmp.ne.s32.totalorder %s2491_s13, %s2487_s12  ;;  %p123_p2 = scmp.eq.s32.totalorder %s1943_s17, 1 }
   0x6   : > { %s3172_s18 = smov (%p27_p0, %s25_s18), 0  ;;  %p1949_p4 = scmp.ge.s32.totalorder %s2503_s16, 1 }
   0x7   : > { %p2590_p3 = por %p123_p2, %p122_p1  ;;  %s107_s21 = ssub.s32 %s2499_s15, %s3172_s18 }
   0x8   : > { %p180_p5 = scmp.lt.s32.totalorder %s2503_s16, 3  ;;  %p110_p6 = scmp.eq.s32.totalorder %s107_s21, 0 }
   0xa   : > { %p181_p7 = pnand %p1949_p4, %p180_p5 }
   0xb   : > { %s2599_s22 = scalar_select %p110_p6, %s2491_s13, %s112_s19  }
   0xc   : > { %184 = sbr.rel (%p181_p7) target bundleno = 509 (0x1fd), region = 32  ;;  %v2321_v0 = vld [vmem:[%s3160_s1] sm:$0xff] (!%p181_p7)   ;;  %v2537_v1 = vmov (!%p181_p7), 0   ;;  %s2607_s25 = sshll.u32 (!%p181_p7), %s2495_s14, 6  ;;  %v2322_v2 = vld [vmem:[%s3160_s1 + $0x8] sm:$0xff] (!%p181_p7)   ;;  %v2323_v3 = vld [vmem:[%s3160_s1 + $0x10] sm:$0xff] (!%p181_p7)  }
   0xd   : > { %765 = vmatprep.subr.bf16.mxu0 (!%p181_p7), %v2537_v1  ;;  %2184 = vmatprep.subr.bf16.mxu1 (!%p181_p7), %v2537_v1  ;;  %p222_p8 = scmp.lt.s32.totalorder (!%p181_p7), %s2607_s25, 99  ;;  %v2324_v4 = vld [vmem:[%s3160_s1 + $0x18] sm:$0xff] (!%p181_p7)   ;;  %v2325_v5 = vld [vmem:[%s3160_s1 + $0x20] sm:$0xff] (!%p181_p7)   ;;  %v2326_v7 = vld [vmem:[%s3160_s1 + $0x28] sm:$0xff] (!%p181_p7)   ;;  %s213_s26 = sand.u32 (!%p181_p7), 1, %s2487_s12   ;;  %vm1374_vm0 = vcmask (!%p181_p7), 257024  }
   0xe   : > { %766 = vmatpush1.bf16.msra.mxu0 (!%p181_p7), %v2321_v0  ;;  %2200 = vmatpush1.bf16.msra.mxu1 (!%p181_p7), %v2321_v0  ;;  %v2327_v9 = vld [vmem:[%s3160_s1 + $0x30] sm:$0xff] (!%p181_p7)   ;;  %v2328_v10 = vld [vmem:[%s3160_s1 + $0x38] sm:$0xff] (!%p181_p7)   ;;  %v2329_v11 = vld [vmem:[%s3160_s1 + $0x40] sm:$0xff] (!%p181_p7)   ;;  %s1950_s29 = sshll.u32 (!%p181_p7), %s213_s26, 8 }
   0xf   : > { %767 = vmatprep.subr.bf16.mxu0 (!%p181_p7), %v2537_v1  ;;  %2185 = vmatprep.subr.bf16.mxu1 (!%p181_p7), %v2537_v1  ;;  %v2330_v12 = vld [vmem:[%s3160_s1 + $0x48] sm:$0xff] (!%p181_p7)   ;;  %v2331_v13 = vld [vmem:[%s3160_s1 + $0x50] sm:$0xff] (!%p181_p7)   ;;  %v2332_v14 = vld [vmem:[%s3160_s1 + $0x58] sm:$0xff] (!%p181_p7)   ;;  %s2765_s12 = scalar_lea.vmem (!%p181_p7), [#allocation2], %s1950_s29  }
  0x10   : > { %v2333_v15 = vld [vmem:[%s3160_s1 + $0x60] sm:$0xff] (!%p181_p7)   ;;  %v2334_v16 = vld [vmem:[%s3160_s1 + $0x68] sm:$0xff] (!%p181_p7)   ;;  %v2335_v17 = vld [vmem:[%s3160_s1 + $0x70] sm:$0xff] (!%p181_p7)  }
  0x11   : > { %v2336_v18 = vld [vmem:[%s3160_s1 + $0x78] sm:$0xff] (!%p181_p7)  }
  0x12   : > { %768 = vmatpush1.bf16.msra.mxu0 (!%p181_p7), %v2322_v2  ;;  %2201 = vmatpush1.bf16.msra.mxu1 (!%p181_p7), %v2322_v2 }
  0x13   : > { %769 = vmatprep.subr.bf16.mxu0 %v2537_v1  ;;  %2186 = vmatprep.subr.bf16.mxu1 %v2537_v1  ;;  %s223_s30 = scalar_select %p222_p8, %s2607_s25, 99 }
  0x15   : > { %s2116_s6 = sshll.u32 %s223_s30, 3  ;;  %s2181_s30 = sshll.u32 (%p2590_p3), %s2495_s14, 8 }
  0x16   : > { %770 = vmatpush1.bf16.msra.mxu0 %v2323_v3  ;;  %2202 = vmatpush1.bf16.msra.mxu1 %v2323_v3  ;;  %s2632_s11 = scalar_lea.vmem %s3159_s0, %s2116_s6  ;;  %s2962_s6 = scalar_lea.vmem (%p2590_p3), %s3162_s3, %s2181_s30  }
  0x17   : > { %771 = vmatprep.subr.bf16.mxu0 %v2537_v1  ;;  %2187 = vmatprep.subr.bf16.mxu1 %v2537_v1  ;;  %v2339_v6 = vld [vmem:[%s2632_s11 + $0x4] ss:$8 sps:$4 sm:$0xff]   ;;  %v2337_v19 = vld [vmem:[%s2632_s11] ss:$8 sps:$4 sm:$0xff]   ;;  %v2343_v21 = vld [vmem:[%s2632_s11 + $0x14] ss:$8 sps:$4 sm:$0xff]  }
  0x18   : > { %v2342_v8 = vld [vmem:[%s2632_s11 + $0x104] ss:$8 sps:$4 sm:$0xff]   ;;  %797 = vmatprep.mubr.bf16.mxu0 %v2339_v6  ;;  %v2340_v20 = vld [vmem:[%s2632_s11 + $0x100] ss:$8 sps:$4 sm:$0xff]   ;;  %v2345_v22 = vld [vmem:[%s2632_s11 + $0x114] ss:$8 sps:$4 sm:$0xff]  }
  0x19   : > { %925 = vmatprep.mubr.bf16.mxu1 %v2342_v8  ;;  %v2347_v23 = vld [vmem:[%s2632_s11 + $0x10] ss:$8 sps:$4 sm:$0xff]   ;;  %v2349_v25 = vld [vmem:[%s2632_s11 + $0x24] ss:$8 sps:$4 sm:$0xff]   ;;  %v2353_v27 = vld [vmem:[%s2632_s11 + $0x20] ss:$8 sps:$4 sm:$0xff]  }
  0x1a   : > { %772 = vmatpush1.bf16.msra.mxu0 %v2324_v4  ;;  %2203 = vmatpush1.bf16.msra.mxu1 %v2324_v4  ;;  %v2348_v24 = vld [vmem:[%s2632_s11 + $0x110] ss:$8 sps:$4 sm:$0xff]   ;;  %v2351_v26 = vld [vmem:[%s2632_s11 + $0x124] ss:$8 sps:$4 sm:$0xff]   ;;  %v2354_v28 = vld [vmem:[%s2632_s11 + $0x120] ss:$8 sps:$4 sm:$0xff]  }
  0x1b   : > { %773 = vmatprep.subr.bf16.mxu0 %v2537_v1  ;;  %2188 = vmatprep.subr.bf16.mxu1 %v2537_v1  ;;  %v2355_v29 = vld [vmem:[%s2632_s11 + $0x34] ss:$8 sps:$4 sm:$0xff]   ;;  %v2359_v31 = vld [vmem:[%s2632_s11 + $0x30] ss:$8 sps:$4 sm:$0xff]   ;;  %v2361_v33 = vld [vmem:[%s2632_s11 + $0x44] ss:$8 sps:$4 sm:$0xff]  }
  0x1c   : > { %v2357_v30 = vld [vmem:[%s2632_s11 + $0x134] ss:$8 sps:$4 sm:$0xff]   ;;  %v2360_v32 = vld [vmem:[%s2632_s11 + $0x130] ss:$8 sps:$4 sm:$0xff]   ;;  %v2363_v34 = vld [vmem:[%s2632_s11 + $0x144] ss:$8 sps:$4 sm:$0xff]  }
  0x1d   : > { %v2365_v35 = vld [vmem:[%s2632_s11 + $0x40] ss:$8 sps:$4 sm:$0xff]   ;;  %v2367_v37 = vld [vmem:[%s2632_s11 + $0x54] ss:$8 sps:$4 sm:$0xff]   ;;  %v2371_v39 = vld [vmem:[%s2632_s11 + $0x50] ss:$8 sps:$4 sm:$0xff]  }
  0x1e   : > { %774 = vmatpush1.bf16.msra.mxu0 %v2325_v5  ;;  %2204 = vmatpush1.bf16.msra.mxu1 %v2325_v5  ;;  %v2366_v36 = vld [vmem:[%s2632_s11 + $0x140] ss:$8 sps:$4 sm:$0xff]   ;;  %v2369_v38 = vld [vmem:[%s2632_s11 + $0x154] ss:$8 sps:$4 sm:$0xff]   ;;  %v2372_v40 = vld [vmem:[%s2632_s11 + $0x150] ss:$8 sps:$4 sm:$0xff]  }
  0x1f   : > { %775 = vmatprep.subr.bf16.mxu0 %v2537_v1  ;;  %2189 = vmatprep.subr.bf16.mxu1 %v2537_v1  ;;  %v2373_v41 = vld [vmem:[%s2632_s11 + $0x64] ss:$8 sps:$4 sm:$0xff]   ;;  %v2377_v43 = vld [vmem:[%s2632_s11 + $0x60] ss:$8 sps:$4 sm:$0xff]   ;;  %v2379_v45 = vld [vmem:[%s2632_s11 + $0x74] ss:$8 sps:$4 sm:$0xff]  }
  0x20   : > { %v2375_v42 = vld [vmem:[%s2632_s11 + $0x164] ss:$8 sps:$4 sm:$0xff]   ;;  %v2378_v44 = vld [vmem:[%s2632_s11 + $0x160] ss:$8 sps:$4 sm:$0xff]   ;;  %v2381_v46 = vld [vmem:[%s2632_s11 + $0x174] ss:$8 sps:$4 sm:$0xff]  }
  0x21   : > { %v2383_v47 = vld [vmem:[%s2632_s11 + $0x70] ss:$8 sps:$4 sm:$0xff]   ;;  %v2385_v49 = vld [vmem:[%s2632_s11 + $0x84] ss:$8 sps:$4 sm:$0xff]   ;;  %v2389_v51 = vld [vmem:[%s2632_s11 + $0x80] ss:$8 sps:$4 sm:$0xff]  }
  0x22   : > { %776 = vmatpush1.bf16.msra.mxu0 %v2326_v7  ;;  %2205 = vmatpush1.bf16.msra.mxu1 %v2326_v7  ;;  %v2384_v48 = vld [vmem:[%s2632_s11 + $0x170] ss:$8 sps:$4 sm:$0xff]   ;;  %v2387_v50 = vld [vmem:[%s2632_s11 + $0x184] ss:$8 sps:$4 sm:$0xff]   ;;  %v2390_v52 = vld [vmem:[%s2632_s11 + $0x180] ss:$8 sps:$4 sm:$0xff]  }
  0x23   : > { %777 = vmatprep.subr.bf16.mxu0 %v2537_v1  ;;  %2190 = vmatprep.subr.bf16.mxu1 %v2537_v1  ;;  %v2391_v53 = vld [vmem:[%s2632_s11 + $0x94] ss:$8 sps:$4 sm:$0xff]   ;;  %v2395_v55 = vld [vmem:[%s2632_s11 + $0x90] ss:$8 sps:$4 sm:$0xff]   ;;  %v2397_v57 = vld [vmem:[%s2632_s11 + $0xa4] ss:$8 sps:$4 sm:$0xff]  }
  0x24   : > { %v2393_v54 = vld [vmem:[%s2632_s11 + $0x194] ss:$8 sps:$4 sm:$0xff]   ;;  %v2396_v56 = vld [vmem:[%s2632_s11 + $0x190] ss:$8 sps:$4 sm:$0xff]   ;;  %v2399_v58 = vld [vmem:[%s2632_s11 + $0x1a4] ss:$8 sps:$4 sm:$0xff]  }
  0x25   : > { %v2401_v59 = vld [vmem:[%s2632_s11 + $0xa0] ss:$8 sps:$4 sm:$0xff]   ;;  %v2403_v61 = vld [vmem:[%s2632_s11 + $0xb4] ss:$8 sps:$4 sm:$0xff]   ;;  %v2407_v63 = vld [vmem:[%s2632_s11 + $0xb0] ss:$8 sps:$4 sm:$0xff]  }
  0x26   : > { %778 = vmatpush1.bf16.msra.mxu0 %v2327_v9  ;;  %2206 = vmatpush1.bf16.msra.mxu1 %v2327_v9  ;;  %v2402_v60 = vld [vmem:[%s2632_s11 + $0x1a0] ss:$8 sps:$4 sm:$0xff]   ;;  %v2405_v62 = vld [vmem:[%s2632_s11 + $0x1b4] ss:$8 sps:$4 sm:$0xff]   ;;  %v2408_v0 = vld [vmem:[%s2632_s11 + $0x1b0] ss:$8 sps:$4 sm:$0xff]  }
  0x27   : > { %779 = vmatprep.subr.bf16.mxu0 %v2537_v1  ;;  %2191 = vmatprep.subr.bf16.mxu1 %v2537_v1  ;;  %v2411_v2 = vld [vmem:[%s2632_s11 + $0x1c4] ss:$8 sps:$4 sm:$0xff]   ;;  %v2413_v3 = vld [vmem:[%s2632_s11 + $0xc0] ss:$8 sps:$4 sm:$0xff]   ;;  %v2415_v5 = vld [vmem:[%s2632_s11 + $0xd4] ss:$8 sps:$4 sm:$0xff]  }
  0x28   : > { %v2414_v4 = vld [vmem:[%s2632_s11 + $0x1c0] ss:$8 sps:$4 sm:$0xff]   ;;  %v2417_v6 = vld [vmem:[%s2632_s11 + $0x1d4] ss:$8 sps:$4 sm:$0xff]   ;;  %v2419_v7 = vld [vmem:[%s2632_s11 + $0xd0] ss:$8 sps:$4 sm:$0xff]  }
  0x29   : > { %v2420_v8 = vld [vmem:[%s2632_s11 + $0x1d0] ss:$8 sps:$4 sm:$0xff]   ;;  %v2421_v9 = vld [vmem:[%s2632_s11 + $0xe4] ss:$8 sps:$4 sm:$0xff]  }
  0x2a   : > { %780 = vmatpush1.bf16.msra.mxu0 %v2328_v10  ;;  %2207 = vmatpush1.bf16.msra.mxu1 %v2328_v10  ;;  %v2423_v10 = vld [vmem:[%s2632_s11 + $0x1e4] ss:$8 sps:$4 sm:$0xff]  }
  0x2b   : > { %781 = vmatprep.subr.bf16.mxu0 %v2537_v1  ;;  %2192 = vmatprep.subr.bf16.mxu1 %v2537_v1 }
  0x2e   : > { %782 = vmatpush1.bf16.msra.mxu0 %v2329_v11  ;;  %2208 = vmatpush1.bf16.msra.mxu1 %v2329_v11  ;;  %v2425_v11 = vld [vmem:[%s2632_s11 + $0xe0] ss:$8 sps:$4 sm:$0xff]  }
  0x2f   : > { %783 = vmatprep.subr.bf16.mxu0 %v2537_v1  ;;  %2193 = vmatprep.subr.bf16.mxu1 %v2537_v1 }
  0x32   : > { %784 = vmatpush1.bf16.msra.mxu0 %v2330_v12  ;;  %2209 = vmatpush1.bf16.msra.mxu1 %v2330_v12  ;;  %v2426_v12 = vld [vmem:[%s2632_s11 + $0x1e0] ss:$8 sps:$4 sm:$0xff]  }
  0x33   : > { %785 = vmatprep.subr.bf16.mxu0 %v2537_v1  ;;  %2194 = vmatprep.subr.bf16.mxu1 %v2537_v1 }
  0x36   : > { %786 = vmatpush1.bf16.msra.mxu0 %v2331_v13  ;;  %2210 = vmatpush1.bf16.msra.mxu1 %v2331_v13  ;;  %v2427_v13 = vld [vmem:[%s2632_s11 + $0xf4] ss:$8 sps:$4 sm:$0xff]  }
  0x37   : > { %787 = vmatprep.subr.bf16.mxu0 %v2537_v1  ;;  %2195 = vmatprep.subr.bf16.mxu1 %v2537_v1 }
  0x3a   : > { %788 = vmatpush1.bf16.msra.mxu0 %v2332_v14  ;;  %2211 = vmatpush1.bf16.msra.mxu1 %v2332_v14  ;;  %v2429_v14 = vld [vmem:[%s2632_s11 + $0x1f4] ss:$8 sps:$4 sm:$0xff]  }
  0x3b   : > { %789 = vmatprep.subr.bf16.mxu0 %v2537_v1  ;;  %2196 = vmatprep.subr.bf16.mxu1 %v2537_v1 }
  0x3e   : > { %790 = vmatpush1.bf16.msra.mxu0 %v2333_v15  ;;  %2212 = vmatpush1.bf16.msra.mxu1 %v2333_v15  ;;  %v2431_v15 = vld [vmem:[%s2632_s11 + $0xf0] ss:$8 sps:$4 sm:$0xff]  }
  0x3f   : > { %791 = vmatprep.subr.bf16.mxu0 %v2537_v1  ;;  %2197 = vmatprep.subr.bf16.mxu1 %v2537_v1 }
  0x42   : > { %792 = vmatpush1.bf16.msra.mxu0 %v2334_v16  ;;  %2213 = vmatpush1.bf16.msra.mxu1 %v2334_v16  ;;  %v2432_v16 = vld [vmem:[%s2632_s11 + $0x1f0] ss:$8 sps:$4 sm:$0xff]  }
  0x43   : > { %793 = vmatprep.subr.bf16.mxu0 %v2537_v1  ;;  %2198 = vmatprep.subr.bf16.mxu1 %v2537_v1 }
  0x46   : > { %794 = vmatpush1.bf16.msra.mxu0 %v2335_v17  ;;  %2214 = vmatpush1.bf16.msra.mxu1 %v2335_v17  ;;  %v2759_v17 = vld [vmem:[%s3161_s2] ss:$0 sm:$0xff] }
  0x47   : > { %795 = vmatprep.subr.bf16.mxu0 %v2537_v1  ;;  %2199 = vmatprep.subr.bf16.mxu1 %v2537_v1  ;;  %v2409_v1 = vld [vmem:[%s2632_s11 + $0xc4] ss:$8 sps:$4 sm:$0xff]   ;;  %s1447_s11 = ssub.s32 (%p2590_p3), 100, %s2607_s25 }
  0x48   : > { %p1448_p9 = scmp.lt.s32.totalorder (%p2590_p3), %s1447_s11, 64 }
  0x4a   : > { %796 = vmatpush1.bf16.msra.mxu0 %v2336_v18  ;;  %2215 = vmatpush1.bf16.msra.mxu1 %v2336_v18 }
  0x4d   : > { %798 = vmatmul.mubr.bf16.vlgmr.msra.gmra.mrb[0].mxu0 %v2337_v19  ;;  %926 = vmatmul.mubr.bf16.vlgmr.msra.gmra.mrb[0].mxu1 %v2340_v20 }
  0x4e   : > { %805 = vmatprep.mubr.bf16.mxu0 %v2343_v21  ;;  %933 = vmatprep.mubr.bf16.mxu1 %v2345_v22 }
  0x55   : > { %806 = vmatmul.mubr.bf16.gmra.mrb[4].mxu0 %v2347_v23  ;;  %934 = vmatmul.mubr.bf16.gmra.mrb[4].mxu1 %v2348_v24 }
  0x56   : > { %813 = vmatprep.mubr.bf16.mxu0 %v2349_v25  ;;  %941 = vmatprep.mubr.bf16.mxu1 %v2351_v26 }
  0x5d   : > { %814 = vmatmul.mubr.bf16.gmra.mrb[8].mxu0 %v2353_v27  ;;  %942 = vmatmul.mubr.bf16.gmra.mrb[8].mxu1 %v2354_v28 }
  0x5e   : > { %821 = vmatprep.mubr.bf16.mxu0 %v2355_v29  ;;  %949 = vmatprep.mubr.bf16.mxu1 %v2357_v30 }
  0x65   : > { %822 = vmatmul.mubr.bf16.gmra.mrb[12].mxu0 %v2359_v31  ;;  %950 = vmatmul.mubr.bf16.gmra.mrb[12].mxu1 %v2360_v32 }
  0x66   : > { %829 = vmatprep.mubr.bf16.mxu0 %v2361_v33  ;;  %957 = vmatprep.mubr.bf16.mxu1 %v2363_v34 }
  0x6d   : > { %830 = vmatmul.mubr.bf16.gmra.mrb[16].mxu0 %v2365_v35  ;;  %958 = vmatmul.mubr.bf16.gmra.mrb[16].mxu1 %v2366_v36 }
  0x6e   : > { %837 = vmatprep.mubr.bf16.mxu0 %v2367_v37  ;;  %965 = vmatprep.mubr.bf16.mxu1 %v2369_v38 }
  0x75   : > { %838 = vmatmul.mubr.bf16.gmra.mrb[20].mxu0 %v2371_v39  ;;  %966 = vmatmul.mubr.bf16.gmra.mrb[20].mxu1 %v2372_v40 }
  0x76   : > { %845 = vmatprep.mubr.bf16.mxu0 %v2373_v41  ;;  %973 = vmatprep.mubr.bf16.mxu1 %v2375_v42 }
  0x7d   : > { %846 = vmatmul.mubr.bf16.gmra.mrb[24].mxu0 %v2377_v43  ;;  %974 = vmatmul.mubr.bf16.gmra.mrb[24].mxu1 %v2378_v44 }
  0x7e   : > { %853 = vmatprep.mubr.bf16.mxu0 %v2379_v45  ;;  %981 = vmatprep.mubr.bf16.mxu1 %v2381_v46 }
  0x85   : > { %854 = vmatmul.mubr.bf16.gmra.mrb[28].mxu0 %v2383_v47  ;;  %982 = vmatmul.mubr.bf16.gmra.mrb[28].mxu1 %v2384_v48 }
  0x86   : > { %861 = vmatprep.mubr.bf16.mxu0 %v2385_v49  ;;  %989 = vmatprep.mubr.bf16.mxu1 %v2387_v50 }
  0x8d   : > { %862 = vmatmul.mubr.bf16.gmra.mrb[32].mxu0 %v2389_v51  ;;  %990 = vmatmul.mubr.bf16.gmra.mrb[32].mxu1 %v2390_v52 }
  0x8e   : > { %869 = vmatprep.mubr.bf16.mxu0 %v2391_v53  ;;  %997 = vmatprep.mubr.bf16.mxu1 %v2393_v54 }
  0x95   : > { %870 = vmatmul.mubr.bf16.gmra.mrb[36].mxu0 %v2395_v55  ;;  %998 = vmatmul.mubr.bf16.gmra.mrb[36].mxu1 %v2396_v56 }
  0x96   : > { %877 = vmatprep.mubr.bf16.mxu0 %v2397_v57  ;;  %1005 = vmatprep.mubr.bf16.mxu1 %v2399_v58 }
  0x9d   : > { %878 = vmatmul.mubr.bf16.gmra.mrb[40].mxu0 %v2401_v59  ;;  %1006 = vmatmul.mubr.bf16.gmra.mrb[40].mxu1 %v2402_v60 }
  0x9e   : > { %885 = vmatprep.mubr.bf16.mxu0 %v2403_v61  ;;  %1013 = vmatprep.mubr.bf16.mxu1 %v2405_v62 }
  0xa5   : > { %886 = vmatmul.mubr.bf16.gmra.mrb[44].mxu0 %v2407_v63  ;;  %1014 = vmatmul.mubr.bf16.gmra.mrb[44].mxu1 %v2408_v0 }
  0xa6   : > { %893 = vmatprep.mubr.bf16.mxu0 %v2409_v1  ;;  %1021 = vmatprep.mubr.bf16.mxu1 %v2411_v2 }
  0xad   : > { %894 = vmatmul.mubr.bf16.gmra.mrb[48].mxu0 %v2413_v3  ;;  %1022 = vmatmul.mubr.bf16.gmra.mrb[48].mxu1 %v2414_v4 }
  0xae   : > { %901 = vmatprep.mubr.bf16.mxu0 %v2415_v5  ;;  %1029 = vmatprep.mubr.bf16.mxu1 %v2417_v6 }
  0xb5   : > { %902 = vmatmul.mubr.bf16.gmra.mrb[52].mxu0 %v2419_v7  ;;  %1030 = vmatmul.mubr.bf16.gmra.mrb[52].mxu1 %v2420_v8 }
  0xb6   : > { %909 = vmatprep.mubr.bf16.mxu0 %v2421_v9  ;;  %1037 = vmatprep.mubr.bf16.mxu1 %v2423_v10 }
  0xbd   : > { %910 = vmatmul.mubr.bf16.gmra.mrb[56].mxu0 %v2425_v11  ;;  %1038 = vmatmul.mubr.bf16.gmra.mrb[56].mxu1 %v2426_v12 }
  0xbe   : > { %917 = vmatprep.mubr.bf16.mxu0 %v2427_v13  ;;  %1045 = vmatprep.mubr.bf16.mxu1 %v2429_v14 }
  0xc5   : > { %918 = vmatmul.mubr.bf16.gmra.mrb[60].mxu0 %v2431_v15  ;;  %1046 = vmatmul.mubr.bf16.gmra.mrb[60].mxu1 %v2432_v16 }
 0x120   : > { %v799_v18 = vpop.f32.mrb[0].mxu0  ;;  %v927_v19 = vpop.f32.mrb[0].mxu1 }
 0x121   : > { %v800_v20 = vadd.f32 %v2759_v17, %v799_v18  ;;  %v928_v21 = vadd.f32 %v2759_v17, %v927_v19  ;;  %v801_v22 = vpop.f32.mrb[1].mxu0  ;;  %v929_v23 = vpop.f32.mrb[1].mxu1 }
 0x122   : > { %v802_v24 = vpop.f32.mrb[2].mxu0  ;;  %v930_v25 = vpop.f32.mrb[2].mxu1 }
 0x123   : > { %v1054_v26 = vmax.f32 %v800_v20, 0.0  ;;  %v1086_v27 = vmax.f32 %v928_v21, 0.0  ;;  %v803_v28 = vadd.f32 %v2759_v17, %v802_v24  ;;  %v931_v29 = vadd.f32 %v2759_v17, %v930_v25  ;;  %v804_v30 = vpop.f32.mrb[3].mxu0  ;;  %v932_v31 = vpop.f32.mrb[3].mxu1 }
 0x125   : > { %v2117_v32 = vpack.c.bf16 %v1054_v26, %v1054_v26  ;;  %v2149_v33 = vpack.c.bf16 %v1086_v27, %v1086_v27  ;;  %v1055_v34 = vmax.f32 %v803_v28, 0.0  ;;  %v1087_v35 = vmax.f32 %v931_v29, 0.0 }
 0x127   : > { %1375 = vst.msk [vmem:[%s2765_s12] sm:$0xf] %vm1374_vm0, %v2117_v32  ;;  %1407 = vst.msk [vmem:[%s2765_s12 + $0x80] sm:$0xf] %vm1374_vm0, %v2149_v33  ;;  %v2118_v36 = vpack.c.bf16 %v1055_v34, %v1055_v34  ;;  %v2150_v37 = vpack.c.bf16 %v1087_v35, %v1087_v35 }
 0x128   : > { %v807_v38 = vpop.f32.mrb[4].mxu0  ;;  %v935_v39 = vpop.f32.mrb[4].mxu1 }
 0x129   : > { %1376 = vst.msk [vmem:[%s2765_s12 + $0x4] sm:$0xf] %vm1374_vm0, %v2118_v36  ;;  %1408 = vst.msk [vmem:[%s2765_s12 + $0x84] sm:$0xf] %vm1374_vm0, %v2150_v37  ;;  %v808_v40 = vadd.f32 %v2759_v17, %v807_v38  ;;  %v936_v41 = vadd.f32 %v2759_v17, %v935_v39  ;;  %v809_v42 = vpop.f32.mrb[5].mxu0  ;;  %v937_v43 = vpop.f32.mrb[5].mxu1 }
 0x12a   : > { %v810_v44 = vpop.f32.mrb[6].mxu0  ;;  %v938_v45 = vpop.f32.mrb[6].mxu1 }
 0x12b   : > { %v1056_v46 = vmax.f32 %v808_v40, 0.0  ;;  %v1088_v47 = vmax.f32 %v936_v41, 0.0  ;;  %v811_v48 = vadd.f32 %v2759_v17, %v810_v44  ;;  %v939_v49 = vadd.f32 %v2759_v17, %v938_v45  ;;  %v812_v50 = vpop.f32.mrb[7].mxu0  ;;  %v940_v51 = vpop.f32.mrb[7].mxu1 }
 0x12d   : > { %v2119_v52 = vpack.c.bf16 %v1056_v46, %v1056_v46  ;;  %v2151_v53 = vpack.c.bf16 %v1088_v47, %v1088_v47  ;;  %v1057_v54 = vmax.f32 %v811_v48, 0.0  ;;  %v1089_v55 = vmax.f32 %v939_v49, 0.0 }
 0x12f   : > { %1377 = vst.msk [vmem:[%s2765_s12 + $0x8] sm:$0xf] %vm1374_vm0, %v2119_v52  ;;  %1409 = vst.msk [vmem:[%s2765_s12 + $0x88] sm:$0xf] %vm1374_vm0, %v2151_v53  ;;  %v2120_v56 = vpack.c.bf16 %v1057_v54, %v1057_v54  ;;  %v2152_v57 = vpack.c.bf16 %v1089_v55, %v1089_v55 }
 0x130   : > { %v815_v58 = vpop.f32.mrb[8].mxu0  ;;  %v943_v59 = vpop.f32.mrb[8].mxu1 }
 0x131   : > { %1378 = vst.msk [vmem:[%s2765_s12 + $0xc] sm:$0xf] %vm1374_vm0, %v2120_v56  ;;  %1410 = vst.msk [vmem:[%s2765_s12 + $0x8c] sm:$0xf] %vm1374_vm0, %v2152_v57  ;;  %v816_v60 = vadd.f32 %v2759_v17, %v815_v58  ;;  %v944_v61 = vadd.f32 %v2759_v17, %v943_v59  ;;  %v817_v62 = vpop.f32.mrb[9].mxu0  ;;  %v945_v63 = vpop.f32.mrb[9].mxu1 }
 0x132   : > { %v818_v0 = vpop.f32.mrb[10].mxu0  ;;  %v946_v1 = vpop.f32.mrb[10].mxu1 }
 0x133   : > { %v1058_v2 = vmax.f32 %v816_v60, 0.0  ;;  %v1090_v3 = vmax.f32 %v944_v61, 0.0  ;;  %v819_v4 = vadd.f32 %v2759_v17, %v818_v0  ;;  %v947_v5 = vadd.f32 %v2759_v17, %v946_v1  ;;  %v820_v6 = vpop.f32.mrb[11].mxu0  ;;  %v948_v7 = vpop.f32.mrb[11].mxu1 }
 0x135   : > { %v2121_v8 = vpack.c.bf16 %v1058_v2, %v1058_v2  ;;  %v2153_v9 = vpack.c.bf16 %v1090_v3, %v1090_v3  ;;  %v1059_v10 = vmax.f32 %v819_v4, 0.0  ;;  %v1091_v11 = vmax.f32 %v947_v5, 0.0 }
 0x137   : > { %1379 = vst.msk [vmem:[%s2765_s12 + $0x10] sm:$0xf] %vm1374_vm0, %v2121_v8  ;;  %1411 = vst.msk [vmem:[%s2765_s12 + $0x90] sm:$0xf] %vm1374_vm0, %v2153_v9  ;;  %v2122_v12 = vpack.c.bf16 %v1059_v10, %v1059_v10  ;;  %v2154_v13 = vpack.c.bf16 %v1091_v11, %v1091_v11 }
 0x138   : > { %v823_v14 = vpop.f32.mrb[12].mxu0  ;;  %v951_v15 = vpop.f32.mrb[12].mxu1 }
 0x139   : > { %1380 = vst.msk [vmem:[%s2765_s12 + $0x14] sm:$0xf] %vm1374_vm0, %v2122_v12  ;;  %1412 = vst.msk [vmem:[%s2765_s12 + $0x94] sm:$0xf] %vm1374_vm0, %v2154_v13  ;;  %v824_v16 = vadd.f32 %v2759_v17, %v823_v14  ;;  %v952_v18 = vadd.f32 %v2759_v17, %v951_v15  ;;  %v825_v19 = vpop.f32.mrb[13].mxu0  ;;  %v953_v20 = vpop.f32.mrb[13].mxu1 }
 0x13a   : > { %v826_v21 = vpop.f32.mrb[14].mxu0  ;;  %v954_v22 = vpop.f32.mrb[14].mxu1 }
 0x13b   : > { %v1060_v23 = vmax.f32 %v824_v16, 0.0  ;;  %v1092_v24 = vmax.f32 %v952_v18, 0.0  ;;  %v827_v25 = vadd.f32 %v2759_v17, %v826_v21  ;;  %v955_v26 = vadd.f32 %v2759_v17, %v954_v22  ;;  %v828_v27 = vpop.f32.mrb[15].mxu0  ;;  %v956_v28 = vpop.f32.mrb[15].mxu1 }
 0x13d   : > { %v2123_v29 = vpack.c.bf16 %v1060_v23, %v1060_v23  ;;  %v2155_v30 = vpack.c.bf16 %v1092_v24, %v1092_v24  ;;  %v1061_v31 = vmax.f32 %v827_v25, 0.0  ;;  %v1093_v32 = vmax.f32 %v955_v26, 0.0 }
 0x13f   : > { %1381 = vst.msk [vmem:[%s2765_s12 + $0x18] sm:$0xf] %vm1374_vm0, %v2123_v29  ;;  %1413 = vst.msk [vmem:[%s2765_s12 + $0x98] sm:$0xf] %vm1374_vm0, %v2155_v30  ;;  %v2124_v33 = vpack.c.bf16 %v1061_v31, %v1061_v31  ;;  %v2156_v34 = vpack.c.bf16 %v1093_v32, %v1093_v32 }
 0x140   : > { %v831_v35 = vpop.f32.mrb[16].mxu0  ;;  %v959_v36 = vpop.f32.mrb[16].mxu1 }
 0x141   : > { %1382 = vst.msk [vmem:[%s2765_s12 + $0x1c] sm:$0xf] %vm1374_vm0, %v2124_v33  ;;  %1414 = vst.msk [vmem:[%s2765_s12 + $0x9c] sm:$0xf] %vm1374_vm0, %v2156_v34  ;;  %v832_v37 = vadd.f32 %v2759_v17, %v831_v35  ;;  %v960_v38 = vadd.f32 %v2759_v17, %v959_v36  ;;  %v833_v39 = vpop.f32.mrb[17].mxu0  ;;  %v961_v40 = vpop.f32.mrb[17].mxu1 }
 0x142   : > { %v834_v41 = vpop.f32.mrb[18].mxu0  ;;  %v962_v42 = vpop.f32.mrb[18].mxu1 }
 0x143   : > { %v1062_v43 = vmax.f32 %v832_v37, 0.0  ;;  %v1094_v44 = vmax.f32 %v960_v38, 0.0  ;;  %v835_v45 = vadd.f32 %v2759_v17, %v834_v41  ;;  %v963_v46 = vadd.f32 %v2759_v17, %v962_v42  ;;  %v836_v47 = vpop.f32.mrb[19].mxu0  ;;  %v964_v48 = vpop.f32.mrb[19].mxu1 }
 0x145   : > { %v2125_v49 = vpack.c.bf16 %v1062_v43, %v1062_v43  ;;  %v2157_v50 = vpack.c.bf16 %v1094_v44, %v1094_v44  ;;  %v1063_v51 = vmax.f32 %v835_v45, 0.0  ;;  %v1095_v52 = vmax.f32 %v963_v46, 0.0 }
 0x147   : > { %1383 = vst.msk [vmem:[%s2765_s12 + $0x20] sm:$0xf] %vm1374_vm0, %v2125_v49  ;;  %1415 = vst.msk [vmem:[%s2765_s12 + $0xa0] sm:$0xf] %vm1374_vm0, %v2157_v50  ;;  %v2126_v53 = vpack.c.bf16 %v1063_v51, %v1063_v51  ;;  %v2158_v54 = vpack.c.bf16 %v1095_v52, %v1095_v52 }
 0x148   : > { %v839_v55 = vpop.f32.mrb[20].mxu0  ;;  %v967_v56 = vpop.f32.mrb[20].mxu1 }
 0x149   : > { %1384 = vst.msk [vmem:[%s2765_s12 + $0x24] sm:$0xf] %vm1374_vm0, %v2126_v53  ;;  %1416 = vst.msk [vmem:[%s2765_s12 + $0xa4] sm:$0xf] %vm1374_vm0, %v2158_v54  ;;  %v840_v57 = vadd.f32 %v2759_v17, %v839_v55  ;;  %v968_v58 = vadd.f32 %v2759_v17, %v967_v56  ;;  %v841_v59 = vpop.f32.mrb[21].mxu0  ;;  %v969_v60 = vpop.f32.mrb[21].mxu1 }
 0x14a   : > { %v842_v61 = vpop.f32.mrb[22].mxu0  ;;  %v970_v62 = vpop.f32.mrb[22].mxu1 }
 0x14b   : > { %v1064_v63 = vmax.f32 %v840_v57, 0.0  ;;  %v1096_v0 = vmax.f32 %v968_v58, 0.0  ;;  %v843_v1 = vadd.f32 %v2759_v17, %v842_v61  ;;  %v971_v2 = vadd.f32 %v2759_v17, %v970_v62  ;;  %v844_v3 = vpop.f32.mrb[23].mxu0  ;;  %v972_v4 = vpop.f32.mrb[23].mxu1 }
 0x14d   : > { %v2127_v5 = vpack.c.bf16 %v1064_v63, %v1064_v63  ;;  %v2159_v6 = vpack.c.bf16 %v1096_v0, %v1096_v0  ;;  %v1065_v7 = vmax.f32 %v843_v1, 0.0  ;;  %v1097_v8 = vmax.f32 %v971_v2, 0.0 }
 0x14f   : > { %1385 = vst.msk [vmem:[%s2765_s12 + $0x28] sm:$0xf] %vm1374_vm0, %v2127_v5  ;;  %1417 = vst.msk [vmem:[%s2765_s12 + $0xa8] sm:$0xf] %vm1374_vm0, %v2159_v6  ;;  %v2128_v9 = vpack.c.bf16 %v1065_v7, %v1065_v7  ;;  %v2160_v10 = vpack.c.bf16 %v1097_v8, %v1097_v8 }
 0x150   : > { %v847_v11 = vpop.f32.mrb[24].mxu0  ;;  %v975_v12 = vpop.f32.mrb[24].mxu1 }
 0x151   : > { %1386 = vst.msk [vmem:[%s2765_s12 + $0x2c] sm:$0xf] %vm1374_vm0, %v2128_v9  ;;  %1418 = vst.msk [vmem:[%s2765_s12 + $0xac] sm:$0xf] %vm1374_vm0, %v2160_v10  ;;  %v848_v13 = vadd.f32 %v2759_v17, %v847_v11  ;;  %v976_v14 = vadd.f32 %v2759_v17, %v975_v12  ;;  %v849_v15 = vpop.f32.mrb[25].mxu0  ;;  %v977_v16 = vpop.f32.mrb[25].mxu1 }
 0x152   : > { %v850_v18 = vpop.f32.mrb[26].mxu0  ;;  %v978_v19 = vpop.f32.mrb[26].mxu1 }
 0x153   : > { %v1066_v20 = vmax.f32 %v848_v13, 0.0  ;;  %v1098_v21 = vmax.f32 %v976_v14, 0.0  ;;  %v851_v22 = vadd.f32 %v2759_v17, %v850_v18  ;;  %v979_v23 = vadd.f32 %v2759_v17, %v978_v19  ;;  %v852_v24 = vpop.f32.mrb[27].mxu0  ;;  %v980_v25 = vpop.f32.mrb[27].mxu1 }
 0x155   : > { %v2129_v26 = vpack.c.bf16 %v1066_v20, %v1066_v20  ;;  %v2161_v27 = vpack.c.bf16 %v1098_v21, %v1098_v21  ;;  %v1067_v28 = vmax.f32 %v851_v22, 0.0  ;;  %v1099_v29 = vmax.f32 %v979_v23, 0.0 }
 0x157   : > { %1387 = vst.msk [vmem:[%s2765_s12 + $0x30] sm:$0xf] %vm1374_vm0, %v2129_v26  ;;  %1419 = vst.msk [vmem:[%s2765_s12 + $0xb0] sm:$0xf] %vm1374_vm0, %v2161_v27  ;;  %v2130_v30 = vpack.c.bf16 %v1067_v28, %v1067_v28  ;;  %v2162_v31 = vpack.c.bf16 %v1099_v29, %v1099_v29 }
 0x158   : > { %v855_v32 = vpop.f32.mrb[28].mxu0  ;;  %v983_v33 = vpop.f32.mrb[28].mxu1 }
 0x159   : > { %1388 = vst.msk [vmem:[%s2765_s12 + $0x34] sm:$0xf] %vm1374_vm0, %v2130_v30  ;;  %1420 = vst.msk [vmem:[%s2765_s12 + $0xb4] sm:$0xf] %vm1374_vm0, %v2162_v31  ;;  %v856_v34 = vadd.f32 %v2759_v17, %v855_v32  ;;  %v984_v35 = vadd.f32 %v2759_v17, %v983_v33  ;;  %v857_v36 = vpop.f32.mrb[29].mxu0  ;;  %v985_v37 = vpop.f32.mrb[29].mxu1 }
 0x15a   : > { %v858_v38 = vpop.f32.mrb[30].mxu0  ;;  %v986_v39 = vpop.f32.mrb[30].mxu1 }
 0x15b   : > { %v1068_v40 = vmax.f32 %v856_v34, 0.0  ;;  %v1100_v41 = vmax.f32 %v984_v35, 0.0  ;;  %v859_v42 = vadd.f32 %v2759_v17, %v858_v38  ;;  %v987_v43 = vadd.f32 %v2759_v17, %v986_v39  ;;  %v860_v44 = vpop.f32.mrb[31].mxu0  ;;  %v988_v45 = vpop.f32.mrb[31].mxu1 }
 0x15d   : > { %v2131_v46 = vpack.c.bf16 %v1068_v40, %v1068_v40  ;;  %v2163_v47 = vpack.c.bf16 %v1100_v41, %v1100_v41  ;;  %v1069_v48 = vmax.f32 %v859_v42, 0.0  ;;  %v1101_v49 = vmax.f32 %v987_v43, 0.0 }
 0x15f   : > { %1389 = vst.msk [vmem:[%s2765_s12 + $0x38] sm:$0xf] %vm1374_vm0, %v2131_v46  ;;  %1421 = vst.msk [vmem:[%s2765_s12 + $0xb8] sm:$0xf] %vm1374_vm0, %v2163_v47  ;;  %v2132_v50 = vpack.c.bf16 %v1069_v48, %v1069_v48  ;;  %v2164_v51 = vpack.c.bf16 %v1101_v49, %v1101_v49 }
 0x160   : > { %v863_v52 = vpop.f32.mrb[32].mxu0  ;;  %v991_v53 = vpop.f32.mrb[32].mxu1 }
 0x161   : > { %1390 = vst.msk [vmem:[%s2765_s12 + $0x3c] sm:$0xf] %vm1374_vm0, %v2132_v50  ;;  %1422 = vst.msk [vmem:[%s2765_s12 + $0xbc] sm:$0xf] %vm1374_vm0, %v2164_v51  ;;  %v864_v54 = vadd.f32 %v2759_v17, %v863_v52  ;;  %v992_v55 = vadd.f32 %v2759_v17, %v991_v53  ;;  %v865_v56 = vpop.f32.mrb[33].mxu0  ;;  %v993_v57 = vpop.f32.mrb[33].mxu1 }
 0x162   : > { %v866_v58 = vpop.f32.mrb[34].mxu0  ;;  %v994_v59 = vpop.f32.mrb[34].mxu1 }
 0x163   : > { %v1070_v60 = vmax.f32 %v864_v54, 0.0  ;;  %v1102_v61 = vmax.f32 %v992_v55, 0.0  ;;  %v867_v62 = vadd.f32 %v2759_v17, %v866_v58  ;;  %v995_v63 = vadd.f32 %v2759_v17, %v994_v59  ;;  %v868_v0 = vpop.f32.mrb[35].mxu0  ;;  %v996_v1 = vpop.f32.mrb[35].mxu1 }
 0x165   : > { %v2133_v2 = vpack.c.bf16 %v1070_v60, %v1070_v60  ;;  %v2165_v3 = vpack.c.bf16 %v1102_v61, %v1102_v61  ;;  %v1071_v4 = vmax.f32 %v867_v62, 0.0  ;;  %v1103_v5 = vmax.f32 %v995_v63, 0.0 }
 0x167   : > { %1391 = vst.msk [vmem:[%s2765_s12 + $0x40] sm:$0xf] %vm1374_vm0, %v2133_v2  ;;  %1423 = vst.msk [vmem:[%s2765_s12 + $0xc0] sm:$0xf] %vm1374_vm0, %v2165_v3  ;;  %v2134_v6 = vpack.c.bf16 %v1071_v4, %v1071_v4  ;;  %v2166_v7 = vpack.c.bf16 %v1103_v5, %v1103_v5 }
 0x168   : > { %v871_v8 = vpop.f32.mrb[36].mxu0  ;;  %v999_v9 = vpop.f32.mrb[36].mxu1 }
 0x169   : > { %1392 = vst.msk [vmem:[%s2765_s12 + $0x44] sm:$0xf] %vm1374_vm0, %v2134_v6  ;;  %1424 = vst.msk [vmem:[%s2765_s12 + $0xc4] sm:$0xf] %vm1374_vm0, %v2166_v7  ;;  %v872_v10 = vadd.f32 %v2759_v17, %v871_v8  ;;  %v1000_v11 = vadd.f32 %v2759_v17, %v999_v9  ;;  %v873_v12 = vpop.f32.mrb[37].mxu0  ;;  %v1001_v13 = vpop.f32.mrb[37].mxu1 }
 0x16a   : > { %v874_v14 = vpop.f32.mrb[38].mxu0  ;;  %v1002_v15 = vpop.f32.mrb[38].mxu1 }
 0x16b   : > { %v1072_v16 = vmax.f32 %v872_v10, 0.0  ;;  %v1104_v18 = vmax.f32 %v1000_v11, 0.0  ;;  %v875_v19 = vadd.f32 %v2759_v17, %v874_v14  ;;  %v1003_v20 = vadd.f32 %v2759_v17, %v1002_v15  ;;  %v876_v21 = vpop.f32.mrb[39].mxu0  ;;  %v1004_v22 = vpop.f32.mrb[39].mxu1 }
 0x16d   : > { %v2135_v23 = vpack.c.bf16 %v1072_v16, %v1072_v16  ;;  %v2167_v24 = vpack.c.bf16 %v1104_v18, %v1104_v18  ;;  %v1073_v25 = vmax.f32 %v875_v19, 0.0  ;;  %v1105_v26 = vmax.f32 %v1003_v20, 0.0 }
 0x16f   : > { %1393 = vst.msk [vmem:[%s2765_s12 + $0x48] sm:$0xf] %vm1374_vm0, %v2135_v23  ;;  %1425 = vst.msk [vmem:[%s2765_s12 + $0xc8] sm:$0xf] %vm1374_vm0, %v2167_v24  ;;  %v2136_v27 = vpack.c.bf16 %v1073_v25, %v1073_v25  ;;  %v2168_v28 = vpack.c.bf16 %v1105_v26, %v1105_v26 }
 0x170   : > { %v879_v29 = vpop.f32.mrb[40].mxu0  ;;  %v1007_v30 = vpop.f32.mrb[40].mxu1 }
 0x171   : > { %1394 = vst.msk [vmem:[%s2765_s12 + $0x4c] sm:$0xf] %vm1374_vm0, %v2136_v27  ;;  %1426 = vst.msk [vmem:[%s2765_s12 + $0xcc] sm:$0xf] %vm1374_vm0, %v2168_v28  ;;  %v880_v31 = vadd.f32 %v2759_v17, %v879_v29  ;;  %v1008_v32 = vadd.f32 %v2759_v17, %v1007_v30  ;;  %v881_v33 = vpop.f32.mrb[41].mxu0  ;;  %v1009_v34 = vpop.f32.mrb[41].mxu1 }
 0x172   : > { %v882_v35 = vpop.f32.mrb[42].mxu0  ;;  %v1010_v36 = vpop.f32.mrb[42].mxu1 }
 0x173   : > { %v1074_v37 = vmax.f32 %v880_v31, 0.0  ;;  %v1106_v38 = vmax.f32 %v1008_v32, 0.0  ;;  %v883_v39 = vadd.f32 %v2759_v17, %v882_v35  ;;  %v1011_v40 = vadd.f32 %v2759_v17, %v1010_v36  ;;  %v884_v41 = vpop.f32.mrb[43].mxu0  ;;  %v1012_v42 = vpop.f32.mrb[43].mxu1 }
 0x175   : > { %v2137_v43 = vpack.c.bf16 %v1074_v37, %v1074_v37  ;;  %v2169_v44 = vpack.c.bf16 %v1106_v38, %v1106_v38  ;;  %v1075_v45 = vmax.f32 %v883_v39, 0.0  ;;  %v1107_v46 = vmax.f32 %v1011_v40, 0.0 }
 0x177   : > { %1395 = vst.msk [vmem:[%s2765_s12 + $0x50] sm:$0xf] %vm1374_vm0, %v2137_v43  ;;  %1427 = vst.msk [vmem:[%s2765_s12 + $0xd0] sm:$0xf] %vm1374_vm0, %v2169_v44  ;;  %v2138_v47 = vpack.c.bf16 %v1075_v45, %v1075_v45  ;;  %v2170_v48 = vpack.c.bf16 %v1107_v46, %v1107_v46 }
 0x178   : > { %v887_v49 = vpop.f32.mrb[44].mxu0  ;;  %v1015_v50 = vpop.f32.mrb[44].mxu1 }
 0x179   : > { %1396 = vst.msk [vmem:[%s2765_s12 + $0x54] sm:$0xf] %vm1374_vm0, %v2138_v47  ;;  %1428 = vst.msk [vmem:[%s2765_s12 + $0xd4] sm:$0xf] %vm1374_vm0, %v2170_v48  ;;  %v888_v51 = vadd.f32 %v2759_v17, %v887_v49  ;;  %v1016_v52 = vadd.f32 %v2759_v17, %v1015_v50  ;;  %v889_v53 = vpop.f32.mrb[45].mxu0  ;;  %v1017_v54 = vpop.f32.mrb[45].mxu1 }
 0x17a   : > { %v890_v55 = vpop.f32.mrb[46].mxu0  ;;  %v1018_v56 = vpop.f32.mrb[46].mxu1 }
 0x17b   : > { %v1076_v57 = vmax.f32 %v888_v51, 0.0  ;;  %v1108_v58 = vmax.f32 %v1016_v52, 0.0  ;;  %v891_v59 = vadd.f32 %v2759_v17, %v890_v55  ;;  %v1019_v60 = vadd.f32 %v2759_v17, %v1018_v56  ;;  %v892_v61 = vpop.f32.mrb[47].mxu0  ;;  %v1020_v62 = vpop.f32.mrb[47].mxu1 }
 0x17d   : > { %v2139_v63 = vpack.c.bf16 %v1076_v57, %v1076_v57  ;;  %v2171_v0 = vpack.c.bf16 %v1108_v58, %v1108_v58  ;;  %v1077_v1 = vmax.f32 %v891_v59, 0.0  ;;  %v1109_v2 = vmax.f32 %v1019_v60, 0.0 }
 0x17f   : > { %1397 = vst.msk [vmem:[%s2765_s12 + $0x58] sm:$0xf] %vm1374_vm0, %v2139_v63  ;;  %1429 = vst.msk [vmem:[%s2765_s12 + $0xd8] sm:$0xf] %vm1374_vm0, %v2171_v0  ;;  %v2140_v3 = vpack.c.bf16 %v1077_v1, %v1077_v1  ;;  %v2172_v4 = vpack.c.bf16 %v1109_v2, %v1109_v2 }
 0x180   : > { %v895_v5 = vpop.f32.mrb[48].mxu0  ;;  %v1023_v6 = vpop.f32.mrb[48].mxu1 }
 0x181   : > { %1398 = vst.msk [vmem:[%s2765_s12 + $0x5c] sm:$0xf] %vm1374_vm0, %v2140_v3  ;;  %1430 = vst.msk [vmem:[%s2765_s12 + $0xdc] sm:$0xf] %vm1374_vm0, %v2172_v4  ;;  %v896_v7 = vadd.f32 %v2759_v17, %v895_v5  ;;  %v1024_v8 = vadd.f32 %v2759_v17, %v1023_v6  ;;  %v897_v9 = vpop.f32.mrb[49].mxu0  ;;  %v1025_v10 = vpop.f32.mrb[49].mxu1 }
 0x182   : > { %v898_v11 = vpop.f32.mrb[50].mxu0  ;;  %v1026_v12 = vpop.f32.mrb[50].mxu1 }
 0x183   : > { %v1078_v13 = vmax.f32 %v896_v7, 0.0  ;;  %v1110_v14 = vmax.f32 %v1024_v8, 0.0  ;;  %v899_v15 = vadd.f32 %v2759_v17, %v898_v11  ;;  %v1027_v16 = vadd.f32 %v2759_v17, %v1026_v12  ;;  %v900_v18 = vpop.f32.mrb[51].mxu0  ;;  %v1028_v19 = vpop.f32.mrb[51].mxu1 }
 0x185   : > { %v2141_v20 = vpack.c.bf16 %v1078_v13, %v1078_v13  ;;  %v2173_v21 = vpack.c.bf16 %v1110_v14, %v1110_v14  ;;  %v1079_v22 = vmax.f32 %v899_v15, 0.0  ;;  %v1111_v23 = vmax.f32 %v1027_v16, 0.0 }
 0x187   : > { %1399 = vst.msk [vmem:[%s2765_s12 + $0x60] sm:$0xf] %vm1374_vm0, %v2141_v20  ;;  %1431 = vst.msk [vmem:[%s2765_s12 + $0xe0] sm:$0xf] %vm1374_vm0, %v2173_v21  ;;  %v2142_v24 = vpack.c.bf16 %v1079_v22, %v1079_v22  ;;  %v2174_v25 = vpack.c.bf16 %v1111_v23, %v1111_v23 }
 0x188   : > { %v903_v26 = vpop.f32.mrb[52].mxu0  ;;  %v1031_v27 = vpop.f32.mrb[52].mxu1 }
 0x189   : > { %1400 = vst.msk [vmem:[%s2765_s12 + $0x64] sm:$0xf] %vm1374_vm0, %v2142_v24  ;;  %1432 = vst.msk [vmem:[%s2765_s12 + $0xe4] sm:$0xf] %vm1374_vm0, %v2174_v25  ;;  %v904_v28 = vadd.f32 %v2759_v17, %v903_v26  ;;  %v1032_v29 = vadd.f32 %v2759_v17, %v1031_v27  ;;  %v905_v30 = vpop.f32.mrb[53].mxu0  ;;  %v1033_v31 = vpop.f32.mrb[53].mxu1 }
 0x18a   : > { %v906_v32 = vpop.f32.mrb[54].mxu0  ;;  %v1034_v33 = vpop.f32.mrb[54].mxu1 }
 0x18b   : > { %v1080_v34 = vmax.f32 %v904_v28, 0.0  ;;  %v1112_v35 = vmax.f32 %v1032_v29, 0.0  ;;  %v907_v36 = vadd.f32 %v2759_v17, %v906_v32  ;;  %v1035_v37 = vadd.f32 %v2759_v17, %v1034_v33  ;;  %v908_v38 = vpop.f32.mrb[55].mxu0  ;;  %v1036_v39 = vpop.f32.mrb[55].mxu1 }
 0x18d   : > { %v2143_v40 = vpack.c.bf16 %v1080_v34, %v1080_v34  ;;  %v2175_v41 = vpack.c.bf16 %v1112_v35, %v1112_v35  ;;  %v1081_v42 = vmax.f32 %v907_v36, 0.0  ;;  %v1113_v43 = vmax.f32 %v1035_v37, 0.0 }
 0x18f   : > { %1401 = vst.msk [vmem:[%s2765_s12 + $0x68] sm:$0xf] %vm1374_vm0, %v2143_v40  ;;  %1433 = vst.msk [vmem:[%s2765_s12 + $0xe8] sm:$0xf] %vm1374_vm0, %v2175_v41  ;;  %v2144_v44 = vpack.c.bf16 %v1081_v42, %v1081_v42  ;;  %v2176_v45 = vpack.c.bf16 %v1113_v43, %v1113_v43 }
 0x190   : > { %v911_v46 = vpop.f32.mrb[56].mxu0  ;;  %v1039_v47 = vpop.f32.mrb[56].mxu1 }
 0x191   : > { %1402 = vst.msk [vmem:[%s2765_s12 + $0x6c] sm:$0xf] %vm1374_vm0, %v2144_v44  ;;  %1434 = vst.msk [vmem:[%s2765_s12 + $0xec] sm:$0xf] %vm1374_vm0, %v2176_v45  ;;  %v912_v48 = vadd.f32 %v2759_v17, %v911_v46  ;;  %v1040_v49 = vadd.f32 %v2759_v17, %v1039_v47  ;;  %v913_v50 = vpop.f32.mrb[57].mxu0  ;;  %v1041_v51 = vpop.f32.mrb[57].mxu1 }
 0x192   : > { %v914_v52 = vpop.f32.mrb[58].mxu0  ;;  %v1042_v53 = vpop.f32.mrb[58].mxu1 }
 0x193   : > { %v1082_v54 = vmax.f32 %v912_v48, 0.0  ;;  %v1114_v55 = vmax.f32 %v1040_v49, 0.0  ;;  %v915_v56 = vadd.f32 %v2759_v17, %v914_v52  ;;  %v1043_v57 = vadd.f32 %v2759_v17, %v1042_v53  ;;  %v916_v58 = vpop.f32.mrb[59].mxu0  ;;  %v1044_v59 = vpop.f32.mrb[59].mxu1 }
 0x195   : > { %v2145_v60 = vpack.c.bf16 %v1082_v54, %v1082_v54  ;;  %v2177_v61 = vpack.c.bf16 %v1114_v55, %v1114_v55  ;;  %v1083_v62 = vmax.f32 %v915_v56, 0.0  ;;  %v1115_v63 = vmax.f32 %v1043_v57, 0.0 }
 0x197   : > { %1403 = vst.msk [vmem:[%s2765_s12 + $0x70] sm:$0xf] %vm1374_vm0, %v2145_v60  ;;  %1435 = vst.msk [vmem:[%s2765_s12 + $0xf0] sm:$0xf] %vm1374_vm0, %v2177_v61  ;;  %v2146_v0 = vpack.c.bf16 %v1083_v62, %v1083_v62  ;;  %v2178_v1 = vpack.c.bf16 %v1115_v63, %v1115_v63 }
 0x198   : > { %v919_v2 = vpop.f32.mrb[60].mxu0  ;;  %v1047_v3 = vpop.f32.mrb[60].mxu1 }
 0x199   : > { %1404 = vst.msk [vmem:[%s2765_s12 + $0x74] sm:$0xf] %vm1374_vm0, %v2146_v0  ;;  %1436 = vst.msk [vmem:[%s2765_s12 + $0xf4] sm:$0xf] %vm1374_vm0, %v2178_v1  ;;  %v920_v4 = vadd.f32 %v2759_v17, %v919_v2  ;;  %v1048_v5 = vadd.f32 %v2759_v17, %v1047_v3  ;;  %v921_v6 = vpop.f32.mrb[61].mxu0  ;;  %v1049_v7 = vpop.f32.mrb[61].mxu1 }
 0x19a   : > { %v922_v8 = vpop.f32.mrb[62].mxu0  ;;  %v1050_v9 = vpop.f32.mrb[62].mxu1 }
 0x19b   : > { %v1084_v10 = vmax.f32 %v920_v4, 0.0  ;;  %v1116_v11 = vmax.f32 %v1048_v5, 0.0  ;;  %v923_v12 = vadd.f32 %v2759_v17, %v922_v8  ;;  %v1051_v13 = vadd.f32 %v2759_v17, %v1050_v9  ;;  %v924_v14 = vpop.f32.mrb[63].mxu0  ;;  %v1052_v15 = vpop.f32.mrb[63].mxu1  ;;  %1445 = sbr.rel (!%p2590_p3) target bundleno = 509 (0x1fd), region = 36 }
 0x19d   : > { %v2147_v16 = vpack.c.bf16 %v1084_v10, %v1084_v10  ;;  %v2179_v18 = vpack.c.bf16 %v1116_v11, %v1116_v11  ;;  %v1085_v19 = vmax.f32 %v923_v12, 0.0  ;;  %v1117_v20 = vmax.f32 %v1051_v13, 0.0 }
 0x19f   : > { %1405 = vst.msk [vmem:[%s2765_s12 + $0x78] sm:$0xf] %vm1374_vm0, %v2147_v16  ;;  %1437 = vst.msk [vmem:[%s2765_s12 + $0xf8] sm:$0xf] %vm1374_vm0, %v2179_v18  ;;  %v2148_v21 = vpack.c.bf16 %v1085_v19, %v1085_v19  ;;  %v2180_v22 = vpack.c.bf16 %v1117_v20, %v1117_v20 }
 0x1a1   : > { %1406 = vst.msk [vmem:[%s2765_s12 + $0x7c] sm:$0xf] %vm1374_vm0, %v2148_v21  ;;  %1438 = vst.msk [vmem:[%s2765_s12 + $0xfc] sm:$0xf] %vm1374_vm0, %v2180_v22 }
 0x1a2   : > { %s3174_s11 = smov (!%p1448_p9, %s1447_s11), 64 }
 0x1a3   : > { %s2101_s7 = sshll.u32 %s3174_s11, 6 }
 0x1a4   : > { %p2104_p10 = scmp.eq.s32.totalorder %s2101_s7, 0 }
 0x1a5   : > { %s2968_s8 = sshrl.u32 (!%p2104_p10), %s3174_s11, 6 }
 0x1a6   : > { %1457 = sbr.rel (%p2104_p10) target bundleno = 509 (0x1fd), region = 40  ;;  %p2105_p11 = scmp.le.s32.totalorder (!%p2104_p10), %s2968_s8, 0 }
 0x1ad   : > { %1873 = sbr.rel (%p2105_p11) target bundleno = 488 (0x1e8), region = 118  ;;  %s3164_s14 = smov (!%p2105_p11), %s2962_s6 }
 0x1ae   : > { %s3165_s20 = smov (!%p2105_p11), %s2765_s12  ;;  %s2977_s25 = smov (!%p2105_p11), 0  }
 0x1af   : > { %s2979_s9 = smov (!%p2105_p11), 0  }
 0x1b4 LB: >> { %v1473_v17 = vld [vmem:[%s2511_s20] sm:$0xf]  ;;  %v1475_v23 = vld [vmem:[%s2511_s20 + $0x4] sm:$0xf]  ;;  %v1477_v24 = vld [vmem:[%s2511_s20 + $0x8] sm:$0xf]  ;;  %s2519_s9 = sphi %s2979_s9, %s1467_s9   ;;  %s2515_s25 = sphi %s2977_s25, %s3166_s25   ;;  %s2511_s20 = sphi %s3165_s20, %s1606_s20   ;;  %s2507_s14 = sphi %s3164_s14, %s1607_s14  }
 0x1b5   : >> { %1474 = vst [vmem:[%s2507_s14] sm:$0xf] %v1473_v17  ;;  %1476 = vst [vmem:[%s2507_s14 + $0x4] sm:$0xf] %v1475_v23  ;;  %v1479_v25 = vld [vmem:[%s2511_s20 + $0xc] sm:$0xf]  ;;  %s1601_s10 = sadd.s32 1, %s2515_s25 }
 0x1b6   : >> { %1478 = vst [vmem:[%s2507_s14 + $0x8] sm:$0xf] %v1477_v24  ;;  %v1481_v26 = vld [vmem:[%s2511_s20 + $0x10] sm:$0xf]  ;;  %v1483_v27 = vld [vmem:[%s2511_s20 + $0x14] sm:$0xf]  ;;  %p1602_p12 = scmp.ge.s32.totalorder %s1601_s10, %s2968_s8 }
 0x1b7   : >> { %1480 = vst [vmem:[%s2507_s14 + $0xc] sm:$0xf] %v1479_v25  ;;  %1482 = vst [vmem:[%s2507_s14 + $0x10] sm:$0xf] %v1481_v26  ;;  %v1485_v28 = vld [vmem:[%s2511_s20 + $0x18] sm:$0xf] }
 0x1b8   : >> { %1484 = vst [vmem:[%s2507_s14 + $0x14] sm:$0xf] %v1483_v27  ;;  %v1487_v29 = vld [vmem:[%s2511_s20 + $0x1c] sm:$0xf]  ;;  %v1489_v30 = vld [vmem:[%s2511_s20 + $0x20] sm:$0xf] }
 0x1b9   : >> { %1486 = vst [vmem:[%s2507_s14 + $0x18] sm:$0xf] %v1485_v28  ;;  %1488 = vst [vmem:[%s2507_s14 + $0x1c] sm:$0xf] %v1487_v29  ;;  %v1491_v31 = vld [vmem:[%s2511_s20 + $0x24] sm:$0xf] }
 0x1ba   : >> { %1490 = vst [vmem:[%s2507_s14 + $0x20] sm:$0xf] %v1489_v30  ;;  %v1493_v32 = vld [vmem:[%s2511_s20 + $0x28] sm:$0xf]  ;;  %v1495_v33 = vld [vmem:[%s2511_s20 + $0x2c] sm:$0xf] }
 0x1bb   : >> { %1492 = vst [vmem:[%s2507_s14 + $0x24] sm:$0xf] %v1491_v31  ;;  %1494 = vst [vmem:[%s2507_s14 + $0x28] sm:$0xf] %v1493_v32  ;;  %v1497_v34 = vld [vmem:[%s2511_s20 + $0x30] sm:$0xf] }
 0x1bc   : >> { %1496 = vst [vmem:[%s2507_s14 + $0x2c] sm:$0xf] %v1495_v33  ;;  %v1499_v35 = vld [vmem:[%s2511_s20 + $0x34] sm:$0xf]  ;;  %v1501_v36 = vld [vmem:[%s2511_s20 + $0x38] sm:$0xf] }
 0x1bd   : >> { %1498 = vst [vmem:[%s2507_s14 + $0x30] sm:$0xf] %v1497_v34  ;;  %1500 = vst [vmem:[%s2507_s14 + $0x34] sm:$0xf] %v1499_v35  ;;  %v1503_v37 = vld [vmem:[%s2511_s20 + $0x3c] sm:$0xf] }
 0x1be   : >> { %1502 = vst [vmem:[%s2507_s14 + $0x38] sm:$0xf] %v1501_v36  ;;  %v1505_v38 = vld [vmem:[%s2511_s20 + $0x40] sm:$0xf]  ;;  %v1507_v39 = vld [vmem:[%s2511_s20 + $0x44] sm:$0xf] }
 0x1bf   : >> { %1504 = vst [vmem:[%s2507_s14 + $0x3c] sm:$0xf] %v1503_v37  ;;  %1506 = vst [vmem:[%s2507_s14 + $0x40] sm:$0xf] %v1505_v38  ;;  %v1509_v40 = vld [vmem:[%s2511_s20 + $0x48] sm:$0xf] }
 0x1c0   : >> { %1508 = vst [vmem:[%s2507_s14 + $0x44] sm:$0xf] %v1507_v39  ;;  %v1511_v41 = vld [vmem:[%s2511_s20 + $0x4c] sm:$0xf]  ;;  %v1513_v42 = vld [vmem:[%s2511_s20 + $0x50] sm:$0xf] }
 0x1c1   : >> { %1510 = vst [vmem:[%s2507_s14 + $0x48] sm:$0xf] %v1509_v40  ;;  %1512 = vst [vmem:[%s2507_s14 + $0x4c] sm:$0xf] %v1511_v41  ;;  %v1515_v43 = vld [vmem:[%s2511_s20 + $0x54] sm:$0xf] }
 0x1c2   : >> { %1514 = vst [vmem:[%s2507_s14 + $0x50] sm:$0xf] %v1513_v42  ;;  %v1517_v44 = vld [vmem:[%s2511_s20 + $0x58] sm:$0xf]  ;;  %v1519_v45 = vld [vmem:[%s2511_s20 + $0x5c] sm:$0xf] }
 0x1c3   : >> { %1516 = vst [vmem:[%s2507_s14 + $0x54] sm:$0xf] %v1515_v43  ;;  %1518 = vst [vmem:[%s2507_s14 + $0x58] sm:$0xf] %v1517_v44  ;;  %v1521_v46 = vld [vmem:[%s2511_s20 + $0x60] sm:$0xf] }
 0x1c4   : >> { %1520 = vst [vmem:[%s2507_s14 + $0x5c] sm:$0xf] %v1519_v45  ;;  %v1523_v47 = vld [vmem:[%s2511_s20 + $0x64] sm:$0xf]  ;;  %v1525_v48 = vld [vmem:[%s2511_s20 + $0x68] sm:$0xf] }
 0x1c5   : >> { %1522 = vst [vmem:[%s2507_s14 + $0x60] sm:$0xf] %v1521_v46  ;;  %1524 = vst [vmem:[%s2507_s14 + $0x64] sm:$0xf] %v1523_v47  ;;  %v1527_v49 = vld [vmem:[%s2511_s20 + $0x6c] sm:$0xf] }
 0x1c6   : >> { %1526 = vst [vmem:[%s2507_s14 + $0x68] sm:$0xf] %v1525_v48  ;;  %v1529_v50 = vld [vmem:[%s2511_s20 + $0x70] sm:$0xf]  ;;  %v1531_v51 = vld [vmem:[%s2511_s20 + $0x74] sm:$0xf] }
 0x1c7   : >> { %1528 = vst [vmem:[%s2507_s14 + $0x6c] sm:$0xf] %v1527_v49  ;;  %1530 = vst [vmem:[%s2507_s14 + $0x70] sm:$0xf] %v1529_v50  ;;  %v1533_v52 = vld [vmem:[%s2511_s20 + $0x78] sm:$0xf] }
 0x1c8   : >> { %1532 = vst [vmem:[%s2507_s14 + $0x74] sm:$0xf] %v1531_v51  ;;  %v1535_v53 = vld [vmem:[%s2511_s20 + $0x7c] sm:$0xf]  ;;  %v1537_v54 = vld [vmem:[%s2511_s20 + $0x80] sm:$0xf] }
 0x1c9   : >> { %1534 = vst [vmem:[%s2507_s14 + $0x78] sm:$0xf] %v1533_v52  ;;  %1536 = vst [vmem:[%s2507_s14 + $0x7c] sm:$0xf] %v1535_v53  ;;  %v1539_v55 = vld [vmem:[%s2511_s20 + $0x84] sm:$0xf] }
 0x1ca   : >> { %1538 = vst [vmem:[%s2507_s14 + $0x80] sm:$0xf] %v1537_v54  ;;  %v1541_v56 = vld [vmem:[%s2511_s20 + $0x88] sm:$0xf]  ;;  %v1543_v57 = vld [vmem:[%s2511_s20 + $0x8c] sm:$0xf] }
 0x1cb   : >> { %1540 = vst [vmem:[%s2507_s14 + $0x84] sm:$0xf] %v1539_v55  ;;  %1542 = vst [vmem:[%s2507_s14 + $0x88] sm:$0xf] %v1541_v56  ;;  %v1545_v58 = vld [vmem:[%s2511_s20 + $0x90] sm:$0xf] }
 0x1cc   : >> { %1544 = vst [vmem:[%s2507_s14 + $0x8c] sm:$0xf] %v1543_v57  ;;  %v1547_v59 = vld [vmem:[%s2511_s20 + $0x94] sm:$0xf]  ;;  %v1549_v60 = vld [vmem:[%s2511_s20 + $0x98] sm:$0xf] }
 0x1cd   : >> { %1546 = vst [vmem:[%s2507_s14 + $0x90] sm:$0xf] %v1545_v58  ;;  %1548 = vst [vmem:[%s2507_s14 + $0x94] sm:$0xf] %v1547_v59  ;;  %v1551_v61 = vld [vmem:[%s2511_s20 + $0x9c] sm:$0xf] }
 0x1ce   : >> { %1550 = vst [vmem:[%s2507_s14 + $0x98] sm:$0xf] %v1549_v60  ;;  %v1553_v62 = vld [vmem:[%s2511_s20 + $0xa0] sm:$0xf]  ;;  %v1555_v63 = vld [vmem:[%s2511_s20 + $0xa4] sm:$0xf] }
 0x1cf   : >> { %1552 = vst [vmem:[%s2507_s14 + $0x9c] sm:$0xf] %v1551_v61  ;;  %1554 = vst [vmem:[%s2507_s14 + $0xa0] sm:$0xf] %v1553_v62  ;;  %v1557_v0 = vld [vmem:[%s2511_s20 + $0xa8] sm:$0xf] }
 0x1d0   : >> { %1556 = vst [vmem:[%s2507_s14 + $0xa4] sm:$0xf] %v1555_v63  ;;  %v1559_v1 = vld [vmem:[%s2511_s20 + $0xac] sm:$0xf]  ;;  %v1561_v2 = vld [vmem:[%s2511_s20 + $0xb0] sm:$0xf] }
 0x1d1   : >> { %1558 = vst [vmem:[%s2507_s14 + $0xa8] sm:$0xf] %v1557_v0  ;;  %1560 = vst [vmem:[%s2507_s14 + $0xac] sm:$0xf] %v1559_v1  ;;  %v1563_v3 = vld [vmem:[%s2511_s20 + $0xb4] sm:$0xf] }
 0x1d2   : >> { %1562 = vst [vmem:[%s2507_s14 + $0xb0] sm:$0xf] %v1561_v2  ;;  %v1565_v4 = vld [vmem:[%s2511_s20 + $0xb8] sm:$0xf]  ;;  %v1567_v5 = vld [vmem:[%s2511_s20 + $0xbc] sm:$0xf] }
 0x1d3   : >> { %1564 = vst [vmem:[%s2507_s14 + $0xb4] sm:$0xf] %v1563_v3  ;;  %1566 = vst [vmem:[%s2507_s14 + $0xb8] sm:$0xf] %v1565_v4  ;;  %v1569_v6 = vld [vmem:[%s2511_s20 + $0xc0] sm:$0xf] }
 0x1d4   : >> { %1568 = vst [vmem:[%s2507_s14 + $0xbc] sm:$0xf] %v1567_v5  ;;  %v1571_v7 = vld [vmem:[%s2511_s20 + $0xc4] sm:$0xf]  ;;  %v1573_v8 = vld [vmem:[%s2511_s20 + $0xc8] sm:$0xf] }
 0x1d5   : >> { %1570 = vst [vmem:[%s2507_s14 + $0xc0] sm:$0xf] %v1569_v6  ;;  %1572 = vst [vmem:[%s2507_s14 + $0xc4] sm:$0xf] %v1571_v7  ;;  %v1575_v9 = vld [vmem:[%s2511_s20 + $0xcc] sm:$0xf] }
 0x1d6   : >> { %1574 = vst [vmem:[%s2507_s14 + $0xc8] sm:$0xf] %v1573_v8  ;;  %v1577_v10 = vld [vmem:[%s2511_s20 + $0xd0] sm:$0xf]  ;;  %v1579_v11 = vld [vmem:[%s2511_s20 + $0xd4] sm:$0xf] }
 0x1d7   : >> { %1576 = vst [vmem:[%s2507_s14 + $0xcc] sm:$0xf] %v1575_v9  ;;  %1578 = vst [vmem:[%s2507_s14 + $0xd0] sm:$0xf] %v1577_v10  ;;  %v1581_v12 = vld [vmem:[%s2511_s20 + $0xd8] sm:$0xf] }
 0x1d8   : >> { %1580 = vst [vmem:[%s2507_s14 + $0xd4] sm:$0xf] %v1579_v11  ;;  %v1583_v13 = vld [vmem:[%s2511_s20 + $0xdc] sm:$0xf]  ;;  %v1585_v14 = vld [vmem:[%s2511_s20 + $0xe0] sm:$0xf] }
 0x1d9   : >> { %1582 = vst [vmem:[%s2507_s14 + $0xd8] sm:$0xf] %v1581_v12  ;;  %1584 = vst [vmem:[%s2507_s14 + $0xdc] sm:$0xf] %v1583_v13  ;;  %v1587_v15 = vld [vmem:[%s2511_s20 + $0xe4] sm:$0xf] }
 0x1da   : >> { %1586 = vst [vmem:[%s2507_s14 + $0xe0] sm:$0xf] %v1585_v14  ;;  %v1589_v16 = vld [vmem:[%s2511_s20 + $0xe8] sm:$0xf]  ;;  %v1591_v18 = vld [vmem:[%s2511_s20 + $0xec] sm:$0xf] }
 0x1db   : >> { %1588 = vst [vmem:[%s2507_s14 + $0xe4] sm:$0xf] %v1587_v15  ;;  %1590 = vst [vmem:[%s2507_s14 + $0xe8] sm:$0xf] %v1589_v16  ;;  %v1593_v19 = vld [vmem:[%s2511_s20 + $0xf0] sm:$0xf] }
 0x1dc   : >> { %1592 = vst [vmem:[%s2507_s14 + $0xec] sm:$0xf] %v1591_v18  ;;  %v1595_v20 = vld [vmem:[%s2511_s20 + $0xf4] sm:$0xf]  ;;  %v1597_v21 = vld [vmem:[%s2511_s20 + $0xf8] sm:$0xf] }
 0x1dd   : >> { %1594 = vst [vmem:[%s2507_s14 + $0xf0] sm:$0xf] %v1593_v19  ;;  %1596 = vst [vmem:[%s2507_s14 + $0xf4] sm:$0xf] %v1595_v20  ;;  %v1599_v22 = vld [vmem:[%s2511_s20 + $0xfc] sm:$0xf] }
 0x1de   : >> { %1598 = vst [vmem:[%s2507_s14 + $0xf8] sm:$0xf] %v1597_v21  ;;  %1600 = vst [vmem:[%s2507_s14 + $0xfc] sm:$0xf] %v1599_v22  ;;  %s3176_s10 = smov (%p1602_p12, %s1601_s10), 0  ;;  %s1467_s9 = sadd.s32 1, %s2519_s9  }
 0x1df   : >> { %s2106_s17 = sshll.u32 %s3176_s10, 8  ;;  %p1466_p13 = scmp.ge.s32.totalorder %s1467_s9, %s2968_s8 }
 0x1e0   : >> { %s1606_s20 = scalar_lea.vmem %s2765_s12, %s2106_s17 [#allocation2]   ;;  %s1607_s14 = scalar_lea.vmem %s2962_s6, %s2106_s17  }
 0x1e1   : >> { %s3166_s25 = smov %s3176_s10  ;;  %1469 = sbr.rel (!%p1466_p13) target bundleno = 436 (0x1b4), region = 124 }
 0x1e8 PF: > { %s3136_s19 = sand.u32 63, %s3174_s11   ;;  %s2182_s21 = sshll.u32 %s2968_s8, 8 }
 0x1e9   : > { %s1612_s23 = scalar_lea.vmem %s2765_s12, %s2182_s21 [#allocation2]   ;;  %s1614_s24 = scalar_lea.vmem %s2962_s6, %s2182_s21  }
 0x1ea   : > { %p2111_p0 = scmp.le.s32.totalorder %s3136_s19, 0 }
 0x1eb   : > { %s2521_s26 = smov (!%p2111_p0), %s1614_s24   ;;  %s2525_s27 = smov (!%p2111_p0), %s1612_s23  }
 0x1ec   : > { %1887 = sbr.rel (%p2111_p0) target bundleno = 509 (0x1fd), region = 129  ;;  %s2529_s28 = smov (!%p2111_p0), 0  }
 0x1ed   : > { %s2533_s29 = smov (!%p2111_p0), 0  }
 0x1f3 LB: >> { %v1624_v17 = vld [vmem:[%s2527_s27] sm:$0xf]  ;;  %s1626_s11 = sadd.s32 1, %s2531_s28  ;;  %s1618_s29 = sadd.s32 1, %s2535_s29   ;;  %s2535_s29 = sphi %s2533_s29, %s1618_s29   ;;  %s2531_s28 = sphi %s2529_s28, %s2530_s28   ;;  %s2527_s27 = sphi %s2525_s27, %s1631_s27   ;;  %s2523_s26 = sphi %s2521_s26, %s1632_s26  }
 0x1f4   : >> { %1625 = vst [vmem:[%s2523_s26] sm:$0xf] %v1624_v17  ;;  %p1627_p1 = scmp.ge.s32.totalorder %s1626_s11, %s3136_s19  ;;  %p1617_p2 = scmp.ge.s32.totalorder %s1618_s29, %s3136_s19 }
 0x1f6   : >> { %s3178_s11 = smov (%p1627_p1, %s1626_s11), 0  ;;  %1620 = sbr.rel (!%p1617_p2) target bundleno = 499 (0x1f3), region = 135 }
 0x1f7   : >> { %s2112_s12 = sshll.u32 %s3178_s11, 2  ;;  %s2530_s28 = smov %s3178_s11  }
 0x1f8   : >> { %s1631_s27 = scalar_lea.vmem %s1612_s23, %s2112_s12 [#allocation2]   ;;  %s1632_s26 = scalar_lea.vmem %s1614_s24, %s2112_s12  }
 0x1fd PF: > { %s13_s16 = sadd.s32 1, %s2503_s16   ;;  %s3167_s12 = smov %s2491_s13 }
 0x1fe   : > { %p10_p3 = scmp.ge.s32.totalorder %s13_s16, 4   ;;  %s3168_s13 = smov %s2599_s22 }
 0x1ff   : > { %s3169_s14 = smov %s2499_s15  ;;  %s3170_s15 = smov %s3172_s18 }
 0x200   :  { %12 = sbr.rel (!%p10_p3) target bundleno = 3 (0x3), region = 146 }

// kernel: dueling_network_forward.6
= control target key start
LH: loop header
LB: loop body
LE: loop exit
PB: predicated region body
PF: predicated region fallthrough
CT: control target
= control target key end

     0   :  { %vm880_vm0 = vcmask 519168   ;;  %vm901_vm1 = vcmask 516096   ;;  %s1637_s1 = inlined_call_operand.vmem [shape: bf16[512,64], index: 1, kind: input, shape index: {}]   ;;  %s1638_s0 = inlined_call_operand.vmem [shape: bf16[162,512], index: 0, kind: input, shape index: {}]   ;;  %s1639_s2 = inlined_call_operand.vmem [shape: f32[1,64], index: 2, kind: input, shape index: {}]   ;;  %s1640_s3 = inlined_call_operand.vmem [shape: bf16[162,64], index: 3, kind: output, shape index: {}]  }
   0x1   :  { %v1190_v0 = vld [vmem:[%s1637_s1 + $0x40] sm:$0xff]   ;;  %v1194_v4 = vld [vmem:[%s1637_s1 + $0x48] sm:$0xff]   ;;  %v1198_v8 = vld [vmem:[%s1637_s1 + $0x50] sm:$0xff]  }
   0x2   :  { %v1191_v1 = vld [vmem:[%s1637_s1 + $0xc0] sm:$0xff]   ;;  %1026 = vmatprep.subr.bf16.mxu0 %v1190_v0  ;;  %v1195_v5 = vld [vmem:[%s1637_s1 + $0xc8] sm:$0xff]   ;;  %v1199_v9 = vld [vmem:[%s1637_s1 + $0xd0] sm:$0xff]  }
   0x3   :  { %v1192_v2 = vld [vmem:[%s1637_s1] sm:$0xff]   ;;  %1108 = vmatprep.subr.bf16.mxu1 %v1191_v1  ;;  %v1196_v6 = vld [vmem:[%s1637_s1 + $0x8] sm:$0xff]   ;;  %v1200_v10 = vld [vmem:[%s1637_s1 + $0x10] sm:$0xff]  }
   0x4   :  { %v1193_v3 = vld [vmem:[%s1637_s1 + $0x80] sm:$0xff]   ;;  %1027 = vmatpush3.bf16.msra.mxu0 %v1192_v2  ;;  %v1197_v7 = vld [vmem:[%s1637_s1 + $0x88] sm:$0xff]   ;;  %v1201_v11 = vld [vmem:[%s1637_s1 + $0x90] sm:$0xff]  }
   0x5   :  { %1109 = vmatpush3.bf16.msra.mxu1 %v1193_v3  ;;  %1028 = vmatprep.subr.bf16.mxu0 %v1194_v4  ;;  %v1202_v12 = vld [vmem:[%s1637_s1 + $0x58] sm:$0xff]   ;;  %v1206_v16 = vld [vmem:[%s1637_s1 + $0x60] sm:$0xff]   ;;  %v1210_v20 = vld [vmem:[%s1637_s1 + $0x68] sm:$0xff]  }
   0x6   :  { %1110 = vmatprep.subr.bf16.mxu1 %v1195_v5  ;;  %v1203_v13 = vld [vmem:[%s1637_s1 + $0xd8] sm:$0xff]   ;;  %v1207_v17 = vld [vmem:[%s1637_s1 + $0xe0] sm:$0xff]   ;;  %v1211_v21 = vld [vmem:[%s1637_s1 + $0xe8] sm:$0xff]  }
   0x7   :  { %v1204_v14 = vld [vmem:[%s1637_s1 + $0x18] sm:$0xff]   ;;  %v1208_v18 = vld [vmem:[%s1637_s1 + $0x20] sm:$0xff]   ;;  %v1212_v22 = vld [vmem:[%s1637_s1 + $0x28] sm:$0xff]  }
   0x8   :  { %1029 = vmatpush3.bf16.msra.mxu0 %v1196_v6  ;;  %v1205_v15 = vld [vmem:[%s1637_s1 + $0x98] sm:$0xff]   ;;  %v1209_v19 = vld [vmem:[%s1637_s1 + $0xa0] sm:$0xff]   ;;  %v1213_v23 = vld [vmem:[%s1637_s1 + $0xa8] sm:$0xff]  }
   0x9   :  { %1111 = vmatpush3.bf16.msra.mxu1 %v1197_v7  ;;  %1030 = vmatprep.subr.bf16.mxu0 %v1198_v8  ;;  %v1214_v24 = vld [vmem:[%s1637_s1 + $0x70] sm:$0xff]   ;;  %v1218_v28 = vld [vmem:[%s1637_s1 + $0x78] sm:$0xff]   ;;  %v55_v6 = vld [vmem:[%s1638_s0 + $0x140] sm:$0x11] }
   0xa   :  { %1112 = vmatprep.subr.bf16.mxu1 %v1199_v9  ;;  %v1215_v25 = vld [vmem:[%s1637_s1 + $0xf0] sm:$0xff]   ;;  %v1219_v29 = vld [vmem:[%s1637_s1 + $0xf8] sm:$0xff]   ;;  %v56_v7 = vld [vmem:[%s1638_s0 + $0x148] sm:$0x11] }
   0xb   :  { %v1216_v26 = vld [vmem:[%s1637_s1 + $0x30] sm:$0xff]   ;;  %v1220_v30 = vld [vmem:[%s1637_s1 + $0x38] sm:$0xff]  }
   0xc   :  { %1031 = vmatpush3.bf16.msra.mxu0 %v1200_v10  ;;  %v1217_v27 = vld [vmem:[%s1637_s1 + $0xb0] sm:$0xff]   ;;  %v1221_v31 = vld [vmem:[%s1637_s1 + $0xb8] sm:$0xff]   ;;  %v949_v10 = vcombine.high %v55_v6, %v55_v6 }
   0xd   :  { %1113 = vmatpush3.bf16.msra.mxu1 %v1201_v11  ;;  %1032 = vmatprep.subr.bf16.mxu0 %v1202_v12  ;;  %v1222_v32 = vld [vmem:[%s1638_s0] ss:$16 sps:$4 sm:$0xff]   ;;  %v1224_v33 = vld [vmem:[%s1638_s0 + $0x4] ss:$16 sps:$4 sm:$0xff]   ;;  %v1225_v34 = vld [vmem:[%s1638_s0 + $0x8] ss:$16 sps:$4 sm:$0xff]   ;;  %v951_v11 = vcombine.high %v56_v7, %v56_v7  ;;  %v948_v12 = vcombine.low %v55_v6, %v55_v6 }
   0xe   :  { %1114 = vmatprep.subr.bf16.mxu1 %v1203_v13  ;;  %v1227_v35 = vld [vmem:[%s1638_s0 + $0xc] ss:$16 sps:$4 sm:$0xff]   ;;  %566 = vmatprep.mubr.bf16.mxu0 %v1224_v33  ;;  %v1228_v36 = vld [vmem:[%s1638_s0 + $0x24] ss:$16 sps:$4 sm:$0xff]   ;;  %v1232_v38 = vld [vmem:[%s1638_s0 + $0x20] ss:$16 sps:$4 sm:$0xff]   ;;  %v950_v13 = vcombine.low %v56_v7, %v56_v7 }
   0xf   :  { %686 = vmatprep.mubr.bf16.mxu1 %v1227_v35  ;;  %v1230_v37 = vld [vmem:[%s1638_s0 + $0x2c] ss:$16 sps:$4 sm:$0xff]   ;;  %v1233_v39 = vld [vmem:[%s1638_s0 + $0x28] ss:$16 sps:$4 sm:$0xff]   ;;  %v1234_v40 = vld [vmem:[%s1638_s0 + $0x44] ss:$16 sps:$4 sm:$0xff]  }
  0x10   :  { %1033 = vmatpush3.bf16.msra.mxu0 %v1204_v14  ;;  %v1236_v41 = vld [vmem:[%s1638_s0 + $0x4c] ss:$16 sps:$4 sm:$0xff]   ;;  %v1238_v42 = vld [vmem:[%s1638_s0 + $0x40] ss:$16 sps:$4 sm:$0xff]   ;;  %v1239_v43 = vld [vmem:[%s1638_s0 + $0x48] ss:$16 sps:$4 sm:$0xff]  }
  0x11   :  { %1115 = vmatpush3.bf16.msra.mxu1 %v1205_v15  ;;  %1034 = vmatprep.subr.bf16.mxu0 %v1206_v16  ;;  %v1240_v44 = vld [vmem:[%s1638_s0 + $0x64] ss:$16 sps:$4 sm:$0xff]   ;;  %v1242_v45 = vld [vmem:[%s1638_s0 + $0x6c] ss:$16 sps:$4 sm:$0xff]   ;;  %v1244_v46 = vld [vmem:[%s1638_s0 + $0x60] ss:$16 sps:$4 sm:$0xff]  }
  0x12   :  { %1116 = vmatprep.subr.bf16.mxu1 %v1207_v17  ;;  %v1245_v47 = vld [vmem:[%s1638_s0 + $0x68] ss:$16 sps:$4 sm:$0xff]   ;;  %v1246_v48 = vld [vmem:[%s1638_s0 + $0x84] ss:$16 sps:$4 sm:$0xff]   ;;  %v1248_v49 = vld [vmem:[%s1638_s0 + $0x8c] ss:$16 sps:$4 sm:$0xff]  }
  0x13   :  { %v1250_v50 = vld [vmem:[%s1638_s0 + $0x80] ss:$16 sps:$4 sm:$0xff]   ;;  %v1251_v51 = vld [vmem:[%s1638_s0 + $0x88] ss:$16 sps:$4 sm:$0xff]   ;;  %v1252_v52 = vld [vmem:[%s1638_s0 + $0xa4] ss:$16 sps:$4 sm:$0xff]  }
  0x14   :  { %1035 = vmatpush3.bf16.msra.mxu0 %v1208_v18  ;;  %v1254_v53 = vld [vmem:[%s1638_s0 + $0xac] ss:$16 sps:$4 sm:$0xff]   ;;  %v1256_v54 = vld [vmem:[%s1638_s0 + $0xa0] ss:$16 sps:$4 sm:$0xff]   ;;  %v1257_v55 = vld [vmem:[%s1638_s0 + $0xa8] ss:$16 sps:$4 sm:$0xff]  }
  0x15   :  { %1117 = vmatpush3.bf16.msra.mxu1 %v1209_v19  ;;  %1036 = vmatprep.subr.bf16.mxu0 %v1210_v20  ;;  %v1258_v56 = vld [vmem:[%s1638_s0 + $0xc4] ss:$16 sps:$4 sm:$0xff]   ;;  %v1260_v57 = vld [vmem:[%s1638_s0 + $0xcc] ss:$16 sps:$4 sm:$0xff]   ;;  %v1262_v58 = vld [vmem:[%s1638_s0 + $0xc0] ss:$16 sps:$4 sm:$0xff]  }
  0x16   :  { %1118 = vmatprep.subr.bf16.mxu1 %v1211_v21  ;;  %v1263_v59 = vld [vmem:[%s1638_s0 + $0xc8] ss:$16 sps:$4 sm:$0xff]   ;;  %v1264_v60 = vld [vmem:[%s1638_s0 + $0xe4] ss:$16 sps:$4 sm:$0xff]   ;;  %v1266_v61 = vld [vmem:[%s1638_s0 + $0xec] ss:$16 sps:$4 sm:$0xff]  }
  0x17   :  { %v1268_v62 = vld [vmem:[%s1638_s0 + $0xe0] ss:$16 sps:$4 sm:$0xff]   ;;  %v1269_v63 = vld [vmem:[%s1638_s0 + $0xe8] ss:$16 sps:$4 sm:$0xff]   ;;  %v1270_v0 = vld [vmem:[%s1638_s0 + $0x104] ss:$16 sps:$4 sm:$0xff]  }
  0x18   :  { %1037 = vmatpush3.bf16.msra.mxu0 %v1212_v22  ;;  %v1272_v1 = vld [vmem:[%s1638_s0 + $0x10c] ss:$16 sps:$4 sm:$0xff]   ;;  %v1274_v2 = vld [vmem:[%s1638_s0 + $0x100] ss:$16 sps:$4 sm:$0xff]   ;;  %v1275_v3 = vld [vmem:[%s1638_s0 + $0x108] ss:$16 sps:$4 sm:$0xff]  }
  0x19   :  { %1119 = vmatpush3.bf16.msra.mxu1 %v1213_v23  ;;  %1038 = vmatprep.subr.bf16.mxu0 %v1214_v24  ;;  %v1276_v4 = vld [vmem:[%s1638_s0 + $0x124] ss:$16 sps:$4 sm:$0xff]   ;;  %v1278_v5 = vld [vmem:[%s1638_s0 + $0x12c] ss:$16 sps:$4 sm:$0xff]   ;;  %v1280_v8 = vld [vmem:[%s1638_s0 + $0x120] ss:$16 sps:$4 sm:$0xff]  }
  0x1a   :  { %1120 = vmatprep.subr.bf16.mxu1 %v1215_v25  ;;  %v1281_v9 = vld [vmem:[%s1638_s0 + $0x128] ss:$16 sps:$4 sm:$0xff]   ;;  %v1531_v16 = vld [vmem:[%s1639_s2] ss:$0 sm:$0xff] }
  0x1c   :  { %1039 = vmatpush3.bf16.msra.mxu0 %v1216_v26 }
  0x1d   :  { %1121 = vmatpush3.bf16.msra.mxu1 %v1217_v27  ;;  %1040 = vmatprep.subr.bf16.mxu0 %v1218_v28 }
  0x1e   :  { %1122 = vmatprep.subr.bf16.mxu1 %v1219_v29 }
  0x20   :  { %1041 = vmatpush3.bf16.msra.mxu0 %v1220_v30 }
  0x21   :  { %1123 = vmatpush3.bf16.msra.mxu1 %v1221_v31 }
  0x23   :  { %567 = vmatmul.mubr.bf16.vlgmr.msra.gmra.mrb[0].mxu0 %v1222_v32 }
  0x24   :  { %687 = vmatmul.mubr.bf16.vlgmr.msra.gmra.mrb[0].mxu1 %v1225_v34  ;;  %574 = vmatprep.mubr.bf16.mxu0 %v1228_v36 }
  0x25   :  { %694 = vmatprep.mubr.bf16.mxu1 %v1230_v37 }
  0x2b   :  { %575 = vmatmul.mubr.bf16.gmra.mrb[4].mxu0 %v1232_v38 }
  0x2c   :  { %695 = vmatmul.mubr.bf16.gmra.mrb[4].mxu1 %v1233_v39  ;;  %582 = vmatprep.mubr.bf16.mxu0 %v1234_v40 }
  0x2d   :  { %702 = vmatprep.mubr.bf16.mxu1 %v1236_v41 }
  0x33   :  { %583 = vmatmul.mubr.bf16.gmra.mrb[8].mxu0 %v1238_v42 }
  0x34   :  { %703 = vmatmul.mubr.bf16.gmra.mrb[8].mxu1 %v1239_v43  ;;  %590 = vmatprep.mubr.bf16.mxu0 %v1240_v44 }
  0x35   :  { %710 = vmatprep.mubr.bf16.mxu1 %v1242_v45 }
  0x3b   :  { %591 = vmatmul.mubr.bf16.gmra.mrb[12].mxu0 %v1244_v46 }
  0x3c   :  { %711 = vmatmul.mubr.bf16.gmra.mrb[12].mxu1 %v1245_v47  ;;  %598 = vmatprep.mubr.bf16.mxu0 %v1246_v48 }
  0x3d   :  { %718 = vmatprep.mubr.bf16.mxu1 %v1248_v49 }
  0x43   :  { %599 = vmatmul.mubr.bf16.gmra.mrb[16].mxu0 %v1250_v50 }
  0x44   :  { %719 = vmatmul.mubr.bf16.gmra.mrb[16].mxu1 %v1251_v51  ;;  %606 = vmatprep.mubr.bf16.mxu0 %v1252_v52 }
  0x45   :  { %726 = vmatprep.mubr.bf16.mxu1 %v1254_v53 }
  0x4b   :  { %607 = vmatmul.mubr.bf16.gmra.mrb[20].mxu0 %v1256_v54 }
  0x4c   :  { %727 = vmatmul.mubr.bf16.gmra.mrb[20].mxu1 %v1257_v55  ;;  %614 = vmatprep.mubr.bf16.mxu0 %v1258_v56 }
  0x4d   :  { %734 = vmatprep.mubr.bf16.mxu1 %v1260_v57 }
  0x53   :  { %615 = vmatmul.mubr.bf16.gmra.mrb[24].mxu0 %v1262_v58 }
  0x54   :  { %735 = vmatmul.mubr.bf16.gmra.mrb[24].mxu1 %v1263_v59  ;;  %622 = vmatprep.mubr.bf16.mxu0 %v1264_v60 }
  0x55   :  { %742 = vmatprep.mubr.bf16.mxu1 %v1266_v61 }
  0x5b   :  { %623 = vmatmul.mubr.bf16.gmra.mrb[28].mxu0 %v1268_v62 }
  0x5c   :  { %743 = vmatmul.mubr.bf16.gmra.mrb[28].mxu1 %v1269_v63  ;;  %630 = vmatprep.mubr.bf16.mxu0 %v1270_v0 }
  0x5d   :  { %750 = vmatprep.mubr.bf16.mxu1 %v1272_v1 }
  0x63   :  { %631 = vmatmul.mubr.bf16.gmra.mrb[32].mxu0 %v1274_v2 }
  0x64   :  { %751 = vmatmul.mubr.bf16.gmra.mrb[32].mxu1 %v1275_v3  ;;  %638 = vmatprep.mubr.bf16.mxu0 %v1276_v4 }
  0x65   :  { %758 = vmatprep.mubr.bf16.mxu1 %v1278_v5 }
  0x6b   :  { %639 = vmatmul.mubr.bf16.gmra.mrb[36].mxu0 %v1280_v8 }
  0x6c   :  { %759 = vmatmul.mubr.bf16.gmra.mrb[36].mxu1 %v1281_v9  ;;  %646 = vmatprep.mubr.bf16.mxu0 %v949_v10 }
  0x6d   :  { %766 = vmatprep.mubr.bf16.mxu1 %v951_v11 }
  0x73   :  { %647 = vmatmul.mubr.bf16.gmra.mrb[40].mxu0 %v948_v12 }
  0x74   :  { %767 = vmatmul.mubr.bf16.gmra.mrb[40].mxu1 %v950_v13 }
  0xf6   :  { %v1042_v14 = vpop.f32.mrb[0].mxu0 }
  0xf7   :  { %v1124_v15 = vpop.f32.mrb[0].mxu1  ;;  %v1043_v17 = vpop.f32.mrb[1].mxu0 }
  0xf8   :  { %v1044_v18 = vadd.f32 %v1043_v17, %v1042_v14  ;;  %v1125_v19 = vpop.f32.mrb[1].mxu1  ;;  %v1045_v20 = vpop.f32.mrb[2].mxu0 }
  0xf9   :  { %v1126_v21 = vadd.f32 %v1125_v19, %v1124_v15  ;;  %v1127_v22 = vpop.f32.mrb[2].mxu1  ;;  %v1046_v23 = vpop.f32.mrb[3].mxu0 }
  0xfa   :  { %v569_v24 = vadd.f32 %v1044_v18, %v1531_v16  ;;  %v1047_v25 = vadd.f32 %v1046_v23, %v1045_v20  ;;  %v1128_v26 = vpop.f32.mrb[3].mxu1 }
  0xfb   :  { %v1129_v27 = vadd.f32 %v1128_v26, %v1127_v22 }
  0xfc   :  { %v689_v28 = vadd.f32 %v1126_v21, %v569_v24  ;;  %v572_v29 = vadd.f32 %v1047_v25, %v1531_v16 }
  0xfe   :  { %v774_v30 = vmax.f32 %v689_v28, 0.0  ;;  %v692_v31 = vadd.f32 %v1129_v27, %v572_v29  ;;  %v1048_v32 = vpop.f32.mrb[4].mxu0 }
  0xff   :  { %v1130_v33 = vpop.f32.mrb[4].mxu1  ;;  %v1049_v34 = vpop.f32.mrb[5].mxu0 }
 0x100   :  { %v1005_v35 = vpack.c.bf16 %v774_v30, %v774_v30  ;;  %v775_v36 = vmax.f32 %v692_v31, 0.0  ;;  %v1050_v37 = vadd.f32 %v1049_v34, %v1048_v32  ;;  %v1131_v38 = vpop.f32.mrb[5].mxu1  ;;  %v1051_v39 = vpop.f32.mrb[6].mxu0 }
 0x101   :  { %v1132_v40 = vadd.f32 %v1131_v38, %v1130_v33  ;;  %v1133_v41 = vpop.f32.mrb[6].mxu1  ;;  %v1052_v42 = vpop.f32.mrb[7].mxu0 }
 0x102   :  { %881 = vst.msk [vmem:[%s1640_s3] sm:$0xf] %vm880_vm0, %v1005_v35  ;;  %v1006_v43 = vpack.c.bf16 %v775_v36, %v775_v36  ;;  %v577_v44 = vadd.f32 %v1050_v37, %v1531_v16  ;;  %v1053_v45 = vadd.f32 %v1052_v42, %v1051_v39  ;;  %v1134_v46 = vpop.f32.mrb[7].mxu1 }
 0x103   :  { %v1135_v47 = vadd.f32 %v1134_v46, %v1133_v41 }
 0x104   :  { %882 = vst.msk [vmem:[%s1640_s3 + $0x4] sm:$0xf] %vm880_vm0, %v1006_v43  ;;  %v697_v48 = vadd.f32 %v1132_v40, %v577_v44  ;;  %v580_v49 = vadd.f32 %v1053_v45, %v1531_v16 }
 0x106   :  { %v776_v50 = vmax.f32 %v697_v48, 0.0  ;;  %v700_v51 = vadd.f32 %v1135_v47, %v580_v49  ;;  %v1054_v52 = vpop.f32.mrb[8].mxu0 }
 0x107   :  { %v1136_v53 = vpop.f32.mrb[8].mxu1  ;;  %v1055_v54 = vpop.f32.mrb[9].mxu0 }
 0x108   :  { %v1007_v55 = vpack.c.bf16 %v776_v50, %v776_v50  ;;  %v777_v56 = vmax.f32 %v700_v51, 0.0  ;;  %v1056_v57 = vadd.f32 %v1055_v54, %v1054_v52  ;;  %v1137_v58 = vpop.f32.mrb[9].mxu1  ;;  %v1057_v59 = vpop.f32.mrb[10].mxu0 }
 0x109   :  { %v1138_v60 = vadd.f32 %v1137_v58, %v1136_v53  ;;  %v1139_v61 = vpop.f32.mrb[10].mxu1  ;;  %v1058_v62 = vpop.f32.mrb[11].mxu0 }
 0x10a   :  { %883 = vst.msk [vmem:[%s1640_s3 + $0x8] sm:$0xf] %vm880_vm0, %v1007_v55  ;;  %v1008_v63 = vpack.c.bf16 %v777_v56, %v777_v56  ;;  %v585_v0 = vadd.f32 %v1056_v57, %v1531_v16  ;;  %v1059_v1 = vadd.f32 %v1058_v62, %v1057_v59  ;;  %v1140_v2 = vpop.f32.mrb[11].mxu1 }
 0x10b   :  { %v1141_v3 = vadd.f32 %v1140_v2, %v1139_v61 }
 0x10c   :  { %884 = vst.msk [vmem:[%s1640_s3 + $0xc] sm:$0xf] %vm880_vm0, %v1008_v63  ;;  %v705_v4 = vadd.f32 %v1138_v60, %v585_v0  ;;  %v588_v5 = vadd.f32 %v1059_v1, %v1531_v16 }
 0x10e   :  { %v778_v6 = vmax.f32 %v705_v4, 0.0  ;;  %v708_v7 = vadd.f32 %v1141_v3, %v588_v5  ;;  %v1060_v8 = vpop.f32.mrb[12].mxu0 }
 0x10f   :  { %v1142_v9 = vpop.f32.mrb[12].mxu1  ;;  %v1061_v10 = vpop.f32.mrb[13].mxu0 }
 0x110   :  { %v1009_v11 = vpack.c.bf16 %v778_v6, %v778_v6  ;;  %v779_v12 = vmax.f32 %v708_v7, 0.0  ;;  %v1062_v13 = vadd.f32 %v1061_v10, %v1060_v8  ;;  %v1143_v14 = vpop.f32.mrb[13].mxu1  ;;  %v1063_v15 = vpop.f32.mrb[14].mxu0 }
 0x111   :  { %v1144_v17 = vadd.f32 %v1143_v14, %v1142_v9  ;;  %v1145_v18 = vpop.f32.mrb[14].mxu1  ;;  %v1064_v19 = vpop.f32.mrb[15].mxu0 }
 0x112   :  { %885 = vst.msk [vmem:[%s1640_s3 + $0x10] sm:$0xf] %vm880_vm0, %v1009_v11  ;;  %v1010_v20 = vpack.c.bf16 %v779_v12, %v779_v12  ;;  %v593_v21 = vadd.f32 %v1062_v13, %v1531_v16  ;;  %v1065_v22 = vadd.f32 %v1064_v19, %v1063_v15  ;;  %v1146_v23 = vpop.f32.mrb[15].mxu1 }
 0x113   :  { %v1147_v24 = vadd.f32 %v1146_v23, %v1145_v18 }
 0x114   :  { %886 = vst.msk [vmem:[%s1640_s3 + $0x14] sm:$0xf] %vm880_vm0, %v1010_v20  ;;  %v713_v25 = vadd.f32 %v1144_v17, %v593_v21  ;;  %v596_v26 = vadd.f32 %v1065_v22, %v1531_v16 }
 0x116   :  { %v780_v27 = vmax.f32 %v713_v25, 0.0  ;;  %v716_v28 = vadd.f32 %v1147_v24, %v596_v26  ;;  %v1066_v29 = vpop.f32.mrb[16].mxu0 }
 0x117   :  { %v1148_v30 = vpop.f32.mrb[16].mxu1  ;;  %v1067_v31 = vpop.f32.mrb[17].mxu0 }
 0x118   :  { %v1011_v32 = vpack.c.bf16 %v780_v27, %v780_v27  ;;  %v781_v33 = vmax.f32 %v716_v28, 0.0  ;;  %v1068_v34 = vadd.f32 %v1067_v31, %v1066_v29  ;;  %v1149_v35 = vpop.f32.mrb[17].mxu1  ;;  %v1069_v36 = vpop.f32.mrb[18].mxu0 }
 0x119   :  { %v1150_v37 = vadd.f32 %v1149_v35, %v1148_v30  ;;  %v1151_v38 = vpop.f32.mrb[18].mxu1  ;;  %v1070_v39 = vpop.f32.mrb[19].mxu0 }
 0x11a   :  { %887 = vst.msk [vmem:[%s1640_s3 + $0x18] sm:$0xf] %vm880_vm0, %v1011_v32  ;;  %v1012_v40 = vpack.c.bf16 %v781_v33, %v781_v33  ;;  %v601_v41 = vadd.f32 %v1068_v34, %v1531_v16  ;;  %v1071_v42 = vadd.f32 %v1070_v39, %v1069_v36  ;;  %v1152_v43 = vpop.f32.mrb[19].mxu1 }
 0x11b   :  { %v1153_v44 = vadd.f32 %v1152_v43, %v1151_v38 }
 0x11c   :  { %888 = vst.msk [vmem:[%s1640_s3 + $0x1c] sm:$0xf] %vm880_vm0, %v1012_v40  ;;  %v721_v45 = vadd.f32 %v1150_v37, %v601_v41  ;;  %v604_v46 = vadd.f32 %v1071_v42, %v1531_v16 }
 0x11e   :  { %v782_v47 = vmax.f32 %v721_v45, 0.0  ;;  %v724_v48 = vadd.f32 %v1153_v44, %v604_v46  ;;  %v1072_v49 = vpop.f32.mrb[20].mxu0 }
 0x11f   :  { %v1154_v50 = vpop.f32.mrb[20].mxu1  ;;  %v1073_v51 = vpop.f32.mrb[21].mxu0 }
 0x120   :  { %v1013_v52 = vpack.c.bf16 %v782_v47, %v782_v47  ;;  %v783_v53 = vmax.f32 %v724_v48, 0.0  ;;  %v1074_v54 = vadd.f32 %v1073_v51, %v1072_v49  ;;  %v1155_v55 = vpop.f32.mrb[21].mxu1  ;;  %v1075_v56 = vpop.f32.mrb[22].mxu0 }
 0x121   :  { %v1156_v57 = vadd.f32 %v1155_v55, %v1154_v50  ;;  %v1157_v58 = vpop.f32.mrb[22].mxu1  ;;  %v1076_v59 = vpop.f32.mrb[23].mxu0 }
 0x122   :  { %889 = vst.msk [vmem:[%s1640_s3 + $0x20] sm:$0xf] %vm880_vm0, %v1013_v52  ;;  %v1014_v60 = vpack.c.bf16 %v783_v53, %v783_v53  ;;  %v609_v61 = vadd.f32 %v1074_v54, %v1531_v16  ;;  %v1077_v62 = vadd.f32 %v1076_v59, %v1075_v56  ;;  %v1158_v63 = vpop.f32.mrb[23].mxu1 }
 0x123   :  { %v1159_v0 = vadd.f32 %v1158_v63, %v1157_v58 }
 0x124   :  { %890 = vst.msk [vmem:[%s1640_s3 + $0x24] sm:$0xf] %vm880_vm0, %v1014_v60  ;;  %v729_v1 = vadd.f32 %v1156_v57, %v609_v61  ;;  %v612_v2 = vadd.f32 %v1077_v62, %v1531_v16 }
 0x126   :  { %v784_v3 = vmax.f32 %v729_v1, 0.0  ;;  %v732_v4 = vadd.f32 %v1159_v0, %v612_v2  ;;  %v1078_v5 = vpop.f32.mrb[24].mxu0 }
 0x127   :  { %v1160_v6 = vpop.f32.mrb[24].mxu1  ;;  %v1079_v7 = vpop.f32.mrb[25].mxu0 }
 0x128   :  { %v1015_v8 = vpack.c.bf16 %v784_v3, %v784_v3  ;;  %v785_v9 = vmax.f32 %v732_v4, 0.0  ;;  %v1080_v10 = vadd.f32 %v1079_v7, %v1078_v5  ;;  %v1161_v11 = vpop.f32.mrb[25].mxu1  ;;  %v1081_v12 = vpop.f32.mrb[26].mxu0 }
 0x129   :  { %v1162_v13 = vadd.f32 %v1161_v11, %v1160_v6  ;;  %v1163_v14 = vpop.f32.mrb[26].mxu1  ;;  %v1082_v15 = vpop.f32.mrb[27].mxu0 }
 0x12a   :  { %891 = vst.msk [vmem:[%s1640_s3 + $0x28] sm:$0xf] %vm880_vm0, %v1015_v8  ;;  %v1016_v17 = vpack.c.bf16 %v785_v9, %v785_v9  ;;  %v617_v18 = vadd.f32 %v1080_v10, %v1531_v16  ;;  %v1083_v19 = vadd.f32 %v1082_v15, %v1081_v12  ;;  %v1164_v20 = vpop.f32.mrb[27].mxu1 }
 0x12b   :  { %v1165_v21 = vadd.f32 %v1164_v20, %v1163_v14 }
 0x12c   :  { %892 = vst.msk [vmem:[%s1640_s3 + $0x2c] sm:$0xf] %vm880_vm0, %v1016_v17  ;;  %v737_v22 = vadd.f32 %v1162_v13, %v617_v18  ;;  %v620_v23 = vadd.f32 %v1083_v19, %v1531_v16 }
 0x12e   :  { %v786_v24 = vmax.f32 %v737_v22, 0.0  ;;  %v740_v25 = vadd.f32 %v1165_v21, %v620_v23  ;;  %v1084_v26 = vpop.f32.mrb[28].mxu0 }
 0x12f   :  { %v1166_v27 = vpop.f32.mrb[28].mxu1  ;;  %v1085_v28 = vpop.f32.mrb[29].mxu0 }
 0x130   :  { %v1017_v29 = vpack.c.bf16 %v786_v24, %v786_v24  ;;  %v787_v30 = vmax.f32 %v740_v25, 0.0  ;;  %v1086_v31 = vadd.f32 %v1085_v28, %v1084_v26  ;;  %v1167_v32 = vpop.f32.mrb[29].mxu1  ;;  %v1087_v33 = vpop.f32.mrb[30].mxu0 }
 0x131   :  { %v1168_v34 = vadd.f32 %v1167_v32, %v1166_v27  ;;  %v1169_v35 = vpop.f32.mrb[30].mxu1  ;;  %v1088_v36 = vpop.f32.mrb[31].mxu0 }
 0x132   :  { %893 = vst.msk [vmem:[%s1640_s3 + $0x30] sm:$0xf] %vm880_vm0, %v1017_v29  ;;  %v1018_v37 = vpack.c.bf16 %v787_v30, %v787_v30  ;;  %v625_v38 = vadd.f32 %v1086_v31, %v1531_v16  ;;  %v1089_v39 = vadd.f32 %v1088_v36, %v1087_v33  ;;  %v1170_v40 = vpop.f32.mrb[31].mxu1 }
 0x133   :  { %v1171_v41 = vadd.f32 %v1170_v40, %v1169_v35 }
 0x134   :  { %894 = vst.msk [vmem:[%s1640_s3 + $0x34] sm:$0xf] %vm880_vm0, %v1018_v37  ;;  %v745_v42 = vadd.f32 %v1168_v34, %v625_v38  ;;  %v628_v43 = vadd.f32 %v1089_v39, %v1531_v16 }
 0x136   :  { %v788_v44 = vmax.f32 %v745_v42, 0.0  ;;  %v748_v45 = vadd.f32 %v1171_v41, %v628_v43  ;;  %v1090_v46 = vpop.f32.mrb[32].mxu0 }
 0x137   :  { %v1172_v47 = vpop.f32.mrb[32].mxu1  ;;  %v1091_v48 = vpop.f32.mrb[33].mxu0 }
 0x138   :  { %v1019_v49 = vpack.c.bf16 %v788_v44, %v788_v44  ;;  %v789_v50 = vmax.f32 %v748_v45, 0.0  ;;  %v1092_v51 = vadd.f32 %v1091_v48, %v1090_v46  ;;  %v1173_v52 = vpop.f32.mrb[33].mxu1  ;;  %v1093_v53 = vpop.f32.mrb[34].mxu0 }
 0x139   :  { %v1174_v54 = vadd.f32 %v1173_v52, %v1172_v47  ;;  %v1175_v55 = vpop.f32.mrb[34].mxu1  ;;  %v1094_v56 = vpop.f32.mrb[35].mxu0 }
 0x13a   :  { %895 = vst.msk [vmem:[%s1640_s3 + $0x38] sm:$0xf] %vm880_vm0, %v1019_v49  ;;  %v1020_v57 = vpack.c.bf16 %v789_v50, %v789_v50  ;;  %v633_v58 = vadd.f32 %v1092_v51, %v1531_v16  ;;  %v1095_v59 = vadd.f32 %v1094_v56, %v1093_v53  ;;  %v1176_v60 = vpop.f32.mrb[35].mxu1 }
 0x13b   :  { %v1177_v61 = vadd.f32 %v1176_v60, %v1175_v55 }
 0x13c   :  { %896 = vst.msk [vmem:[%s1640_s3 + $0x3c] sm:$0xf] %vm880_vm0, %v1020_v57  ;;  %v753_v62 = vadd.f32 %v1174_v54, %v633_v58  ;;  %v636_v63 = vadd.f32 %v1095_v59, %v1531_v16 }
 0x13e   :  { %v790_v0 = vmax.f32 %v753_v62, 0.0  ;;  %v756_v1 = vadd.f32 %v1177_v61, %v636_v63  ;;  %v1096_v2 = vpop.f32.mrb[36].mxu0 }
 0x13f   :  { %v1178_v3 = vpop.f32.mrb[36].mxu1  ;;  %v1097_v4 = vpop.f32.mrb[37].mxu0 }
 0x140   :  { %v1021_v5 = vpack.c.bf16 %v790_v0, %v790_v0  ;;  %v791_v6 = vmax.f32 %v756_v1, 0.0  ;;  %v1098_v7 = vadd.f32 %v1097_v4, %v1096_v2  ;;  %v1179_v8 = vpop.f32.mrb[37].mxu1  ;;  %v1099_v9 = vpop.f32.mrb[38].mxu0 }
 0x141   :  { %v1180_v10 = vadd.f32 %v1179_v8, %v1178_v3  ;;  %v1181_v11 = vpop.f32.mrb[38].mxu1  ;;  %v1100_v12 = vpop.f32.mrb[39].mxu0 }
 0x142   :  { %897 = vst.msk [vmem:[%s1640_s3 + $0x40] sm:$0xf] %vm880_vm0, %v1021_v5  ;;  %v1022_v13 = vpack.c.bf16 %v791_v6, %v791_v6  ;;  %v641_v14 = vadd.f32 %v1098_v7, %v1531_v16  ;;  %v1101_v15 = vadd.f32 %v1100_v12, %v1099_v9  ;;  %v1182_v17 = vpop.f32.mrb[39].mxu1 }
 0x143   :  { %v1183_v18 = vadd.f32 %v1182_v17, %v1181_v11 }
 0x144   :  { %898 = vst.msk [vmem:[%s1640_s3 + $0x44] sm:$0xf] %vm880_vm0, %v1022_v13  ;;  %v761_v19 = vadd.f32 %v1180_v10, %v641_v14  ;;  %v644_v20 = vadd.f32 %v1101_v15, %v1531_v16 }
 0x146   :  { %v792_v21 = vmax.f32 %v761_v19, 0.0  ;;  %v764_v22 = vadd.f32 %v1183_v18, %v644_v20  ;;  %v1102_v23 = vpop.f32.mrb[40].mxu0 }
 0x147   :  { %v1184_v24 = vpop.f32.mrb[40].mxu1  ;;  %v1103_v25 = vpop.f32.mrb[41].mxu0 }
 0x148   :  { %v1023_v26 = vpack.c.bf16 %v792_v21, %v792_v21  ;;  %v793_v27 = vmax.f32 %v764_v22, 0.0  ;;  %v1104_v28 = vadd.f32 %v1103_v25, %v1102_v23  ;;  %v1185_v29 = vpop.f32.mrb[41].mxu1  ;;  %v1105_v30 = vpop.f32.mrb[42].mxu0 }
 0x149   :  { %v1186_v31 = vadd.f32 %v1185_v29, %v1184_v24  ;;  %v1187_v32 = vpop.f32.mrb[42].mxu1  ;;  %v1106_v33 = vpop.f32.mrb[43].mxu0 }
 0x14a   :  { %899 = vst.msk [vmem:[%s1640_s3 + $0x48] sm:$0xf] %vm880_vm0, %v1023_v26  ;;  %v1024_v34 = vpack.c.bf16 %v793_v27, %v793_v27  ;;  %v649_v35 = vadd.f32 %v1104_v28, %v1531_v16  ;;  %v1188_v36 = vpop.f32.mrb[43].mxu1 }
 0x14c   :  { %900 = vst.msk [vmem:[%s1640_s3 + $0x4c] sm:$0xf] %vm880_vm0, %v1024_v34  ;;  %v769_v37 = vadd.f32 %v1186_v31, %v649_v35 }
 0x14e   :  { %v794_v38 = vmax.f32 %v769_v37, 0.0 }
 0x150   :  { %v1025_v39 = vpack.c.bf16 %v794_v38, %v794_v38 }
 0x152   :  { %902 = vst.msk [vmem:[%s1640_s3 + $0x50] sm:$0x1] %vm901_vm1, %v1025_v39 }

// kernel: dueling_network_forward.7
= control target key start
LH: loop header
LB: loop body
LE: loop exit
PB: predicated region body
PF: predicated region fallthrough
CT: control target
= control target key end

     0   :  { %v1248_v34 = vmov 0.0   ;;  %vm1249_vm0 = vmmov 0   ;;  %vm516_vm1 = vcmask 523264   ;;  %vm868_vm2 = vcmask 519168   ;;  %s1599_s1 = inlined_call_operand.vmem [shape: bf16[576,64], index: 1, kind: input, shape index: {}]   ;;  %s1600_s0 = inlined_call_operand.vmem [shape: bf16[98,576], index: 0, kind: input, shape index: {}]   ;;  %s1601_s2 = inlined_call_operand.vmem [shape: f32[1,64], index: 2, kind: input, shape index: {}]   ;;  %s1602_s3 = inlined_call_operand.vmem [shape: bf16[98,64], index: 3, kind: output, shape index: {}]  }
   0x1   :  { %v1165_v0 = vld [vmem:[%s1599_s1 + $0x40] sm:$0xff]   ;;  %v1169_v4 = vld [vmem:[%s1599_s1 + $0x48] sm:$0xff]   ;;  %v1173_v8 = vld [vmem:[%s1599_s1 + $0x50] sm:$0xff]   ;;  %vm881_vm3 = vcmask 516096  }
   0x2   :  { %v1166_v1 = vld [vmem:[%s1599_s1 + $0xc0] sm:$0xff]   ;;  %992 = vmatprep.subr.bf16.mxu0 %v1165_v0  ;;  %v1170_v5 = vld [vmem:[%s1599_s1 + $0xc8] sm:$0xff]   ;;  %v1174_v9 = vld [vmem:[%s1599_s1 + $0xd0] sm:$0xff]  }
   0x3   :  { %v1167_v2 = vld [vmem:[%s1599_s1] sm:$0xff]   ;;  %1050 = vmatprep.subr.bf16.mxu1 %v1166_v1  ;;  %v1171_v6 = vld [vmem:[%s1599_s1 + $0x8] sm:$0xff]   ;;  %v1175_v10 = vld [vmem:[%s1599_s1 + $0x10] sm:$0xff]  }
   0x4   :  { %v1168_v3 = vld [vmem:[%s1599_s1 + $0x80] sm:$0xff]   ;;  %993 = vmatpush3.bf16.msra.mxu0 %v1167_v2  ;;  %v1172_v7 = vld [vmem:[%s1599_s1 + $0x88] sm:$0xff]   ;;  %v1176_v11 = vld [vmem:[%s1599_s1 + $0x90] sm:$0xff]  }
   0x5   :  { %1051 = vmatpush3.bf16.msra.mxu1 %v1168_v3  ;;  %994 = vmatprep.subr.bf16.mxu0 %v1169_v4  ;;  %v1177_v12 = vld [vmem:[%s1599_s1 + $0x58] sm:$0xff]   ;;  %v1181_v16 = vld [vmem:[%s1599_s1 + $0x60] sm:$0xff]   ;;  %v1185_v20 = vld [vmem:[%s1599_s1 + $0x68] sm:$0xff]  }
   0x6   :  { %1052 = vmatprep.subr.bf16.mxu1 %v1170_v5  ;;  %v1178_v13 = vld [vmem:[%s1599_s1 + $0xd8] sm:$0xff]   ;;  %v1182_v17 = vld [vmem:[%s1599_s1 + $0xe0] sm:$0xff]   ;;  %v1186_v21 = vld [vmem:[%s1599_s1 + $0xe8] sm:$0xff]  }
   0x7   :  { %v1179_v14 = vld [vmem:[%s1599_s1 + $0x18] sm:$0xff]   ;;  %v1183_v18 = vld [vmem:[%s1599_s1 + $0x20] sm:$0xff]   ;;  %v1187_v22 = vld [vmem:[%s1599_s1 + $0x28] sm:$0xff]  }
   0x8   :  { %995 = vmatpush3.bf16.msra.mxu0 %v1171_v6  ;;  %v1180_v15 = vld [vmem:[%s1599_s1 + $0x98] sm:$0xff]   ;;  %v1184_v19 = vld [vmem:[%s1599_s1 + $0xa0] sm:$0xff]   ;;  %v1188_v23 = vld [vmem:[%s1599_s1 + $0xa8] sm:$0xff]  }
   0x9   :  { %1053 = vmatpush3.bf16.msra.mxu1 %v1172_v7  ;;  %996 = vmatprep.subr.bf16.mxu0 %v1173_v8  ;;  %v1189_v24 = vld [vmem:[%s1599_s1 + $0x70] sm:$0xff]   ;;  %v1193_v28 = vld [vmem:[%s1599_s1 + $0x78] sm:$0xff]   ;;  %v1202_v36 = vld [vmem:[%s1600_s0 + $0xc] ss:$20 sps:$4 sm:$0xff]  }
   0xa   :  { %1054 = vmatprep.subr.bf16.mxu1 %v1174_v9  ;;  %v1190_v25 = vld [vmem:[%s1599_s1 + $0xf0] sm:$0xff]   ;;  %v1194_v29 = vld [vmem:[%s1599_s1 + $0xf8] sm:$0xff]   ;;  %v1203_v37 = vld [vmem:[%s1599_s1 + $0x100] sm:$0xff]   ;;  %658 = vmatprep.mubr.bf16.mxu1 %v1202_v36 }
   0xb   :  { %v1191_v26 = vld [vmem:[%s1599_s1 + $0x30] sm:$0xff]   ;;  %v1195_v30 = vld [vmem:[%s1599_s1 + $0x38] sm:$0xff]   ;;  %v1204_v38 = vld [vmem:[%s1600_s0 + $0x2c] ss:$20 sps:$4 sm:$0xff]  }
   0xc   :  { %997 = vmatpush3.bf16.msra.mxu0 %v1175_v10  ;;  %v1192_v27 = vld [vmem:[%s1599_s1 + $0xb0] sm:$0xff]   ;;  %v1196_v31 = vld [vmem:[%s1599_s1 + $0xb8] sm:$0xff]   ;;  %v1214_v43 = vld [vmem:[%s1599_s1 + $0x108] sm:$0xff]  }
   0xd   :  { %1055 = vmatpush3.bf16.msra.mxu1 %v1176_v11  ;;  %998 = vmatprep.subr.bf16.mxu0 %v1177_v12  ;;  %v1197_v32 = vld [vmem:[%s1600_s0] ss:$20 sps:$4 sm:$0xff]   ;;  %v1199_v33 = vld [vmem:[%s1600_s0 + $0x4] ss:$20 sps:$4 sm:$0xff]   ;;  %v1200_v35 = vld [vmem:[%s1600_s0 + $0x8] ss:$20 sps:$4 sm:$0xff]  }
   0xe   :  { %1056 = vmatprep.subr.bf16.mxu1 %v1178_v13  ;;  %570 = vmatprep.mubr.bf16.mxu0 %v1199_v33  ;;  %v1206_v39 = vld [vmem:[%s1600_s0 + $0x34] ss:$20 sps:$4 sm:$0xff]   ;;  %v1209_v41 = vld [vmem:[%s1600_s0 + $0x30] ss:$20 sps:$4 sm:$0xff]   ;;  %v1216_v47 = vld [vmem:[%s1600_s0 + $0x58] ss:$20 sps:$4 sm:$0xff]  }
   0xf   :  { %v1208_v40 = vld [vmem:[%s1600_s0 + $0x28] ss:$20 sps:$4 sm:$0xff]   ;;  %v1223_v45 = vld [vmem:[%s1599_s1 + $0x110] sm:$0xff]   ;;  %v1219_v49 = vld [vmem:[%s1600_s0 + $0x84] ss:$20 sps:$4 sm:$0xff]  }
  0x10   :  { %999 = vmatpush3.bf16.msra.mxu0 %v1179_v14  ;;  %v1210_v42 = vld [vmem:[%s1600_s0 + $0x54] ss:$20 sps:$4 sm:$0xff]   ;;  %v1212_v44 = vld [vmem:[%s1600_s0 + $0x5c] ss:$20 sps:$4 sm:$0xff]   ;;  %v1221_v51 = vld [vmem:[%s1600_s0 + $0x78] ss:$20 sps:$4 sm:$0xff]  }
  0x11   :  { %1057 = vmatpush3.bf16.msra.mxu1 %v1180_v15  ;;  %1000 = vmatprep.subr.bf16.mxu0 %v1181_v16  ;;  %v1215_v46 = vld [vmem:[%s1600_s0 + $0x50] ss:$20 sps:$4 sm:$0xff]   ;;  %v1236_v50 = vld [vmem:[%s1599_s1 + $0x118] sm:$0xff]   ;;  %v1222_v52 = vld [vmem:[%s1600_s0 + $0x80] ss:$20 sps:$4 sm:$0xff]  }
  0x12   :  { %1058 = vmatprep.subr.bf16.mxu1 %v1182_v17  ;;  %v1217_v48 = vld [vmem:[%s1600_s0 + $0x7c] ss:$20 sps:$4 sm:$0xff]   ;;  %v1224_v53 = vld [vmem:[%s1600_s0 + $0xa4] ss:$20 sps:$4 sm:$0xff]   ;;  %v1226_v54 = vld [vmem:[%s1600_s0 + $0xac] ss:$20 sps:$4 sm:$0xff]  }
  0x13   :  { %v1228_v55 = vld [vmem:[%s1600_s0 + $0xa0] ss:$20 sps:$4 sm:$0xff]   ;;  %v1229_v56 = vld [vmem:[%s1600_s0 + $0xa8] ss:$20 sps:$4 sm:$0xff]   ;;  %v1235_v62 = vld [vmem:[%s1600_s0 + $0xd0] ss:$20 sps:$4 sm:$0xff]  }
  0x14   :  { %1001 = vmatpush3.bf16.msra.mxu0 %v1183_v18  ;;  %v1230_v57 = vld [vmem:[%s1600_s0 + $0xcc] ss:$20 sps:$4 sm:$0xff]   ;;  %v1232_v58 = vld [vmem:[%s1600_s0 + $0xd4] ss:$20 sps:$4 sm:$0xff]   ;;  %v52_v60 = vld [vmem:[%s1600_s0 + $0xf8] sm:$0x11] }
  0x15   :  { %1059 = vmatpush3.bf16.msra.mxu1 %v1184_v19  ;;  %1002 = vmatprep.subr.bf16.mxu0 %v1185_v20  ;;  %v51_v59 = vld [vmem:[%s1600_s0 + $0xf0] sm:$0x11]  ;;  %v1234_v61 = vld [vmem:[%s1600_s0 + $0xc8] ss:$20 sps:$4 sm:$0xff]   ;;  %v921_v0 = vcombine.high %v52_v60, %v52_v60  ;;  %v920_v2 = vcombine.low %v52_v60, %v52_v60  ;;  %v1243_v5 = vld [vmem:[%s1600_s0 + $0x38] ss:$20 sps:$4 sm:$0xff]  }
  0x16   :  { %1060 = vmatprep.subr.bf16.mxu1 %v1186_v21  ;;  %v919_v63 = vcombine.high %v51_v59, %v51_v59  ;;  %v918_v1 = vcombine.low %v51_v59, %v51_v59  ;;  %v1241_v3 = vld [vmem:[%s1600_s0 + $0x10] ss:$20 sps:$4 sm:$0xff]   ;;  %v1244_v6 = vld [vmem:[%s1600_s0 + $0xd8] ss:$20 sps:$4 sm:$0xff]   ;;  %v1245_v7 = vld [vmem:[%s1600_s0 + $0x60] ss:$20 sps:$4 sm:$0xff]  }
  0x17   :  { %v1242_v4 = vld [vmem:[%s1600_s0 + $0xb0] ss:$20 sps:$4 sm:$0xff]   ;;  %v1246_v8 = vld [vmem:[%s1600_s0 + $0x100] ss:$0 sps:$4 sm:$0x11]  }
  0x18   :  { %1003 = vmatpush3.bf16.msra.mxu0 %v1187_v22  ;;  %v1247_v9 = vld [vmem:[%s1600_s0 + $0x88] ss:$20 sps:$4 sm:$0xff]   ;;  %v1509_v11 = vld [vmem:[%s1601_s2] ss:$0 sm:$0xff] }
  0x19   :  { %1061 = vmatpush3.bf16.msra.mxu1 %v1188_v23  ;;  %1004 = vmatprep.subr.bf16.mxu0 %v1189_v24 }
  0x1a   :  { %1062 = vmatprep.subr.bf16.mxu1 %v1190_v25 }
  0x1c   :  { %1005 = vmatpush3.bf16.msra.mxu0 %v1191_v26 }
  0x1d   :  { %1063 = vmatpush3.bf16.msra.mxu1 %v1192_v27  ;;  %1006 = vmatprep.subr.bf16.mxu0 %v1193_v28 }
  0x1e   :  { %1064 = vmatprep.subr.bf16.mxu1 %v1194_v29 }
  0x20   :  { %1007 = vmatpush3.bf16.msra.mxu0 %v1195_v30 }
  0x21   :  { %1065 = vmatpush3.bf16.msra.mxu1 %v1196_v31  ;;  %1119 = vmatprep.subr.bf16.mxu0 %v1248_v34 }
  0x22   :  { %1155 = vmatprep.subr.bf16.mxu1 %v1248_v34 }
  0x23   :  { %571 = vmatmul.mubr.bf16.vlgmr.msra.gmra.mrb[0].mxu0 %v1197_v32 }
  0x24   :  { %659 = vmatmul.mubr.bf16.vlgmr.msra.gmra.mrb[0].mxu1 %v1200_v35  ;;  %1120 = vmatpush3.bf16.msra.mxu0 %v1203_v37 }
  0x25   :  { %578 = vmatprep.mubr.bf16.mxu0 %v1204_v38  ;;  %1159 = vmatpush3.bf16.msra.mxu1 %v1203_v37 }
  0x26   :  { %666 = vmatprep.mubr.bf16.mxu1 %v1206_v39  ;;  %1121 = vmatprep.subr.bf16.mxu0 %v1248_v34 }
  0x27   :  { %1156 = vmatprep.subr.bf16.mxu1 %v1248_v34 }
  0x28   :  { %1122 = vmatpush3.bf16.msra.mxu0 %v1214_v43 }
  0x29   :  { %1160 = vmatpush3.bf16.msra.mxu1 %v1214_v43  ;;  %1123 = vmatprep.subr.bf16.mxu0 %v1248_v34 }
  0x2a   :  { %1157 = vmatprep.subr.bf16.mxu1 %v1248_v34 }
  0x2b   :  { %579 = vmatmul.mubr.bf16.gmra.mrb[4].mxu0 %v1208_v40 }
  0x2c   :  { %667 = vmatmul.mubr.bf16.gmra.mrb[4].mxu1 %v1209_v41  ;;  %586 = vmatprep.mubr.bf16.mxu0 %v1210_v42 }
  0x2d   :  { %674 = vmatprep.mubr.bf16.mxu1 %v1212_v44  ;;  %1124 = vmatpush3.bf16.msra.mxu0 %v1223_v45 }
  0x2e   :  { %1161 = vmatpush3.bf16.msra.mxu1 %v1223_v45  ;;  %1125 = vmatprep.subr.bf16.mxu0 %v1248_v34 }
  0x2f   :  { %1158 = vmatprep.subr.bf16.mxu1 %v1248_v34 }
  0x31   :  { %1126 = vmatpush3.bf16.msra.mxu0 %v1236_v50 }
  0x32   :  { %1162 = vmatpush3.bf16.msra.mxu1 %v1236_v50 }
  0x33   :  { %587 = vmatmul.mubr.bf16.gmra.mrb[8].mxu0 %v1215_v46 }
  0x34   :  { %675 = vmatmul.mubr.bf16.gmra.mrb[8].mxu1 %v1216_v47  ;;  %594 = vmatprep.mubr.bf16.mxu0 %v1217_v48 }
  0x35   :  { %682 = vmatprep.mubr.bf16.mxu1 %v1219_v49 }
  0x3b   :  { %595 = vmatmul.mubr.bf16.gmra.mrb[12].mxu0 %v1221_v51 }
  0x3c   :  { %683 = vmatmul.mubr.bf16.gmra.mrb[12].mxu1 %v1222_v52  ;;  %602 = vmatprep.mubr.bf16.mxu0 %v1224_v53 }
  0x3d   :  { %690 = vmatprep.mubr.bf16.mxu1 %v1226_v54 }
  0x43   :  { %603 = vmatmul.mubr.bf16.gmra.mrb[16].mxu0 %v1228_v55 }
  0x44   :  { %691 = vmatmul.mubr.bf16.gmra.mrb[16].mxu1 %v1229_v56  ;;  %610 = vmatprep.mubr.bf16.mxu0 %v1230_v57 }
  0x45   :  { %698 = vmatprep.mubr.bf16.mxu1 %v1232_v58 }
  0x4b   :  { %611 = vmatmul.mubr.bf16.gmra.mrb[20].mxu0 %v1234_v61 }
  0x4c   :  { %699 = vmatmul.mubr.bf16.gmra.mrb[20].mxu1 %v1235_v62  ;;  %618 = vmatprep.mubr.bf16.mxu0 %v919_v63 }
  0x4d   :  { %706 = vmatprep.mubr.bf16.mxu1 %v921_v0 }
  0x53   :  { %619 = vmatmul.mubr.bf16.gmra.mrb[24].mxu0 %v918_v1 }
  0x54   :  { %707 = vmatmul.mubr.bf16.gmra.mrb[24].mxu1 %v920_v2  ;;  %1127 = vmatprep.mubr.msk.bf16.mxu0 %vm1249_vm0, %v1248_v34 }
  0x55   :  { %1143 = vmatprep.mubr.msk.bf16.mxu1 %vm1249_vm0, %v1248_v34 }
  0x5b   :  { %1128 = vmatmul.mubr.msk.bf16.vlgmr.msra.gmra.mrb[28].mxu0 %vm516_vm1, %v1241_v3 }
  0x5c   :  { %1144 = vmatmul.mubr.msk.bf16.vlgmr.msra.gmra.mrb[28].mxu1 %vm516_vm1, %v1242_v4  ;;  %1131 = vmatprep.mubr.msk.bf16.mxu0 %vm1249_vm0, %v1248_v34 }
  0x5d   :  { %1147 = vmatprep.mubr.msk.bf16.mxu1 %vm1249_vm0, %v1248_v34 }
  0x63   :  { %1132 = vmatmul.mubr.msk.bf16.gmra.mrb[32].mxu0 %vm516_vm1, %v1243_v5 }
  0x64   :  { %1148 = vmatmul.mubr.msk.bf16.gmra.mrb[32].mxu1 %vm516_vm1, %v1244_v6  ;;  %1135 = vmatprep.mubr.msk.bf16.mxu0 %vm1249_vm0, %v1248_v34 }
  0x65   :  { %1151 = vmatprep.mubr.msk.bf16.mxu1 %vm1249_vm0, %v1248_v34 }
  0x6b   :  { %1136 = vmatmul.mubr.msk.bf16.gmra.mrb[36].mxu0 %vm516_vm1, %v1245_v7 }
  0x6c   :  { %1152 = vmatmul.mubr.msk.bf16.gmra.mrb[36].mxu1 %vm516_vm1, %v1246_v8  ;;  %1139 = vmatprep.mubr.msk.bf16.mxu0 %vm1249_vm0, %v1248_v34 }
  0x73   :  { %1140 = vmatmul.mubr.msk.bf16.gmra.mrb[40].mxu0 %vm516_vm1, %v1247_v9 }
  0xf6   :  { %v1008_v10 = vpop.f32.mrb[0].mxu0 }
  0xf7   :  { %v1009_v12 = vpop.f32.mrb[1].mxu0  ;;  %v1066_v13 = vpop.f32.mrb[0].mxu1 }
  0xf8   :  { %v1010_v14 = vadd.f32 %v1009_v12, %v1008_v10  ;;  %v1011_v15 = vpop.f32.mrb[2].mxu0  ;;  %v1067_v16 = vpop.f32.mrb[1].mxu1 }
  0xf9   :  { %v1012_v17 = vpop.f32.mrb[3].mxu0  ;;  %v1068_v18 = vadd.f32 %v1067_v16, %v1066_v13  ;;  %v1069_v19 = vpop.f32.mrb[2].mxu1 }
  0xfa   :  { %v573_v20 = vadd.f32 %v1010_v14, %v1509_v11  ;;  %v1013_v21 = vadd.f32 %v1012_v17, %v1011_v15  ;;  %v1070_v22 = vpop.f32.mrb[3].mxu1 }
  0xfb   :  { %v1071_v23 = vadd.f32 %v1070_v22, %v1069_v19 }
  0xfc   :  { %v576_v24 = vadd.f32 %v1013_v21, %v1509_v11  ;;  %v1513_v25 = vadd.f32 %v1068_v18, %v573_v20 }
  0xfe   :  { %v1014_v26 = vpop.f32.mrb[4].mxu0  ;;  %v1515_v27 = vadd.f32 %v1071_v23, %v576_v24 }
  0xff   :  { %v1015_v28 = vpop.f32.mrb[5].mxu0  ;;  %v1072_v29 = vpop.f32.mrb[4].mxu1 }
 0x100   :  { %v1016_v30 = vadd.f32 %v1015_v28, %v1014_v26  ;;  %v1017_v31 = vpop.f32.mrb[6].mxu0  ;;  %v1073_v32 = vpop.f32.mrb[5].mxu1 }
 0x101   :  { %v1018_v33 = vpop.f32.mrb[7].mxu0  ;;  %v1074_v34 = vadd.f32 %v1073_v32, %v1072_v29  ;;  %v1075_v35 = vpop.f32.mrb[6].mxu1 }
 0x102   :  { %v581_v36 = vadd.f32 %v1016_v30, %v1509_v11  ;;  %v1019_v37 = vadd.f32 %v1018_v33, %v1017_v31  ;;  %v1076_v38 = vpop.f32.mrb[7].mxu1 }
 0x103   :  { %v1077_v39 = vadd.f32 %v1076_v38, %v1075_v35 }
 0x104   :  { %v584_v40 = vadd.f32 %v1019_v37, %v1509_v11  ;;  %v1519_v41 = vadd.f32 %v1074_v34, %v581_v36 }
 0x106   :  { %v1020_v42 = vpop.f32.mrb[8].mxu0  ;;  %v1521_v43 = vadd.f32 %v1077_v39, %v584_v40 }
 0x107   :  { %v1021_v44 = vpop.f32.mrb[9].mxu0  ;;  %v1078_v45 = vpop.f32.mrb[8].mxu1 }
 0x108   :  { %v1022_v46 = vadd.f32 %v1021_v44, %v1020_v42  ;;  %v1023_v47 = vpop.f32.mrb[10].mxu0  ;;  %v1079_v48 = vpop.f32.mrb[9].mxu1 }
 0x109   :  { %v1024_v49 = vpop.f32.mrb[11].mxu0  ;;  %v1080_v50 = vadd.f32 %v1079_v48, %v1078_v45  ;;  %v1081_v51 = vpop.f32.mrb[10].mxu1 }
 0x10a   :  { %v589_v52 = vadd.f32 %v1022_v46, %v1509_v11  ;;  %v1025_v53 = vadd.f32 %v1024_v49, %v1023_v47  ;;  %v1082_v54 = vpop.f32.mrb[11].mxu1 }
 0x10b   :  { %v1083_v55 = vadd.f32 %v1082_v54, %v1081_v51 }
 0x10c   :  { %v592_v56 = vadd.f32 %v1025_v53, %v1509_v11  ;;  %v1525_v57 = vadd.f32 %v1080_v50, %v589_v52 }
 0x10e   :  { %v1026_v58 = vpop.f32.mrb[12].mxu0  ;;  %v1527_v59 = vadd.f32 %v1083_v55, %v592_v56 }
 0x10f   :  { %v1027_v60 = vpop.f32.mrb[13].mxu0  ;;  %v1084_v61 = vpop.f32.mrb[12].mxu1 }
 0x110   :  { %v1028_v62 = vadd.f32 %v1027_v60, %v1026_v58  ;;  %v1029_v63 = vpop.f32.mrb[14].mxu0  ;;  %v1085_v0 = vpop.f32.mrb[13].mxu1 }
 0x111   :  { %v1030_v1 = vpop.f32.mrb[15].mxu0  ;;  %v1086_v2 = vadd.f32 %v1085_v0, %v1084_v61  ;;  %v1087_v3 = vpop.f32.mrb[14].mxu1 }
 0x112   :  { %v597_v4 = vadd.f32 %v1028_v62, %v1509_v11  ;;  %v1031_v5 = vadd.f32 %v1030_v1, %v1029_v63  ;;  %v1088_v6 = vpop.f32.mrb[15].mxu1 }
 0x113   :  { %v1089_v7 = vadd.f32 %v1088_v6, %v1087_v3 }
 0x114   :  { %v600_v8 = vadd.f32 %v1031_v5, %v1509_v11  ;;  %v1531_v9 = vadd.f32 %v1086_v2, %v597_v4 }
 0x116   :  { %v1032_v10 = vpop.f32.mrb[16].mxu0  ;;  %v1533_v12 = vadd.f32 %v1089_v7, %v600_v8 }
 0x117   :  { %v1033_v13 = vpop.f32.mrb[17].mxu0  ;;  %v1090_v14 = vpop.f32.mrb[16].mxu1 }
 0x118   :  { %v1034_v15 = vadd.f32 %v1033_v13, %v1032_v10  ;;  %v1035_v16 = vpop.f32.mrb[18].mxu0  ;;  %v1091_v17 = vpop.f32.mrb[17].mxu1 }
 0x119   :  { %v1036_v18 = vpop.f32.mrb[19].mxu0  ;;  %v1092_v19 = vadd.f32 %v1091_v17, %v1090_v14  ;;  %v1093_v20 = vpop.f32.mrb[18].mxu1 }
 0x11a   :  { %v605_v21 = vadd.f32 %v1034_v15, %v1509_v11  ;;  %v1037_v22 = vadd.f32 %v1036_v18, %v1035_v16  ;;  %v1094_v23 = vpop.f32.mrb[19].mxu1 }
 0x11b   :  { %v1095_v24 = vadd.f32 %v1094_v23, %v1093_v20 }
 0x11c   :  { %v608_v26 = vadd.f32 %v1037_v22, %v1509_v11  ;;  %v693_v28 = vadd.f32 %v1092_v19, %v605_v21 }
 0x11e   :  { %v1038_v29 = vpop.f32.mrb[20].mxu0  ;;  %v696_v30 = vadd.f32 %v1095_v24, %v608_v26 }
 0x11f   :  { %v1039_v31 = vpop.f32.mrb[21].mxu0  ;;  %v1096_v32 = vpop.f32.mrb[20].mxu1 }
 0x120   :  { %v1040_v33 = vadd.f32 %v1039_v31, %v1038_v29  ;;  %v1041_v34 = vpop.f32.mrb[22].mxu0  ;;  %v1097_v35 = vpop.f32.mrb[21].mxu1 }
 0x121   :  { %v1042_v36 = vpop.f32.mrb[23].mxu0  ;;  %v1098_v37 = vadd.f32 %v1097_v35, %v1096_v32  ;;  %v1099_v38 = vpop.f32.mrb[22].mxu1 }
 0x122   :  { %v613_v39 = vadd.f32 %v1040_v33, %v1509_v11  ;;  %v1043_v40 = vadd.f32 %v1042_v36, %v1041_v34  ;;  %v1100_v42 = vpop.f32.mrb[23].mxu1 }
 0x123   :  { %v1101_v44 = vadd.f32 %v1100_v42, %v1099_v38 }
 0x124   :  { %v616_v45 = vadd.f32 %v1043_v40, %v1509_v11  ;;  %v701_v46 = vadd.f32 %v1098_v37, %v613_v39 }
 0x126   :  { %v1044_v47 = vpop.f32.mrb[24].mxu0  ;;  %v704_v48 = vadd.f32 %v1101_v44, %v616_v45 }
 0x127   :  { %v1045_v49 = vpop.f32.mrb[25].mxu0  ;;  %v1102_v50 = vpop.f32.mrb[24].mxu1 }
 0x128   :  { %v1046_v51 = vadd.f32 %v1045_v49, %v1044_v47  ;;  %v1047_v52 = vpop.f32.mrb[26].mxu0  ;;  %v1103_v53 = vpop.f32.mrb[25].mxu1 }
 0x129   :  { %v1048_v54 = vpop.f32.mrb[27].mxu0  ;;  %v1104_v55 = vadd.f32 %v1103_v53, %v1102_v50  ;;  %v1105_v56 = vpop.f32.mrb[26].mxu1 }
 0x12a   :  { %v621_v58 = vadd.f32 %v1046_v51, %v1509_v11  ;;  %v1106_v60 = vpop.f32.mrb[27].mxu1 }
 0x12c   :  { %v709_v61 = vadd.f32 %v1104_v55, %v621_v58 }
 0x12e   :  { %v748_v62 = vpop.f32.mrb[28].mxu0 }
 0x12f   :  { %v749_v63 = vadd.f32 %v748_v62, %v1513_v25  ;;  %v780_v0 = vpop.f32.mrb[28].mxu1  ;;  %v1129_v1 = vpop.f32.mrb[29].mxu0 }
 0x130   :  { %v781_v2 = vadd.f32 %v780_v0, %v693_v28  ;;  %v1145_v3 = vpop.f32.mrb[29].mxu1  ;;  %v751_v4 = vpop.f32.mrb[30].mxu0 }
 0x131   :  { %v802_v5 = vmax.f32 %v749_v63, 0.0  ;;  %v752_v6 = vadd.f32 %v751_v4, %v1515_v27  ;;  %v783_v7 = vpop.f32.mrb[30].mxu1  ;;  %v1130_v8 = vpop.f32.mrb[31].mxu0 }
 0x132   :  { %v810_v10 = vmax.f32 %v781_v2, 0.0  ;;  %v784_v13 = vadd.f32 %v783_v7, %v696_v30  ;;  %v1146_v14 = vpop.f32.mrb[31].mxu1 }
 0x133   :  { %v979_v11 = vpack.c.bf16 %v802_v5, %v802_v5  ;;  %v803_v15 = vmax.f32 %v752_v6, 0.0 }
 0x134   :  { %v987_v16 = vpack.c.bf16 %v810_v10, %v810_v10  ;;  %v811_v17 = vmax.f32 %v784_v13, 0.0 }
 0x135   :  { %869 = vst.msk [vmem:[%s1602_s3] sm:$0xf] %vm868_vm2, %v979_v11  ;;  %v980_v25 = vpack.c.bf16 %v803_v15, %v803_v15 }
 0x136   :  { %877 = vst.msk [vmem:[%s1602_s3 + $0x20] sm:$0xf] %vm868_vm2, %v987_v16  ;;  %v988_v27 = vpack.c.bf16 %v811_v17, %v811_v17  ;;  %v756_v18 = vpop.f32.mrb[32].mxu0 }
 0x137   :  { %870 = vst.msk [vmem:[%s1602_s3 + $0x4] sm:$0xf] %vm868_vm2, %v980_v25  ;;  %v757_v19 = vadd.f32 %v756_v18, %v1519_v41  ;;  %v788_v20 = vpop.f32.mrb[32].mxu1  ;;  %v1133_v21 = vpop.f32.mrb[33].mxu0 }
 0x138   :  { %878 = vst.msk [vmem:[%s1602_s3 + $0x24] sm:$0xf] %vm868_vm2, %v988_v27  ;;  %v789_v22 = vadd.f32 %v788_v20, %v701_v46  ;;  %v1149_v23 = vpop.f32.mrb[33].mxu1  ;;  %v759_v24 = vpop.f32.mrb[34].mxu0 }
 0x139   :  { %v804_v26 = vmax.f32 %v757_v19, 0.0  ;;  %v760_v28 = vadd.f32 %v759_v24, %v1521_v43  ;;  %v791_v29 = vpop.f32.mrb[34].mxu1  ;;  %v1134_v30 = vpop.f32.mrb[35].mxu0 }
 0x13a   :  { %v812_v31 = vmax.f32 %v789_v22, 0.0  ;;  %v792_v32 = vadd.f32 %v791_v29, %v704_v48  ;;  %v1150_v33 = vpop.f32.mrb[35].mxu1 }
 0x13b   :  { %v981_v34 = vpack.c.bf16 %v804_v26, %v804_v26  ;;  %v805_v41 = vmax.f32 %v760_v28, 0.0 }
 0x13c   :  { %v989_v35 = vpack.c.bf16 %v812_v31, %v812_v31  ;;  %v813_v36 = vmax.f32 %v792_v32, 0.0 }
 0x13d   :  { %871 = vst.msk [vmem:[%s1602_s3 + $0x8] sm:$0xf] %vm868_vm2, %v981_v34  ;;  %v982_v37 = vpack.c.bf16 %v805_v41, %v805_v41 }
 0x13e   :  { %879 = vst.msk [vmem:[%s1602_s3 + $0x28] sm:$0xf] %vm868_vm2, %v989_v35  ;;  %v990_v43 = vpack.c.bf16 %v813_v36, %v813_v36  ;;  %v764_v38 = vpop.f32.mrb[36].mxu0 }
 0x13f   :  { %872 = vst.msk [vmem:[%s1602_s3 + $0xc] sm:$0xf] %vm868_vm2, %v982_v37  ;;  %v765_v39 = vadd.f32 %v764_v38, %v1525_v57  ;;  %v796_v40 = vpop.f32.mrb[36].mxu1  ;;  %v1137_v42 = vpop.f32.mrb[37].mxu0 }
 0x140   :  { %880 = vst.msk [vmem:[%s1602_s3 + $0x2c] sm:$0xf] %vm868_vm2, %v990_v43  ;;  %v797_v44 = vadd.f32 %v796_v40, %v709_v61  ;;  %v767_v45 = vpop.f32.mrb[38].mxu0  ;;  %v1153_v46 = vpop.f32.mrb[37].mxu1 }
 0x141   :  { %v806_v47 = vmax.f32 %v765_v39, 0.0  ;;  %v768_v48 = vadd.f32 %v767_v45, %v1527_v59  ;;  %v1138_v49 = vpop.f32.mrb[39].mxu0  ;;  %v799_v50 = vpop.f32.mrb[38].mxu1 }
 0x142   :  { %v814_v51 = vmax.f32 %v797_v44, 0.0  ;;  %v1154_v52 = vpop.f32.mrb[39].mxu1 }
 0x143   :  { %v983_v53 = vpack.c.bf16 %v806_v47, %v806_v47  ;;  %v807_v57 = vmax.f32 %v768_v48, 0.0 }
 0x144   :  { %v991_v54 = vpack.c.bf16 %v814_v51, %v814_v51 }
 0x145   :  { %873 = vst.msk [vmem:[%s1602_s3 + $0x10] sm:$0xf] %vm868_vm2, %v983_v53  ;;  %v984_v55 = vpack.c.bf16 %v807_v57, %v807_v57 }
 0x146   :  { %882 = vst.msk [vmem:[%s1602_s3 + $0x30] sm:$0x1] %vm881_vm3, %v991_v54  ;;  %v772_v56 = vpop.f32.mrb[40].mxu0 }
 0x147   :  { %874 = vst.msk [vmem:[%s1602_s3 + $0x14] sm:$0xf] %vm868_vm2, %v984_v55  ;;  %v773_v59 = vadd.f32 %v772_v56, %v1531_v9  ;;  %v1141_v58 = vpop.f32.mrb[41].mxu0 }
 0x148   :  { %v775_v60 = vpop.f32.mrb[42].mxu0 }
 0x149   :  { %v808_v61 = vmax.f32 %v773_v59, 0.0  ;;  %v776_v62 = vadd.f32 %v775_v60, %v1533_v12  ;;  %v1142_v63 = vpop.f32.mrb[43].mxu0 }
 0x14b   :  { %v985_v0 = vpack.c.bf16 %v808_v61, %v808_v61  ;;  %v809_v1 = vmax.f32 %v776_v62, 0.0 }
 0x14d   :  { %875 = vst.msk [vmem:[%s1602_s3 + $0x18] sm:$0xf] %vm868_vm2, %v985_v0  ;;  %v986_v2 = vpack.c.bf16 %v809_v1, %v809_v1 }
 0x14f   :  { %876 = vst.msk [vmem:[%s1602_s3 + $0x1c] sm:$0xf] %vm868_vm2, %v986_v2 }

// kernel: dueling_network_forward.9
= control target key start
LH: loop header
LB: loop body
LE: loop exit
PB: predicated region body
PF: predicated region fallthrough
CT: control target
= control target key end

     0   :  { %v157_v28 = vlaneseq  ;;  %v1028_v36 = vmov 1966171168   ;;  %s1274_s0 = inlined_call_operand.vmem [shape: bf16[2,1024], index: 0, kind: input, shape index: {}]   ;;  %s1275_s1 = inlined_call_operand.vmem [shape: bf16[1024,7], index: 1, kind: input, shape index: {}]   ;;  %s1276_s2 = inlined_call_operand.vmem [shape: f32[1,7], index: 2, kind: input, shape index: {}]   ;;  %s1277_s3 = inlined_call_operand.hbm [shape: f32[2,6], index: 3, kind: output, shape index: {}]  }
   0x1   :  { %v939_v0 = vld [vmem:[%s1275_s1 + $0x40] sm:$0xff]   ;;  %v943_v4 = vld [vmem:[%s1275_s1 + $0x48] sm:$0xff]   ;;  %v947_v8 = vld [vmem:[%s1275_s1 + $0x50] sm:$0xff]   ;;  %v155_v37 = vunpack.c.l.s4 %v1028_v36 }
   0x2   :  { %v940_v1 = vld [vmem:[%s1275_s1 + $0xc0] sm:$0xff]   ;;  %847 = vmatprep.subr.bf16.mxu0 %v939_v0  ;;  %v944_v5 = vld [vmem:[%s1275_s1 + $0xc8] sm:$0xff]   ;;  %v948_v9 = vld [vmem:[%s1275_s1 + $0xd0] sm:$0xff]   ;;  %v158_v33 = vshrl.u32 %v157_v28, 7 }
   0x3   :  { %v941_v2 = vld [vmem:[%s1275_s1] sm:$0xff]   ;;  %869 = vmatprep.subr.bf16.mxu1 %v940_v1  ;;  %v945_v6 = vld [vmem:[%s1275_s1 + $0x8] sm:$0xff]   ;;  %v949_v10 = vld [vmem:[%s1275_s1 + $0x10] sm:$0xff]   ;;  %v156_v40 = vunpack.c.0.s8 %v155_v37 }
   0x4   :  { %v942_v3 = vld [vmem:[%s1275_s1 + $0x80] sm:$0xff]   ;;  %848 = vmatpush3.bf16.msra.mxu0 %v941_v2  ;;  %v946_v7 = vld [vmem:[%s1275_s1 + $0x88] sm:$0xff]   ;;  %v950_v11 = vld [vmem:[%s1275_s1 + $0x90] sm:$0xff]  }
   0x5   :  { %870 = vmatpush3.bf16.msra.mxu1 %v942_v3  ;;  %849 = vmatprep.subr.bf16.mxu0 %v943_v4  ;;  %v951_v12 = vld [vmem:[%s1275_s1 + $0x58] sm:$0xff]   ;;  %v955_v16 = vld [vmem:[%s1275_s1 + $0x60] sm:$0xff]   ;;  %v959_v20 = vld [vmem:[%s1275_s1 + $0x68] sm:$0xff]   ;;  %v1156_v41 = vsub.s32 %v156_v40, %v158_v33 }
   0x6   :  { %871 = vmatprep.subr.bf16.mxu1 %v944_v5  ;;  %v952_v13 = vld [vmem:[%s1275_s1 + $0xd8] sm:$0xff]   ;;  %v956_v17 = vld [vmem:[%s1275_s1 + $0xe0] sm:$0xff]   ;;  %v960_v21 = vld [vmem:[%s1275_s1 + $0xe8] sm:$0xff]  }
   0x7   :  { %v953_v14 = vld [vmem:[%s1275_s1 + $0x18] sm:$0xff]   ;;  %v957_v18 = vld [vmem:[%s1275_s1 + $0x20] sm:$0xff]   ;;  %v961_v22 = vld [vmem:[%s1275_s1 + $0x28] sm:$0xff]  }
   0x8   :  { %850 = vmatpush3.bf16.msra.mxu0 %v945_v6  ;;  %v954_v15 = vld [vmem:[%s1275_s1 + $0x98] sm:$0xff]   ;;  %v958_v19 = vld [vmem:[%s1275_s1 + $0xa0] sm:$0xff]   ;;  %v962_v23 = vld [vmem:[%s1275_s1 + $0xa8] sm:$0xff]  }
   0x9   :  { %872 = vmatpush3.bf16.msra.mxu1 %v946_v7  ;;  %851 = vmatprep.subr.bf16.mxu0 %v947_v8  ;;  %v963_v24 = vld [vmem:[%s1275_s1 + $0x70] sm:$0xff]   ;;  %v967_v29 = vld [vmem:[%s1275_s1 + $0x78] sm:$0xff]   ;;  %v16_v34 = vld [vmem:[%s1274_s0] sm:$0xff] }
   0xa   :  { %873 = vmatprep.subr.bf16.mxu1 %v948_v9  ;;  %v964_v25 = vld [vmem:[%s1275_s1 + $0xf0] sm:$0xff]   ;;  %v968_v30 = vld [vmem:[%s1275_s1 + $0xf8] sm:$0xff]   ;;  %v972_v35 = vld [vmem:[%s1275_s1 + $0x140] sm:$0xff]   ;;  %v153_v39 = vcombine.high %v16_v34, %v16_v34  ;;  %v160_v42 = vrot.slane %v16_v34, %v1156_v41 }
   0xb   :  { %v965_v26 = vld [vmem:[%s1275_s1 + $0x30] sm:$0xff]   ;;  %v969_v31 = vld [vmem:[%s1275_s1 + $0x38] sm:$0xff]   ;;  %v973_v38 = vld [vmem:[%s1275_s1 + $0x1c0] sm:$0xff]  }
   0xc   :  { %852 = vmatpush3.bf16.msra.mxu0 %v949_v10  ;;  %v966_v27 = vld [vmem:[%s1275_s1 + $0xb0] sm:$0xff]   ;;  %v970_v32 = vld [vmem:[%s1275_s1 + $0xb8] sm:$0xff]   ;;  %v1160_v43 = vrot.slane %v153_v39, %v1156_v41  ;;  %v168_v44 = vcombine.high %v160_v42, %v160_v42  ;;  %v176_v45 = vrot.slane %v160_v42, %v1156_v41  ;;  %v974_v48 = vld [vmem:[%s1275_s1 + $0x100] sm:$0xff]  }
   0xd   :  { %874 = vmatpush3.bf16.msra.mxu1 %v950_v11  ;;  %853 = vmatprep.subr.bf16.mxu0 %v951_v12  ;;  %v976_v51 = vld [vmem:[%s1275_s1 + $0x148] sm:$0xff]   ;;  %v975_v53 = vld [vmem:[%s1275_s1 + $0x180] sm:$0xff]   ;;  %v980_v57 = vld [vmem:[%s1275_s1 + $0x150] sm:$0xff]  }
   0xe   :  { %875 = vmatprep.subr.bf16.mxu1 %v952_v13  ;;  %v169_v46 = vcombine.high %v1160_v43, %v1160_v43  ;;  %v190_v47 = vrot.slane %v168_v44, %v1156_v41  ;;  %v198_v50 = vcombine.high %v176_v45, %v176_v45  ;;  %v977_v54 = vld [vmem:[%s1275_s1 + $0x1c8] sm:$0xff]   ;;  %v981_v59 = vld [vmem:[%s1275_s1 + $0x1d0] sm:$0xff]   ;;  %v984_v61 = vld [vmem:[%s1275_s1 + $0x158] sm:$0xff]  }
   0xf   :  { %v978_v56 = vld [vmem:[%s1275_s1 + $0x108] sm:$0xff]   ;;  %v982_v60 = vld [vmem:[%s1275_s1 + $0x110] sm:$0xff]   ;;  %v985_v63 = vld [vmem:[%s1275_s1 + $0x1d8] sm:$0xff]  }
  0x10   :  { %854 = vmatpush3.bf16.msra.mxu0 %v953_v14  ;;  %v197_v49 = vrot.slane %v169_v46, %v1156_v41  ;;  %626 = vmatprep.mubr.bf16.mxu0 %v190_v47  ;;  %v200_v52 = vcombine.high %v190_v47, %v190_v47  ;;  %v979_v58 = vld [vmem:[%s1275_s1 + $0x188] sm:$0xff]   ;;  %v983_v62 = vld [vmem:[%s1275_s1 + $0x190] sm:$0xff]   ;;  %v986_v0 = vld [vmem:[%s1275_s1 + $0x118] sm:$0xff]  }
  0x11   :  { %876 = vmatpush3.bf16.msra.mxu1 %v954_v15  ;;  %855 = vmatprep.subr.bf16.mxu0 %v955_v16  ;;  %v988_v1 = vld [vmem:[%s1275_s1 + $0x160] sm:$0xff]   ;;  %v987_v2 = vld [vmem:[%s1275_s1 + $0x198] sm:$0xff]   ;;  %v992_v5 = vld [vmem:[%s1275_s1 + $0x168] sm:$0xff]  }
  0x12   :  { %877 = vmatprep.subr.bf16.mxu1 %v956_v17  ;;  %v201_v55 = vcombine.high %v197_v49, %v197_v49  ;;  %666 = vmatprep.mubr.bf16.mxu1 %v200_v52  ;;  %v989_v3 = vld [vmem:[%s1275_s1 + $0x1e0] sm:$0xff]   ;;  %v993_v7 = vld [vmem:[%s1275_s1 + $0x1e8] sm:$0xff]   ;;  %v996_v9 = vld [vmem:[%s1275_s1 + $0x170] sm:$0xff]  }
  0x13   :  { %v990_v4 = vld [vmem:[%s1275_s1 + $0x120] sm:$0xff]   ;;  %v994_v8 = vld [vmem:[%s1275_s1 + $0x128] sm:$0xff]  }
  0x14   :  { %856 = vmatpush3.bf16.msra.mxu0 %v957_v18  ;;  %v991_v6 = vld [vmem:[%s1275_s1 + $0x1a0] sm:$0xff]  }
  0x15   :  { %878 = vmatpush3.bf16.msra.mxu1 %v958_v19  ;;  %857 = vmatprep.subr.bf16.mxu0 %v959_v20 }
  0x16   :  { %879 = vmatprep.subr.bf16.mxu1 %v960_v21 }
  0x18   :  { %858 = vmatpush3.bf16.msra.mxu0 %v961_v22 }
  0x19   :  { %880 = vmatpush3.bf16.msra.mxu1 %v962_v23  ;;  %859 = vmatprep.subr.bf16.mxu0 %v963_v24 }
  0x1a   :  { %881 = vmatprep.subr.bf16.mxu1 %v964_v25 }
  0x1c   :  { %860 = vmatpush3.bf16.msra.mxu0 %v965_v26 }
  0x1d   :  { %882 = vmatpush3.bf16.msra.mxu1 %v966_v27  ;;  %861 = vmatprep.subr.bf16.mxu0 %v967_v29 }
  0x1e   :  { %883 = vmatprep.subr.bf16.mxu1 %v968_v30 }
  0x20   :  { %862 = vmatpush3.bf16.msra.mxu0 %v969_v31 }
  0x21   :  { %884 = vmatpush3.bf16.msra.mxu1 %v970_v32  ;;  %891 = vmatprep.subr.bf16.mxu0 %v972_v35 }
  0x22   :  { %913 = vmatprep.subr.bf16.mxu1 %v973_v38 }
  0x23   :  { %627 = vmatmul.mubr.bf16.vlgmr.msra.gmra.mrb[0].mxu0 %v176_v45 }
  0x24   :  { %892 = vmatpush3.bf16.msra.mxu0 %v974_v48  ;;  %667 = vmatmul.mubr.bf16.vlgmr.msra.gmra.mrb[0].mxu1 %v198_v50 }
  0x25   :  { %893 = vmatprep.subr.bf16.mxu0 %v976_v51  ;;  %914 = vmatpush3.bf16.msra.mxu1 %v975_v53 }
  0x26   :  { %706 = vmatprep.mubr.bf16.mxu0 %v197_v49  ;;  %915 = vmatprep.subr.bf16.mxu1 %v977_v54 }
  0x27   :  { %746 = vmatprep.mubr.bf16.mxu1 %v201_v55 }
  0x28   :  { %894 = vmatpush3.bf16.msra.mxu0 %v978_v56 }
  0x29   :  { %895 = vmatprep.subr.bf16.mxu0 %v980_v57  ;;  %916 = vmatpush3.bf16.msra.mxu1 %v979_v58 }
  0x2a   :  { %917 = vmatprep.subr.bf16.mxu1 %v981_v59 }
  0x2c   :  { %896 = vmatpush3.bf16.msra.mxu0 %v982_v60 }
  0x2d   :  { %897 = vmatprep.subr.bf16.mxu0 %v984_v61  ;;  %918 = vmatpush3.bf16.msra.mxu1 %v983_v62 }
  0x2e   :  { %919 = vmatprep.subr.bf16.mxu1 %v985_v63 }
  0x30   :  { %898 = vmatpush3.bf16.msra.mxu0 %v986_v0 }
  0x31   :  { %899 = vmatprep.subr.bf16.mxu0 %v988_v1  ;;  %920 = vmatpush3.bf16.msra.mxu1 %v987_v2 }
  0x32   :  { %921 = vmatprep.subr.bf16.mxu1 %v989_v3 }
  0x34   :  { %900 = vmatpush3.bf16.msra.mxu0 %v990_v4 }
  0x35   :  { %901 = vmatprep.subr.bf16.mxu0 %v992_v5 }
  0x36   :  { %8 = vsyncpa [#allocation3], 0  ;;  %922 = vmatpush3.bf16.msra.mxu1 %v991_v6  ;;  %v995_v10 = vld [vmem:[%s1275_s1 + $0x1a8] sm:$0xff]   ;;  %v997_v11 = vld [vmem:[%s1275_s1 + $0x1f0] sm:$0xff]   ;;  %v183_v17 = vrot.slane %v1160_v43, %v1156_v41  ;;  %v1029_v20 = vmov 6   ;;  %vm760_vm0 = vcmask 41984  }
  0x37   :  { %923 = vmatprep.subr.bf16.mxu1 %v993_v7  ;;  %v998_v12 = vld [vmem:[%s1275_s1 + $0x130] sm:$0xff]   ;;  %v1000_v13 = vld [vmem:[%s1275_s1 + $0x178] sm:$0xff]   ;;  %938 = vset.pattern.permute.xlu0 %v1029_v20  ;;  %v782_v22 = vld [vmem:[%s1276_s2] ss:$0 sm:$0xff] }
  0x38   :  { %902 = vmatpush3.bf16.msra.mxu0 %v994_v8  ;;  %v999_v14 = vld [vmem:[%s1275_s1 + $0x1b0] sm:$0xff]   ;;  %v1001_v15 = vld [vmem:[%s1275_s1 + $0x1f8] sm:$0xff]   ;;  %v199_v19 = vcombine.high %v183_v17, %v183_v17 }
  0x39   :  { %903 = vmatprep.subr.bf16.mxu0 %v996_v9  ;;  %v1002_v16 = vld [vmem:[%s1275_s1 + $0x138] sm:$0xff]  }
  0x3a   :  { %924 = vmatpush3.bf16.msra.mxu1 %v995_v10  ;;  %v1003_v18 = vld [vmem:[%s1275_s1 + $0x1b8] sm:$0xff]   ;;  %s1030_s1 = smov [#allocation2]  }
  0x3b   :  { %925 = vmatprep.subr.bf16.mxu1 %v997_v11  ;;  %s774_s2 = sshll.u32 %s1030_s1, 4  ;;  %s775_s2 = int_to_ptr.vmem [resolvable:$true] %s774_s2 }
  0x3c   :  { %904 = vmatpush3.bf16.msra.mxu0 %v998_v12  ;;  %s1004_s6 = scalar_lea.vmem %s775_s2, 32  ;;  %p1009_p1 = scmp.lt.s32.totalorder %s775_s2, %s775_s2 }
  0x3d   :  { %905 = vmatprep.subr.bf16.mxu0 %v1000_v13  ;;  %p1005_p0 = scmp.ne.s32.totalorder %s775_s2, %s1004_s6  ;;  %p1010_p2 = scmp.lt.s32.totalorder %s1004_s6, %s1004_s6 }
  0x3e   :  { %926 = vmatpush3.bf16.msra.mxu1 %v999_v14 }
  0x3f   :  { %927 = vmatprep.subr.bf16.mxu1 %v1001_v15  ;;  %p1011_p3 = por %p1010_p2, %p1009_p1 }
  0x40   :  { %906 = vmatpush3.bf16.msra.mxu0 %v1002_v16 }
  0x41   :  { %p1012_p4 = pnand %p1011_p3, %p1005_p0 }
  0x42   :  { %928 = vmatpush3.bf16.msra.mxu1 %v1003_v18 }
  0x43   :  { %707 = vmatmul.mubr.bf16.vlgmr.msra.gmra.mrb[4].mxu0 %v183_v17 }
  0x45   :  { %747 = vmatmul.mubr.bf16.vlgmr.msra.gmra.mrb[4].mxu1 %v199_v19 }
  0xf6   :  { %v863_v21 = vpop.f32.mrb[0].mxu0 }
  0xf7   :  { %v864_v23 = vpop.f32.mrb[1].mxu0  ;;  %v885_v24 = vpop.f32.mrb[0].mxu1 }
  0xf8   :  { %v865_v25 = vadd.f32 %v864_v23, %v863_v21  ;;  %v866_v26 = vpop.f32.mrb[2].mxu0  ;;  %v886_v27 = vpop.f32.mrb[1].mxu1 }
  0xf9   :  { %v867_v28 = vpop.f32.mrb[3].mxu0  ;;  %v887_v30 = vadd.f32 %v886_v27, %v885_v24  ;;  %v888_v31 = vpop.f32.mrb[2].mxu1 }
  0xfa   :  { %v629_v29 = vadd.f32 %v865_v25, %v782_v22  ;;  %v889_v32 = vpop.f32.mrb[3].mxu1 }
  0xfc   :  { %v669_v33 = vadd.f32 %v887_v30, %v629_v29 }
 0x116   :  { %v907_v34 = vpop.f32.mrb[4].mxu0 }
 0x117   :  { %v908_v35 = vpop.f32.mrb[5].mxu0 }
 0x118   :  { %v929_v36 = vpop.f32.mrb[4].mxu1  ;;  %v909_v37 = vadd.f32 %v908_v35, %v907_v34  ;;  %v910_v38 = vpop.f32.mrb[6].mxu0 }
 0x119   :  { %v930_v39 = vpop.f32.mrb[5].mxu1  ;;  %v911_v40 = vpop.f32.mrb[7].mxu0 }
 0x11a   :  { %v709_v41 = vadd.f32 %v909_v37, %v669_v33  ;;  %v931_v42 = vadd.f32 %v930_v39, %v929_v36  ;;  %v932_v43 = vpop.f32.mrb[6].mxu1 }
 0x11b   :  { %v933_v44 = vpop.f32.mrb[7].mxu1 }
 0x11c   :  { %v749_v45 = vadd.f32 %v931_v42, %v709_v41 }
 0x11e   :  { %v761_v46 = vsel %vm760_vm0, %v749_v45, 0.0 }
 0x11f   :  { %762 = vadd.xlane.f32.xlu0 %v761_v46 }
 0x135   :  { %756 = vperm.xlu0 %938, %v749_v45  }
 0x1ac   :  { %v763_v47 = vpop.xlane.xlu0 %762 }
 0x1ad   :  { %v765_v49 = vmul.f32 0.16666667, %v763_v47 }
 0x1b4   :  { %v757_v48 = vpop.permute.xlu0 %756 }
 0x1b5   :  { %v759_v50 = vadd.f32 %v757_v48, %v749_v45 }
 0x1b7   :  { %v766_v51 = vsub.f32 %v759_v50, %v765_v49 }
 0x1b9   :  { %767 = vst.msk [vmem:[#allocation2] sm:$0x3] %vm760_vm0, %v766_v51 }
 0x1ba   :  { %1015 = shalt.err (!%p1012_p4)
}
 0x1bb   :  { %s1016_s9 = scalar_lea.hbm %s1277_s3, 32 }
 0x1bc   :  { %p1017_p5 = scmp.ne.s32.totalorder %s1277_s3, %s1016_s9  ;;  %p1020_p6 = scmp.lt.u32.totalorder %s1016_s9, %s1277_s3 }
 0x1be   :  { %p1022_p7 = pnand %p1020_p6, %p1017_p5 }
 0x1c0   :  { %1025 = shalt.err (!%p1022_p7)
}
 0x1c1   :  { %777 = dma.vmem_to_hbm [thread:$0]  %s775_s2, 32, %s1277_s3, [#allocation3]  }
 0x1c2   :  { %1026 = dma.done.wait [#allocation3], 32  }
 0x1c3   :  { %1027 = vsyncadd [#allocation3], 4294967264 }
 0x1c4   :  { %781 = vsyncpa [#allocation3], 1 }

// kernel: dueling_network_forward.8
= control target key start
LH: loop header
LB: loop body
LE: loop exit
PB: predicated region body
PF: predicated region fallthrough
CT: control target
= control target key end

     0   :  { %s10138_s12 = smov 0   ;;  %s10140_s13 = smov 0   ;;  %s12724_s0 = inlined_call_operand.vmem [shape: bf16[2,3136], index: 0, kind: input, shape index: {}]   ;;  %s12725_s1 = inlined_call_operand.vmem [shape: bf16[3136,1024], index: 1, kind: input, shape index: {}]   ;;  %s12726_s2 = inlined_call_operand.vmem [shape: f32[1,1024], index: 2, kind: input, shape index: {}]   ;;  %s12727_s3 = inlined_call_operand.vmem [shape: bf16[2,1024], index: 3, kind: output, shape index: {}]  }
   0x1   :  { %s10142_s14 = smov 0   ;;  %s10144_s15 = smov 0  }
   0x2   :  { %s10146_s16 = smov 0  }
   0x3 LB: > { %s22_s17 = sadd.s32 1, %s10110_s15  ;;  %p65_p1 = scmp.ne.s32.totalorder %s10102_s13, %s10098_s12  ;;  %s10114_s16 = sphi %s10146_s16, %s13_s16   ;;  %s10110_s15 = sphi %s10144_s15, %s12731_s15   ;;  %s10106_s14 = sphi %s10142_s14, %s12730_s14   ;;  %s10102_s13 = sphi %s10140_s13, %s12729_s13   ;;  %s10098_s12 = sphi %s10138_s12, %s12728_s12  }
   0x4   : > { %p23_p0 = scmp.ge.s32.totalorder %s22_s17, 2  ;;  %p66_p2 = scmp.eq.s32.totalorder %s10114_s16, 0 }
   0x5   : > { %s58_s19 = sadd.s32 1, %s10102_s13  ;;  %p7952_p5 = scmp.ge.s32.totalorder %s10114_s16, 2 }
   0x6   : > { %s12733_s17 = smov (%p23_p0, %s22_s17), 0  ;;  %p67_p3 = por %p66_p2, %p65_p1 }
   0x7   : > { %s55_s18 = ssub.s32 %s10110_s15, %s12733_s17  ;;  %152 = sbr.rel (%p7952_p5) target bundleno = 410 (0x19a), region = 20 }
   0x8   : > { %p56_p4 = scmp.eq.s32.totalorder %s55_s18, 0 }
   0xa   : > { %s10173_s20 = scalar_select %p56_p4, %s10102_s13, %s58_s19  }
   0xe   : > { %155 = sbr.rel (!%p67_p3) target bundleno = 410 (0x19a), region = 24  ;;  %s157_s21 = sand.u32 (%p67_p3), 1, %s10102_s13  }
   0xf   : > { %s8750_s22 = sshll.u32 (%p67_p3), %s10110_s15, 4  ;;  %s8851_s23 = smul.u32 (%p67_p3), 6272, %s157_s21 }
  0x10   : > { %s10181_s26 = scalar_lea.vmem (%p67_p3), %s12725_s1, %s8750_s22 }
  0x11   : > { %v175_v0 = vld [vmem:[%s10181_s26] sm:$0xff] (%p67_p3)  ;;  %v177_v1 = vld [vmem:[%s10181_s26 + $0x8] sm:$0xff] (%p67_p3)  ;;  %s10189_s27 = scalar_lea.vmem (%p67_p3), [#allocation2], %s8851_s23 }
  0x12   : > { %v179_v2 = vld [vmem:[%s10181_s26 + $0x20] sm:$0xff] (%p67_p3)  ;;  %v181_v3 = vld [vmem:[%s10181_s26 + $0x28] sm:$0xff] (%p67_p3)  ;;  %176 = vst [vmem:[%s10189_s27] sm:$0xff] (%p67_p3), %v175_v0  ;;  %178 = vst [vmem:[%s10189_s27 + $0x8] sm:$0xff] (%p67_p3), %v177_v1 }
  0x13   : > { %v183_v4 = vld [vmem:[%s10181_s26 + $0x40] sm:$0xff] (%p67_p3)  ;;  %v185_v5 = vld [vmem:[%s10181_s26 + $0x48] sm:$0xff] (%p67_p3)  ;;  %180 = vst [vmem:[%s10189_s27 + $0x10] sm:$0xff] (%p67_p3), %v179_v2  ;;  %182 = vst [vmem:[%s10189_s27 + $0x18] sm:$0xff] (%p67_p3), %v181_v3 }
  0x14   : > { %184 = vst [vmem:[%s10189_s27 + $0x20] sm:$0xff] (%p67_p3), %v183_v4  ;;  %186 = vst [vmem:[%s10189_s27 + $0x28] sm:$0xff] (%p67_p3), %v185_v5  ;;  %v187_v6 = vld [vmem:[%s10181_s26 + $0x60] sm:$0xff] (%p67_p3)  ;;  %v189_v7 = vld [vmem:[%s10181_s26 + $0x68] sm:$0xff] (%p67_p3) }
  0x15   : > { %v191_v8 = vld [vmem:[%s10181_s26 + $0x80] sm:$0xff]  ;;  %188 = vst [vmem:[%s10189_s27 + $0x30] sm:$0xff] %v187_v6  ;;  %190 = vst [vmem:[%s10189_s27 + $0x38] sm:$0xff] %v189_v7  ;;  %v193_v9 = vld [vmem:[%s10181_s26 + $0x88] sm:$0xff] }
  0x16   : > { %192 = vst [vmem:[%s10189_s27 + $0x40] sm:$0xff] %v191_v8  ;;  %v195_v10 = vld [vmem:[%s10181_s26 + $0xa0] sm:$0xff]  ;;  %v197_v11 = vld [vmem:[%s10181_s26 + $0xa8] sm:$0xff]  ;;  %194 = vst [vmem:[%s10189_s27 + $0x48] sm:$0xff] %v193_v9 }
  0x17   : > { %196 = vst [vmem:[%s10189_s27 + $0x50] sm:$0xff] %v195_v10  ;;  %198 = vst [vmem:[%s10189_s27 + $0x58] sm:$0xff] %v197_v11  ;;  %v199_v12 = vld [vmem:[%s10181_s26 + $0xc0] sm:$0xff]  ;;  %v201_v13 = vld [vmem:[%s10181_s26 + $0xc8] sm:$0xff] }
  0x18   : > { %v203_v14 = vld [vmem:[%s10181_s26 + $0xe0] sm:$0xff]  ;;  %200 = vst [vmem:[%s10189_s27 + $0x60] sm:$0xff] %v199_v12  ;;  %202 = vst [vmem:[%s10189_s27 + $0x68] sm:$0xff] %v201_v13  ;;  %v205_v15 = vld [vmem:[%s10181_s26 + $0xe8] sm:$0xff] }
  0x19   : > { %204 = vst [vmem:[%s10189_s27 + $0x70] sm:$0xff] %v203_v14  ;;  %v207_v16 = vld [vmem:[%s10181_s26 + $0x100] sm:$0xff]  ;;  %v209_v17 = vld [vmem:[%s10181_s26 + $0x108] sm:$0xff]  ;;  %206 = vst [vmem:[%s10189_s27 + $0x78] sm:$0xff] %v205_v15 }
  0x1a   : > { %208 = vst [vmem:[%s10189_s27 + $0x80] sm:$0xff] %v207_v16  ;;  %210 = vst [vmem:[%s10189_s27 + $0x88] sm:$0xff] %v209_v17  ;;  %v211_v18 = vld [vmem:[%s10181_s26 + $0x120] sm:$0xff]  ;;  %v213_v19 = vld [vmem:[%s10181_s26 + $0x128] sm:$0xff] }
  0x1b   : > { %v215_v20 = vld [vmem:[%s10181_s26 + $0x140] sm:$0xff]  ;;  %212 = vst [vmem:[%s10189_s27 + $0x90] sm:$0xff] %v211_v18  ;;  %214 = vst [vmem:[%s10189_s27 + $0x98] sm:$0xff] %v213_v19  ;;  %v217_v21 = vld [vmem:[%s10181_s26 + $0x148] sm:$0xff] }
  0x1c   : > { %216 = vst [vmem:[%s10189_s27 + $0xa0] sm:$0xff] %v215_v20  ;;  %v219_v22 = vld [vmem:[%s10181_s26 + $0x160] sm:$0xff]  ;;  %v221_v23 = vld [vmem:[%s10181_s26 + $0x168] sm:$0xff]  ;;  %218 = vst [vmem:[%s10189_s27 + $0xa8] sm:$0xff] %v217_v21 }
  0x1d   : > { %220 = vst [vmem:[%s10189_s27 + $0xb0] sm:$0xff] %v219_v22  ;;  %222 = vst [vmem:[%s10189_s27 + $0xb8] sm:$0xff] %v221_v23  ;;  %v223_v24 = vld [vmem:[%s10181_s26 + $0x180] sm:$0xff]  ;;  %v225_v25 = vld [vmem:[%s10181_s26 + $0x188] sm:$0xff] }
  0x1e   : > { %v227_v26 = vld [vmem:[%s10181_s26 + $0x1a0] sm:$0xff]  ;;  %224 = vst [vmem:[%s10189_s27 + $0xc0] sm:$0xff] %v223_v24  ;;  %226 = vst [vmem:[%s10189_s27 + $0xc8] sm:$0xff] %v225_v25  ;;  %v229_v27 = vld [vmem:[%s10181_s26 + $0x1a8] sm:$0xff] }
  0x1f   : > { %228 = vst [vmem:[%s10189_s27 + $0xd0] sm:$0xff] %v227_v26  ;;  %v231_v28 = vld [vmem:[%s10181_s26 + $0x1c0] sm:$0xff]  ;;  %v233_v29 = vld [vmem:[%s10181_s26 + $0x1c8] sm:$0xff]  ;;  %230 = vst [vmem:[%s10189_s27 + $0xd8] sm:$0xff] %v229_v27 }
  0x20   : > { %232 = vst [vmem:[%s10189_s27 + $0xe0] sm:$0xff] %v231_v28  ;;  %234 = vst [vmem:[%s10189_s27 + $0xe8] sm:$0xff] %v233_v29  ;;  %v235_v30 = vld [vmem:[%s10181_s26 + $0x1e0] sm:$0xff]  ;;  %v237_v31 = vld [vmem:[%s10181_s26 + $0x1e8] sm:$0xff] }
  0x21   : > { %v239_v32 = vld [vmem:[%s10181_s26 + $0x200] sm:$0xff]  ;;  %236 = vst [vmem:[%s10189_s27 + $0xf0] sm:$0xff] %v235_v30  ;;  %238 = vst [vmem:[%s10189_s27 + $0xf8] sm:$0xff] %v237_v31  ;;  %v241_v33 = vld [vmem:[%s10181_s26 + $0x208] sm:$0xff] }
  0x22   : > { %240 = vst [vmem:[%s10189_s27 + $0x100] sm:$0xff] %v239_v32  ;;  %v243_v34 = vld [vmem:[%s10181_s26 + $0x220] sm:$0xff]  ;;  %v245_v35 = vld [vmem:[%s10181_s26 + $0x228] sm:$0xff]  ;;  %242 = vst [vmem:[%s10189_s27 + $0x108] sm:$0xff] %v241_v33 }
  0x23   : > { %244 = vst [vmem:[%s10189_s27 + $0x110] sm:$0xff] %v243_v34  ;;  %246 = vst [vmem:[%s10189_s27 + $0x118] sm:$0xff] %v245_v35  ;;  %v247_v36 = vld [vmem:[%s10181_s26 + $0x240] sm:$0xff]  ;;  %v249_v37 = vld [vmem:[%s10181_s26 + $0x248] sm:$0xff] }
  0x24   : > { %v251_v38 = vld [vmem:[%s10181_s26 + $0x260] sm:$0xff]  ;;  %248 = vst [vmem:[%s10189_s27 + $0x120] sm:$0xff] %v247_v36  ;;  %250 = vst [vmem:[%s10189_s27 + $0x128] sm:$0xff] %v249_v37  ;;  %v253_v39 = vld [vmem:[%s10181_s26 + $0x268] sm:$0xff] }
  0x25   : > { %252 = vst [vmem:[%s10189_s27 + $0x130] sm:$0xff] %v251_v38  ;;  %v255_v40 = vld [vmem:[%s10181_s26 + $0x280] sm:$0xff]  ;;  %v257_v41 = vld [vmem:[%s10181_s26 + $0x288] sm:$0xff]  ;;  %254 = vst [vmem:[%s10189_s27 + $0x138] sm:$0xff] %v253_v39 }
  0x26   : > { %256 = vst [vmem:[%s10189_s27 + $0x140] sm:$0xff] %v255_v40  ;;  %258 = vst [vmem:[%s10189_s27 + $0x148] sm:$0xff] %v257_v41  ;;  %v259_v42 = vld [vmem:[%s10181_s26 + $0x2a0] sm:$0xff]  ;;  %v261_v43 = vld [vmem:[%s10181_s26 + $0x2a8] sm:$0xff] }
  0x27   : > { %v263_v44 = vld [vmem:[%s10181_s26 + $0x2c0] sm:$0xff]  ;;  %260 = vst [vmem:[%s10189_s27 + $0x150] sm:$0xff] %v259_v42  ;;  %262 = vst [vmem:[%s10189_s27 + $0x158] sm:$0xff] %v261_v43  ;;  %v265_v45 = vld [vmem:[%s10181_s26 + $0x2c8] sm:$0xff] }
  0x28   : > { %264 = vst [vmem:[%s10189_s27 + $0x160] sm:$0xff] %v263_v44  ;;  %v267_v46 = vld [vmem:[%s10181_s26 + $0x2e0] sm:$0xff]  ;;  %v269_v47 = vld [vmem:[%s10181_s26 + $0x2e8] sm:$0xff]  ;;  %266 = vst [vmem:[%s10189_s27 + $0x168] sm:$0xff] %v265_v45 }
  0x29   : > { %268 = vst [vmem:[%s10189_s27 + $0x170] sm:$0xff] %v267_v46  ;;  %270 = vst [vmem:[%s10189_s27 + $0x178] sm:$0xff] %v269_v47  ;;  %v271_v48 = vld [vmem:[%s10181_s26 + $0x300] sm:$0xff]  ;;  %v273_v49 = vld [vmem:[%s10181_s26 + $0x308] sm:$0xff] }
  0x2a   : > { %v275_v50 = vld [vmem:[%s10181_s26 + $0x320] sm:$0xff]  ;;  %272 = vst [vmem:[%s10189_s27 + $0x180] sm:$0xff] %v271_v48  ;;  %274 = vst [vmem:[%s10189_s27 + $0x188] sm:$0xff] %v273_v49  ;;  %v277_v51 = vld [vmem:[%s10181_s26 + $0x328] sm:$0xff] }
  0x2b   : > { %276 = vst [vmem:[%s10189_s27 + $0x190] sm:$0xff] %v275_v50  ;;  %v279_v52 = vld [vmem:[%s10181_s26 + $0x340] sm:$0xff]  ;;  %v281_v53 = vld [vmem:[%s10181_s26 + $0x348] sm:$0xff]  ;;  %278 = vst [vmem:[%s10189_s27 + $0x198] sm:$0xff] %v277_v51 }
  0x2c   : > { %280 = vst [vmem:[%s10189_s27 + $0x1a0] sm:$0xff] %v279_v52  ;;  %282 = vst [vmem:[%s10189_s27 + $0x1a8] sm:$0xff] %v281_v53  ;;  %v283_v54 = vld [vmem:[%s10181_s26 + $0x360] sm:$0xff]  ;;  %v285_v55 = vld [vmem:[%s10181_s26 + $0x368] sm:$0xff] }
  0x2d   : > { %v287_v56 = vld [vmem:[%s10181_s26 + $0x380] sm:$0xff]  ;;  %284 = vst [vmem:[%s10189_s27 + $0x1b0] sm:$0xff] %v283_v54  ;;  %286 = vst [vmem:[%s10189_s27 + $0x1b8] sm:$0xff] %v285_v55  ;;  %v289_v57 = vld [vmem:[%s10181_s26 + $0x388] sm:$0xff] }
  0x2e   : > { %288 = vst [vmem:[%s10189_s27 + $0x1c0] sm:$0xff] %v287_v56  ;;  %v291_v58 = vld [vmem:[%s10181_s26 + $0x3a0] sm:$0xff]  ;;  %v293_v59 = vld [vmem:[%s10181_s26 + $0x3a8] sm:$0xff]  ;;  %290 = vst [vmem:[%s10189_s27 + $0x1c8] sm:$0xff] %v289_v57 }
  0x2f   : > { %292 = vst [vmem:[%s10189_s27 + $0x1d0] sm:$0xff] %v291_v58  ;;  %294 = vst [vmem:[%s10189_s27 + $0x1d8] sm:$0xff] %v293_v59  ;;  %v295_v60 = vld [vmem:[%s10181_s26 + $0x3c0] sm:$0xff]  ;;  %v297_v61 = vld [vmem:[%s10181_s26 + $0x3c8] sm:$0xff] }
  0x30   : > { %v299_v62 = vld [vmem:[%s10181_s26 + $0x3e0] sm:$0xff]  ;;  %296 = vst [vmem:[%s10189_s27 + $0x1e0] sm:$0xff] %v295_v60  ;;  %298 = vst [vmem:[%s10189_s27 + $0x1e8] sm:$0xff] %v297_v61  ;;  %v301_v63 = vld [vmem:[%s10181_s26 + $0x3e8] sm:$0xff] }
  0x31   : > { %300 = vst [vmem:[%s10189_s27 + $0x1f0] sm:$0xff] %v299_v62  ;;  %v303_v0 = vld [vmem:[%s10181_s26 + $0x400] sm:$0xff]  ;;  %v305_v1 = vld [vmem:[%s10181_s26 + $0x408] sm:$0xff]  ;;  %302 = vst [vmem:[%s10189_s27 + $0x1f8] sm:$0xff] %v301_v63 }
  0x32   : > { %304 = vst [vmem:[%s10189_s27 + $0x200] sm:$0xff] %v303_v0  ;;  %306 = vst [vmem:[%s10189_s27 + $0x208] sm:$0xff] %v305_v1  ;;  %v307_v2 = vld [vmem:[%s10181_s26 + $0x420] sm:$0xff]  ;;  %v309_v3 = vld [vmem:[%s10181_s26 + $0x428] sm:$0xff] }
  0x33   : > { %v311_v4 = vld [vmem:[%s10181_s26 + $0x440] sm:$0xff]  ;;  %308 = vst [vmem:[%s10189_s27 + $0x210] sm:$0xff] %v307_v2  ;;  %310 = vst [vmem:[%s10189_s27 + $0x218] sm:$0xff] %v309_v3  ;;  %v313_v5 = vld [vmem:[%s10181_s26 + $0x448] sm:$0xff] }
  0x34   : > { %312 = vst [vmem:[%s10189_s27 + $0x220] sm:$0xff] %v311_v4  ;;  %v315_v6 = vld [vmem:[%s10181_s26 + $0x460] sm:$0xff]  ;;  %v317_v7 = vld [vmem:[%s10181_s26 + $0x468] sm:$0xff]  ;;  %314 = vst [vmem:[%s10189_s27 + $0x228] sm:$0xff] %v313_v5 }
  0x35   : > { %316 = vst [vmem:[%s10189_s27 + $0x230] sm:$0xff] %v315_v6  ;;  %318 = vst [vmem:[%s10189_s27 + $0x238] sm:$0xff] %v317_v7  ;;  %v319_v8 = vld [vmem:[%s10181_s26 + $0x480] sm:$0xff]  ;;  %v321_v9 = vld [vmem:[%s10181_s26 + $0x488] sm:$0xff] }
  0x36   : > { %v323_v10 = vld [vmem:[%s10181_s26 + $0x4a0] sm:$0xff]  ;;  %320 = vst [vmem:[%s10189_s27 + $0x240] sm:$0xff] %v319_v8  ;;  %322 = vst [vmem:[%s10189_s27 + $0x248] sm:$0xff] %v321_v9  ;;  %v325_v11 = vld [vmem:[%s10181_s26 + $0x4a8] sm:$0xff] }
  0x37   : > { %324 = vst [vmem:[%s10189_s27 + $0x250] sm:$0xff] %v323_v10  ;;  %v327_v12 = vld [vmem:[%s10181_s26 + $0x4c0] sm:$0xff]  ;;  %v329_v13 = vld [vmem:[%s10181_s26 + $0x4c8] sm:$0xff]  ;;  %326 = vst [vmem:[%s10189_s27 + $0x258] sm:$0xff] %v325_v11 }
  0x38   : > { %328 = vst [vmem:[%s10189_s27 + $0x260] sm:$0xff] %v327_v12  ;;  %330 = vst [vmem:[%s10189_s27 + $0x268] sm:$0xff] %v329_v13  ;;  %v331_v14 = vld [vmem:[%s10181_s26 + $0x4e0] sm:$0xff]  ;;  %v333_v15 = vld [vmem:[%s10181_s26 + $0x4e8] sm:$0xff] }
  0x39   : > { %v335_v16 = vld [vmem:[%s10181_s26 + $0x500] sm:$0xff]  ;;  %332 = vst [vmem:[%s10189_s27 + $0x270] sm:$0xff] %v331_v14  ;;  %334 = vst [vmem:[%s10189_s27 + $0x278] sm:$0xff] %v333_v15  ;;  %v337_v17 = vld [vmem:[%s10181_s26 + $0x508] sm:$0xff] }
  0x3a   : > { %336 = vst [vmem:[%s10189_s27 + $0x280] sm:$0xff] %v335_v16  ;;  %v339_v18 = vld [vmem:[%s10181_s26 + $0x520] sm:$0xff]  ;;  %v341_v19 = vld [vmem:[%s10181_s26 + $0x528] sm:$0xff]  ;;  %338 = vst [vmem:[%s10189_s27 + $0x288] sm:$0xff] %v337_v17 }
  0x3b   : > { %340 = vst [vmem:[%s10189_s27 + $0x290] sm:$0xff] %v339_v18  ;;  %342 = vst [vmem:[%s10189_s27 + $0x298] sm:$0xff] %v341_v19  ;;  %v343_v20 = vld [vmem:[%s10181_s26 + $0x540] sm:$0xff]  ;;  %v345_v21 = vld [vmem:[%s10181_s26 + $0x548] sm:$0xff] }
  0x3c   : > { %v347_v22 = vld [vmem:[%s10181_s26 + $0x560] sm:$0xff]  ;;  %344 = vst [vmem:[%s10189_s27 + $0x2a0] sm:$0xff] %v343_v20  ;;  %346 = vst [vmem:[%s10189_s27 + $0x2a8] sm:$0xff] %v345_v21  ;;  %v349_v23 = vld [vmem:[%s10181_s26 + $0x568] sm:$0xff] }
  0x3d   : > { %348 = vst [vmem:[%s10189_s27 + $0x2b0] sm:$0xff] %v347_v22  ;;  %v351_v24 = vld [vmem:[%s10181_s26 + $0x580] sm:$0xff]  ;;  %v353_v25 = vld [vmem:[%s10181_s26 + $0x588] sm:$0xff]  ;;  %350 = vst [vmem:[%s10189_s27 + $0x2b8] sm:$0xff] %v349_v23 }
  0x3e   : > { %352 = vst [vmem:[%s10189_s27 + $0x2c0] sm:$0xff] %v351_v24  ;;  %354 = vst [vmem:[%s10189_s27 + $0x2c8] sm:$0xff] %v353_v25  ;;  %v355_v26 = vld [vmem:[%s10181_s26 + $0x5a0] sm:$0xff]  ;;  %v357_v27 = vld [vmem:[%s10181_s26 + $0x5a8] sm:$0xff] }
  0x3f   : > { %v359_v28 = vld [vmem:[%s10181_s26 + $0x5c0] sm:$0xff]  ;;  %356 = vst [vmem:[%s10189_s27 + $0x2d0] sm:$0xff] %v355_v26  ;;  %358 = vst [vmem:[%s10189_s27 + $0x2d8] sm:$0xff] %v357_v27  ;;  %v361_v29 = vld [vmem:[%s10181_s26 + $0x5c8] sm:$0xff] }
  0x40   : > { %360 = vst [vmem:[%s10189_s27 + $0x2e0] sm:$0xff] %v359_v28  ;;  %v363_v30 = vld [vmem:[%s10181_s26 + $0x5e0] sm:$0xff]  ;;  %v365_v31 = vld [vmem:[%s10181_s26 + $0x5e8] sm:$0xff]  ;;  %362 = vst [vmem:[%s10189_s27 + $0x2e8] sm:$0xff] %v361_v29 }
  0x41   : > { %364 = vst [vmem:[%s10189_s27 + $0x2f0] sm:$0xff] %v363_v30  ;;  %366 = vst [vmem:[%s10189_s27 + $0x2f8] sm:$0xff] %v365_v31  ;;  %v367_v32 = vld [vmem:[%s10181_s26 + $0x600] sm:$0xff]  ;;  %v369_v33 = vld [vmem:[%s10181_s26 + $0x608] sm:$0xff] }
  0x42   : > { %v371_v34 = vld [vmem:[%s10181_s26 + $0x620] sm:$0xff]  ;;  %368 = vst [vmem:[%s10189_s27 + $0x300] sm:$0xff] %v367_v32  ;;  %370 = vst [vmem:[%s10189_s27 + $0x308] sm:$0xff] %v369_v33  ;;  %v373_v35 = vld [vmem:[%s10181_s26 + $0x628] sm:$0xff] }
  0x43   : > { %372 = vst [vmem:[%s10189_s27 + $0x310] sm:$0xff] %v371_v34  ;;  %v375_v36 = vld [vmem:[%s10181_s26 + $0x640] sm:$0xff]  ;;  %v377_v37 = vld [vmem:[%s10181_s26 + $0x648] sm:$0xff]  ;;  %374 = vst [vmem:[%s10189_s27 + $0x318] sm:$0xff] %v373_v35 }
  0x44   : > { %376 = vst [vmem:[%s10189_s27 + $0x320] sm:$0xff] %v375_v36  ;;  %378 = vst [vmem:[%s10189_s27 + $0x328] sm:$0xff] %v377_v37  ;;  %v379_v38 = vld [vmem:[%s10181_s26 + $0x660] sm:$0xff]  ;;  %v381_v39 = vld [vmem:[%s10181_s26 + $0x668] sm:$0xff] }
  0x45   : > { %v383_v40 = vld [vmem:[%s10181_s26 + $0x680] sm:$0xff]  ;;  %380 = vst [vmem:[%s10189_s27 + $0x330] sm:$0xff] %v379_v38  ;;  %382 = vst [vmem:[%s10189_s27 + $0x338] sm:$0xff] %v381_v39  ;;  %v385_v41 = vld [vmem:[%s10181_s26 + $0x688] sm:$0xff] }
  0x46   : > { %384 = vst [vmem:[%s10189_s27 + $0x340] sm:$0xff] %v383_v40  ;;  %v387_v42 = vld [vmem:[%s10181_s26 + $0x6a0] sm:$0xff]  ;;  %v389_v43 = vld [vmem:[%s10181_s26 + $0x6a8] sm:$0xff]  ;;  %386 = vst [vmem:[%s10189_s27 + $0x348] sm:$0xff] %v385_v41 }
  0x47   : > { %388 = vst [vmem:[%s10189_s27 + $0x350] sm:$0xff] %v387_v42  ;;  %390 = vst [vmem:[%s10189_s27 + $0x358] sm:$0xff] %v389_v43  ;;  %v391_v44 = vld [vmem:[%s10181_s26 + $0x6c0] sm:$0xff]  ;;  %v393_v45 = vld [vmem:[%s10181_s26 + $0x6c8] sm:$0xff] }
  0x48   : > { %v395_v46 = vld [vmem:[%s10181_s26 + $0x6e0] sm:$0xff]  ;;  %392 = vst [vmem:[%s10189_s27 + $0x360] sm:$0xff] %v391_v44  ;;  %394 = vst [vmem:[%s10189_s27 + $0x368] sm:$0xff] %v393_v45  ;;  %v397_v47 = vld [vmem:[%s10181_s26 + $0x6e8] sm:$0xff] }
  0x49   : > { %396 = vst [vmem:[%s10189_s27 + $0x370] sm:$0xff] %v395_v46  ;;  %v399_v48 = vld [vmem:[%s10181_s26 + $0x700] sm:$0xff]  ;;  %v401_v49 = vld [vmem:[%s10181_s26 + $0x708] sm:$0xff]  ;;  %398 = vst [vmem:[%s10189_s27 + $0x378] sm:$0xff] %v397_v47 }
  0x4a   : > { %400 = vst [vmem:[%s10189_s27 + $0x380] sm:$0xff] %v399_v48  ;;  %402 = vst [vmem:[%s10189_s27 + $0x388] sm:$0xff] %v401_v49  ;;  %v403_v50 = vld [vmem:[%s10181_s26 + $0x720] sm:$0xff]  ;;  %v405_v51 = vld [vmem:[%s10181_s26 + $0x728] sm:$0xff] }
  0x4b   : > { %v407_v52 = vld [vmem:[%s10181_s26 + $0x740] sm:$0xff]  ;;  %404 = vst [vmem:[%s10189_s27 + $0x390] sm:$0xff] %v403_v50  ;;  %406 = vst [vmem:[%s10189_s27 + $0x398] sm:$0xff] %v405_v51  ;;  %v409_v53 = vld [vmem:[%s10181_s26 + $0x748] sm:$0xff] }
  0x4c   : > { %408 = vst [vmem:[%s10189_s27 + $0x3a0] sm:$0xff] %v407_v52  ;;  %v411_v54 = vld [vmem:[%s10181_s26 + $0x760] sm:$0xff]  ;;  %v413_v55 = vld [vmem:[%s10181_s26 + $0x768] sm:$0xff]  ;;  %410 = vst [vmem:[%s10189_s27 + $0x3a8] sm:$0xff] %v409_v53 }
  0x4d   : > { %412 = vst [vmem:[%s10189_s27 + $0x3b0] sm:$0xff] %v411_v54  ;;  %414 = vst [vmem:[%s10189_s27 + $0x3b8] sm:$0xff] %v413_v55  ;;  %v415_v56 = vld [vmem:[%s10181_s26 + $0x780] sm:$0xff]  ;;  %v417_v57 = vld [vmem:[%s10181_s26 + $0x788] sm:$0xff] }
  0x4e   : > { %v419_v58 = vld [vmem:[%s10181_s26 + $0x7a0] sm:$0xff]  ;;  %416 = vst [vmem:[%s10189_s27 + $0x3c0] sm:$0xff] %v415_v56  ;;  %418 = vst [vmem:[%s10189_s27 + $0x3c8] sm:$0xff] %v417_v57  ;;  %v421_v59 = vld [vmem:[%s10181_s26 + $0x7a8] sm:$0xff] }
  0x4f   : > { %420 = vst [vmem:[%s10189_s27 + $0x3d0] sm:$0xff] %v419_v58  ;;  %v423_v60 = vld [vmem:[%s10181_s26 + $0x7c0] sm:$0xff]  ;;  %v425_v61 = vld [vmem:[%s10181_s26 + $0x7c8] sm:$0xff]  ;;  %422 = vst [vmem:[%s10189_s27 + $0x3d8] sm:$0xff] %v421_v59 }
  0x50   : > { %424 = vst [vmem:[%s10189_s27 + $0x3e0] sm:$0xff] %v423_v60  ;;  %426 = vst [vmem:[%s10189_s27 + $0x3e8] sm:$0xff] %v425_v61  ;;  %v427_v62 = vld [vmem:[%s10181_s26 + $0x7e0] sm:$0xff]  ;;  %v429_v63 = vld [vmem:[%s10181_s26 + $0x7e8] sm:$0xff] }
  0x51   : > { %v431_v0 = vld [vmem:[%s10181_s26 + $0x800] sm:$0xff]  ;;  %428 = vst [vmem:[%s10189_s27 + $0x3f0] sm:$0xff] %v427_v62  ;;  %430 = vst [vmem:[%s10189_s27 + $0x3f8] sm:$0xff] %v429_v63  ;;  %v433_v1 = vld [vmem:[%s10181_s26 + $0x808] sm:$0xff] }
  0x52   : > { %432 = vst [vmem:[%s10189_s27 + $0x400] sm:$0xff] %v431_v0  ;;  %v435_v2 = vld [vmem:[%s10181_s26 + $0x820] sm:$0xff]  ;;  %v437_v3 = vld [vmem:[%s10181_s26 + $0x828] sm:$0xff]  ;;  %434 = vst [vmem:[%s10189_s27 + $0x408] sm:$0xff] %v433_v1 }
  0x53   : > { %436 = vst [vmem:[%s10189_s27 + $0x410] sm:$0xff] %v435_v2  ;;  %438 = vst [vmem:[%s10189_s27 + $0x418] sm:$0xff] %v437_v3  ;;  %v439_v4 = vld [vmem:[%s10181_s26 + $0x840] sm:$0xff]  ;;  %v441_v5 = vld [vmem:[%s10181_s26 + $0x848] sm:$0xff] }
  0x54   : > { %v443_v6 = vld [vmem:[%s10181_s26 + $0x860] sm:$0xff]  ;;  %440 = vst [vmem:[%s10189_s27 + $0x420] sm:$0xff] %v439_v4  ;;  %442 = vst [vmem:[%s10189_s27 + $0x428] sm:$0xff] %v441_v5  ;;  %v445_v7 = vld [vmem:[%s10181_s26 + $0x868] sm:$0xff] }
  0x55   : > { %444 = vst [vmem:[%s10189_s27 + $0x430] sm:$0xff] %v443_v6  ;;  %v447_v8 = vld [vmem:[%s10181_s26 + $0x880] sm:$0xff]  ;;  %v449_v9 = vld [vmem:[%s10181_s26 + $0x888] sm:$0xff]  ;;  %446 = vst [vmem:[%s10189_s27 + $0x438] sm:$0xff] %v445_v7 }
  0x56   : > { %448 = vst [vmem:[%s10189_s27 + $0x440] sm:$0xff] %v447_v8  ;;  %450 = vst [vmem:[%s10189_s27 + $0x448] sm:$0xff] %v449_v9  ;;  %v451_v10 = vld [vmem:[%s10181_s26 + $0x8a0] sm:$0xff]  ;;  %v453_v11 = vld [vmem:[%s10181_s26 + $0x8a8] sm:$0xff] }
  0x57   : > { %v455_v12 = vld [vmem:[%s10181_s26 + $0x8c0] sm:$0xff]  ;;  %452 = vst [vmem:[%s10189_s27 + $0x450] sm:$0xff] %v451_v10  ;;  %454 = vst [vmem:[%s10189_s27 + $0x458] sm:$0xff] %v453_v11  ;;  %v457_v13 = vld [vmem:[%s10181_s26 + $0x8c8] sm:$0xff] }
  0x58   : > { %456 = vst [vmem:[%s10189_s27 + $0x460] sm:$0xff] %v455_v12  ;;  %v459_v14 = vld [vmem:[%s10181_s26 + $0x8e0] sm:$0xff]  ;;  %v461_v15 = vld [vmem:[%s10181_s26 + $0x8e8] sm:$0xff]  ;;  %458 = vst [vmem:[%s10189_s27 + $0x468] sm:$0xff] %v457_v13 }
  0x59   : > { %460 = vst [vmem:[%s10189_s27 + $0x470] sm:$0xff] %v459_v14  ;;  %462 = vst [vmem:[%s10189_s27 + $0x478] sm:$0xff] %v461_v15  ;;  %v463_v16 = vld [vmem:[%s10181_s26 + $0x900] sm:$0xff]  ;;  %v465_v17 = vld [vmem:[%s10181_s26 + $0x908] sm:$0xff] }
  0x5a   : > { %v467_v18 = vld [vmem:[%s10181_s26 + $0x920] sm:$0xff]  ;;  %464 = vst [vmem:[%s10189_s27 + $0x480] sm:$0xff] %v463_v16  ;;  %466 = vst [vmem:[%s10189_s27 + $0x488] sm:$0xff] %v465_v17  ;;  %v469_v19 = vld [vmem:[%s10181_s26 + $0x928] sm:$0xff] }
  0x5b   : > { %468 = vst [vmem:[%s10189_s27 + $0x490] sm:$0xff] %v467_v18  ;;  %v471_v20 = vld [vmem:[%s10181_s26 + $0x940] sm:$0xff]  ;;  %v473_v21 = vld [vmem:[%s10181_s26 + $0x948] sm:$0xff]  ;;  %470 = vst [vmem:[%s10189_s27 + $0x498] sm:$0xff] %v469_v19 }
  0x5c   : > { %472 = vst [vmem:[%s10189_s27 + $0x4a0] sm:$0xff] %v471_v20  ;;  %474 = vst [vmem:[%s10189_s27 + $0x4a8] sm:$0xff] %v473_v21  ;;  %v475_v22 = vld [vmem:[%s10181_s26 + $0x960] sm:$0xff]  ;;  %v477_v23 = vld [vmem:[%s10181_s26 + $0x968] sm:$0xff] }
  0x5d   : > { %v479_v24 = vld [vmem:[%s10181_s26 + $0x980] sm:$0xff]  ;;  %476 = vst [vmem:[%s10189_s27 + $0x4b0] sm:$0xff] %v475_v22  ;;  %478 = vst [vmem:[%s10189_s27 + $0x4b8] sm:$0xff] %v477_v23  ;;  %v481_v25 = vld [vmem:[%s10181_s26 + $0x988] sm:$0xff] }
  0x5e   : > { %480 = vst [vmem:[%s10189_s27 + $0x4c0] sm:$0xff] %v479_v24  ;;  %v483_v26 = vld [vmem:[%s10181_s26 + $0x9a0] sm:$0xff]  ;;  %v485_v27 = vld [vmem:[%s10181_s26 + $0x9a8] sm:$0xff]  ;;  %482 = vst [vmem:[%s10189_s27 + $0x4c8] sm:$0xff] %v481_v25 }
  0x5f   : > { %484 = vst [vmem:[%s10189_s27 + $0x4d0] sm:$0xff] %v483_v26  ;;  %486 = vst [vmem:[%s10189_s27 + $0x4d8] sm:$0xff] %v485_v27  ;;  %v487_v28 = vld [vmem:[%s10181_s26 + $0x9c0] sm:$0xff]  ;;  %v489_v29 = vld [vmem:[%s10181_s26 + $0x9c8] sm:$0xff] }
  0x60   : > { %v491_v30 = vld [vmem:[%s10181_s26 + $0x9e0] sm:$0xff]  ;;  %488 = vst [vmem:[%s10189_s27 + $0x4e0] sm:$0xff] %v487_v28  ;;  %490 = vst [vmem:[%s10189_s27 + $0x4e8] sm:$0xff] %v489_v29  ;;  %v493_v31 = vld [vmem:[%s10181_s26 + $0x9e8] sm:$0xff] }
  0x61   : > { %492 = vst [vmem:[%s10189_s27 + $0x4f0] sm:$0xff] %v491_v30  ;;  %v495_v32 = vld [vmem:[%s10181_s26 + $0xa00] sm:$0xff]  ;;  %v497_v33 = vld [vmem:[%s10181_s26 + $0xa08] sm:$0xff]  ;;  %494 = vst [vmem:[%s10189_s27 + $0x4f8] sm:$0xff] %v493_v31 }
  0x62   : > { %496 = vst [vmem:[%s10189_s27 + $0x500] sm:$0xff] %v495_v32  ;;  %498 = vst [vmem:[%s10189_s27 + $0x508] sm:$0xff] %v497_v33  ;;  %v499_v34 = vld [vmem:[%s10181_s26 + $0xa20] sm:$0xff]  ;;  %v501_v35 = vld [vmem:[%s10181_s26 + $0xa28] sm:$0xff] }
  0x63   : > { %v503_v36 = vld [vmem:[%s10181_s26 + $0xa40] sm:$0xff]  ;;  %500 = vst [vmem:[%s10189_s27 + $0x510] sm:$0xff] %v499_v34  ;;  %502 = vst [vmem:[%s10189_s27 + $0x518] sm:$0xff] %v501_v35  ;;  %v505_v37 = vld [vmem:[%s10181_s26 + $0xa48] sm:$0xff] }
  0x64   : > { %504 = vst [vmem:[%s10189_s27 + $0x520] sm:$0xff] %v503_v36  ;;  %v507_v38 = vld [vmem:[%s10181_s26 + $0xa60] sm:$0xff]  ;;  %v509_v39 = vld [vmem:[%s10181_s26 + $0xa68] sm:$0xff]  ;;  %506 = vst [vmem:[%s10189_s27 + $0x528] sm:$0xff] %v505_v37 }
  0x65   : > { %508 = vst [vmem:[%s10189_s27 + $0x530] sm:$0xff] %v507_v38  ;;  %510 = vst [vmem:[%s10189_s27 + $0x538] sm:$0xff] %v509_v39  ;;  %v511_v40 = vld [vmem:[%s10181_s26 + $0xa80] sm:$0xff]  ;;  %v513_v41 = vld [vmem:[%s10181_s26 + $0xa88] sm:$0xff] }
  0x66   : > { %v515_v42 = vld [vmem:[%s10181_s26 + $0xaa0] sm:$0xff]  ;;  %512 = vst [vmem:[%s10189_s27 + $0x540] sm:$0xff] %v511_v40  ;;  %514 = vst [vmem:[%s10189_s27 + $0x548] sm:$0xff] %v513_v41  ;;  %v517_v43 = vld [vmem:[%s10181_s26 + $0xaa8] sm:$0xff] }
  0x67   : > { %516 = vst [vmem:[%s10189_s27 + $0x550] sm:$0xff] %v515_v42  ;;  %v519_v44 = vld [vmem:[%s10181_s26 + $0xac0] sm:$0xff]  ;;  %v521_v45 = vld [vmem:[%s10181_s26 + $0xac8] sm:$0xff]  ;;  %518 = vst [vmem:[%s10189_s27 + $0x558] sm:$0xff] %v517_v43 }
  0x68   : > { %520 = vst [vmem:[%s10189_s27 + $0x560] sm:$0xff] %v519_v44  ;;  %522 = vst [vmem:[%s10189_s27 + $0x568] sm:$0xff] %v521_v45  ;;  %v523_v46 = vld [vmem:[%s10181_s26 + $0xae0] sm:$0xff]  ;;  %v525_v47 = vld [vmem:[%s10181_s26 + $0xae8] sm:$0xff] }
  0x69   : > { %v527_v48 = vld [vmem:[%s10181_s26 + $0xb00] sm:$0xff]  ;;  %524 = vst [vmem:[%s10189_s27 + $0x570] sm:$0xff] %v523_v46  ;;  %526 = vst [vmem:[%s10189_s27 + $0x578] sm:$0xff] %v525_v47  ;;  %v529_v49 = vld [vmem:[%s10181_s26 + $0xb08] sm:$0xff] }
  0x6a   : > { %528 = vst [vmem:[%s10189_s27 + $0x580] sm:$0xff] %v527_v48  ;;  %v531_v50 = vld [vmem:[%s10181_s26 + $0xb20] sm:$0xff]  ;;  %v533_v51 = vld [vmem:[%s10181_s26 + $0xb28] sm:$0xff]  ;;  %530 = vst [vmem:[%s10189_s27 + $0x588] sm:$0xff] %v529_v49 }
  0x6b   : > { %532 = vst [vmem:[%s10189_s27 + $0x590] sm:$0xff] %v531_v50  ;;  %534 = vst [vmem:[%s10189_s27 + $0x598] sm:$0xff] %v533_v51  ;;  %v535_v52 = vld [vmem:[%s10181_s26 + $0xb40] sm:$0xff]  ;;  %v537_v53 = vld [vmem:[%s10181_s26 + $0xb48] sm:$0xff] }
  0x6c   : > { %v539_v54 = vld [vmem:[%s10181_s26 + $0xb60] sm:$0xff]  ;;  %536 = vst [vmem:[%s10189_s27 + $0x5a0] sm:$0xff] %v535_v52  ;;  %538 = vst [vmem:[%s10189_s27 + $0x5a8] sm:$0xff] %v537_v53  ;;  %v541_v55 = vld [vmem:[%s10181_s26 + $0xb68] sm:$0xff] }
  0x6d   : > { %540 = vst [vmem:[%s10189_s27 + $0x5b0] sm:$0xff] %v539_v54  ;;  %v543_v56 = vld [vmem:[%s10181_s26 + $0xb80] sm:$0xff]  ;;  %v545_v57 = vld [vmem:[%s10181_s26 + $0xb88] sm:$0xff]  ;;  %542 = vst [vmem:[%s10189_s27 + $0x5b8] sm:$0xff] %v541_v55 }
  0x6e   : > { %544 = vst [vmem:[%s10189_s27 + $0x5c0] sm:$0xff] %v543_v56  ;;  %546 = vst [vmem:[%s10189_s27 + $0x5c8] sm:$0xff] %v545_v57  ;;  %v547_v58 = vld [vmem:[%s10181_s26 + $0xba0] sm:$0xff]  ;;  %v549_v59 = vld [vmem:[%s10181_s26 + $0xba8] sm:$0xff] }
  0x6f   : > { %v551_v60 = vld [vmem:[%s10181_s26 + $0xbc0] sm:$0xff]  ;;  %548 = vst [vmem:[%s10189_s27 + $0x5d0] sm:$0xff] %v547_v58  ;;  %550 = vst [vmem:[%s10189_s27 + $0x5d8] sm:$0xff] %v549_v59  ;;  %v553_v61 = vld [vmem:[%s10181_s26 + $0xbc8] sm:$0xff] }
  0x70   : > { %552 = vst [vmem:[%s10189_s27 + $0x5e0] sm:$0xff] %v551_v60  ;;  %v555_v62 = vld [vmem:[%s10181_s26 + $0xbe0] sm:$0xff]  ;;  %v557_v63 = vld [vmem:[%s10181_s26 + $0xbe8] sm:$0xff]  ;;  %554 = vst [vmem:[%s10189_s27 + $0x5e8] sm:$0xff] %v553_v61 }
  0x71   : > { %556 = vst [vmem:[%s10189_s27 + $0x5f0] sm:$0xff] %v555_v62  ;;  %558 = vst [vmem:[%s10189_s27 + $0x5f8] sm:$0xff] %v557_v63  ;;  %v559_v0 = vld [vmem:[%s10181_s26 + $0xc00] sm:$0xff]  ;;  %v561_v1 = vld [vmem:[%s10181_s26 + $0xc08] sm:$0xff] }
  0x72   : > { %v563_v2 = vld [vmem:[%s10181_s26 + $0xc20] sm:$0xff]  ;;  %560 = vst [vmem:[%s10189_s27 + $0x600] sm:$0xff] %v559_v0  ;;  %562 = vst [vmem:[%s10189_s27 + $0x608] sm:$0xff] %v561_v1  ;;  %v565_v3 = vld [vmem:[%s10181_s26 + $0xc28] sm:$0xff] }
  0x73   : > { %564 = vst [vmem:[%s10189_s27 + $0x610] sm:$0xff] %v563_v2  ;;  %v567_v4 = vld [vmem:[%s10181_s26 + $0xc40] sm:$0xff]  ;;  %v569_v5 = vld [vmem:[%s10181_s26 + $0xc48] sm:$0xff]  ;;  %566 = vst [vmem:[%s10189_s27 + $0x618] sm:$0xff] %v565_v3 }
  0x74   : > { %568 = vst [vmem:[%s10189_s27 + $0x620] sm:$0xff] %v567_v4  ;;  %570 = vst [vmem:[%s10189_s27 + $0x628] sm:$0xff] %v569_v5  ;;  %v571_v6 = vld [vmem:[%s10181_s26 + $0xc60] sm:$0xff]  ;;  %v573_v7 = vld [vmem:[%s10181_s26 + $0xc68] sm:$0xff] }
  0x75   : > { %v575_v8 = vld [vmem:[%s10181_s26 + $0xc80] sm:$0xff]  ;;  %572 = vst [vmem:[%s10189_s27 + $0x630] sm:$0xff] %v571_v6  ;;  %574 = vst [vmem:[%s10189_s27 + $0x638] sm:$0xff] %v573_v7  ;;  %v577_v9 = vld [vmem:[%s10181_s26 + $0xc88] sm:$0xff] }
  0x76   : > { %576 = vst [vmem:[%s10189_s27 + $0x640] sm:$0xff] %v575_v8  ;;  %v579_v10 = vld [vmem:[%s10181_s26 + $0xca0] sm:$0xff]  ;;  %v581_v11 = vld [vmem:[%s10181_s26 + $0xca8] sm:$0xff]  ;;  %578 = vst [vmem:[%s10189_s27 + $0x648] sm:$0xff] %v577_v9 }
  0x77   : > { %580 = vst [vmem:[%s10189_s27 + $0x650] sm:$0xff] %v579_v10  ;;  %582 = vst [vmem:[%s10189_s27 + $0x658] sm:$0xff] %v581_v11  ;;  %v583_v12 = vld [vmem:[%s10181_s26 + $0xcc0] sm:$0xff]  ;;  %v585_v13 = vld [vmem:[%s10181_s26 + $0xcc8] sm:$0xff] }
  0x78   : > { %v587_v14 = vld [vmem:[%s10181_s26 + $0xce0] sm:$0xff]  ;;  %584 = vst [vmem:[%s10189_s27 + $0x660] sm:$0xff] %v583_v12  ;;  %586 = vst [vmem:[%s10189_s27 + $0x668] sm:$0xff] %v585_v13  ;;  %v589_v15 = vld [vmem:[%s10181_s26 + $0xce8] sm:$0xff] }
  0x79   : > { %588 = vst [vmem:[%s10189_s27 + $0x670] sm:$0xff] %v587_v14  ;;  %v591_v16 = vld [vmem:[%s10181_s26 + $0xd00] sm:$0xff]  ;;  %v593_v17 = vld [vmem:[%s10181_s26 + $0xd08] sm:$0xff]  ;;  %590 = vst [vmem:[%s10189_s27 + $0x678] sm:$0xff] %v589_v15 }
  0x7a   : > { %592 = vst [vmem:[%s10189_s27 + $0x680] sm:$0xff] %v591_v16  ;;  %594 = vst [vmem:[%s10189_s27 + $0x688] sm:$0xff] %v593_v17  ;;  %v595_v18 = vld [vmem:[%s10181_s26 + $0xd20] sm:$0xff]  ;;  %v597_v19 = vld [vmem:[%s10181_s26 + $0xd28] sm:$0xff] }
  0x7b   : > { %v599_v20 = vld [vmem:[%s10181_s26 + $0xd40] sm:$0xff]  ;;  %596 = vst [vmem:[%s10189_s27 + $0x690] sm:$0xff] %v595_v18  ;;  %598 = vst [vmem:[%s10189_s27 + $0x698] sm:$0xff] %v597_v19  ;;  %v601_v21 = vld [vmem:[%s10181_s26 + $0xd48] sm:$0xff] }
  0x7c   : > { %600 = vst [vmem:[%s10189_s27 + $0x6a0] sm:$0xff] %v599_v20  ;;  %v603_v22 = vld [vmem:[%s10181_s26 + $0xd60] sm:$0xff]  ;;  %v605_v23 = vld [vmem:[%s10181_s26 + $0xd68] sm:$0xff]  ;;  %602 = vst [vmem:[%s10189_s27 + $0x6a8] sm:$0xff] %v601_v21 }
  0x7d   : > { %604 = vst [vmem:[%s10189_s27 + $0x6b0] sm:$0xff] %v603_v22  ;;  %606 = vst [vmem:[%s10189_s27 + $0x6b8] sm:$0xff] %v605_v23  ;;  %v607_v24 = vld [vmem:[%s10181_s26 + $0xd80] sm:$0xff]  ;;  %v609_v25 = vld [vmem:[%s10181_s26 + $0xd88] sm:$0xff] }
  0x7e   : > { %v611_v26 = vld [vmem:[%s10181_s26 + $0xda0] sm:$0xff]  ;;  %608 = vst [vmem:[%s10189_s27 + $0x6c0] sm:$0xff] %v607_v24  ;;  %610 = vst [vmem:[%s10189_s27 + $0x6c8] sm:$0xff] %v609_v25  ;;  %v613_v27 = vld [vmem:[%s10181_s26 + $0xda8] sm:$0xff] }
  0x7f   : > { %612 = vst [vmem:[%s10189_s27 + $0x6d0] sm:$0xff] %v611_v26  ;;  %v615_v28 = vld [vmem:[%s10181_s26 + $0xdc0] sm:$0xff]  ;;  %v617_v29 = vld [vmem:[%s10181_s26 + $0xdc8] sm:$0xff]  ;;  %614 = vst [vmem:[%s10189_s27 + $0x6d8] sm:$0xff] %v613_v27 }
  0x80   : > { %616 = vst [vmem:[%s10189_s27 + $0x6e0] sm:$0xff] %v615_v28  ;;  %618 = vst [vmem:[%s10189_s27 + $0x6e8] sm:$0xff] %v617_v29  ;;  %v619_v30 = vld [vmem:[%s10181_s26 + $0xde0] sm:$0xff]  ;;  %v621_v31 = vld [vmem:[%s10181_s26 + $0xde8] sm:$0xff] }
  0x81   : > { %v623_v32 = vld [vmem:[%s10181_s26 + $0xe00] sm:$0xff]  ;;  %620 = vst [vmem:[%s10189_s27 + $0x6f0] sm:$0xff] %v619_v30  ;;  %622 = vst [vmem:[%s10189_s27 + $0x6f8] sm:$0xff] %v621_v31  ;;  %v625_v33 = vld [vmem:[%s10181_s26 + $0xe08] sm:$0xff] }
  0x82   : > { %624 = vst [vmem:[%s10189_s27 + $0x700] sm:$0xff] %v623_v32  ;;  %v627_v34 = vld [vmem:[%s10181_s26 + $0xe20] sm:$0xff]  ;;  %v629_v35 = vld [vmem:[%s10181_s26 + $0xe28] sm:$0xff]  ;;  %626 = vst [vmem:[%s10189_s27 + $0x708] sm:$0xff] %v625_v33 }
  0x83   : > { %628 = vst [vmem:[%s10189_s27 + $0x710] sm:$0xff] %v627_v34  ;;  %630 = vst [vmem:[%s10189_s27 + $0x718] sm:$0xff] %v629_v35  ;;  %v631_v36 = vld [vmem:[%s10181_s26 + $0xe40] sm:$0xff]  ;;  %v633_v37 = vld [vmem:[%s10181_s26 + $0xe48] sm:$0xff] }
  0x84   : > { %v635_v38 = vld [vmem:[%s10181_s26 + $0xe60] sm:$0xff]  ;;  %632 = vst [vmem:[%s10189_s27 + $0x720] sm:$0xff] %v631_v36  ;;  %634 = vst [vmem:[%s10189_s27 + $0x728] sm:$0xff] %v633_v37  ;;  %v637_v39 = vld [vmem:[%s10181_s26 + $0xe68] sm:$0xff] }
  0x85   : > { %636 = vst [vmem:[%s10189_s27 + $0x730] sm:$0xff] %v635_v38  ;;  %v639_v40 = vld [vmem:[%s10181_s26 + $0xe80] sm:$0xff]  ;;  %v641_v41 = vld [vmem:[%s10181_s26 + $0xe88] sm:$0xff]  ;;  %638 = vst [vmem:[%s10189_s27 + $0x738] sm:$0xff] %v637_v39 }
  0x86   : > { %640 = vst [vmem:[%s10189_s27 + $0x740] sm:$0xff] %v639_v40  ;;  %642 = vst [vmem:[%s10189_s27 + $0x748] sm:$0xff] %v641_v41  ;;  %v643_v42 = vld [vmem:[%s10181_s26 + $0xea0] sm:$0xff]  ;;  %v645_v43 = vld [vmem:[%s10181_s26 + $0xea8] sm:$0xff] }
  0x87   : > { %v647_v44 = vld [vmem:[%s10181_s26 + $0xec0] sm:$0xff]  ;;  %644 = vst [vmem:[%s10189_s27 + $0x750] sm:$0xff] %v643_v42  ;;  %646 = vst [vmem:[%s10189_s27 + $0x758] sm:$0xff] %v645_v43  ;;  %v649_v45 = vld [vmem:[%s10181_s26 + $0xec8] sm:$0xff] }
  0x88   : > { %648 = vst [vmem:[%s10189_s27 + $0x760] sm:$0xff] %v647_v44  ;;  %v651_v46 = vld [vmem:[%s10181_s26 + $0xee0] sm:$0xff]  ;;  %v653_v47 = vld [vmem:[%s10181_s26 + $0xee8] sm:$0xff]  ;;  %650 = vst [vmem:[%s10189_s27 + $0x768] sm:$0xff] %v649_v45 }
  0x89   : > { %652 = vst [vmem:[%s10189_s27 + $0x770] sm:$0xff] %v651_v46  ;;  %654 = vst [vmem:[%s10189_s27 + $0x778] sm:$0xff] %v653_v47  ;;  %v655_v48 = vld [vmem:[%s10181_s26 + $0xf00] sm:$0xff]  ;;  %v657_v49 = vld [vmem:[%s10181_s26 + $0xf08] sm:$0xff] }
  0x8a   : > { %v659_v50 = vld [vmem:[%s10181_s26 + $0xf20] sm:$0xff]  ;;  %656 = vst [vmem:[%s10189_s27 + $0x780] sm:$0xff] %v655_v48  ;;  %658 = vst [vmem:[%s10189_s27 + $0x788] sm:$0xff] %v657_v49  ;;  %v661_v51 = vld [vmem:[%s10181_s26 + $0xf28] sm:$0xff] }
  0x8b   : > { %660 = vst [vmem:[%s10189_s27 + $0x790] sm:$0xff] %v659_v50  ;;  %v663_v52 = vld [vmem:[%s10181_s26 + $0xf40] sm:$0xff]  ;;  %v665_v53 = vld [vmem:[%s10181_s26 + $0xf48] sm:$0xff]  ;;  %662 = vst [vmem:[%s10189_s27 + $0x798] sm:$0xff] %v661_v51 }
  0x8c   : > { %664 = vst [vmem:[%s10189_s27 + $0x7a0] sm:$0xff] %v663_v52  ;;  %666 = vst [vmem:[%s10189_s27 + $0x7a8] sm:$0xff] %v665_v53  ;;  %v667_v54 = vld [vmem:[%s10181_s26 + $0xf60] sm:$0xff]  ;;  %v669_v55 = vld [vmem:[%s10181_s26 + $0xf68] sm:$0xff] }
  0x8d   : > { %v671_v56 = vld [vmem:[%s10181_s26 + $0xf80] sm:$0xff]  ;;  %668 = vst [vmem:[%s10189_s27 + $0x7b0] sm:$0xff] %v667_v54  ;;  %670 = vst [vmem:[%s10189_s27 + $0x7b8] sm:$0xff] %v669_v55  ;;  %v673_v57 = vld [vmem:[%s10181_s26 + $0xf88] sm:$0xff] }
  0x8e   : > { %672 = vst [vmem:[%s10189_s27 + $0x7c0] sm:$0xff] %v671_v56  ;;  %v675_v58 = vld [vmem:[%s10181_s26 + $0xfa0] sm:$0xff]  ;;  %v677_v59 = vld [vmem:[%s10181_s26 + $0xfa8] sm:$0xff]  ;;  %674 = vst [vmem:[%s10189_s27 + $0x7c8] sm:$0xff] %v673_v57 }
  0x8f   : > { %676 = vst [vmem:[%s10189_s27 + $0x7d0] sm:$0xff] %v675_v58  ;;  %678 = vst [vmem:[%s10189_s27 + $0x7d8] sm:$0xff] %v677_v59  ;;  %v679_v60 = vld [vmem:[%s10181_s26 + $0xfc0] sm:$0xff]  ;;  %v681_v61 = vld [vmem:[%s10181_s26 + $0xfc8] sm:$0xff] }
  0x90   : > { %v683_v62 = vld [vmem:[%s10181_s26 + $0xfe0] sm:$0xff]  ;;  %680 = vst [vmem:[%s10189_s27 + $0x7e0] sm:$0xff] %v679_v60  ;;  %682 = vst [vmem:[%s10189_s27 + $0x7e8] sm:$0xff] %v681_v61  ;;  %v685_v63 = vld [vmem:[%s10181_s26 + $0xfe8] sm:$0xff] }
  0x91   : > { %684 = vst [vmem:[%s10189_s27 + $0x7f0] sm:$0xff] %v683_v62  ;;  %v687_v0 = vld [vmem:[%s10181_s26 + $0x1000] sm:$0xff]  ;;  %v689_v1 = vld [vmem:[%s10181_s26 + $0x1008] sm:$0xff]  ;;  %686 = vst [vmem:[%s10189_s27 + $0x7f8] sm:$0xff] %v685_v63 }
  0x92   : > { %688 = vst [vmem:[%s10189_s27 + $0x800] sm:$0xff] %v687_v0  ;;  %690 = vst [vmem:[%s10189_s27 + $0x808] sm:$0xff] %v689_v1  ;;  %v691_v2 = vld [vmem:[%s10181_s26 + $0x1020] sm:$0xff]  ;;  %v693_v3 = vld [vmem:[%s10181_s26 + $0x1028] sm:$0xff] }
  0x93   : > { %v695_v4 = vld [vmem:[%s10181_s26 + $0x1040] sm:$0xff]  ;;  %692 = vst [vmem:[%s10189_s27 + $0x810] sm:$0xff] %v691_v2  ;;  %694 = vst [vmem:[%s10189_s27 + $0x818] sm:$0xff] %v693_v3  ;;  %v697_v5 = vld [vmem:[%s10181_s26 + $0x1048] sm:$0xff] }
  0x94   : > { %696 = vst [vmem:[%s10189_s27 + $0x820] sm:$0xff] %v695_v4  ;;  %v699_v6 = vld [vmem:[%s10181_s26 + $0x1060] sm:$0xff]  ;;  %v701_v7 = vld [vmem:[%s10181_s26 + $0x1068] sm:$0xff]  ;;  %698 = vst [vmem:[%s10189_s27 + $0x828] sm:$0xff] %v697_v5 }
  0x95   : > { %700 = vst [vmem:[%s10189_s27 + $0x830] sm:$0xff] %v699_v6  ;;  %702 = vst [vmem:[%s10189_s27 + $0x838] sm:$0xff] %v701_v7  ;;  %v703_v8 = vld [vmem:[%s10181_s26 + $0x1080] sm:$0xff]  ;;  %v705_v9 = vld [vmem:[%s10181_s26 + $0x1088] sm:$0xff] }
  0x96   : > { %v707_v10 = vld [vmem:[%s10181_s26 + $0x10a0] sm:$0xff]  ;;  %704 = vst [vmem:[%s10189_s27 + $0x840] sm:$0xff] %v703_v8  ;;  %706 = vst [vmem:[%s10189_s27 + $0x848] sm:$0xff] %v705_v9  ;;  %v709_v11 = vld [vmem:[%s10181_s26 + $0x10a8] sm:$0xff] }
  0x97   : > { %708 = vst [vmem:[%s10189_s27 + $0x850] sm:$0xff] %v707_v10  ;;  %v711_v12 = vld [vmem:[%s10181_s26 + $0x10c0] sm:$0xff]  ;;  %v713_v13 = vld [vmem:[%s10181_s26 + $0x10c8] sm:$0xff]  ;;  %710 = vst [vmem:[%s10189_s27 + $0x858] sm:$0xff] %v709_v11 }
  0x98   : > { %712 = vst [vmem:[%s10189_s27 + $0x860] sm:$0xff] %v711_v12  ;;  %714 = vst [vmem:[%s10189_s27 + $0x868] sm:$0xff] %v713_v13  ;;  %v715_v14 = vld [vmem:[%s10181_s26 + $0x10e0] sm:$0xff]  ;;  %v717_v15 = vld [vmem:[%s10181_s26 + $0x10e8] sm:$0xff] }
  0x99   : > { %v719_v16 = vld [vmem:[%s10181_s26 + $0x1100] sm:$0xff]  ;;  %716 = vst [vmem:[%s10189_s27 + $0x870] sm:$0xff] %v715_v14  ;;  %718 = vst [vmem:[%s10189_s27 + $0x878] sm:$0xff] %v717_v15  ;;  %v721_v17 = vld [vmem:[%s10181_s26 + $0x1108] sm:$0xff] }
  0x9a   : > { %720 = vst [vmem:[%s10189_s27 + $0x880] sm:$0xff] %v719_v16  ;;  %v723_v18 = vld [vmem:[%s10181_s26 + $0x1120] sm:$0xff]  ;;  %v725_v19 = vld [vmem:[%s10181_s26 + $0x1128] sm:$0xff]  ;;  %722 = vst [vmem:[%s10189_s27 + $0x888] sm:$0xff] %v721_v17 }
  0x9b   : > { %724 = vst [vmem:[%s10189_s27 + $0x890] sm:$0xff] %v723_v18  ;;  %726 = vst [vmem:[%s10189_s27 + $0x898] sm:$0xff] %v725_v19  ;;  %v727_v20 = vld [vmem:[%s10181_s26 + $0x1140] sm:$0xff]  ;;  %v729_v21 = vld [vmem:[%s10181_s26 + $0x1148] sm:$0xff] }
  0x9c   : > { %v731_v22 = vld [vmem:[%s10181_s26 + $0x1160] sm:$0xff]  ;;  %728 = vst [vmem:[%s10189_s27 + $0x8a0] sm:$0xff] %v727_v20  ;;  %730 = vst [vmem:[%s10189_s27 + $0x8a8] sm:$0xff] %v729_v21  ;;  %v733_v23 = vld [vmem:[%s10181_s26 + $0x1168] sm:$0xff] }
  0x9d   : > { %732 = vst [vmem:[%s10189_s27 + $0x8b0] sm:$0xff] %v731_v22  ;;  %v735_v24 = vld [vmem:[%s10181_s26 + $0x1180] sm:$0xff]  ;;  %v737_v25 = vld [vmem:[%s10181_s26 + $0x1188] sm:$0xff]  ;;  %734 = vst [vmem:[%s10189_s27 + $0x8b8] sm:$0xff] %v733_v23 }
  0x9e   : > { %736 = vst [vmem:[%s10189_s27 + $0x8c0] sm:$0xff] %v735_v24  ;;  %738 = vst [vmem:[%s10189_s27 + $0x8c8] sm:$0xff] %v737_v25  ;;  %v739_v26 = vld [vmem:[%s10181_s26 + $0x11a0] sm:$0xff]  ;;  %v741_v27 = vld [vmem:[%s10181_s26 + $0x11a8] sm:$0xff] }
  0x9f   : > { %v743_v28 = vld [vmem:[%s10181_s26 + $0x11c0] sm:$0xff]  ;;  %740 = vst [vmem:[%s10189_s27 + $0x8d0] sm:$0xff] %v739_v26  ;;  %742 = vst [vmem:[%s10189_s27 + $0x8d8] sm:$0xff] %v741_v27  ;;  %v745_v29 = vld [vmem:[%s10181_s26 + $0x11c8] sm:$0xff] }
  0xa0   : > { %744 = vst [vmem:[%s10189_s27 + $0x8e0] sm:$0xff] %v743_v28  ;;  %v747_v30 = vld [vmem:[%s10181_s26 + $0x11e0] sm:$0xff]  ;;  %v749_v31 = vld [vmem:[%s10181_s26 + $0x11e8] sm:$0xff]  ;;  %746 = vst [vmem:[%s10189_s27 + $0x8e8] sm:$0xff] %v745_v29 }
  0xa1   : > { %748 = vst [vmem:[%s10189_s27 + $0x8f0] sm:$0xff] %v747_v30  ;;  %750 = vst [vmem:[%s10189_s27 + $0x8f8] sm:$0xff] %v749_v31  ;;  %v751_v32 = vld [vmem:[%s10181_s26 + $0x1200] sm:$0xff]  ;;  %v753_v33 = vld [vmem:[%s10181_s26 + $0x1208] sm:$0xff] }
  0xa2   : > { %v755_v34 = vld [vmem:[%s10181_s26 + $0x1220] sm:$0xff]  ;;  %752 = vst [vmem:[%s10189_s27 + $0x900] sm:$0xff] %v751_v32  ;;  %754 = vst [vmem:[%s10189_s27 + $0x908] sm:$0xff] %v753_v33  ;;  %v757_v35 = vld [vmem:[%s10181_s26 + $0x1228] sm:$0xff] }
  0xa3   : > { %756 = vst [vmem:[%s10189_s27 + $0x910] sm:$0xff] %v755_v34  ;;  %v759_v36 = vld [vmem:[%s10181_s26 + $0x1240] sm:$0xff]  ;;  %v761_v37 = vld [vmem:[%s10181_s26 + $0x1248] sm:$0xff]  ;;  %758 = vst [vmem:[%s10189_s27 + $0x918] sm:$0xff] %v757_v35 }
  0xa4   : > { %760 = vst [vmem:[%s10189_s27 + $0x920] sm:$0xff] %v759_v36  ;;  %762 = vst [vmem:[%s10189_s27 + $0x928] sm:$0xff] %v761_v37  ;;  %v763_v38 = vld [vmem:[%s10181_s26 + $0x1260] sm:$0xff]  ;;  %v765_v39 = vld [vmem:[%s10181_s26 + $0x1268] sm:$0xff] }
  0xa5   : > { %v767_v40 = vld [vmem:[%s10181_s26 + $0x1280] sm:$0xff]  ;;  %764 = vst [vmem:[%s10189_s27 + $0x930] sm:$0xff] %v763_v38  ;;  %766 = vst [vmem:[%s10189_s27 + $0x938] sm:$0xff] %v765_v39  ;;  %v769_v41 = vld [vmem:[%s10181_s26 + $0x1288] sm:$0xff] }
  0xa6   : > { %768 = vst [vmem:[%s10189_s27 + $0x940] sm:$0xff] %v767_v40  ;;  %v771_v42 = vld [vmem:[%s10181_s26 + $0x12a0] sm:$0xff]  ;;  %v773_v43 = vld [vmem:[%s10181_s26 + $0x12a8] sm:$0xff]  ;;  %770 = vst [vmem:[%s10189_s27 + $0x948] sm:$0xff] %v769_v41 }
  0xa7   : > { %772 = vst [vmem:[%s10189_s27 + $0x950] sm:$0xff] %v771_v42  ;;  %774 = vst [vmem:[%s10189_s27 + $0x958] sm:$0xff] %v773_v43  ;;  %v775_v44 = vld [vmem:[%s10181_s26 + $0x12c0] sm:$0xff]  ;;  %v777_v45 = vld [vmem:[%s10181_s26 + $0x12c8] sm:$0xff] }
  0xa8   : > { %v779_v46 = vld [vmem:[%s10181_s26 + $0x12e0] sm:$0xff]  ;;  %776 = vst [vmem:[%s10189_s27 + $0x960] sm:$0xff] %v775_v44  ;;  %778 = vst [vmem:[%s10189_s27 + $0x968] sm:$0xff] %v777_v45  ;;  %v781_v47 = vld [vmem:[%s10181_s26 + $0x12e8] sm:$0xff] }
  0xa9   : > { %780 = vst [vmem:[%s10189_s27 + $0x970] sm:$0xff] %v779_v46  ;;  %v783_v48 = vld [vmem:[%s10181_s26 + $0x1300] sm:$0xff]  ;;  %v785_v49 = vld [vmem:[%s10181_s26 + $0x1308] sm:$0xff]  ;;  %782 = vst [vmem:[%s10189_s27 + $0x978] sm:$0xff] %v781_v47 }
  0xaa   : > { %784 = vst [vmem:[%s10189_s27 + $0x980] sm:$0xff] %v783_v48  ;;  %786 = vst [vmem:[%s10189_s27 + $0x988] sm:$0xff] %v785_v49  ;;  %v787_v50 = vld [vmem:[%s10181_s26 + $0x1320] sm:$0xff]  ;;  %v789_v51 = vld [vmem:[%s10181_s26 + $0x1328] sm:$0xff] }
  0xab   : > { %v791_v52 = vld [vmem:[%s10181_s26 + $0x1340] sm:$0xff]  ;;  %788 = vst [vmem:[%s10189_s27 + $0x990] sm:$0xff] %v787_v50  ;;  %790 = vst [vmem:[%s10189_s27 + $0x998] sm:$0xff] %v789_v51  ;;  %v793_v53 = vld [vmem:[%s10181_s26 + $0x1348] sm:$0xff] }
  0xac   : > { %792 = vst [vmem:[%s10189_s27 + $0x9a0] sm:$0xff] %v791_v52  ;;  %v795_v54 = vld [vmem:[%s10181_s26 + $0x1360] sm:$0xff]  ;;  %v797_v55 = vld [vmem:[%s10181_s26 + $0x1368] sm:$0xff]  ;;  %794 = vst [vmem:[%s10189_s27 + $0x9a8] sm:$0xff] %v793_v53 }
  0xad   : > { %796 = vst [vmem:[%s10189_s27 + $0x9b0] sm:$0xff] %v795_v54  ;;  %798 = vst [vmem:[%s10189_s27 + $0x9b8] sm:$0xff] %v797_v55  ;;  %v799_v56 = vld [vmem:[%s10181_s26 + $0x1380] sm:$0xff]  ;;  %v801_v57 = vld [vmem:[%s10181_s26 + $0x1388] sm:$0xff] }
  0xae   : > { %v803_v58 = vld [vmem:[%s10181_s26 + $0x13a0] sm:$0xff]  ;;  %800 = vst [vmem:[%s10189_s27 + $0x9c0] sm:$0xff] %v799_v56  ;;  %802 = vst [vmem:[%s10189_s27 + $0x9c8] sm:$0xff] %v801_v57  ;;  %v805_v59 = vld [vmem:[%s10181_s26 + $0x13a8] sm:$0xff] }
  0xaf   : > { %804 = vst [vmem:[%s10189_s27 + $0x9d0] sm:$0xff] %v803_v58  ;;  %v807_v60 = vld [vmem:[%s10181_s26 + $0x13c0] sm:$0xff]  ;;  %v809_v61 = vld [vmem:[%s10181_s26 + $0x13c8] sm:$0xff]  ;;  %806 = vst [vmem:[%s10189_s27 + $0x9d8] sm:$0xff] %v805_v59 }
  0xb0   : > { %808 = vst [vmem:[%s10189_s27 + $0x9e0] sm:$0xff] %v807_v60  ;;  %810 = vst [vmem:[%s10189_s27 + $0x9e8] sm:$0xff] %v809_v61  ;;  %v811_v62 = vld [vmem:[%s10181_s26 + $0x13e0] sm:$0xff]  ;;  %v813_v63 = vld [vmem:[%s10181_s26 + $0x13e8] sm:$0xff] }
  0xb1   : > { %v815_v0 = vld [vmem:[%s10181_s26 + $0x1400] sm:$0xff]  ;;  %812 = vst [vmem:[%s10189_s27 + $0x9f0] sm:$0xff] %v811_v62  ;;  %814 = vst [vmem:[%s10189_s27 + $0x9f8] sm:$0xff] %v813_v63  ;;  %v817_v1 = vld [vmem:[%s10181_s26 + $0x1408] sm:$0xff] }
  0xb2   : > { %816 = vst [vmem:[%s10189_s27 + $0xa00] sm:$0xff] %v815_v0  ;;  %v819_v2 = vld [vmem:[%s10181_s26 + $0x1420] sm:$0xff]  ;;  %v821_v3 = vld [vmem:[%s10181_s26 + $0x1428] sm:$0xff]  ;;  %818 = vst [vmem:[%s10189_s27 + $0xa08] sm:$0xff] %v817_v1 }
  0xb3   : > { %820 = vst [vmem:[%s10189_s27 + $0xa10] sm:$0xff] %v819_v2  ;;  %822 = vst [vmem:[%s10189_s27 + $0xa18] sm:$0xff] %v821_v3  ;;  %v823_v4 = vld [vmem:[%s10181_s26 + $0x1440] sm:$0xff]  ;;  %v825_v5 = vld [vmem:[%s10181_s26 + $0x1448] sm:$0xff] }
  0xb4   : > { %v827_v6 = vld [vmem:[%s10181_s26 + $0x1460] sm:$0xff]  ;;  %824 = vst [vmem:[%s10189_s27 + $0xa20] sm:$0xff] %v823_v4  ;;  %826 = vst [vmem:[%s10189_s27 + $0xa28] sm:$0xff] %v825_v5  ;;  %v829_v7 = vld [vmem:[%s10181_s26 + $0x1468] sm:$0xff] }
  0xb5   : > { %828 = vst [vmem:[%s10189_s27 + $0xa30] sm:$0xff] %v827_v6  ;;  %v831_v8 = vld [vmem:[%s10181_s26 + $0x1480] sm:$0xff]  ;;  %v833_v9 = vld [vmem:[%s10181_s26 + $0x1488] sm:$0xff]  ;;  %830 = vst [vmem:[%s10189_s27 + $0xa38] sm:$0xff] %v829_v7 }
  0xb6   : > { %832 = vst [vmem:[%s10189_s27 + $0xa40] sm:$0xff] %v831_v8  ;;  %834 = vst [vmem:[%s10189_s27 + $0xa48] sm:$0xff] %v833_v9  ;;  %v835_v10 = vld [vmem:[%s10181_s26 + $0x14a0] sm:$0xff]  ;;  %v837_v11 = vld [vmem:[%s10181_s26 + $0x14a8] sm:$0xff] }
  0xb7   : > { %v839_v12 = vld [vmem:[%s10181_s26 + $0x14c0] sm:$0xff]  ;;  %836 = vst [vmem:[%s10189_s27 + $0xa50] sm:$0xff] %v835_v10  ;;  %838 = vst [vmem:[%s10189_s27 + $0xa58] sm:$0xff] %v837_v11  ;;  %v841_v13 = vld [vmem:[%s10181_s26 + $0x14c8] sm:$0xff] }
  0xb8   : > { %840 = vst [vmem:[%s10189_s27 + $0xa60] sm:$0xff] %v839_v12  ;;  %v843_v14 = vld [vmem:[%s10181_s26 + $0x14e0] sm:$0xff]  ;;  %v845_v15 = vld [vmem:[%s10181_s26 + $0x14e8] sm:$0xff]  ;;  %842 = vst [vmem:[%s10189_s27 + $0xa68] sm:$0xff] %v841_v13 }
  0xb9   : > { %844 = vst [vmem:[%s10189_s27 + $0xa70] sm:$0xff] %v843_v14  ;;  %846 = vst [vmem:[%s10189_s27 + $0xa78] sm:$0xff] %v845_v15  ;;  %v847_v16 = vld [vmem:[%s10181_s26 + $0x1500] sm:$0xff]  ;;  %v849_v17 = vld [vmem:[%s10181_s26 + $0x1508] sm:$0xff] }
  0xba   : > { %v851_v18 = vld [vmem:[%s10181_s26 + $0x1520] sm:$0xff]  ;;  %848 = vst [vmem:[%s10189_s27 + $0xa80] sm:$0xff] %v847_v16  ;;  %850 = vst [vmem:[%s10189_s27 + $0xa88] sm:$0xff] %v849_v17  ;;  %v853_v19 = vld [vmem:[%s10181_s26 + $0x1528] sm:$0xff] }
  0xbb   : > { %852 = vst [vmem:[%s10189_s27 + $0xa90] sm:$0xff] %v851_v18  ;;  %v855_v20 = vld [vmem:[%s10181_s26 + $0x1540] sm:$0xff]  ;;  %v857_v21 = vld [vmem:[%s10181_s26 + $0x1548] sm:$0xff]  ;;  %854 = vst [vmem:[%s10189_s27 + $0xa98] sm:$0xff] %v853_v19 }
  0xbc   : > { %856 = vst [vmem:[%s10189_s27 + $0xaa0] sm:$0xff] %v855_v20  ;;  %858 = vst [vmem:[%s10189_s27 + $0xaa8] sm:$0xff] %v857_v21  ;;  %v859_v22 = vld [vmem:[%s10181_s26 + $0x1560] sm:$0xff]  ;;  %v861_v23 = vld [vmem:[%s10181_s26 + $0x1568] sm:$0xff] }
  0xbd   : > { %v863_v24 = vld [vmem:[%s10181_s26 + $0x1580] sm:$0xff]  ;;  %860 = vst [vmem:[%s10189_s27 + $0xab0] sm:$0xff] %v859_v22  ;;  %862 = vst [vmem:[%s10189_s27 + $0xab8] sm:$0xff] %v861_v23  ;;  %v865_v25 = vld [vmem:[%s10181_s26 + $0x1588] sm:$0xff] }
  0xbe   : > { %864 = vst [vmem:[%s10189_s27 + $0xac0] sm:$0xff] %v863_v24  ;;  %v867_v26 = vld [vmem:[%s10181_s26 + $0x15a0] sm:$0xff]  ;;  %v869_v27 = vld [vmem:[%s10181_s26 + $0x15a8] sm:$0xff]  ;;  %866 = vst [vmem:[%s10189_s27 + $0xac8] sm:$0xff] %v865_v25 }
  0xbf   : > { %868 = vst [vmem:[%s10189_s27 + $0xad0] sm:$0xff] %v867_v26  ;;  %870 = vst [vmem:[%s10189_s27 + $0xad8] sm:$0xff] %v869_v27  ;;  %v871_v28 = vld [vmem:[%s10181_s26 + $0x15c0] sm:$0xff]  ;;  %v873_v29 = vld [vmem:[%s10181_s26 + $0x15c8] sm:$0xff] }
  0xc0   : > { %v875_v30 = vld [vmem:[%s10181_s26 + $0x15e0] sm:$0xff]  ;;  %872 = vst [vmem:[%s10189_s27 + $0xae0] sm:$0xff] %v871_v28  ;;  %874 = vst [vmem:[%s10189_s27 + $0xae8] sm:$0xff] %v873_v29  ;;  %v877_v31 = vld [vmem:[%s10181_s26 + $0x15e8] sm:$0xff] }
  0xc1   : > { %876 = vst [vmem:[%s10189_s27 + $0xaf0] sm:$0xff] %v875_v30  ;;  %v879_v32 = vld [vmem:[%s10181_s26 + $0x1600] sm:$0xff]  ;;  %v881_v33 = vld [vmem:[%s10181_s26 + $0x1608] sm:$0xff]  ;;  %878 = vst [vmem:[%s10189_s27 + $0xaf8] sm:$0xff] %v877_v31 }
  0xc2   : > { %880 = vst [vmem:[%s10189_s27 + $0xb00] sm:$0xff] %v879_v32  ;;  %882 = vst [vmem:[%s10189_s27 + $0xb08] sm:$0xff] %v881_v33  ;;  %v883_v34 = vld [vmem:[%s10181_s26 + $0x1620] sm:$0xff]  ;;  %v885_v35 = vld [vmem:[%s10181_s26 + $0x1628] sm:$0xff] }
  0xc3   : > { %v887_v36 = vld [vmem:[%s10181_s26 + $0x1640] sm:$0xff]  ;;  %884 = vst [vmem:[%s10189_s27 + $0xb10] sm:$0xff] %v883_v34  ;;  %886 = vst [vmem:[%s10189_s27 + $0xb18] sm:$0xff] %v885_v35  ;;  %v889_v37 = vld [vmem:[%s10181_s26 + $0x1648] sm:$0xff] }
  0xc4   : > { %888 = vst [vmem:[%s10189_s27 + $0xb20] sm:$0xff] %v887_v36  ;;  %v891_v38 = vld [vmem:[%s10181_s26 + $0x1660] sm:$0xff]  ;;  %v893_v39 = vld [vmem:[%s10181_s26 + $0x1668] sm:$0xff]  ;;  %890 = vst [vmem:[%s10189_s27 + $0xb28] sm:$0xff] %v889_v37 }
  0xc5   : > { %892 = vst [vmem:[%s10189_s27 + $0xb30] sm:$0xff] %v891_v38  ;;  %894 = vst [vmem:[%s10189_s27 + $0xb38] sm:$0xff] %v893_v39  ;;  %v895_v40 = vld [vmem:[%s10181_s26 + $0x1680] sm:$0xff]  ;;  %v897_v41 = vld [vmem:[%s10181_s26 + $0x1688] sm:$0xff] }
  0xc6   : > { %v899_v42 = vld [vmem:[%s10181_s26 + $0x16a0] sm:$0xff]  ;;  %896 = vst [vmem:[%s10189_s27 + $0xb40] sm:$0xff] %v895_v40  ;;  %898 = vst [vmem:[%s10189_s27 + $0xb48] sm:$0xff] %v897_v41  ;;  %v901_v43 = vld [vmem:[%s10181_s26 + $0x16a8] sm:$0xff] }
  0xc7   : > { %900 = vst [vmem:[%s10189_s27 + $0xb50] sm:$0xff] %v899_v42  ;;  %v903_v44 = vld [vmem:[%s10181_s26 + $0x16c0] sm:$0xff]  ;;  %v905_v45 = vld [vmem:[%s10181_s26 + $0x16c8] sm:$0xff]  ;;  %902 = vst [vmem:[%s10189_s27 + $0xb58] sm:$0xff] %v901_v43 }
  0xc8   : > { %904 = vst [vmem:[%s10189_s27 + $0xb60] sm:$0xff] %v903_v44  ;;  %906 = vst [vmem:[%s10189_s27 + $0xb68] sm:$0xff] %v905_v45  ;;  %v907_v46 = vld [vmem:[%s10181_s26 + $0x16e0] sm:$0xff]  ;;  %v909_v47 = vld [vmem:[%s10181_s26 + $0x16e8] sm:$0xff] }
  0xc9   : > { %v911_v48 = vld [vmem:[%s10181_s26 + $0x1700] sm:$0xff]  ;;  %908 = vst [vmem:[%s10189_s27 + $0xb70] sm:$0xff] %v907_v46  ;;  %910 = vst [vmem:[%s10189_s27 + $0xb78] sm:$0xff] %v909_v47  ;;  %v913_v49 = vld [vmem:[%s10181_s26 + $0x1708] sm:$0xff] }
  0xca   : > { %912 = vst [vmem:[%s10189_s27 + $0xb80] sm:$0xff] %v911_v48  ;;  %v915_v50 = vld [vmem:[%s10181_s26 + $0x1720] sm:$0xff]  ;;  %v917_v51 = vld [vmem:[%s10181_s26 + $0x1728] sm:$0xff]  ;;  %914 = vst [vmem:[%s10189_s27 + $0xb88] sm:$0xff] %v913_v49 }
  0xcb   : > { %916 = vst [vmem:[%s10189_s27 + $0xb90] sm:$0xff] %v915_v50  ;;  %918 = vst [vmem:[%s10189_s27 + $0xb98] sm:$0xff] %v917_v51  ;;  %v919_v52 = vld [vmem:[%s10181_s26 + $0x1740] sm:$0xff]  ;;  %v921_v53 = vld [vmem:[%s10181_s26 + $0x1748] sm:$0xff] }
  0xcc   : > { %v923_v54 = vld [vmem:[%s10181_s26 + $0x1760] sm:$0xff]  ;;  %920 = vst [vmem:[%s10189_s27 + $0xba0] sm:$0xff] %v919_v52  ;;  %922 = vst [vmem:[%s10189_s27 + $0xba8] sm:$0xff] %v921_v53  ;;  %v925_v55 = vld [vmem:[%s10181_s26 + $0x1768] sm:$0xff] }
  0xcd   : > { %924 = vst [vmem:[%s10189_s27 + $0xbb0] sm:$0xff] %v923_v54  ;;  %v927_v56 = vld [vmem:[%s10181_s26 + $0x1780] sm:$0xff]  ;;  %v929_v57 = vld [vmem:[%s10181_s26 + $0x1788] sm:$0xff]  ;;  %926 = vst [vmem:[%s10189_s27 + $0xbb8] sm:$0xff] %v925_v55 }
  0xce   : > { %928 = vst [vmem:[%s10189_s27 + $0xbc0] sm:$0xff] %v927_v56  ;;  %930 = vst [vmem:[%s10189_s27 + $0xbc8] sm:$0xff] %v929_v57  ;;  %v931_v58 = vld [vmem:[%s10181_s26 + $0x17a0] sm:$0xff]  ;;  %v933_v59 = vld [vmem:[%s10181_s26 + $0x17a8] sm:$0xff] }
  0xcf   : > { %v935_v60 = vld [vmem:[%s10181_s26 + $0x17c0] sm:$0xff]  ;;  %932 = vst [vmem:[%s10189_s27 + $0xbd0] sm:$0xff] %v931_v58  ;;  %934 = vst [vmem:[%s10189_s27 + $0xbd8] sm:$0xff] %v933_v59  ;;  %v937_v61 = vld [vmem:[%s10181_s26 + $0x17c8] sm:$0xff] }
  0xd0   : > { %936 = vst [vmem:[%s10189_s27 + $0xbe0] sm:$0xff] %v935_v60  ;;  %v939_v62 = vld [vmem:[%s10181_s26 + $0x17e0] sm:$0xff]  ;;  %v941_v63 = vld [vmem:[%s10181_s26 + $0x17e8] sm:$0xff]  ;;  %938 = vst [vmem:[%s10189_s27 + $0xbe8] sm:$0xff] %v937_v61 }
  0xd1   : > { %940 = vst [vmem:[%s10189_s27 + $0xbf0] sm:$0xff] %v939_v62  ;;  %942 = vst [vmem:[%s10189_s27 + $0xbf8] sm:$0xff] %v941_v63  ;;  %v943_v0 = vld [vmem:[%s10181_s26 + $0x1800] sm:$0xff]  ;;  %v945_v1 = vld [vmem:[%s10181_s26 + $0x1808] sm:$0xff] }
  0xd2   : > { %v947_v2 = vld [vmem:[%s10181_s26 + $0x1820] sm:$0xff]  ;;  %944 = vst [vmem:[%s10189_s27 + $0xc00] sm:$0xff] %v943_v0  ;;  %946 = vst [vmem:[%s10189_s27 + $0xc08] sm:$0xff] %v945_v1  ;;  %v949_v3 = vld [vmem:[%s10181_s26 + $0x1828] sm:$0xff] }
  0xd3   : > { %948 = vst [vmem:[%s10189_s27 + $0xc10] sm:$0xff] %v947_v2  ;;  %v951_v4 = vld [vmem:[%s10181_s26 + $0x1840] sm:$0xff]  ;;  %v953_v5 = vld [vmem:[%s10181_s26 + $0x1848] sm:$0xff]  ;;  %950 = vst [vmem:[%s10189_s27 + $0xc18] sm:$0xff] %v949_v3 }
  0xd4   : > { %952 = vst [vmem:[%s10189_s27 + $0xc20] sm:$0xff] %v951_v4  ;;  %954 = vst [vmem:[%s10189_s27 + $0xc28] sm:$0xff] %v953_v5  ;;  %v955_v6 = vld [vmem:[%s10181_s26 + $0x1860] sm:$0xff]  ;;  %v957_v7 = vld [vmem:[%s10181_s26 + $0x1868] sm:$0xff] }
  0xd5   : > { %v959_v8 = vld [vmem:[%s10181_s26 + $0x1880] sm:$0xff]  ;;  %956 = vst [vmem:[%s10189_s27 + $0xc30] sm:$0xff] %v955_v6  ;;  %958 = vst [vmem:[%s10189_s27 + $0xc38] sm:$0xff] %v957_v7  ;;  %v961_v9 = vld [vmem:[%s10181_s26 + $0x1888] sm:$0xff] }
  0xd6   : > { %960 = vst [vmem:[%s10189_s27 + $0xc40] sm:$0xff] %v959_v8  ;;  %v963_v10 = vld [vmem:[%s10181_s26 + $0x18a0] sm:$0xff]  ;;  %v965_v11 = vld [vmem:[%s10181_s26 + $0x18a8] sm:$0xff]  ;;  %962 = vst [vmem:[%s10189_s27 + $0xc48] sm:$0xff] %v961_v9 }
  0xd7   : > { %964 = vst [vmem:[%s10189_s27 + $0xc50] sm:$0xff] %v963_v10  ;;  %966 = vst [vmem:[%s10189_s27 + $0xc58] sm:$0xff] %v965_v11  ;;  %v967_v12 = vld [vmem:[%s10181_s26 + $0x18c0] sm:$0xff]  ;;  %v969_v13 = vld [vmem:[%s10181_s26 + $0x18c8] sm:$0xff] }
  0xd8   : > { %v971_v14 = vld [vmem:[%s10181_s26 + $0x18e0] sm:$0xff]  ;;  %968 = vst [vmem:[%s10189_s27 + $0xc60] sm:$0xff] %v967_v12  ;;  %970 = vst [vmem:[%s10189_s27 + $0xc68] sm:$0xff] %v969_v13  ;;  %v973_v15 = vld [vmem:[%s10181_s26 + $0x18e8] sm:$0xff] }
  0xd9   : > { %972 = vst [vmem:[%s10189_s27 + $0xc70] sm:$0xff] %v971_v14  ;;  %v975_v16 = vld [vmem:[%s10181_s26 + $0x1900] sm:$0xff]  ;;  %v977_v17 = vld [vmem:[%s10181_s26 + $0x1908] sm:$0xff]  ;;  %974 = vst [vmem:[%s10189_s27 + $0xc78] sm:$0xff] %v973_v15 }
  0xda   : > { %976 = vst [vmem:[%s10189_s27 + $0xc80] sm:$0xff] %v975_v16  ;;  %978 = vst [vmem:[%s10189_s27 + $0xc88] sm:$0xff] %v977_v17  ;;  %v979_v18 = vld [vmem:[%s10181_s26 + $0x1920] sm:$0xff]  ;;  %v981_v19 = vld [vmem:[%s10181_s26 + $0x1928] sm:$0xff] }
  0xdb   : > { %v983_v20 = vld [vmem:[%s10181_s26 + $0x1940] sm:$0xff]  ;;  %980 = vst [vmem:[%s10189_s27 + $0xc90] sm:$0xff] %v979_v18  ;;  %982 = vst [vmem:[%s10189_s27 + $0xc98] sm:$0xff] %v981_v19  ;;  %v985_v21 = vld [vmem:[%s10181_s26 + $0x1948] sm:$0xff] }
  0xdc   : > { %984 = vst [vmem:[%s10189_s27 + $0xca0] sm:$0xff] %v983_v20  ;;  %v987_v22 = vld [vmem:[%s10181_s26 + $0x1960] sm:$0xff]  ;;  %v989_v23 = vld [vmem:[%s10181_s26 + $0x1968] sm:$0xff]  ;;  %986 = vst [vmem:[%s10189_s27 + $0xca8] sm:$0xff] %v985_v21 }
  0xdd   : > { %988 = vst [vmem:[%s10189_s27 + $0xcb0] sm:$0xff] %v987_v22  ;;  %990 = vst [vmem:[%s10189_s27 + $0xcb8] sm:$0xff] %v989_v23  ;;  %v991_v24 = vld [vmem:[%s10181_s26 + $0x1980] sm:$0xff]  ;;  %v993_v25 = vld [vmem:[%s10181_s26 + $0x1988] sm:$0xff] }
  0xde   : > { %v995_v26 = vld [vmem:[%s10181_s26 + $0x19a0] sm:$0xff]  ;;  %992 = vst [vmem:[%s10189_s27 + $0xcc0] sm:$0xff] %v991_v24  ;;  %994 = vst [vmem:[%s10189_s27 + $0xcc8] sm:$0xff] %v993_v25  ;;  %v997_v27 = vld [vmem:[%s10181_s26 + $0x19a8] sm:$0xff] }
  0xdf   : > { %996 = vst [vmem:[%s10189_s27 + $0xcd0] sm:$0xff] %v995_v26  ;;  %v999_v28 = vld [vmem:[%s10181_s26 + $0x19c0] sm:$0xff]  ;;  %v1001_v29 = vld [vmem:[%s10181_s26 + $0x19c8] sm:$0xff]  ;;  %998 = vst [vmem:[%s10189_s27 + $0xcd8] sm:$0xff] %v997_v27 }
  0xe0   : > { %1000 = vst [vmem:[%s10189_s27 + $0xce0] sm:$0xff] %v999_v28  ;;  %1002 = vst [vmem:[%s10189_s27 + $0xce8] sm:$0xff] %v1001_v29  ;;  %v1003_v30 = vld [vmem:[%s10181_s26 + $0x19e0] sm:$0xff]  ;;  %v1005_v31 = vld [vmem:[%s10181_s26 + $0x19e8] sm:$0xff] }
  0xe1   : > { %v1007_v32 = vld [vmem:[%s10181_s26 + $0x1a00] sm:$0xff]  ;;  %1004 = vst [vmem:[%s10189_s27 + $0xcf0] sm:$0xff] %v1003_v30  ;;  %1006 = vst [vmem:[%s10189_s27 + $0xcf8] sm:$0xff] %v1005_v31  ;;  %v1009_v33 = vld [vmem:[%s10181_s26 + $0x1a08] sm:$0xff] }
  0xe2   : > { %1008 = vst [vmem:[%s10189_s27 + $0xd00] sm:$0xff] %v1007_v32  ;;  %v1011_v34 = vld [vmem:[%s10181_s26 + $0x1a20] sm:$0xff]  ;;  %v1013_v35 = vld [vmem:[%s10181_s26 + $0x1a28] sm:$0xff]  ;;  %1010 = vst [vmem:[%s10189_s27 + $0xd08] sm:$0xff] %v1009_v33 }
  0xe3   : > { %1012 = vst [vmem:[%s10189_s27 + $0xd10] sm:$0xff] %v1011_v34  ;;  %1014 = vst [vmem:[%s10189_s27 + $0xd18] sm:$0xff] %v1013_v35  ;;  %v1015_v36 = vld [vmem:[%s10181_s26 + $0x1a40] sm:$0xff]  ;;  %v1017_v37 = vld [vmem:[%s10181_s26 + $0x1a48] sm:$0xff] }
  0xe4   : > { %v1019_v38 = vld [vmem:[%s10181_s26 + $0x1a60] sm:$0xff]  ;;  %1016 = vst [vmem:[%s10189_s27 + $0xd20] sm:$0xff] %v1015_v36  ;;  %1018 = vst [vmem:[%s10189_s27 + $0xd28] sm:$0xff] %v1017_v37  ;;  %v1021_v39 = vld [vmem:[%s10181_s26 + $0x1a68] sm:$0xff] }
  0xe5   : > { %1020 = vst [vmem:[%s10189_s27 + $0xd30] sm:$0xff] %v1019_v38  ;;  %v1023_v40 = vld [vmem:[%s10181_s26 + $0x1a80] sm:$0xff]  ;;  %v1025_v41 = vld [vmem:[%s10181_s26 + $0x1a88] sm:$0xff]  ;;  %1022 = vst [vmem:[%s10189_s27 + $0xd38] sm:$0xff] %v1021_v39 }
  0xe6   : > { %1024 = vst [vmem:[%s10189_s27 + $0xd40] sm:$0xff] %v1023_v40  ;;  %1026 = vst [vmem:[%s10189_s27 + $0xd48] sm:$0xff] %v1025_v41  ;;  %v1027_v42 = vld [vmem:[%s10181_s26 + $0x1aa0] sm:$0xff]  ;;  %v1029_v43 = vld [vmem:[%s10181_s26 + $0x1aa8] sm:$0xff] }
  0xe7   : > { %v1031_v44 = vld [vmem:[%s10181_s26 + $0x1ac0] sm:$0xff]  ;;  %1028 = vst [vmem:[%s10189_s27 + $0xd50] sm:$0xff] %v1027_v42  ;;  %1030 = vst [vmem:[%s10189_s27 + $0xd58] sm:$0xff] %v1029_v43  ;;  %v1033_v45 = vld [vmem:[%s10181_s26 + $0x1ac8] sm:$0xff] }
  0xe8   : > { %1032 = vst [vmem:[%s10189_s27 + $0xd60] sm:$0xff] %v1031_v44  ;;  %v1035_v46 = vld [vmem:[%s10181_s26 + $0x1ae0] sm:$0xff]  ;;  %v1037_v47 = vld [vmem:[%s10181_s26 + $0x1ae8] sm:$0xff]  ;;  %1034 = vst [vmem:[%s10189_s27 + $0xd68] sm:$0xff] %v1033_v45 }
  0xe9   : > { %1036 = vst [vmem:[%s10189_s27 + $0xd70] sm:$0xff] %v1035_v46  ;;  %1038 = vst [vmem:[%s10189_s27 + $0xd78] sm:$0xff] %v1037_v47  ;;  %v1039_v48 = vld [vmem:[%s10181_s26 + $0x1b00] sm:$0xff]  ;;  %v1041_v49 = vld [vmem:[%s10181_s26 + $0x1b08] sm:$0xff] }
  0xea   : > { %v1043_v50 = vld [vmem:[%s10181_s26 + $0x1b20] sm:$0xff]  ;;  %1040 = vst [vmem:[%s10189_s27 + $0xd80] sm:$0xff] %v1039_v48  ;;  %1042 = vst [vmem:[%s10189_s27 + $0xd88] sm:$0xff] %v1041_v49  ;;  %v1045_v51 = vld [vmem:[%s10181_s26 + $0x1b28] sm:$0xff] }
  0xeb   : > { %1044 = vst [vmem:[%s10189_s27 + $0xd90] sm:$0xff] %v1043_v50  ;;  %v1047_v52 = vld [vmem:[%s10181_s26 + $0x1b40] sm:$0xff]  ;;  %v1049_v53 = vld [vmem:[%s10181_s26 + $0x1b48] sm:$0xff]  ;;  %1046 = vst [vmem:[%s10189_s27 + $0xd98] sm:$0xff] %v1045_v51 }
  0xec   : > { %1048 = vst [vmem:[%s10189_s27 + $0xda0] sm:$0xff] %v1047_v52  ;;  %1050 = vst [vmem:[%s10189_s27 + $0xda8] sm:$0xff] %v1049_v53  ;;  %v1051_v54 = vld [vmem:[%s10181_s26 + $0x1b60] sm:$0xff]  ;;  %v1053_v55 = vld [vmem:[%s10181_s26 + $0x1b68] sm:$0xff] }
  0xed   : > { %v1055_v56 = vld [vmem:[%s10181_s26 + $0x1b80] sm:$0xff]  ;;  %1052 = vst [vmem:[%s10189_s27 + $0xdb0] sm:$0xff] %v1051_v54  ;;  %1054 = vst [vmem:[%s10189_s27 + $0xdb8] sm:$0xff] %v1053_v55  ;;  %v1057_v57 = vld [vmem:[%s10181_s26 + $0x1b88] sm:$0xff] }
  0xee   : > { %1056 = vst [vmem:[%s10189_s27 + $0xdc0] sm:$0xff] %v1055_v56  ;;  %v1059_v58 = vld [vmem:[%s10181_s26 + $0x1ba0] sm:$0xff]  ;;  %v1061_v59 = vld [vmem:[%s10181_s26 + $0x1ba8] sm:$0xff]  ;;  %1058 = vst [vmem:[%s10189_s27 + $0xdc8] sm:$0xff] %v1057_v57 }
  0xef   : > { %1060 = vst [vmem:[%s10189_s27 + $0xdd0] sm:$0xff] %v1059_v58  ;;  %1062 = vst [vmem:[%s10189_s27 + $0xdd8] sm:$0xff] %v1061_v59  ;;  %v1063_v60 = vld [vmem:[%s10181_s26 + $0x1bc0] sm:$0xff]  ;;  %v1065_v61 = vld [vmem:[%s10181_s26 + $0x1bc8] sm:$0xff] }
  0xf0   : > { %v1067_v62 = vld [vmem:[%s10181_s26 + $0x1be0] sm:$0xff]  ;;  %1064 = vst [vmem:[%s10189_s27 + $0xde0] sm:$0xff] %v1063_v60  ;;  %1066 = vst [vmem:[%s10189_s27 + $0xde8] sm:$0xff] %v1065_v61  ;;  %v1069_v63 = vld [vmem:[%s10181_s26 + $0x1be8] sm:$0xff] }
  0xf1   : > { %1068 = vst [vmem:[%s10189_s27 + $0xdf0] sm:$0xff] %v1067_v62  ;;  %v1071_v0 = vld [vmem:[%s10181_s26 + $0x1c00] sm:$0xff]  ;;  %v1073_v1 = vld [vmem:[%s10181_s26 + $0x1c08] sm:$0xff]  ;;  %1070 = vst [vmem:[%s10189_s27 + $0xdf8] sm:$0xff] %v1069_v63 }
  0xf2   : > { %1072 = vst [vmem:[%s10189_s27 + $0xe00] sm:$0xff] %v1071_v0  ;;  %1074 = vst [vmem:[%s10189_s27 + $0xe08] sm:$0xff] %v1073_v1  ;;  %v1075_v2 = vld [vmem:[%s10181_s26 + $0x1c20] sm:$0xff]  ;;  %v1077_v3 = vld [vmem:[%s10181_s26 + $0x1c28] sm:$0xff] }
  0xf3   : > { %v1079_v4 = vld [vmem:[%s10181_s26 + $0x1c40] sm:$0xff]  ;;  %1076 = vst [vmem:[%s10189_s27 + $0xe10] sm:$0xff] %v1075_v2  ;;  %1078 = vst [vmem:[%s10189_s27 + $0xe18] sm:$0xff] %v1077_v3  ;;  %v1081_v5 = vld [vmem:[%s10181_s26 + $0x1c48] sm:$0xff] }
  0xf4   : > { %1080 = vst [vmem:[%s10189_s27 + $0xe20] sm:$0xff] %v1079_v4  ;;  %v1083_v6 = vld [vmem:[%s10181_s26 + $0x1c60] sm:$0xff]  ;;  %v1085_v7 = vld [vmem:[%s10181_s26 + $0x1c68] sm:$0xff]  ;;  %1082 = vst [vmem:[%s10189_s27 + $0xe28] sm:$0xff] %v1081_v5 }
  0xf5   : > { %1084 = vst [vmem:[%s10189_s27 + $0xe30] sm:$0xff] %v1083_v6  ;;  %1086 = vst [vmem:[%s10189_s27 + $0xe38] sm:$0xff] %v1085_v7  ;;  %v1087_v8 = vld [vmem:[%s10181_s26 + $0x1c80] sm:$0xff]  ;;  %v1089_v9 = vld [vmem:[%s10181_s26 + $0x1c88] sm:$0xff] }
  0xf6   : > { %v1091_v10 = vld [vmem:[%s10181_s26 + $0x1ca0] sm:$0xff]  ;;  %1088 = vst [vmem:[%s10189_s27 + $0xe40] sm:$0xff] %v1087_v8  ;;  %1090 = vst [vmem:[%s10189_s27 + $0xe48] sm:$0xff] %v1089_v9  ;;  %v1093_v11 = vld [vmem:[%s10181_s26 + $0x1ca8] sm:$0xff] }
  0xf7   : > { %1092 = vst [vmem:[%s10189_s27 + $0xe50] sm:$0xff] %v1091_v10  ;;  %v1095_v12 = vld [vmem:[%s10181_s26 + $0x1cc0] sm:$0xff]  ;;  %v1097_v13 = vld [vmem:[%s10181_s26 + $0x1cc8] sm:$0xff]  ;;  %1094 = vst [vmem:[%s10189_s27 + $0xe58] sm:$0xff] %v1093_v11 }
  0xf8   : > { %1096 = vst [vmem:[%s10189_s27 + $0xe60] sm:$0xff] %v1095_v12  ;;  %1098 = vst [vmem:[%s10189_s27 + $0xe68] sm:$0xff] %v1097_v13  ;;  %v1099_v14 = vld [vmem:[%s10181_s26 + $0x1ce0] sm:$0xff]  ;;  %v1101_v15 = vld [vmem:[%s10181_s26 + $0x1ce8] sm:$0xff] }
  0xf9   : > { %v1103_v16 = vld [vmem:[%s10181_s26 + $0x1d00] sm:$0xff]  ;;  %1100 = vst [vmem:[%s10189_s27 + $0xe70] sm:$0xff] %v1099_v14  ;;  %1102 = vst [vmem:[%s10189_s27 + $0xe78] sm:$0xff] %v1101_v15  ;;  %v1105_v17 = vld [vmem:[%s10181_s26 + $0x1d08] sm:$0xff] }
  0xfa   : > { %1104 = vst [vmem:[%s10189_s27 + $0xe80] sm:$0xff] %v1103_v16  ;;  %v1107_v18 = vld [vmem:[%s10181_s26 + $0x1d20] sm:$0xff]  ;;  %v1109_v19 = vld [vmem:[%s10181_s26 + $0x1d28] sm:$0xff]  ;;  %1106 = vst [vmem:[%s10189_s27 + $0xe88] sm:$0xff] %v1105_v17 }
  0xfb   : > { %1108 = vst [vmem:[%s10189_s27 + $0xe90] sm:$0xff] %v1107_v18  ;;  %1110 = vst [vmem:[%s10189_s27 + $0xe98] sm:$0xff] %v1109_v19  ;;  %v1111_v20 = vld [vmem:[%s10181_s26 + $0x1d40] sm:$0xff]  ;;  %v1113_v21 = vld [vmem:[%s10181_s26 + $0x1d48] sm:$0xff] }
  0xfc   : > { %v1115_v22 = vld [vmem:[%s10181_s26 + $0x1d60] sm:$0xff]  ;;  %1112 = vst [vmem:[%s10189_s27 + $0xea0] sm:$0xff] %v1111_v20  ;;  %1114 = vst [vmem:[%s10189_s27 + $0xea8] sm:$0xff] %v1113_v21  ;;  %v1117_v23 = vld [vmem:[%s10181_s26 + $0x1d68] sm:$0xff] }
  0xfd   : > { %1116 = vst [vmem:[%s10189_s27 + $0xeb0] sm:$0xff] %v1115_v22  ;;  %v1119_v24 = vld [vmem:[%s10181_s26 + $0x1d80] sm:$0xff]  ;;  %v1121_v25 = vld [vmem:[%s10181_s26 + $0x1d88] sm:$0xff]  ;;  %1118 = vst [vmem:[%s10189_s27 + $0xeb8] sm:$0xff] %v1117_v23 }
  0xfe   : > { %1120 = vst [vmem:[%s10189_s27 + $0xec0] sm:$0xff] %v1119_v24  ;;  %1122 = vst [vmem:[%s10189_s27 + $0xec8] sm:$0xff] %v1121_v25  ;;  %v1123_v26 = vld [vmem:[%s10181_s26 + $0x1da0] sm:$0xff]  ;;  %v1125_v27 = vld [vmem:[%s10181_s26 + $0x1da8] sm:$0xff] }
  0xff   : > { %v1127_v28 = vld [vmem:[%s10181_s26 + $0x1dc0] sm:$0xff]  ;;  %1124 = vst [vmem:[%s10189_s27 + $0xed0] sm:$0xff] %v1123_v26  ;;  %1126 = vst [vmem:[%s10189_s27 + $0xed8] sm:$0xff] %v1125_v27  ;;  %v1129_v29 = vld [vmem:[%s10181_s26 + $0x1dc8] sm:$0xff] }
 0x100   : > { %1128 = vst [vmem:[%s10189_s27 + $0xee0] sm:$0xff] %v1127_v28  ;;  %v1131_v30 = vld [vmem:[%s10181_s26 + $0x1de0] sm:$0xff]  ;;  %v1133_v31 = vld [vmem:[%s10181_s26 + $0x1de8] sm:$0xff]  ;;  %1130 = vst [vmem:[%s10189_s27 + $0xee8] sm:$0xff] %v1129_v29 }
 0x101   : > { %1132 = vst [vmem:[%s10189_s27 + $0xef0] sm:$0xff] %v1131_v30  ;;  %1134 = vst [vmem:[%s10189_s27 + $0xef8] sm:$0xff] %v1133_v31  ;;  %v1135_v32 = vld [vmem:[%s10181_s26 + $0x1e00] sm:$0xff]  ;;  %v1137_v33 = vld [vmem:[%s10181_s26 + $0x1e08] sm:$0xff] }
 0x102   : > { %v1139_v34 = vld [vmem:[%s10181_s26 + $0x1e20] sm:$0xff]  ;;  %1136 = vst [vmem:[%s10189_s27 + $0xf00] sm:$0xff] %v1135_v32  ;;  %1138 = vst [vmem:[%s10189_s27 + $0xf08] sm:$0xff] %v1137_v33  ;;  %v1141_v35 = vld [vmem:[%s10181_s26 + $0x1e28] sm:$0xff] }
 0x103   : > { %1140 = vst [vmem:[%s10189_s27 + $0xf10] sm:$0xff] %v1139_v34  ;;  %v1143_v36 = vld [vmem:[%s10181_s26 + $0x1e40] sm:$0xff]  ;;  %v1145_v37 = vld [vmem:[%s10181_s26 + $0x1e48] sm:$0xff]  ;;  %1142 = vst [vmem:[%s10189_s27 + $0xf18] sm:$0xff] %v1141_v35 }
 0x104   : > { %1144 = vst [vmem:[%s10189_s27 + $0xf20] sm:$0xff] %v1143_v36  ;;  %1146 = vst [vmem:[%s10189_s27 + $0xf28] sm:$0xff] %v1145_v37  ;;  %v1147_v38 = vld [vmem:[%s10181_s26 + $0x1e60] sm:$0xff]  ;;  %v1149_v39 = vld [vmem:[%s10181_s26 + $0x1e68] sm:$0xff] }
 0x105   : > { %v1151_v40 = vld [vmem:[%s10181_s26 + $0x1e80] sm:$0xff]  ;;  %1148 = vst [vmem:[%s10189_s27 + $0xf30] sm:$0xff] %v1147_v38  ;;  %1150 = vst [vmem:[%s10189_s27 + $0xf38] sm:$0xff] %v1149_v39  ;;  %v1153_v41 = vld [vmem:[%s10181_s26 + $0x1e88] sm:$0xff] }
 0x106   : > { %1152 = vst [vmem:[%s10189_s27 + $0xf40] sm:$0xff] %v1151_v40  ;;  %v1155_v42 = vld [vmem:[%s10181_s26 + $0x1ea0] sm:$0xff]  ;;  %v1157_v43 = vld [vmem:[%s10181_s26 + $0x1ea8] sm:$0xff]  ;;  %1154 = vst [vmem:[%s10189_s27 + $0xf48] sm:$0xff] %v1153_v41 }
 0x107   : > { %1156 = vst [vmem:[%s10189_s27 + $0xf50] sm:$0xff] %v1155_v42  ;;  %1158 = vst [vmem:[%s10189_s27 + $0xf58] sm:$0xff] %v1157_v43  ;;  %v1159_v44 = vld [vmem:[%s10181_s26 + $0x1ec0] sm:$0xff]  ;;  %v1161_v45 = vld [vmem:[%s10181_s26 + $0x1ec8] sm:$0xff] }
 0x108   : > { %v1163_v46 = vld [vmem:[%s10181_s26 + $0x1ee0] sm:$0xff]  ;;  %1160 = vst [vmem:[%s10189_s27 + $0xf60] sm:$0xff] %v1159_v44  ;;  %1162 = vst [vmem:[%s10189_s27 + $0xf68] sm:$0xff] %v1161_v45  ;;  %v1165_v47 = vld [vmem:[%s10181_s26 + $0x1ee8] sm:$0xff] }
 0x109   : > { %1164 = vst [vmem:[%s10189_s27 + $0xf70] sm:$0xff] %v1163_v46  ;;  %v1167_v48 = vld [vmem:[%s10181_s26 + $0x1f00] sm:$0xff]  ;;  %v1169_v49 = vld [vmem:[%s10181_s26 + $0x1f08] sm:$0xff]  ;;  %1166 = vst [vmem:[%s10189_s27 + $0xf78] sm:$0xff] %v1165_v47 }
 0x10a   : > { %1168 = vst [vmem:[%s10189_s27 + $0xf80] sm:$0xff] %v1167_v48  ;;  %1170 = vst [vmem:[%s10189_s27 + $0xf88] sm:$0xff] %v1169_v49  ;;  %v1171_v50 = vld [vmem:[%s10181_s26 + $0x1f20] sm:$0xff]  ;;  %v1173_v51 = vld [vmem:[%s10181_s26 + $0x1f28] sm:$0xff] }
 0x10b   : > { %v1175_v52 = vld [vmem:[%s10181_s26 + $0x1f40] sm:$0xff]  ;;  %1172 = vst [vmem:[%s10189_s27 + $0xf90] sm:$0xff] %v1171_v50  ;;  %1174 = vst [vmem:[%s10189_s27 + $0xf98] sm:$0xff] %v1173_v51  ;;  %v1177_v53 = vld [vmem:[%s10181_s26 + $0x1f48] sm:$0xff] }
 0x10c   : > { %1176 = vst [vmem:[%s10189_s27 + $0xfa0] sm:$0xff] %v1175_v52  ;;  %v1179_v54 = vld [vmem:[%s10181_s26 + $0x1f60] sm:$0xff]  ;;  %v1181_v55 = vld [vmem:[%s10181_s26 + $0x1f68] sm:$0xff]  ;;  %1178 = vst [vmem:[%s10189_s27 + $0xfa8] sm:$0xff] %v1177_v53 }
 0x10d   : > { %1180 = vst [vmem:[%s10189_s27 + $0xfb0] sm:$0xff] %v1179_v54  ;;  %1182 = vst [vmem:[%s10189_s27 + $0xfb8] sm:$0xff] %v1181_v55  ;;  %v1183_v56 = vld [vmem:[%s10181_s26 + $0x1f80] sm:$0xff]  ;;  %v1185_v57 = vld [vmem:[%s10181_s26 + $0x1f88] sm:$0xff] }
 0x10e   : > { %v1187_v58 = vld [vmem:[%s10181_s26 + $0x1fa0] sm:$0xff]  ;;  %1184 = vst [vmem:[%s10189_s27 + $0xfc0] sm:$0xff] %v1183_v56  ;;  %1186 = vst [vmem:[%s10189_s27 + $0xfc8] sm:$0xff] %v1185_v57  ;;  %v1189_v59 = vld [vmem:[%s10181_s26 + $0x1fa8] sm:$0xff] }
 0x10f   : > { %1188 = vst [vmem:[%s10189_s27 + $0xfd0] sm:$0xff] %v1187_v58  ;;  %v1191_v60 = vld [vmem:[%s10181_s26 + $0x1fc0] sm:$0xff]  ;;  %v1193_v61 = vld [vmem:[%s10181_s26 + $0x1fc8] sm:$0xff]  ;;  %1190 = vst [vmem:[%s10189_s27 + $0xfd8] sm:$0xff] %v1189_v59 }
 0x110   : > { %1192 = vst [vmem:[%s10189_s27 + $0xfe0] sm:$0xff] %v1191_v60  ;;  %1194 = vst [vmem:[%s10189_s27 + $0xfe8] sm:$0xff] %v1193_v61  ;;  %v1195_v62 = vld [vmem:[%s10181_s26 + $0x1fe0] sm:$0xff]  ;;  %v1197_v63 = vld [vmem:[%s10181_s26 + $0x1fe8] sm:$0xff] }
 0x111   : > { %v1199_v0 = vld [vmem:[%s10181_s26 + $0x2000] sm:$0xff]  ;;  %1196 = vst [vmem:[%s10189_s27 + $0xff0] sm:$0xff] %v1195_v62  ;;  %1198 = vst [vmem:[%s10189_s27 + $0xff8] sm:$0xff] %v1197_v63  ;;  %v1201_v1 = vld [vmem:[%s10181_s26 + $0x2008] sm:$0xff] }
 0x112   : > { %1200 = vst [vmem:[%s10189_s27 + $0x1000] sm:$0xff] %v1199_v0  ;;  %v1203_v2 = vld [vmem:[%s10181_s26 + $0x2020] sm:$0xff]  ;;  %v1205_v3 = vld [vmem:[%s10181_s26 + $0x2028] sm:$0xff]  ;;  %1202 = vst [vmem:[%s10189_s27 + $0x1008] sm:$0xff] %v1201_v1 }
 0x113   : > { %1204 = vst [vmem:[%s10189_s27 + $0x1010] sm:$0xff] %v1203_v2  ;;  %1206 = vst [vmem:[%s10189_s27 + $0x1018] sm:$0xff] %v1205_v3  ;;  %v1207_v4 = vld [vmem:[%s10181_s26 + $0x2040] sm:$0xff]  ;;  %v1209_v5 = vld [vmem:[%s10181_s26 + $0x2048] sm:$0xff] }
 0x114   : > { %v1211_v6 = vld [vmem:[%s10181_s26 + $0x2060] sm:$0xff]  ;;  %1208 = vst [vmem:[%s10189_s27 + $0x1020] sm:$0xff] %v1207_v4  ;;  %1210 = vst [vmem:[%s10189_s27 + $0x1028] sm:$0xff] %v1209_v5  ;;  %v1213_v7 = vld [vmem:[%s10181_s26 + $0x2068] sm:$0xff] }
 0x115   : > { %1212 = vst [vmem:[%s10189_s27 + $0x1030] sm:$0xff] %v1211_v6  ;;  %v1215_v8 = vld [vmem:[%s10181_s26 + $0x2080] sm:$0xff]  ;;  %v1217_v9 = vld [vmem:[%s10181_s26 + $0x2088] sm:$0xff]  ;;  %1214 = vst [vmem:[%s10189_s27 + $0x1038] sm:$0xff] %v1213_v7 }
 0x116   : > { %1216 = vst [vmem:[%s10189_s27 + $0x1040] sm:$0xff] %v1215_v8  ;;  %1218 = vst [vmem:[%s10189_s27 + $0x1048] sm:$0xff] %v1217_v9  ;;  %v1219_v10 = vld [vmem:[%s10181_s26 + $0x20a0] sm:$0xff]  ;;  %v1221_v11 = vld [vmem:[%s10181_s26 + $0x20a8] sm:$0xff] }
 0x117   : > { %v1223_v12 = vld [vmem:[%s10181_s26 + $0x20c0] sm:$0xff]  ;;  %1220 = vst [vmem:[%s10189_s27 + $0x1050] sm:$0xff] %v1219_v10  ;;  %1222 = vst [vmem:[%s10189_s27 + $0x1058] sm:$0xff] %v1221_v11  ;;  %v1225_v13 = vld [vmem:[%s10181_s26 + $0x20c8] sm:$0xff] }
 0x118   : > { %1224 = vst [vmem:[%s10189_s27 + $0x1060] sm:$0xff] %v1223_v12  ;;  %v1227_v14 = vld [vmem:[%s10181_s26 + $0x20e0] sm:$0xff]  ;;  %v1229_v15 = vld [vmem:[%s10181_s26 + $0x20e8] sm:$0xff]  ;;  %1226 = vst [vmem:[%s10189_s27 + $0x1068] sm:$0xff] %v1225_v13 }
 0x119   : > { %1228 = vst [vmem:[%s10189_s27 + $0x1070] sm:$0xff] %v1227_v14  ;;  %1230 = vst [vmem:[%s10189_s27 + $0x1078] sm:$0xff] %v1229_v15  ;;  %v1231_v16 = vld [vmem:[%s10181_s26 + $0x2100] sm:$0xff]  ;;  %v1233_v17 = vld [vmem:[%s10181_s26 + $0x2108] sm:$0xff] }
 0x11a   : > { %v1235_v18 = vld [vmem:[%s10181_s26 + $0x2120] sm:$0xff]  ;;  %1232 = vst [vmem:[%s10189_s27 + $0x1080] sm:$0xff] %v1231_v16  ;;  %1234 = vst [vmem:[%s10189_s27 + $0x1088] sm:$0xff] %v1233_v17  ;;  %v1237_v19 = vld [vmem:[%s10181_s26 + $0x2128] sm:$0xff] }
 0x11b   : > { %1236 = vst [vmem:[%s10189_s27 + $0x1090] sm:$0xff] %v1235_v18  ;;  %v1239_v20 = vld [vmem:[%s10181_s26 + $0x2140] sm:$0xff]  ;;  %v1241_v21 = vld [vmem:[%s10181_s26 + $0x2148] sm:$0xff]  ;;  %1238 = vst [vmem:[%s10189_s27 + $0x1098] sm:$0xff] %v1237_v19 }
 0x11c   : > { %1240 = vst [vmem:[%s10189_s27 + $0x10a0] sm:$0xff] %v1239_v20  ;;  %1242 = vst [vmem:[%s10189_s27 + $0x10a8] sm:$0xff] %v1241_v21  ;;  %v1243_v22 = vld [vmem:[%s10181_s26 + $0x2160] sm:$0xff]  ;;  %v1245_v23 = vld [vmem:[%s10181_s26 + $0x2168] sm:$0xff] }
 0x11d   : > { %v1247_v24 = vld [vmem:[%s10181_s26 + $0x2180] sm:$0xff]  ;;  %1244 = vst [vmem:[%s10189_s27 + $0x10b0] sm:$0xff] %v1243_v22  ;;  %1246 = vst [vmem:[%s10189_s27 + $0x10b8] sm:$0xff] %v1245_v23  ;;  %v1249_v25 = vld [vmem:[%s10181_s26 + $0x2188] sm:$0xff] }
 0x11e   : > { %1248 = vst [vmem:[%s10189_s27 + $0x10c0] sm:$0xff] %v1247_v24  ;;  %v1251_v26 = vld [vmem:[%s10181_s26 + $0x21a0] sm:$0xff]  ;;  %v1253_v27 = vld [vmem:[%s10181_s26 + $0x21a8] sm:$0xff]  ;;  %1250 = vst [vmem:[%s10189_s27 + $0x10c8] sm:$0xff] %v1249_v25 }
 0x11f   : > { %1252 = vst [vmem:[%s10189_s27 + $0x10d0] sm:$0xff] %v1251_v26  ;;  %1254 = vst [vmem:[%s10189_s27 + $0x10d8] sm:$0xff] %v1253_v27  ;;  %v1255_v28 = vld [vmem:[%s10181_s26 + $0x21c0] sm:$0xff]  ;;  %v1257_v29 = vld [vmem:[%s10181_s26 + $0x21c8] sm:$0xff] }
 0x120   : > { %v1259_v30 = vld [vmem:[%s10181_s26 + $0x21e0] sm:$0xff]  ;;  %1256 = vst [vmem:[%s10189_s27 + $0x10e0] sm:$0xff] %v1255_v28  ;;  %1258 = vst [vmem:[%s10189_s27 + $0x10e8] sm:$0xff] %v1257_v29  ;;  %v1261_v31 = vld [vmem:[%s10181_s26 + $0x21e8] sm:$0xff] }
 0x121   : > { %1260 = vst [vmem:[%s10189_s27 + $0x10f0] sm:$0xff] %v1259_v30  ;;  %v1263_v32 = vld [vmem:[%s10181_s26 + $0x2200] sm:$0xff]  ;;  %v1265_v33 = vld [vmem:[%s10181_s26 + $0x2208] sm:$0xff]  ;;  %1262 = vst [vmem:[%s10189_s27 + $0x10f8] sm:$0xff] %v1261_v31 }
 0x122   : > { %1264 = vst [vmem:[%s10189_s27 + $0x1100] sm:$0xff] %v1263_v32  ;;  %1266 = vst [vmem:[%s10189_s27 + $0x1108] sm:$0xff] %v1265_v33  ;;  %v1267_v34 = vld [vmem:[%s10181_s26 + $0x2220] sm:$0xff]  ;;  %v1269_v35 = vld [vmem:[%s10181_s26 + $0x2228] sm:$0xff] }
 0x123   : > { %v1271_v36 = vld [vmem:[%s10181_s26 + $0x2240] sm:$0xff]  ;;  %1268 = vst [vmem:[%s10189_s27 + $0x1110] sm:$0xff] %v1267_v34  ;;  %1270 = vst [vmem:[%s10189_s27 + $0x1118] sm:$0xff] %v1269_v35  ;;  %v1273_v37 = vld [vmem:[%s10181_s26 + $0x2248] sm:$0xff] }
 0x124   : > { %1272 = vst [vmem:[%s10189_s27 + $0x1120] sm:$0xff] %v1271_v36  ;;  %v1275_v38 = vld [vmem:[%s10181_s26 + $0x2260] sm:$0xff]  ;;  %v1277_v39 = vld [vmem:[%s10181_s26 + $0x2268] sm:$0xff]  ;;  %1274 = vst [vmem:[%s10189_s27 + $0x1128] sm:$0xff] %v1273_v37 }
 0x125   : > { %1276 = vst [vmem:[%s10189_s27 + $0x1130] sm:$0xff] %v1275_v38  ;;  %1278 = vst [vmem:[%s10189_s27 + $0x1138] sm:$0xff] %v1277_v39  ;;  %v1279_v40 = vld [vmem:[%s10181_s26 + $0x2280] sm:$0xff]  ;;  %v1281_v41 = vld [vmem:[%s10181_s26 + $0x2288] sm:$0xff] }
 0x126   : > { %v1283_v42 = vld [vmem:[%s10181_s26 + $0x22a0] sm:$0xff]  ;;  %1280 = vst [vmem:[%s10189_s27 + $0x1140] sm:$0xff] %v1279_v40  ;;  %1282 = vst [vmem:[%s10189_s27 + $0x1148] sm:$0xff] %v1281_v41  ;;  %v1285_v43 = vld [vmem:[%s10181_s26 + $0x22a8] sm:$0xff] }
 0x127   : > { %1284 = vst [vmem:[%s10189_s27 + $0x1150] sm:$0xff] %v1283_v42  ;;  %v1287_v44 = vld [vmem:[%s10181_s26 + $0x22c0] sm:$0xff]  ;;  %v1289_v45 = vld [vmem:[%s10181_s26 + $0x22c8] sm:$0xff]  ;;  %1286 = vst [vmem:[%s10189_s27 + $0x1158] sm:$0xff] %v1285_v43 }
 0x128   : > { %1288 = vst [vmem:[%s10189_s27 + $0x1160] sm:$0xff] %v1287_v44  ;;  %1290 = vst [vmem:[%s10189_s27 + $0x1168] sm:$0xff] %v1289_v45  ;;  %v1291_v46 = vld [vmem:[%s10181_s26 + $0x22e0] sm:$0xff]  ;;  %v1293_v47 = vld [vmem:[%s10181_s26 + $0x22e8] sm:$0xff] }
 0x129   : > { %v1295_v48 = vld [vmem:[%s10181_s26 + $0x2300] sm:$0xff]  ;;  %1292 = vst [vmem:[%s10189_s27 + $0x1170] sm:$0xff] %v1291_v46  ;;  %1294 = vst [vmem:[%s10189_s27 + $0x1178] sm:$0xff] %v1293_v47  ;;  %v1297_v49 = vld [vmem:[%s10181_s26 + $0x2308] sm:$0xff] }
 0x12a   : > { %1296 = vst [vmem:[%s10189_s27 + $0x1180] sm:$0xff] %v1295_v48  ;;  %v1299_v50 = vld [vmem:[%s10181_s26 + $0x2320] sm:$0xff]  ;;  %v1301_v51 = vld [vmem:[%s10181_s26 + $0x2328] sm:$0xff]  ;;  %1298 = vst [vmem:[%s10189_s27 + $0x1188] sm:$0xff] %v1297_v49 }
 0x12b   : > { %1300 = vst [vmem:[%s10189_s27 + $0x1190] sm:$0xff] %v1299_v50  ;;  %1302 = vst [vmem:[%s10189_s27 + $0x1198] sm:$0xff] %v1301_v51  ;;  %v1303_v52 = vld [vmem:[%s10181_s26 + $0x2340] sm:$0xff]  ;;  %v1305_v53 = vld [vmem:[%s10181_s26 + $0x2348] sm:$0xff] }
 0x12c   : > { %v1307_v54 = vld [vmem:[%s10181_s26 + $0x2360] sm:$0xff]  ;;  %1304 = vst [vmem:[%s10189_s27 + $0x11a0] sm:$0xff] %v1303_v52  ;;  %1306 = vst [vmem:[%s10189_s27 + $0x11a8] sm:$0xff] %v1305_v53  ;;  %v1309_v55 = vld [vmem:[%s10181_s26 + $0x2368] sm:$0xff] }
 0x12d   : > { %1308 = vst [vmem:[%s10189_s27 + $0x11b0] sm:$0xff] %v1307_v54  ;;  %v1311_v56 = vld [vmem:[%s10181_s26 + $0x2380] sm:$0xff]  ;;  %v1313_v57 = vld [vmem:[%s10181_s26 + $0x2388] sm:$0xff]  ;;  %1310 = vst [vmem:[%s10189_s27 + $0x11b8] sm:$0xff] %v1309_v55 }
 0x12e   : > { %1312 = vst [vmem:[%s10189_s27 + $0x11c0] sm:$0xff] %v1311_v56  ;;  %1314 = vst [vmem:[%s10189_s27 + $0x11c8] sm:$0xff] %v1313_v57  ;;  %v1315_v58 = vld [vmem:[%s10181_s26 + $0x23a0] sm:$0xff]  ;;  %v1317_v59 = vld [vmem:[%s10181_s26 + $0x23a8] sm:$0xff] }
 0x12f   : > { %v1319_v60 = vld [vmem:[%s10181_s26 + $0x23c0] sm:$0xff]  ;;  %1316 = vst [vmem:[%s10189_s27 + $0x11d0] sm:$0xff] %v1315_v58  ;;  %1318 = vst [vmem:[%s10189_s27 + $0x11d8] sm:$0xff] %v1317_v59  ;;  %v1321_v61 = vld [vmem:[%s10181_s26 + $0x23c8] sm:$0xff] }
 0x130   : > { %1320 = vst [vmem:[%s10189_s27 + $0x11e0] sm:$0xff] %v1319_v60  ;;  %v1323_v62 = vld [vmem:[%s10181_s26 + $0x23e0] sm:$0xff]  ;;  %v1325_v63 = vld [vmem:[%s10181_s26 + $0x23e8] sm:$0xff]  ;;  %1322 = vst [vmem:[%s10189_s27 + $0x11e8] sm:$0xff] %v1321_v61 }
 0x131   : > { %1324 = vst [vmem:[%s10189_s27 + $0x11f0] sm:$0xff] %v1323_v62  ;;  %1326 = vst [vmem:[%s10189_s27 + $0x11f8] sm:$0xff] %v1325_v63  ;;  %v1327_v0 = vld [vmem:[%s10181_s26 + $0x2400] sm:$0xff]  ;;  %v1329_v1 = vld [vmem:[%s10181_s26 + $0x2408] sm:$0xff] }
 0x132   : > { %v1331_v2 = vld [vmem:[%s10181_s26 + $0x2420] sm:$0xff]  ;;  %1328 = vst [vmem:[%s10189_s27 + $0x1200] sm:$0xff] %v1327_v0  ;;  %1330 = vst [vmem:[%s10189_s27 + $0x1208] sm:$0xff] %v1329_v1  ;;  %v1333_v3 = vld [vmem:[%s10181_s26 + $0x2428] sm:$0xff] }
 0x133   : > { %1332 = vst [vmem:[%s10189_s27 + $0x1210] sm:$0xff] %v1331_v2  ;;  %v1335_v4 = vld [vmem:[%s10181_s26 + $0x2440] sm:$0xff]  ;;  %v1337_v5 = vld [vmem:[%s10181_s26 + $0x2448] sm:$0xff]  ;;  %1334 = vst [vmem:[%s10189_s27 + $0x1218] sm:$0xff] %v1333_v3 }
 0x134   : > { %1336 = vst [vmem:[%s10189_s27 + $0x1220] sm:$0xff] %v1335_v4  ;;  %1338 = vst [vmem:[%s10189_s27 + $0x1228] sm:$0xff] %v1337_v5  ;;  %v1339_v6 = vld [vmem:[%s10181_s26 + $0x2460] sm:$0xff]  ;;  %v1341_v7 = vld [vmem:[%s10181_s26 + $0x2468] sm:$0xff] }
 0x135   : > { %v1343_v8 = vld [vmem:[%s10181_s26 + $0x2480] sm:$0xff]  ;;  %1340 = vst [vmem:[%s10189_s27 + $0x1230] sm:$0xff] %v1339_v6  ;;  %1342 = vst [vmem:[%s10189_s27 + $0x1238] sm:$0xff] %v1341_v7  ;;  %v1345_v9 = vld [vmem:[%s10181_s26 + $0x2488] sm:$0xff] }
 0x136   : > { %1344 = vst [vmem:[%s10189_s27 + $0x1240] sm:$0xff] %v1343_v8  ;;  %v1347_v10 = vld [vmem:[%s10181_s26 + $0x24a0] sm:$0xff]  ;;  %v1349_v11 = vld [vmem:[%s10181_s26 + $0x24a8] sm:$0xff]  ;;  %1346 = vst [vmem:[%s10189_s27 + $0x1248] sm:$0xff] %v1345_v9 }
 0x137   : > { %1348 = vst [vmem:[%s10189_s27 + $0x1250] sm:$0xff] %v1347_v10  ;;  %1350 = vst [vmem:[%s10189_s27 + $0x1258] sm:$0xff] %v1349_v11  ;;  %v1351_v12 = vld [vmem:[%s10181_s26 + $0x24c0] sm:$0xff]  ;;  %v1353_v13 = vld [vmem:[%s10181_s26 + $0x24c8] sm:$0xff] }
 0x138   : > { %v1355_v14 = vld [vmem:[%s10181_s26 + $0x24e0] sm:$0xff]  ;;  %1352 = vst [vmem:[%s10189_s27 + $0x1260] sm:$0xff] %v1351_v12  ;;  %1354 = vst [vmem:[%s10189_s27 + $0x1268] sm:$0xff] %v1353_v13  ;;  %v1357_v15 = vld [vmem:[%s10181_s26 + $0x24e8] sm:$0xff] }
 0x139   : > { %1356 = vst [vmem:[%s10189_s27 + $0x1270] sm:$0xff] %v1355_v14  ;;  %v1359_v16 = vld [vmem:[%s10181_s26 + $0x2500] sm:$0xff]  ;;  %v1361_v17 = vld [vmem:[%s10181_s26 + $0x2508] sm:$0xff]  ;;  %1358 = vst [vmem:[%s10189_s27 + $0x1278] sm:$0xff] %v1357_v15 }
 0x13a   : > { %1360 = vst [vmem:[%s10189_s27 + $0x1280] sm:$0xff] %v1359_v16  ;;  %1362 = vst [vmem:[%s10189_s27 + $0x1288] sm:$0xff] %v1361_v17  ;;  %v1363_v18 = vld [vmem:[%s10181_s26 + $0x2520] sm:$0xff]  ;;  %v1365_v19 = vld [vmem:[%s10181_s26 + $0x2528] sm:$0xff] }
 0x13b   : > { %v1367_v20 = vld [vmem:[%s10181_s26 + $0x2540] sm:$0xff]  ;;  %1364 = vst [vmem:[%s10189_s27 + $0x1290] sm:$0xff] %v1363_v18  ;;  %1366 = vst [vmem:[%s10189_s27 + $0x1298] sm:$0xff] %v1365_v19  ;;  %v1369_v21 = vld [vmem:[%s10181_s26 + $0x2548] sm:$0xff] }
 0x13c   : > { %1368 = vst [vmem:[%s10189_s27 + $0x12a0] sm:$0xff] %v1367_v20  ;;  %v1371_v22 = vld [vmem:[%s10181_s26 + $0x2560] sm:$0xff]  ;;  %v1373_v23 = vld [vmem:[%s10181_s26 + $0x2568] sm:$0xff]  ;;  %1370 = vst [vmem:[%s10189_s27 + $0x12a8] sm:$0xff] %v1369_v21 }
 0x13d   : > { %1372 = vst [vmem:[%s10189_s27 + $0x12b0] sm:$0xff] %v1371_v22  ;;  %1374 = vst [vmem:[%s10189_s27 + $0x12b8] sm:$0xff] %v1373_v23  ;;  %v1375_v24 = vld [vmem:[%s10181_s26 + $0x2580] sm:$0xff]  ;;  %v1377_v25 = vld [vmem:[%s10181_s26 + $0x2588] sm:$0xff] }
 0x13e   : > { %v1379_v26 = vld [vmem:[%s10181_s26 + $0x25a0] sm:$0xff]  ;;  %1376 = vst [vmem:[%s10189_s27 + $0x12c0] sm:$0xff] %v1375_v24  ;;  %1378 = vst [vmem:[%s10189_s27 + $0x12c8] sm:$0xff] %v1377_v25  ;;  %v1381_v27 = vld [vmem:[%s10181_s26 + $0x25a8] sm:$0xff] }
 0x13f   : > { %1380 = vst [vmem:[%s10189_s27 + $0x12d0] sm:$0xff] %v1379_v26  ;;  %v1383_v28 = vld [vmem:[%s10181_s26 + $0x25c0] sm:$0xff]  ;;  %v1385_v29 = vld [vmem:[%s10181_s26 + $0x25c8] sm:$0xff]  ;;  %1382 = vst [vmem:[%s10189_s27 + $0x12d8] sm:$0xff] %v1381_v27 }
 0x140   : > { %1384 = vst [vmem:[%s10189_s27 + $0x12e0] sm:$0xff] %v1383_v28  ;;  %1386 = vst [vmem:[%s10189_s27 + $0x12e8] sm:$0xff] %v1385_v29  ;;  %v1387_v30 = vld [vmem:[%s10181_s26 + $0x25e0] sm:$0xff]  ;;  %v1389_v31 = vld [vmem:[%s10181_s26 + $0x25e8] sm:$0xff] }
 0x141   : > { %v1391_v32 = vld [vmem:[%s10181_s26 + $0x2600] sm:$0xff]  ;;  %1388 = vst [vmem:[%s10189_s27 + $0x12f0] sm:$0xff] %v1387_v30  ;;  %1390 = vst [vmem:[%s10189_s27 + $0x12f8] sm:$0xff] %v1389_v31  ;;  %v1393_v33 = vld [vmem:[%s10181_s26 + $0x2608] sm:$0xff] }
 0x142   : > { %1392 = vst [vmem:[%s10189_s27 + $0x1300] sm:$0xff] %v1391_v32  ;;  %v1395_v34 = vld [vmem:[%s10181_s26 + $0x2620] sm:$0xff]  ;;  %v1397_v35 = vld [vmem:[%s10181_s26 + $0x2628] sm:$0xff]  ;;  %1394 = vst [vmem:[%s10189_s27 + $0x1308] sm:$0xff] %v1393_v33 }
 0x143   : > { %1396 = vst [vmem:[%s10189_s27 + $0x1310] sm:$0xff] %v1395_v34  ;;  %1398 = vst [vmem:[%s10189_s27 + $0x1318] sm:$0xff] %v1397_v35  ;;  %v1399_v36 = vld [vmem:[%s10181_s26 + $0x2640] sm:$0xff]  ;;  %v1401_v37 = vld [vmem:[%s10181_s26 + $0x2648] sm:$0xff] }
 0x144   : > { %v1403_v38 = vld [vmem:[%s10181_s26 + $0x2660] sm:$0xff]  ;;  %1400 = vst [vmem:[%s10189_s27 + $0x1320] sm:$0xff] %v1399_v36  ;;  %1402 = vst [vmem:[%s10189_s27 + $0x1328] sm:$0xff] %v1401_v37  ;;  %v1405_v39 = vld [vmem:[%s10181_s26 + $0x2668] sm:$0xff] }
 0x145   : > { %1404 = vst [vmem:[%s10189_s27 + $0x1330] sm:$0xff] %v1403_v38  ;;  %v1407_v40 = vld [vmem:[%s10181_s26 + $0x2680] sm:$0xff]  ;;  %v1409_v41 = vld [vmem:[%s10181_s26 + $0x2688] sm:$0xff]  ;;  %1406 = vst [vmem:[%s10189_s27 + $0x1338] sm:$0xff] %v1405_v39 }
 0x146   : > { %1408 = vst [vmem:[%s10189_s27 + $0x1340] sm:$0xff] %v1407_v40  ;;  %1410 = vst [vmem:[%s10189_s27 + $0x1348] sm:$0xff] %v1409_v41  ;;  %v1411_v42 = vld [vmem:[%s10181_s26 + $0x26a0] sm:$0xff]  ;;  %v1413_v43 = vld [vmem:[%s10181_s26 + $0x26a8] sm:$0xff] }
 0x147   : > { %v1415_v44 = vld [vmem:[%s10181_s26 + $0x26c0] sm:$0xff]  ;;  %1412 = vst [vmem:[%s10189_s27 + $0x1350] sm:$0xff] %v1411_v42  ;;  %1414 = vst [vmem:[%s10189_s27 + $0x1358] sm:$0xff] %v1413_v43  ;;  %v1417_v45 = vld [vmem:[%s10181_s26 + $0x26c8] sm:$0xff] }
 0x148   : > { %1416 = vst [vmem:[%s10189_s27 + $0x1360] sm:$0xff] %v1415_v44  ;;  %v1419_v46 = vld [vmem:[%s10181_s26 + $0x26e0] sm:$0xff]  ;;  %v1421_v47 = vld [vmem:[%s10181_s26 + $0x26e8] sm:$0xff]  ;;  %1418 = vst [vmem:[%s10189_s27 + $0x1368] sm:$0xff] %v1417_v45 }
 0x149   : > { %1420 = vst [vmem:[%s10189_s27 + $0x1370] sm:$0xff] %v1419_v46  ;;  %1422 = vst [vmem:[%s10189_s27 + $0x1378] sm:$0xff] %v1421_v47  ;;  %v1423_v48 = vld [vmem:[%s10181_s26 + $0x2700] sm:$0xff]  ;;  %v1425_v49 = vld [vmem:[%s10181_s26 + $0x2708] sm:$0xff] }
 0x14a   : > { %v1427_v50 = vld [vmem:[%s10181_s26 + $0x2720] sm:$0xff]  ;;  %1424 = vst [vmem:[%s10189_s27 + $0x1380] sm:$0xff] %v1423_v48  ;;  %1426 = vst [vmem:[%s10189_s27 + $0x1388] sm:$0xff] %v1425_v49  ;;  %v1429_v51 = vld [vmem:[%s10181_s26 + $0x2728] sm:$0xff] }
 0x14b   : > { %1428 = vst [vmem:[%s10189_s27 + $0x1390] sm:$0xff] %v1427_v50  ;;  %v1431_v52 = vld [vmem:[%s10181_s26 + $0x2740] sm:$0xff]  ;;  %v1433_v53 = vld [vmem:[%s10181_s26 + $0x2748] sm:$0xff]  ;;  %1430 = vst [vmem:[%s10189_s27 + $0x1398] sm:$0xff] %v1429_v51 }
 0x14c   : > { %1432 = vst [vmem:[%s10189_s27 + $0x13a0] sm:$0xff] %v1431_v52  ;;  %1434 = vst [vmem:[%s10189_s27 + $0x13a8] sm:$0xff] %v1433_v53  ;;  %v1435_v54 = vld [vmem:[%s10181_s26 + $0x2760] sm:$0xff]  ;;  %v1437_v55 = vld [vmem:[%s10181_s26 + $0x2768] sm:$0xff] }
 0x14d   : > { %v1439_v56 = vld [vmem:[%s10181_s26 + $0x2780] sm:$0xff]  ;;  %1436 = vst [vmem:[%s10189_s27 + $0x13b0] sm:$0xff] %v1435_v54  ;;  %1438 = vst [vmem:[%s10189_s27 + $0x13b8] sm:$0xff] %v1437_v55  ;;  %v1441_v57 = vld [vmem:[%s10181_s26 + $0x2788] sm:$0xff] }
 0x14e   : > { %1440 = vst [vmem:[%s10189_s27 + $0x13c0] sm:$0xff] %v1439_v56  ;;  %v1443_v58 = vld [vmem:[%s10181_s26 + $0x27a0] sm:$0xff]  ;;  %v1445_v59 = vld [vmem:[%s10181_s26 + $0x27a8] sm:$0xff]  ;;  %1442 = vst [vmem:[%s10189_s27 + $0x13c8] sm:$0xff] %v1441_v57 }
 0x14f   : > { %1444 = vst [vmem:[%s10189_s27 + $0x13d0] sm:$0xff] %v1443_v58  ;;  %1446 = vst [vmem:[%s10189_s27 + $0x13d8] sm:$0xff] %v1445_v59  ;;  %v1447_v60 = vld [vmem:[%s10181_s26 + $0x27c0] sm:$0xff]  ;;  %v1449_v61 = vld [vmem:[%s10181_s26 + $0x27c8] sm:$0xff] }
 0x150   : > { %v1451_v62 = vld [vmem:[%s10181_s26 + $0x27e0] sm:$0xff]  ;;  %1448 = vst [vmem:[%s10189_s27 + $0x13e0] sm:$0xff] %v1447_v60  ;;  %1450 = vst [vmem:[%s10189_s27 + $0x13e8] sm:$0xff] %v1449_v61  ;;  %v1453_v63 = vld [vmem:[%s10181_s26 + $0x27e8] sm:$0xff] }
 0x151   : > { %1452 = vst [vmem:[%s10189_s27 + $0x13f0] sm:$0xff] %v1451_v62  ;;  %v1455_v0 = vld [vmem:[%s10181_s26 + $0x2800] sm:$0xff]  ;;  %v1457_v1 = vld [vmem:[%s10181_s26 + $0x2808] sm:$0xff]  ;;  %1454 = vst [vmem:[%s10189_s27 + $0x13f8] sm:$0xff] %v1453_v63 }
 0x152   : > { %1456 = vst [vmem:[%s10189_s27 + $0x1400] sm:$0xff] %v1455_v0  ;;  %1458 = vst [vmem:[%s10189_s27 + $0x1408] sm:$0xff] %v1457_v1  ;;  %v1459_v2 = vld [vmem:[%s10181_s26 + $0x2820] sm:$0xff]  ;;  %v1461_v3 = vld [vmem:[%s10181_s26 + $0x2828] sm:$0xff] }
 0x153   : > { %v1463_v4 = vld [vmem:[%s10181_s26 + $0x2840] sm:$0xff]  ;;  %1460 = vst [vmem:[%s10189_s27 + $0x1410] sm:$0xff] %v1459_v2  ;;  %1462 = vst [vmem:[%s10189_s27 + $0x1418] sm:$0xff] %v1461_v3  ;;  %v1465_v5 = vld [vmem:[%s10181_s26 + $0x2848] sm:$0xff] }
 0x154   : > { %1464 = vst [vmem:[%s10189_s27 + $0x1420] sm:$0xff] %v1463_v4  ;;  %v1467_v6 = vld [vmem:[%s10181_s26 + $0x2860] sm:$0xff]  ;;  %v1469_v7 = vld [vmem:[%s10181_s26 + $0x2868] sm:$0xff]  ;;  %1466 = vst [vmem:[%s10189_s27 + $0x1428] sm:$0xff] %v1465_v5 }
 0x155   : > { %1468 = vst [vmem:[%s10189_s27 + $0x1430] sm:$0xff] %v1467_v6  ;;  %1470 = vst [vmem:[%s10189_s27 + $0x1438] sm:$0xff] %v1469_v7  ;;  %v1471_v8 = vld [vmem:[%s10181_s26 + $0x2880] sm:$0xff]  ;;  %v1473_v9 = vld [vmem:[%s10181_s26 + $0x2888] sm:$0xff] }
 0x156   : > { %v1475_v10 = vld [vmem:[%s10181_s26 + $0x28a0] sm:$0xff]  ;;  %1472 = vst [vmem:[%s10189_s27 + $0x1440] sm:$0xff] %v1471_v8  ;;  %1474 = vst [vmem:[%s10189_s27 + $0x1448] sm:$0xff] %v1473_v9  ;;  %v1477_v11 = vld [vmem:[%s10181_s26 + $0x28a8] sm:$0xff] }
 0x157   : > { %1476 = vst [vmem:[%s10189_s27 + $0x1450] sm:$0xff] %v1475_v10  ;;  %v1479_v12 = vld [vmem:[%s10181_s26 + $0x28c0] sm:$0xff]  ;;  %v1481_v13 = vld [vmem:[%s10181_s26 + $0x28c8] sm:$0xff]  ;;  %1478 = vst [vmem:[%s10189_s27 + $0x1458] sm:$0xff] %v1477_v11 }
 0x158   : > { %1480 = vst [vmem:[%s10189_s27 + $0x1460] sm:$0xff] %v1479_v12  ;;  %1482 = vst [vmem:[%s10189_s27 + $0x1468] sm:$0xff] %v1481_v13  ;;  %v1483_v14 = vld [vmem:[%s10181_s26 + $0x28e0] sm:$0xff]  ;;  %v1485_v15 = vld [vmem:[%s10181_s26 + $0x28e8] sm:$0xff] }
 0x159   : > { %v1487_v16 = vld [vmem:[%s10181_s26 + $0x2900] sm:$0xff]  ;;  %1484 = vst [vmem:[%s10189_s27 + $0x1470] sm:$0xff] %v1483_v14  ;;  %1486 = vst [vmem:[%s10189_s27 + $0x1478] sm:$0xff] %v1485_v15  ;;  %v1489_v17 = vld [vmem:[%s10181_s26 + $0x2908] sm:$0xff] }
 0x15a   : > { %1488 = vst [vmem:[%s10189_s27 + $0x1480] sm:$0xff] %v1487_v16  ;;  %v1491_v18 = vld [vmem:[%s10181_s26 + $0x2920] sm:$0xff]  ;;  %v1493_v19 = vld [vmem:[%s10181_s26 + $0x2928] sm:$0xff]  ;;  %1490 = vst [vmem:[%s10189_s27 + $0x1488] sm:$0xff] %v1489_v17 }
 0x15b   : > { %1492 = vst [vmem:[%s10189_s27 + $0x1490] sm:$0xff] %v1491_v18  ;;  %1494 = vst [vmem:[%s10189_s27 + $0x1498] sm:$0xff] %v1493_v19  ;;  %v1495_v20 = vld [vmem:[%s10181_s26 + $0x2940] sm:$0xff]  ;;  %v1497_v21 = vld [vmem:[%s10181_s26 + $0x2948] sm:$0xff] }
 0x15c   : > { %v1499_v22 = vld [vmem:[%s10181_s26 + $0x2960] sm:$0xff]  ;;  %1496 = vst [vmem:[%s10189_s27 + $0x14a0] sm:$0xff] %v1495_v20  ;;  %1498 = vst [vmem:[%s10189_s27 + $0x14a8] sm:$0xff] %v1497_v21  ;;  %v1501_v23 = vld [vmem:[%s10181_s26 + $0x2968] sm:$0xff] }
 0x15d   : > { %1500 = vst [vmem:[%s10189_s27 + $0x14b0] sm:$0xff] %v1499_v22  ;;  %v1503_v24 = vld [vmem:[%s10181_s26 + $0x2980] sm:$0xff]  ;;  %v1505_v25 = vld [vmem:[%s10181_s26 + $0x2988] sm:$0xff]  ;;  %1502 = vst [vmem:[%s10189_s27 + $0x14b8] sm:$0xff] %v1501_v23 }
 0x15e   : > { %1504 = vst [vmem:[%s10189_s27 + $0x14c0] sm:$0xff] %v1503_v24  ;;  %1506 = vst [vmem:[%s10189_s27 + $0x14c8] sm:$0xff] %v1505_v25  ;;  %v1507_v26 = vld [vmem:[%s10181_s26 + $0x29a0] sm:$0xff]  ;;  %v1509_v27 = vld [vmem:[%s10181_s26 + $0x29a8] sm:$0xff] }
 0x15f   : > { %v1511_v28 = vld [vmem:[%s10181_s26 + $0x29c0] sm:$0xff]  ;;  %1508 = vst [vmem:[%s10189_s27 + $0x14d0] sm:$0xff] %v1507_v26  ;;  %1510 = vst [vmem:[%s10189_s27 + $0x14d8] sm:$0xff] %v1509_v27  ;;  %v1513_v29 = vld [vmem:[%s10181_s26 + $0x29c8] sm:$0xff] }
 0x160   : > { %1512 = vst [vmem:[%s10189_s27 + $0x14e0] sm:$0xff] %v1511_v28  ;;  %v1515_v30 = vld [vmem:[%s10181_s26 + $0x29e0] sm:$0xff]  ;;  %v1517_v31 = vld [vmem:[%s10181_s26 + $0x29e8] sm:$0xff]  ;;  %1514 = vst [vmem:[%s10189_s27 + $0x14e8] sm:$0xff] %v1513_v29 }
 0x161   : > { %1516 = vst [vmem:[%s10189_s27 + $0x14f0] sm:$0xff] %v1515_v30  ;;  %1518 = vst [vmem:[%s10189_s27 + $0x14f8] sm:$0xff] %v1517_v31  ;;  %v1519_v32 = vld [vmem:[%s10181_s26 + $0x2a00] sm:$0xff]  ;;  %v1521_v33 = vld [vmem:[%s10181_s26 + $0x2a08] sm:$0xff] }
 0x162   : > { %v1523_v34 = vld [vmem:[%s10181_s26 + $0x2a20] sm:$0xff]  ;;  %1520 = vst [vmem:[%s10189_s27 + $0x1500] sm:$0xff] %v1519_v32  ;;  %1522 = vst [vmem:[%s10189_s27 + $0x1508] sm:$0xff] %v1521_v33  ;;  %v1525_v35 = vld [vmem:[%s10181_s26 + $0x2a28] sm:$0xff] }
 0x163   : > { %1524 = vst [vmem:[%s10189_s27 + $0x1510] sm:$0xff] %v1523_v34  ;;  %v1527_v36 = vld [vmem:[%s10181_s26 + $0x2a40] sm:$0xff]  ;;  %v1529_v37 = vld [vmem:[%s10181_s26 + $0x2a48] sm:$0xff]  ;;  %1526 = vst [vmem:[%s10189_s27 + $0x1518] sm:$0xff] %v1525_v35 }
 0x164   : > { %1528 = vst [vmem:[%s10189_s27 + $0x1520] sm:$0xff] %v1527_v36  ;;  %1530 = vst [vmem:[%s10189_s27 + $0x1528] sm:$0xff] %v1529_v37  ;;  %v1531_v38 = vld [vmem:[%s10181_s26 + $0x2a60] sm:$0xff]  ;;  %v1533_v39 = vld [vmem:[%s10181_s26 + $0x2a68] sm:$0xff] }
 0x165   : > { %v1535_v40 = vld [vmem:[%s10181_s26 + $0x2a80] sm:$0xff]  ;;  %1532 = vst [vmem:[%s10189_s27 + $0x1530] sm:$0xff] %v1531_v38  ;;  %1534 = vst [vmem:[%s10189_s27 + $0x1538] sm:$0xff] %v1533_v39  ;;  %v1537_v41 = vld [vmem:[%s10181_s26 + $0x2a88] sm:$0xff] }
 0x166   : > { %1536 = vst [vmem:[%s10189_s27 + $0x1540] sm:$0xff] %v1535_v40  ;;  %v1539_v42 = vld [vmem:[%s10181_s26 + $0x2aa0] sm:$0xff]  ;;  %v1541_v43 = vld [vmem:[%s10181_s26 + $0x2aa8] sm:$0xff]  ;;  %1538 = vst [vmem:[%s10189_s27 + $0x1548] sm:$0xff] %v1537_v41 }
 0x167   : > { %1540 = vst [vmem:[%s10189_s27 + $0x1550] sm:$0xff] %v1539_v42  ;;  %1542 = vst [vmem:[%s10189_s27 + $0x1558] sm:$0xff] %v1541_v43  ;;  %v1543_v44 = vld [vmem:[%s10181_s26 + $0x2ac0] sm:$0xff]  ;;  %v1545_v45 = vld [vmem:[%s10181_s26 + $0x2ac8] sm:$0xff] }
 0x168   : > { %v1547_v46 = vld [vmem:[%s10181_s26 + $0x2ae0] sm:$0xff]  ;;  %1544 = vst [vmem:[%s10189_s27 + $0x1560] sm:$0xff] %v1543_v44  ;;  %1546 = vst [vmem:[%s10189_s27 + $0x1568] sm:$0xff] %v1545_v45  ;;  %v1549_v47 = vld [vmem:[%s10181_s26 + $0x2ae8] sm:$0xff] }
 0x169   : > { %1548 = vst [vmem:[%s10189_s27 + $0x1570] sm:$0xff] %v1547_v46  ;;  %v1551_v48 = vld [vmem:[%s10181_s26 + $0x2b00] sm:$0xff]  ;;  %v1553_v49 = vld [vmem:[%s10181_s26 + $0x2b08] sm:$0xff]  ;;  %1550 = vst [vmem:[%s10189_s27 + $0x1578] sm:$0xff] %v1549_v47 }
 0x16a   : > { %1552 = vst [vmem:[%s10189_s27 + $0x1580] sm:$0xff] %v1551_v48  ;;  %1554 = vst [vmem:[%s10189_s27 + $0x1588] sm:$0xff] %v1553_v49  ;;  %v1555_v50 = vld [vmem:[%s10181_s26 + $0x2b20] sm:$0xff]  ;;  %v1557_v51 = vld [vmem:[%s10181_s26 + $0x2b28] sm:$0xff] }
 0x16b   : > { %v1559_v52 = vld [vmem:[%s10181_s26 + $0x2b40] sm:$0xff]  ;;  %1556 = vst [vmem:[%s10189_s27 + $0x1590] sm:$0xff] %v1555_v50  ;;  %1558 = vst [vmem:[%s10189_s27 + $0x1598] sm:$0xff] %v1557_v51  ;;  %v1561_v53 = vld [vmem:[%s10181_s26 + $0x2b48] sm:$0xff] }
 0x16c   : > { %1560 = vst [vmem:[%s10189_s27 + $0x15a0] sm:$0xff] %v1559_v52  ;;  %v1563_v54 = vld [vmem:[%s10181_s26 + $0x2b60] sm:$0xff]  ;;  %v1565_v55 = vld [vmem:[%s10181_s26 + $0x2b68] sm:$0xff]  ;;  %1562 = vst [vmem:[%s10189_s27 + $0x15a8] sm:$0xff] %v1561_v53 }
 0x16d   : > { %1564 = vst [vmem:[%s10189_s27 + $0x15b0] sm:$0xff] %v1563_v54  ;;  %1566 = vst [vmem:[%s10189_s27 + $0x15b8] sm:$0xff] %v1565_v55  ;;  %v1567_v56 = vld [vmem:[%s10181_s26 + $0x2b80] sm:$0xff]  ;;  %v1569_v57 = vld [vmem:[%s10181_s26 + $0x2b88] sm:$0xff] }
 0x16e   : > { %v1571_v58 = vld [vmem:[%s10181_s26 + $0x2ba0] sm:$0xff]  ;;  %1568 = vst [vmem:[%s10189_s27 + $0x15c0] sm:$0xff] %v1567_v56  ;;  %1570 = vst [vmem:[%s10189_s27 + $0x15c8] sm:$0xff] %v1569_v57  ;;  %v1573_v59 = vld [vmem:[%s10181_s26 + $0x2ba8] sm:$0xff] }
 0x16f   : > { %1572 = vst [vmem:[%s10189_s27 + $0x15d0] sm:$0xff] %v1571_v58  ;;  %v1575_v60 = vld [vmem:[%s10181_s26 + $0x2bc0] sm:$0xff]  ;;  %v1577_v61 = vld [vmem:[%s10181_s26 + $0x2bc8] sm:$0xff]  ;;  %1574 = vst [vmem:[%s10189_s27 + $0x15d8] sm:$0xff] %v1573_v59 }
 0x170   : > { %1576 = vst [vmem:[%s10189_s27 + $0x15e0] sm:$0xff] %v1575_v60  ;;  %1578 = vst [vmem:[%s10189_s27 + $0x15e8] sm:$0xff] %v1577_v61  ;;  %v1579_v62 = vld [vmem:[%s10181_s26 + $0x2be0] sm:$0xff]  ;;  %v1581_v63 = vld [vmem:[%s10181_s26 + $0x2be8] sm:$0xff] }
 0x171   : > { %v1583_v0 = vld [vmem:[%s10181_s26 + $0x2c00] sm:$0xff]  ;;  %1580 = vst [vmem:[%s10189_s27 + $0x15f0] sm:$0xff] %v1579_v62  ;;  %1582 = vst [vmem:[%s10189_s27 + $0x15f8] sm:$0xff] %v1581_v63  ;;  %v1585_v1 = vld [vmem:[%s10181_s26 + $0x2c08] sm:$0xff] }
 0x172   : > { %1584 = vst [vmem:[%s10189_s27 + $0x1600] sm:$0xff] %v1583_v0  ;;  %v1587_v2 = vld [vmem:[%s10181_s26 + $0x2c20] sm:$0xff]  ;;  %v1589_v3 = vld [vmem:[%s10181_s26 + $0x2c28] sm:$0xff]  ;;  %1586 = vst [vmem:[%s10189_s27 + $0x1608] sm:$0xff] %v1585_v1 }
 0x173   : > { %1588 = vst [vmem:[%s10189_s27 + $0x1610] sm:$0xff] %v1587_v2  ;;  %1590 = vst [vmem:[%s10189_s27 + $0x1618] sm:$0xff] %v1589_v3  ;;  %v1591_v4 = vld [vmem:[%s10181_s26 + $0x2c40] sm:$0xff]  ;;  %v1593_v5 = vld [vmem:[%s10181_s26 + $0x2c48] sm:$0xff] }
 0x174   : > { %v1595_v6 = vld [vmem:[%s10181_s26 + $0x2c60] sm:$0xff]  ;;  %1592 = vst [vmem:[%s10189_s27 + $0x1620] sm:$0xff] %v1591_v4  ;;  %1594 = vst [vmem:[%s10189_s27 + $0x1628] sm:$0xff] %v1593_v5  ;;  %v1597_v7 = vld [vmem:[%s10181_s26 + $0x2c68] sm:$0xff] }
 0x175   : > { %1596 = vst [vmem:[%s10189_s27 + $0x1630] sm:$0xff] %v1595_v6  ;;  %v1599_v8 = vld [vmem:[%s10181_s26 + $0x2c80] sm:$0xff]  ;;  %v1601_v9 = vld [vmem:[%s10181_s26 + $0x2c88] sm:$0xff]  ;;  %1598 = vst [vmem:[%s10189_s27 + $0x1638] sm:$0xff] %v1597_v7 }
 0x176   : > { %1600 = vst [vmem:[%s10189_s27 + $0x1640] sm:$0xff] %v1599_v8  ;;  %1602 = vst [vmem:[%s10189_s27 + $0x1648] sm:$0xff] %v1601_v9  ;;  %v1603_v10 = vld [vmem:[%s10181_s26 + $0x2ca0] sm:$0xff]  ;;  %v1605_v11 = vld [vmem:[%s10181_s26 + $0x2ca8] sm:$0xff] }
 0x177   : > { %v1607_v12 = vld [vmem:[%s10181_s26 + $0x2cc0] sm:$0xff]  ;;  %1604 = vst [vmem:[%s10189_s27 + $0x1650] sm:$0xff] %v1603_v10  ;;  %1606 = vst [vmem:[%s10189_s27 + $0x1658] sm:$0xff] %v1605_v11  ;;  %v1609_v13 = vld [vmem:[%s10181_s26 + $0x2cc8] sm:$0xff] }
 0x178   : > { %1608 = vst [vmem:[%s10189_s27 + $0x1660] sm:$0xff] %v1607_v12  ;;  %v1611_v14 = vld [vmem:[%s10181_s26 + $0x2ce0] sm:$0xff]  ;;  %v1613_v15 = vld [vmem:[%s10181_s26 + $0x2ce8] sm:$0xff]  ;;  %1610 = vst [vmem:[%s10189_s27 + $0x1668] sm:$0xff] %v1609_v13 }
 0x179   : > { %1612 = vst [vmem:[%s10189_s27 + $0x1670] sm:$0xff] %v1611_v14  ;;  %1614 = vst [vmem:[%s10189_s27 + $0x1678] sm:$0xff] %v1613_v15  ;;  %v1615_v16 = vld [vmem:[%s10181_s26 + $0x2d00] sm:$0xff]  ;;  %v1617_v17 = vld [vmem:[%s10181_s26 + $0x2d08] sm:$0xff] }
 0x17a   : > { %v1619_v18 = vld [vmem:[%s10181_s26 + $0x2d20] sm:$0xff]  ;;  %1616 = vst [vmem:[%s10189_s27 + $0x1680] sm:$0xff] %v1615_v16  ;;  %1618 = vst [vmem:[%s10189_s27 + $0x1688] sm:$0xff] %v1617_v17  ;;  %v1621_v19 = vld [vmem:[%s10181_s26 + $0x2d28] sm:$0xff] }
 0x17b   : > { %1620 = vst [vmem:[%s10189_s27 + $0x1690] sm:$0xff] %v1619_v18  ;;  %v1623_v20 = vld [vmem:[%s10181_s26 + $0x2d40] sm:$0xff]  ;;  %v1625_v21 = vld [vmem:[%s10181_s26 + $0x2d48] sm:$0xff]  ;;  %1622 = vst [vmem:[%s10189_s27 + $0x1698] sm:$0xff] %v1621_v19 }
 0x17c   : > { %1624 = vst [vmem:[%s10189_s27 + $0x16a0] sm:$0xff] %v1623_v20  ;;  %1626 = vst [vmem:[%s10189_s27 + $0x16a8] sm:$0xff] %v1625_v21  ;;  %v1627_v22 = vld [vmem:[%s10181_s26 + $0x2d60] sm:$0xff]  ;;  %v1629_v23 = vld [vmem:[%s10181_s26 + $0x2d68] sm:$0xff] }
 0x17d   : > { %v1631_v24 = vld [vmem:[%s10181_s26 + $0x2d80] sm:$0xff]  ;;  %1628 = vst [vmem:[%s10189_s27 + $0x16b0] sm:$0xff] %v1627_v22  ;;  %1630 = vst [vmem:[%s10189_s27 + $0x16b8] sm:$0xff] %v1629_v23  ;;  %v1633_v25 = vld [vmem:[%s10181_s26 + $0x2d88] sm:$0xff] }
 0x17e   : > { %1632 = vst [vmem:[%s10189_s27 + $0x16c0] sm:$0xff] %v1631_v24  ;;  %v1635_v26 = vld [vmem:[%s10181_s26 + $0x2da0] sm:$0xff]  ;;  %v1637_v27 = vld [vmem:[%s10181_s26 + $0x2da8] sm:$0xff]  ;;  %1634 = vst [vmem:[%s10189_s27 + $0x16c8] sm:$0xff] %v1633_v25 }
 0x17f   : > { %1636 = vst [vmem:[%s10189_s27 + $0x16d0] sm:$0xff] %v1635_v26  ;;  %1638 = vst [vmem:[%s10189_s27 + $0x16d8] sm:$0xff] %v1637_v27  ;;  %v1639_v28 = vld [vmem:[%s10181_s26 + $0x2dc0] sm:$0xff]  ;;  %v1641_v29 = vld [vmem:[%s10181_s26 + $0x2dc8] sm:$0xff] }
 0x180   : > { %v1643_v30 = vld [vmem:[%s10181_s26 + $0x2de0] sm:$0xff]  ;;  %1640 = vst [vmem:[%s10189_s27 + $0x16e0] sm:$0xff] %v1639_v28  ;;  %1642 = vst [vmem:[%s10189_s27 + $0x16e8] sm:$0xff] %v1641_v29  ;;  %v1645_v31 = vld [vmem:[%s10181_s26 + $0x2de8] sm:$0xff] }
 0x181   : > { %1644 = vst [vmem:[%s10189_s27 + $0x16f0] sm:$0xff] %v1643_v30  ;;  %v1647_v32 = vld [vmem:[%s10181_s26 + $0x2e00] sm:$0xff]  ;;  %v1649_v33 = vld [vmem:[%s10181_s26 + $0x2e08] sm:$0xff]  ;;  %1646 = vst [vmem:[%s10189_s27 + $0x16f8] sm:$0xff] %v1645_v31 }
 0x182   : > { %1648 = vst [vmem:[%s10189_s27 + $0x1700] sm:$0xff] %v1647_v32  ;;  %1650 = vst [vmem:[%s10189_s27 + $0x1708] sm:$0xff] %v1649_v33  ;;  %v1651_v34 = vld [vmem:[%s10181_s26 + $0x2e20] sm:$0xff]  ;;  %v1653_v35 = vld [vmem:[%s10181_s26 + $0x2e28] sm:$0xff] }
 0x183   : > { %v1655_v36 = vld [vmem:[%s10181_s26 + $0x2e40] sm:$0xff]  ;;  %1652 = vst [vmem:[%s10189_s27 + $0x1710] sm:$0xff] %v1651_v34  ;;  %1654 = vst [vmem:[%s10189_s27 + $0x1718] sm:$0xff] %v1653_v35  ;;  %v1657_v37 = vld [vmem:[%s10181_s26 + $0x2e48] sm:$0xff] }
 0x184   : > { %1656 = vst [vmem:[%s10189_s27 + $0x1720] sm:$0xff] %v1655_v36  ;;  %v1659_v38 = vld [vmem:[%s10181_s26 + $0x2e60] sm:$0xff]  ;;  %v1661_v39 = vld [vmem:[%s10181_s26 + $0x2e68] sm:$0xff]  ;;  %1658 = vst [vmem:[%s10189_s27 + $0x1728] sm:$0xff] %v1657_v37 }
 0x185   : > { %1660 = vst [vmem:[%s10189_s27 + $0x1730] sm:$0xff] %v1659_v38  ;;  %1662 = vst [vmem:[%s10189_s27 + $0x1738] sm:$0xff] %v1661_v39  ;;  %v1663_v40 = vld [vmem:[%s10181_s26 + $0x2e80] sm:$0xff]  ;;  %v1665_v41 = vld [vmem:[%s10181_s26 + $0x2e88] sm:$0xff] }
 0x186   : > { %v1667_v42 = vld [vmem:[%s10181_s26 + $0x2ea0] sm:$0xff]  ;;  %1664 = vst [vmem:[%s10189_s27 + $0x1740] sm:$0xff] %v1663_v40  ;;  %1666 = vst [vmem:[%s10189_s27 + $0x1748] sm:$0xff] %v1665_v41  ;;  %v1669_v43 = vld [vmem:[%s10181_s26 + $0x2ea8] sm:$0xff] }
 0x187   : > { %1668 = vst [vmem:[%s10189_s27 + $0x1750] sm:$0xff] %v1667_v42  ;;  %v1671_v44 = vld [vmem:[%s10181_s26 + $0x2ec0] sm:$0xff]  ;;  %v1673_v45 = vld [vmem:[%s10181_s26 + $0x2ec8] sm:$0xff]  ;;  %1670 = vst [vmem:[%s10189_s27 + $0x1758] sm:$0xff] %v1669_v43 }
 0x188   : > { %1672 = vst [vmem:[%s10189_s27 + $0x1760] sm:$0xff] %v1671_v44  ;;  %1674 = vst [vmem:[%s10189_s27 + $0x1768] sm:$0xff] %v1673_v45  ;;  %v1675_v46 = vld [vmem:[%s10181_s26 + $0x2ee0] sm:$0xff]  ;;  %v1677_v47 = vld [vmem:[%s10181_s26 + $0x2ee8] sm:$0xff] }
 0x189   : > { %v1679_v48 = vld [vmem:[%s10181_s26 + $0x2f00] sm:$0xff]  ;;  %1676 = vst [vmem:[%s10189_s27 + $0x1770] sm:$0xff] %v1675_v46  ;;  %1678 = vst [vmem:[%s10189_s27 + $0x1778] sm:$0xff] %v1677_v47  ;;  %v1681_v49 = vld [vmem:[%s10181_s26 + $0x2f08] sm:$0xff] }
 0x18a   : > { %1680 = vst [vmem:[%s10189_s27 + $0x1780] sm:$0xff] %v1679_v48  ;;  %v1683_v50 = vld [vmem:[%s10181_s26 + $0x2f20] sm:$0xff]  ;;  %v1685_v51 = vld [vmem:[%s10181_s26 + $0x2f28] sm:$0xff]  ;;  %1682 = vst [vmem:[%s10189_s27 + $0x1788] sm:$0xff] %v1681_v49 }
 0x18b   : > { %1684 = vst [vmem:[%s10189_s27 + $0x1790] sm:$0xff] %v1683_v50  ;;  %1686 = vst [vmem:[%s10189_s27 + $0x1798] sm:$0xff] %v1685_v51  ;;  %v1687_v52 = vld [vmem:[%s10181_s26 + $0x2f40] sm:$0xff]  ;;  %v1689_v53 = vld [vmem:[%s10181_s26 + $0x2f48] sm:$0xff] }
 0x18c   : > { %v1691_v54 = vld [vmem:[%s10181_s26 + $0x2f60] sm:$0xff]  ;;  %1688 = vst [vmem:[%s10189_s27 + $0x17a0] sm:$0xff] %v1687_v52  ;;  %1690 = vst [vmem:[%s10189_s27 + $0x17a8] sm:$0xff] %v1689_v53  ;;  %v1693_v55 = vld [vmem:[%s10181_s26 + $0x2f68] sm:$0xff] }
 0x18d   : > { %1692 = vst [vmem:[%s10189_s27 + $0x17b0] sm:$0xff] %v1691_v54  ;;  %v1695_v56 = vld [vmem:[%s10181_s26 + $0x2f80] sm:$0xff]  ;;  %v1697_v57 = vld [vmem:[%s10181_s26 + $0x2f88] sm:$0xff]  ;;  %1694 = vst [vmem:[%s10189_s27 + $0x17b8] sm:$0xff] %v1693_v55 }
 0x18e   : > { %1696 = vst [vmem:[%s10189_s27 + $0x17c0] sm:$0xff] %v1695_v56  ;;  %1698 = vst [vmem:[%s10189_s27 + $0x17c8] sm:$0xff] %v1697_v57  ;;  %v1699_v58 = vld [vmem:[%s10181_s26 + $0x2fa0] sm:$0xff]  ;;  %v1701_v59 = vld [vmem:[%s10181_s26 + $0x2fa8] sm:$0xff] }
 0x18f   : > { %v1703_v60 = vld [vmem:[%s10181_s26 + $0x2fc0] sm:$0xff]  ;;  %1700 = vst [vmem:[%s10189_s27 + $0x17d0] sm:$0xff] %v1699_v58  ;;  %1702 = vst [vmem:[%s10189_s27 + $0x17d8] sm:$0xff] %v1701_v59  ;;  %v1705_v61 = vld [vmem:[%s10181_s26 + $0x2fc8] sm:$0xff] }
 0x190   : > { %1704 = vst [vmem:[%s10189_s27 + $0x17e0] sm:$0xff] %v1703_v60  ;;  %v1707_v62 = vld [vmem:[%s10181_s26 + $0x2fe0] sm:$0xff]  ;;  %v1709_v63 = vld [vmem:[%s10181_s26 + $0x2fe8] sm:$0xff]  ;;  %1706 = vst [vmem:[%s10189_s27 + $0x17e8] sm:$0xff] %v1705_v61 }
 0x191   : > { %1708 = vst [vmem:[%s10189_s27 + $0x17f0] sm:$0xff] %v1707_v62  ;;  %1710 = vst [vmem:[%s10189_s27 + $0x17f8] sm:$0xff] %v1709_v63  ;;  %v1711_v0 = vld [vmem:[%s10181_s26 + $0x3000] sm:$0xff]  ;;  %v1713_v1 = vld [vmem:[%s10181_s26 + $0x3008] sm:$0xff] }
 0x192   : > { %v1715_v2 = vld [vmem:[%s10181_s26 + $0x3020] sm:$0xff]  ;;  %1712 = vst [vmem:[%s10189_s27 + $0x1800] sm:$0xff] %v1711_v0  ;;  %1714 = vst [vmem:[%s10189_s27 + $0x1808] sm:$0xff] %v1713_v1  ;;  %v1717_v3 = vld [vmem:[%s10181_s26 + $0x3028] sm:$0xff] }
 0x193   : > { %1716 = vst [vmem:[%s10189_s27 + $0x1810] sm:$0xff] %v1715_v2  ;;  %v1719_v4 = vld [vmem:[%s10181_s26 + $0x3040] sm:$0xff]  ;;  %v1721_v5 = vld [vmem:[%s10181_s26 + $0x3048] sm:$0xff]  ;;  %1718 = vst [vmem:[%s10189_s27 + $0x1818] sm:$0xff] %v1717_v3 }
 0x194   : > { %1720 = vst [vmem:[%s10189_s27 + $0x1820] sm:$0xff] %v1719_v4  ;;  %1722 = vst [vmem:[%s10189_s27 + $0x1828] sm:$0xff] %v1721_v5  ;;  %v1723_v6 = vld [vmem:[%s10181_s26 + $0x3060] sm:$0xff]  ;;  %v1725_v7 = vld [vmem:[%s10181_s26 + $0x3068] sm:$0xff] }
 0x195   : > { %v1727_v8 = vld [vmem:[%s10181_s26 + $0x3080] sm:$0xff]  ;;  %1724 = vst [vmem:[%s10189_s27 + $0x1830] sm:$0xff] %v1723_v6  ;;  %1726 = vst [vmem:[%s10189_s27 + $0x1838] sm:$0xff] %v1725_v7  ;;  %v1729_v9 = vld [vmem:[%s10181_s26 + $0x3088] sm:$0xff] }
 0x196   : > { %1728 = vst [vmem:[%s10189_s27 + $0x1840] sm:$0xff] %v1727_v8  ;;  %v1731_v10 = vld [vmem:[%s10181_s26 + $0x30a0] sm:$0xff]  ;;  %v1733_v11 = vld [vmem:[%s10181_s26 + $0x30a8] sm:$0xff]  ;;  %1730 = vst [vmem:[%s10189_s27 + $0x1848] sm:$0xff] %v1729_v9 }
 0x197   : > { %1732 = vst [vmem:[%s10189_s27 + $0x1850] sm:$0xff] %v1731_v10  ;;  %1734 = vst [vmem:[%s10189_s27 + $0x1858] sm:$0xff] %v1733_v11  ;;  %v1735_v12 = vld [vmem:[%s10181_s26 + $0x30c0] sm:$0xff]  ;;  %v1737_v13 = vld [vmem:[%s10181_s26 + $0x30c8] sm:$0xff] }
 0x198   : > { %v1739_v14 = vld [vmem:[%s10181_s26 + $0x30e0] sm:$0xff]  ;;  %1736 = vst [vmem:[%s10189_s27 + $0x1860] sm:$0xff] %v1735_v12  ;;  %1738 = vst [vmem:[%s10189_s27 + $0x1868] sm:$0xff] %v1737_v13  ;;  %v1741_v15 = vld [vmem:[%s10181_s26 + $0x30e8] sm:$0xff] }
 0x199   : > { %1740 = vst [vmem:[%s10189_s27 + $0x1870] sm:$0xff] %v1739_v14  ;;  %1742 = vst [vmem:[%s10189_s27 + $0x1878] sm:$0xff] %v1741_v15 }
 0x19a PF: > { %p7955_p6 = scmp.ge.s32.totalorder %s10114_s16, 1  ;;  %p1755_p7 = scmp.lt.s32.totalorder %s10114_s16, 3 }
 0x19c   : > { %p1756_p8 = pnand %p7955_p6, %p1755_p7 }
 0x19d   : > { %s1762_s28 = sand.u32 (!%p1756_p8), 1, %s10098_s12   ;;  %v2606_v16 = vlaneseq (!%p1756_p8)  ;;  %v10116_v17 = vmov (!%p1756_p8), 1966171168   ;;  %v11761_v20 = vld [vmem:[%s12724_s0] sm:$0xff] (!%p1756_p8)  ;;  %vm6735_vm0 = vcmask (!%p1756_p8), 523264   ;;  %s7956_s19 = sshll.u32 (!%p1756_p8), %s10106_s14, 2 }
 0x19e   : > { %1759 = sbr.rel (%p1756_p8) target bundleno = 1427 (0x593), region = 51  ;;  %v2632_v18 = vunpack.c.l.s4 (!%p1756_p8), %v10116_v17  ;;  %p1802_p9 = scmp.lt.s32.totalorder (!%p1756_p8), %s7956_s19, 7 }
 0x19f   : > { %s8852_s29 = smul.u32 (!%p1756_p8), 6272, %s1762_s28  ;;  %v11756_v19 = vshrl.u32 (!%p1756_p8), %v2606_v16, 7 }
 0x1a0   : > { %v2633_v21 = vunpack.c.0.s8 (!%p1756_p8), %v2632_v18 }
 0x1a1   : > { %s11763_s5 = scalar_lea.vmem (!%p1756_p8), [#allocation2], %s8852_s29 }
 0x1a2   : > { %v8895_v22 = vld [vmem:[%s11763_s5 + $0x4] ss:$16 sps:$4 sm:$0xff] (!%p1756_p8)   ;;  %v8897_v23 = vld [vmem:[%s11763_s5 + $0xc] ss:$16 sps:$4 sm:$0xff] (!%p1756_p8)   ;;  %v11768_v24 = vsub.s32 (!%p1756_p8), %v2633_v21, %v11756_v19  ;;  %v8899_v25 = vld [vmem:[%s11763_s5] ss:$16 sps:$4 sm:$0xff] (!%p1756_p8)  }
 0x1a3   : > { %6739 = vmatprep.subr.bf16.mxu0 (!%p1756_p8), %v8895_v22  ;;  %v8900_v26 = vld [vmem:[%s11763_s5 + $0x8] ss:$16 sps:$4 sm:$0xff] (!%p1756_p8)   ;;  %7272 = vmatprep.subr.bf16.mxu1 (!%p1756_p8), %v8897_v23  ;;  %v8901_v27 = vld [vmem:[%s11763_s5 + $0x24] ss:$16 sps:$4 sm:$0xff] (!%p1756_p8)   ;;  %v8903_v29 = vld [vmem:[%s11763_s5 + $0x2c] ss:$16 sps:$4 sm:$0xff] (!%p1756_p8)  }
 0x1a4   : > { %v11775_v28 = vrot.slane (!%p1756_p8), %v11761_v20, %v11768_v24  ;;  %6740 = vmatpush1.bf16.msra.mxu0 (!%p1756_p8), %v8899_v25  ;;  %7273 = vmatpush1.bf16.msra.mxu1 (!%p1756_p8), %v8900_v26  ;;  %v8905_v30 = vld [vmem:[%s11763_s5 + $0x20] ss:$16 sps:$4 sm:$0xff] (!%p1756_p8)   ;;  %v8906_v31 = vld [vmem:[%s11763_s5 + $0x28] ss:$16 sps:$4 sm:$0xff] (!%p1756_p8)   ;;  %v8907_v33 = vld [vmem:[%s11763_s5 + $0x44] ss:$16 sps:$4 sm:$0xff] (!%p1756_p8)  }
 0x1a5   : > { %6741 = vmatprep.subr.bf16.mxu0 %v8901_v27  ;;  %7274 = vmatprep.subr.bf16.mxu1 %v8903_v29  ;;  %v8909_v34 = vld [vmem:[%s11763_s5 + $0x4c] ss:$16 sps:$4 sm:$0xff]   ;;  %v8911_v35 = vld [vmem:[%s11763_s5 + $0x40] ss:$16 sps:$4 sm:$0xff]   ;;  %v8912_v36 = vld [vmem:[%s11763_s5 + $0x48] ss:$16 sps:$4 sm:$0xff]  }
 0x1a6   : > { %v2645_v32 = vcombine.high %v11775_v28, %v11775_v28  ;;  %v8913_v38 = vld [vmem:[%s11763_s5 + $0x64] ss:$16 sps:$4 sm:$0xff]   ;;  %v8915_v39 = vld [vmem:[%s11763_s5 + $0x6c] ss:$16 sps:$4 sm:$0xff]   ;;  %v8917_v40 = vld [vmem:[%s11763_s5 + $0x60] ss:$16 sps:$4 sm:$0xff]  }
 0x1a7   : > { %v8918_v41 = vld [vmem:[%s11763_s5 + $0x68] ss:$16 sps:$4 sm:$0xff]   ;;  %v8919_v42 = vld [vmem:[%s11763_s5 + $0x84] ss:$16 sps:$4 sm:$0xff]   ;;  %v8921_v43 = vld [vmem:[%s11763_s5 + $0x8c] ss:$16 sps:$4 sm:$0xff]  }
 0x1a8   : > { %v11787_v37 = vrot.slane %v2645_v32, %v11768_v24  ;;  %6742 = vmatpush1.bf16.msra.mxu0 %v8905_v30  ;;  %7275 = vmatpush1.bf16.msra.mxu1 %v8906_v31  ;;  %v8923_v44 = vld [vmem:[%s11763_s5 + $0x80] ss:$16 sps:$4 sm:$0xff]   ;;  %v8924_v45 = vld [vmem:[%s11763_s5 + $0x88] ss:$16 sps:$4 sm:$0xff]   ;;  %v8925_v46 = vld [vmem:[%s11763_s5 + $0xa4] ss:$16 sps:$4 sm:$0xff]  }
 0x1a9   : > { %6743 = vmatprep.subr.bf16.mxu0 %v8907_v33  ;;  %7276 = vmatprep.subr.bf16.mxu1 %v8909_v34  ;;  %v8927_v47 = vld [vmem:[%s11763_s5 + $0xac] ss:$16 sps:$4 sm:$0xff]   ;;  %v8929_v48 = vld [vmem:[%s11763_s5 + $0xa0] ss:$16 sps:$4 sm:$0xff]   ;;  %v8930_v49 = vld [vmem:[%s11763_s5 + $0xa8] ss:$16 sps:$4 sm:$0xff]   ;;  %v11849_v34 = vrot.slane %v11775_v28, %v11768_v24 }
 0x1aa   : > { %6771 = vmatprep.mubr.bf16.mxu0 %v11787_v37  ;;  %7304 = vmatprep.mubr.bf16.mxu1 %v11787_v37  ;;  %v8931_v50 = vld [vmem:[%s11763_s5 + $0xc4] ss:$16 sps:$4 sm:$0xff]   ;;  %v8933_v51 = vld [vmem:[%s11763_s5 + $0xcc] ss:$16 sps:$4 sm:$0xff]   ;;  %v8935_v52 = vld [vmem:[%s11763_s5 + $0xc0] ss:$16 sps:$4 sm:$0xff]  }
 0x1ab   : > { %v8936_v53 = vld [vmem:[%s11763_s5 + $0xc8] ss:$16 sps:$4 sm:$0xff]   ;;  %v8937_v54 = vld [vmem:[%s11763_s5 + $0xe4] ss:$16 sps:$4 sm:$0xff]   ;;  %v8939_v55 = vld [vmem:[%s11763_s5 + $0xec] ss:$16 sps:$4 sm:$0xff]  }
 0x1ac   : > { %6744 = vmatpush1.bf16.msra.mxu0 %v8911_v35  ;;  %7277 = vmatpush1.bf16.msra.mxu1 %v8912_v36  ;;  %v8941_v56 = vld [vmem:[%s11763_s5 + $0xe0] ss:$16 sps:$4 sm:$0xff]   ;;  %v8942_v57 = vld [vmem:[%s11763_s5 + $0xe8] ss:$16 sps:$4 sm:$0xff]   ;;  %v8943_v58 = vld [vmem:[%s11763_s5 + $0x104] ss:$16 sps:$4 sm:$0xff]  }
 0x1ad   : > { %6745 = vmatprep.subr.bf16.mxu0 %v8913_v38  ;;  %7278 = vmatprep.subr.bf16.mxu1 %v8915_v39  ;;  %v8945_v59 = vld [vmem:[%s11763_s5 + $0x10c] ss:$16 sps:$4 sm:$0xff]   ;;  %v8947_v60 = vld [vmem:[%s11763_s5 + $0x100] ss:$16 sps:$4 sm:$0xff]   ;;  %v8948_v61 = vld [vmem:[%s11763_s5 + $0x108] ss:$16 sps:$4 sm:$0xff]   ;;  %v2677_v38 = vcombine.high %v11787_v37, %v11787_v37 }
 0x1ae   : > { %v8949_v62 = vld [vmem:[%s11763_s5 + $0x124] ss:$16 sps:$4 sm:$0xff]   ;;  %v8951_v63 = vld [vmem:[%s11763_s5 + $0x12c] ss:$16 sps:$4 sm:$0xff]   ;;  %v8953_v0 = vld [vmem:[%s11763_s5 + $0x120] ss:$16 sps:$4 sm:$0xff]  }
 0x1af   : > { %v8954_v1 = vld [vmem:[%s11763_s5 + $0x128] ss:$16 sps:$4 sm:$0xff]   ;;  %v8955_v2 = vld [vmem:[%s11763_s5 + $0x144] ss:$16 sps:$4 sm:$0xff]   ;;  %v8957_v3 = vld [vmem:[%s11763_s5 + $0x14c] ss:$16 sps:$4 sm:$0xff]  }
 0x1b0   : > { %6746 = vmatpush1.bf16.msra.mxu0 %v8917_v40  ;;  %7279 = vmatpush1.bf16.msra.mxu1 %v8918_v41  ;;  %v8959_v4 = vld [vmem:[%s11763_s5 + $0x140] ss:$16 sps:$4 sm:$0xff]   ;;  %v8960_v5 = vld [vmem:[%s11763_s5 + $0x148] ss:$16 sps:$4 sm:$0xff]   ;;  %v8961_v6 = vld [vmem:[%s11763_s5 + $0x164] ss:$16 sps:$4 sm:$0xff]  }
 0x1b1   : > { %6747 = vmatprep.subr.bf16.mxu0 %v8919_v42  ;;  %7280 = vmatprep.subr.bf16.mxu1 %v8921_v43  ;;  %v8963_v7 = vld [vmem:[%s11763_s5 + $0x16c] ss:$16 sps:$4 sm:$0xff]   ;;  %v8965_v8 = vld [vmem:[%s11763_s5 + $0x160] ss:$16 sps:$4 sm:$0xff]   ;;  %v8966_v9 = vld [vmem:[%s11763_s5 + $0x168] ss:$16 sps:$4 sm:$0xff]  }
 0x1b2   : > { %v8967_v10 = vld [vmem:[%s11763_s5 + $0x184] ss:$16 sps:$4 sm:$0xff]   ;;  %v8969_v11 = vld [vmem:[%s11763_s5 + $0x18c] ss:$16 sps:$4 sm:$0xff]   ;;  %v8971_v12 = vld [vmem:[%s11763_s5 + $0x180] ss:$16 sps:$4 sm:$0xff]  }
 0x1b3   : > { %v8972_v13 = vld [vmem:[%s11763_s5 + $0x188] ss:$16 sps:$4 sm:$0xff]   ;;  %v8973_v14 = vld [vmem:[%s11763_s5 + $0x1a4] ss:$16 sps:$4 sm:$0xff]   ;;  %v8975_v15 = vld [vmem:[%s11763_s5 + $0x1ac] ss:$16 sps:$4 sm:$0xff]  }
 0x1b4   : > { %6748 = vmatpush1.bf16.msra.mxu0 %v8923_v44  ;;  %7281 = vmatpush1.bf16.msra.mxu1 %v8924_v45  ;;  %v8977_v16 = vld [vmem:[%s11763_s5 + $0x1a0] ss:$16 sps:$4 sm:$0xff]   ;;  %v8978_v17 = vld [vmem:[%s11763_s5 + $0x1a8] ss:$16 sps:$4 sm:$0xff]   ;;  %v8979_v18 = vld [vmem:[%s11763_s5 + $0x1c4] ss:$16 sps:$4 sm:$0xff]  }
 0x1b5   : > { %6749 = vmatprep.subr.bf16.mxu0 %v8925_v46  ;;  %7282 = vmatprep.subr.bf16.mxu1 %v8927_v47  ;;  %v8981_v21 = vld [vmem:[%s11763_s5 + $0x1cc] ss:$16 sps:$4 sm:$0xff]   ;;  %v8983_v22 = vld [vmem:[%s11763_s5 + $0x1c0] ss:$16 sps:$4 sm:$0xff]   ;;  %v8984_v23 = vld [vmem:[%s11763_s5 + $0x1c8] ss:$16 sps:$4 sm:$0xff]  }
 0x1b6   : > { %v8985_v25 = vld [vmem:[%s11763_s5 + $0x1e4] ss:$16 sps:$4 sm:$0xff]   ;;  %v8987_v26 = vld [vmem:[%s11763_s5 + $0x1ec] ss:$16 sps:$4 sm:$0xff]   ;;  %v8989_v27 = vld [vmem:[%s11763_s5 + $0x1e0] ss:$16 sps:$4 sm:$0xff]  }
 0x1b7   : > { %v8990_v29 = vld [vmem:[%s11763_s5 + $0x1e8] ss:$16 sps:$4 sm:$0xff]   ;;  %v8993_v30 = vld [vmem:[%s11763_s5 + $0x204] ss:$16 sps:$4 sm:$0xff]   ;;  %v8996_v31 = vld [vmem:[%s11763_s5 + $0x20c] ss:$16 sps:$4 sm:$0xff]  }
 0x1b8   : > { %6750 = vmatpush1.bf16.msra.mxu0 %v8929_v48  ;;  %7283 = vmatpush1.bf16.msra.mxu1 %v8930_v49  ;;  %v8991_v32 = vld [vmem:[%s11763_s5 + $0x200] ss:$16 sps:$4 sm:$0xff]   ;;  %v8994_v33 = vld [vmem:[%s11763_s5 + $0x208] ss:$16 sps:$4 sm:$0xff]   ;;  %v8999_v35 = vld [vmem:[%s11763_s5 + $0x224] ss:$16 sps:$4 sm:$0xff]  }
 0x1b9   : > { %6751 = vmatprep.subr.bf16.mxu0 %v8931_v50  ;;  %7284 = vmatprep.subr.bf16.mxu1 %v8933_v51  ;;  %v9002_v36 = vld [vmem:[%s11763_s5 + $0x22c] ss:$16 sps:$4 sm:$0xff]   ;;  %v8997_v39 = vld [vmem:[%s11763_s5 + $0x220] ss:$16 sps:$4 sm:$0xff]   ;;  %v9000_v28 = vld [vmem:[%s11763_s5 + $0x228] ss:$16 sps:$4 sm:$0xff]  }
 0x1ba   : > { %v9005_v40 = vld [vmem:[%s11763_s5 + $0x244] ss:$16 sps:$4 sm:$0xff]   ;;  %v9008_v41 = vld [vmem:[%s11763_s5 + $0x24c] ss:$16 sps:$4 sm:$0xff]   ;;  %v9003_v37 = vld [vmem:[%s11763_s5 + $0x240] ss:$16 sps:$4 sm:$0xff]  }
 0x1bb   : > { %v9006_v42 = vld [vmem:[%s11763_s5 + $0x248] ss:$16 sps:$4 sm:$0xff]   ;;  %v9011_v43 = vld [vmem:[%s11763_s5 + $0x264] ss:$16 sps:$4 sm:$0xff]   ;;  %v9014_v44 = vld [vmem:[%s11763_s5 + $0x26c] ss:$16 sps:$4 sm:$0xff]  }
 0x1bc   : > { %6752 = vmatpush1.bf16.msra.mxu0 %v8935_v52  ;;  %7285 = vmatpush1.bf16.msra.mxu1 %v8936_v53  ;;  %v9009_v45 = vld [vmem:[%s11763_s5 + $0x260] ss:$16 sps:$4 sm:$0xff]   ;;  %v9012_v46 = vld [vmem:[%s11763_s5 + $0x268] ss:$16 sps:$4 sm:$0xff]   ;;  %v9017_v47 = vld [vmem:[%s11763_s5 + $0x284] ss:$16 sps:$4 sm:$0xff]  }
 0x1bd   : > { %6753 = vmatprep.subr.bf16.mxu0 %v8937_v54  ;;  %7286 = vmatprep.subr.bf16.mxu1 %v8939_v55  ;;  %v9020_v48 = vld [vmem:[%s11763_s5 + $0x28c] ss:$16 sps:$4 sm:$0xff]   ;;  %v9015_v49 = vld [vmem:[%s11763_s5 + $0x280] ss:$16 sps:$4 sm:$0xff]   ;;  %v9018_v50 = vld [vmem:[%s11763_s5 + $0x288] ss:$16 sps:$4 sm:$0xff]  }
 0x1be   : > { %v9023_v51 = vld [vmem:[%s11763_s5 + $0x2a4] ss:$16 sps:$4 sm:$0xff]   ;;  %v9026_v52 = vld [vmem:[%s11763_s5 + $0x2ac] ss:$16 sps:$4 sm:$0xff]   ;;  %v9021_v53 = vld [vmem:[%s11763_s5 + $0x2a0] ss:$16 sps:$4 sm:$0xff]  }
 0x1bf   : > { %v9024_v54 = vld [vmem:[%s11763_s5 + $0x2a8] ss:$16 sps:$4 sm:$0xff]   ;;  %v9029_v55 = vld [vmem:[%s11763_s5 + $0x2c4] ss:$16 sps:$4 sm:$0xff]   ;;  %s12735_s19 = smov (!%p1802_p9, %s7956_s19), 7 }
 0x1c0   : > { %6754 = vmatpush1.bf16.msra.mxu0 %v8941_v56  ;;  %7287 = vmatpush1.bf16.msra.mxu1 %v8942_v57  ;;  %v9032_v56 = vld [vmem:[%s11763_s5 + $0x2cc] ss:$16 sps:$4 sm:$0xff]   ;;  %v9027_v57 = vld [vmem:[%s11763_s5 + $0x2c0] ss:$16 sps:$4 sm:$0xff]   ;;  %s1804_s23 = scalar_lea.vmem %s12726_s2, %s12735_s19  ;;  %s1813_s25 = scalar_lea.vmem %s12727_s3, %s12735_s19 }
 0x1c1   : > { %6755 = vmatprep.subr.bf16.mxu0 %v8943_v58  ;;  %7288 = vmatprep.subr.bf16.mxu1 %v8945_v59  ;;  %v9030_v58 = vld [vmem:[%s11763_s5 + $0x2c8] ss:$16 sps:$4 sm:$0xff]   ;;  %v9035_v59 = vld [vmem:[%s11763_s5 + $0x2e4] ss:$16 sps:$4 sm:$0xff]  }
 0x1c4   : > { %6756 = vmatpush1.bf16.msra.mxu0 %v8947_v60  ;;  %7289 = vmatpush1.bf16.msra.mxu1 %v8948_v61  ;;  %v9038_v60 = vld [vmem:[%s11763_s5 + $0x2ec] ss:$16 sps:$4 sm:$0xff]   ;;  %v9033_v61 = vld [vmem:[%s11763_s5 + $0x2e0] ss:$16 sps:$4 sm:$0xff]  }
 0x1c5   : > { %6757 = vmatprep.subr.bf16.mxu0 %v8949_v62  ;;  %7290 = vmatprep.subr.bf16.mxu1 %v8951_v63  ;;  %v9036_v62 = vld [vmem:[%s11763_s5 + $0x2e8] ss:$16 sps:$4 sm:$0xff]   ;;  %v9041_v63 = vld [vmem:[%s11763_s5 + $0x304] ss:$16 sps:$4 sm:$0xff]  }
 0x1c8   : > { %6758 = vmatpush1.bf16.msra.mxu0 %v8953_v0  ;;  %7291 = vmatpush1.bf16.msra.mxu1 %v8954_v1  ;;  %v9044_v0 = vld [vmem:[%s11763_s5 + $0x30c] ss:$16 sps:$4 sm:$0xff]   ;;  %v9039_v1 = vld [vmem:[%s11763_s5 + $0x300] ss:$16 sps:$4 sm:$0xff]  }
 0x1c9   : > { %6759 = vmatprep.subr.bf16.mxu0 %v8955_v2  ;;  %7292 = vmatprep.subr.bf16.mxu1 %v8957_v3  ;;  %v9042_v2 = vld [vmem:[%s11763_s5 + $0x308] ss:$16 sps:$4 sm:$0xff]   ;;  %v9047_v3 = vld [vmem:[%s11763_s5 + $0x324] ss:$16 sps:$4 sm:$0xff]  }
 0x1cc   : > { %6760 = vmatpush1.bf16.msra.mxu0 %v8959_v4  ;;  %7293 = vmatpush1.bf16.msra.mxu1 %v8960_v5  ;;  %v9050_v4 = vld [vmem:[%s11763_s5 + $0x32c] ss:$16 sps:$4 sm:$0xff]   ;;  %v9045_v5 = vld [vmem:[%s11763_s5 + $0x320] ss:$16 sps:$4 sm:$0xff]  }
 0x1cd   : > { %6761 = vmatprep.subr.bf16.mxu0 %v8961_v6  ;;  %7294 = vmatprep.subr.bf16.mxu1 %v8963_v7  ;;  %v9048_v6 = vld [vmem:[%s11763_s5 + $0x328] ss:$16 sps:$4 sm:$0xff]   ;;  %v9053_v7 = vld [vmem:[%s11763_s5 + $0x344] ss:$16 sps:$4 sm:$0xff]  }
 0x1d0   : > { %6762 = vmatpush1.bf16.msra.mxu0 %v8965_v8  ;;  %7295 = vmatpush1.bf16.msra.mxu1 %v8966_v9  ;;  %v9056_v8 = vld [vmem:[%s11763_s5 + $0x34c] ss:$16 sps:$4 sm:$0xff]   ;;  %v9051_v9 = vld [vmem:[%s11763_s5 + $0x340] ss:$16 sps:$4 sm:$0xff]  }
 0x1d1   : > { %6763 = vmatprep.subr.bf16.mxu0 %v8967_v10  ;;  %7296 = vmatprep.subr.bf16.mxu1 %v8969_v11  ;;  %v9054_v10 = vld [vmem:[%s11763_s5 + $0x348] ss:$16 sps:$4 sm:$0xff]   ;;  %v9059_v11 = vld [vmem:[%s11763_s5 + $0x364] ss:$16 sps:$4 sm:$0xff]  }
 0x1d4   : > { %6764 = vmatpush1.bf16.msra.mxu0 %v8971_v12  ;;  %7297 = vmatpush1.bf16.msra.mxu1 %v8972_v13  ;;  %v9062_v12 = vld [vmem:[%s11763_s5 + $0x36c] ss:$16 sps:$4 sm:$0xff]   ;;  %v9057_v13 = vld [vmem:[%s11763_s5 + $0x360] ss:$16 sps:$4 sm:$0xff]  }
 0x1d5   : > { %6765 = vmatprep.subr.bf16.mxu0 %v8973_v14  ;;  %7298 = vmatprep.subr.bf16.mxu1 %v8975_v15  ;;  %v9060_v14 = vld [vmem:[%s11763_s5 + $0x368] ss:$16 sps:$4 sm:$0xff]   ;;  %v9065_v15 = vld [vmem:[%s11763_s5 + $0x384] ss:$16 sps:$4 sm:$0xff]  }
 0x1d8   : > { %6766 = vmatpush1.bf16.msra.mxu0 %v8977_v16  ;;  %7299 = vmatpush1.bf16.msra.mxu1 %v8978_v17  ;;  %v9068_v16 = vld [vmem:[%s11763_s5 + $0x38c] ss:$16 sps:$4 sm:$0xff]   ;;  %v9063_v17 = vld [vmem:[%s11763_s5 + $0x380] ss:$16 sps:$4 sm:$0xff]  }
 0x1d9   : > { %6767 = vmatprep.subr.bf16.mxu0 %v8979_v18  ;;  %7300 = vmatprep.subr.bf16.mxu1 %v8981_v21  ;;  %v9066_v18 = vld [vmem:[%s11763_s5 + $0x388] ss:$16 sps:$4 sm:$0xff]   ;;  %v9071_v21 = vld [vmem:[%s11763_s5 + $0x3a4] ss:$16 sps:$4 sm:$0xff]  }
 0x1dc   : > { %6768 = vmatpush1.bf16.msra.mxu0 %v8983_v22  ;;  %7301 = vmatpush1.bf16.msra.mxu1 %v8984_v23  ;;  %v9074_v22 = vld [vmem:[%s11763_s5 + $0x3ac] ss:$16 sps:$4 sm:$0xff]   ;;  %v9069_v23 = vld [vmem:[%s11763_s5 + $0x3a0] ss:$16 sps:$4 sm:$0xff]  }
 0x1dd   : > { %6769 = vmatprep.subr.bf16.mxu0 %v8985_v25  ;;  %7302 = vmatprep.subr.bf16.mxu1 %v8987_v26  ;;  %v9072_v25 = vld [vmem:[%s11763_s5 + $0x3a8] ss:$16 sps:$4 sm:$0xff]   ;;  %v9077_v26 = vld [vmem:[%s11763_s5 + $0x3c4] ss:$16 sps:$4 sm:$0xff]  }
 0x1e0   : > { %6770 = vmatpush1.bf16.msra.mxu0 %v8989_v27  ;;  %7303 = vmatpush1.bf16.msra.mxu1 %v8990_v29  ;;  %v9080_v27 = vld [vmem:[%s11763_s5 + $0x3cc] ss:$16 sps:$4 sm:$0xff]   ;;  %v2630_v29 = vcombine.high %v11761_v20, %v11761_v20  ;;  %v9089_v20 = vld [vmem:[%s11763_s5 + $0x404] ss:$16 sps:$4 sm:$0xff]  }
 0x1e1   : > { %6780 = vmatprep.subr.bf16.mxu0 %v8993_v30  ;;  %7313 = vmatprep.subr.bf16.mxu1 %v8996_v31  ;;  %v9075_v30 = vld [vmem:[%s11763_s5 + $0x3c0] ss:$16 sps:$4 sm:$0xff]   ;;  %v9078_v31 = vld [vmem:[%s11763_s5 + $0x3c8] ss:$16 sps:$4 sm:$0xff]  }
 0x1e3   : > { %6772 = vmatmul.mubr.bf16.vlgmr.msra.gmra.mrb[0].mxu0 %v11849_v34  ;;  %7305 = vmatmul.mubr.bf16.vlgmr.msra.gmra.mrb[0].mxu1 %v11849_v34 }
 0x1e4   : > { %6781 = vmatpush1.bf16.msra.mxu0 %v8991_v32  ;;  %7314 = vmatpush1.bf16.msra.mxu1 %v8994_v33  ;;  %v9083_v32 = vld [vmem:[%s11763_s5 + $0x3e4] ss:$16 sps:$4 sm:$0xff]   ;;  %v9086_v33 = vld [vmem:[%s11763_s5 + $0x3ec] ss:$16 sps:$4 sm:$0xff]  }
 0x1e5   : > { %6782 = vmatprep.subr.bf16.mxu0 %v8999_v35  ;;  %7315 = vmatprep.subr.bf16.mxu1 %v9002_v36  ;;  %v11916_v35 = vrot.slane %v2630_v29, %v11768_v24  ;;  %v9081_v36 = vld [vmem:[%s11763_s5 + $0x3e0] ss:$16 sps:$4 sm:$0xff]   ;;  %v9162_v29 = vld [vmem:[%s11763_s5 + $0x588] ss:$16 sps:$4 sm:$0xff]  }
 0x1e6   : > { %6812 = vmatprep.mubr.bf16.mxu0 %v2677_v38  ;;  %7345 = vmatprep.mubr.bf16.mxu1 %v2677_v38  ;;  %v9084_v38 = vld [vmem:[%s11763_s5 + $0x3e8] ss:$16 sps:$4 sm:$0xff]  }
 0x1e8   : > { %6783 = vmatpush1.bf16.msra.mxu0 %v8997_v39  ;;  %7316 = vmatpush1.bf16.msra.mxu1 %v9000_v28  ;;  %v9092_v39 = vld [vmem:[%s11763_s5 + $0x40c] ss:$16 sps:$4 sm:$0xff]   ;;  %v2646_v28 = vcombine.high %v11916_v35, %v11916_v35 }
 0x1e9   : > { %6784 = vmatprep.subr.bf16.mxu0 %v9005_v40  ;;  %7317 = vmatprep.subr.bf16.mxu1 %v9008_v41  ;;  %v9087_v40 = vld [vmem:[%s11763_s5 + $0x400] ss:$16 sps:$4 sm:$0xff]   ;;  %v9090_v41 = vld [vmem:[%s11763_s5 + $0x408] ss:$16 sps:$4 sm:$0xff]  }
 0x1ec   : > { %6785 = vmatpush1.bf16.msra.mxu0 %v9003_v37  ;;  %7318 = vmatpush1.bf16.msra.mxu1 %v9006_v42  ;;  %v2675_v37 = vcombine.high %v11849_v34, %v11849_v34  ;;  %v9095_v42 = vld [vmem:[%s11763_s5 + $0x424] ss:$16 sps:$4 sm:$0xff]  }
 0x1ed   : > { %6786 = vmatprep.subr.bf16.mxu0 %v9011_v43  ;;  %7319 = vmatprep.subr.bf16.mxu1 %v9014_v44  ;;  %v9098_v43 = vld [vmem:[%s11763_s5 + $0x42c] ss:$16 sps:$4 sm:$0xff]   ;;  %v11931_v44 = vrot.slane %v2646_v28, %v11768_v24  ;;  %v9101_v34 = vld [vmem:[%s11763_s5 + $0x444] ss:$16 sps:$4 sm:$0xff]  }
 0x1ee   : > { %v9179_v28 = vld [vmem:[%s11763_s5 + $0x5e4] ss:$16 sps:$4 sm:$0xff]  }
 0x1f0   : > { %6787 = vmatpush1.bf16.msra.mxu0 %v9009_v45  ;;  %7320 = vmatpush1.bf16.msra.mxu1 %v9012_v46  ;;  %v9093_v45 = vld [vmem:[%s11763_s5 + $0x420] ss:$16 sps:$4 sm:$0xff]   ;;  %v9096_v46 = vld [vmem:[%s11763_s5 + $0x428] ss:$16 sps:$4 sm:$0xff]  }
 0x1f1   : > { %6788 = vmatprep.subr.bf16.mxu0 %v9017_v47  ;;  %7321 = vmatprep.subr.bf16.mxu1 %v9020_v48  ;;  %v9104_v47 = vld [vmem:[%s11763_s5 + $0x44c] ss:$16 sps:$4 sm:$0xff]   ;;  %v9099_v48 = vld [vmem:[%s11763_s5 + $0x440] ss:$16 sps:$4 sm:$0xff]  }
 0x1f4   : > { %6789 = vmatpush1.bf16.msra.mxu0 %v9015_v49  ;;  %7322 = vmatpush1.bf16.msra.mxu1 %v9018_v50  ;;  %v9102_v49 = vld [vmem:[%s11763_s5 + $0x448] ss:$16 sps:$4 sm:$0xff]   ;;  %v9107_v50 = vld [vmem:[%s11763_s5 + $0x464] ss:$16 sps:$4 sm:$0xff]  }
 0x1f5   : > { %6790 = vmatprep.subr.bf16.mxu0 %v9023_v51  ;;  %7323 = vmatprep.subr.bf16.mxu1 %v9026_v52  ;;  %v9110_v51 = vld [vmem:[%s11763_s5 + $0x46c] ss:$16 sps:$4 sm:$0xff]   ;;  %v9105_v52 = vld [vmem:[%s11763_s5 + $0x460] ss:$16 sps:$4 sm:$0xff]  }
 0x1f8   : > { %6791 = vmatpush1.bf16.msra.mxu0 %v9021_v53  ;;  %7324 = vmatpush1.bf16.msra.mxu1 %v9024_v54  ;;  %v9108_v53 = vld [vmem:[%s11763_s5 + $0x468] ss:$16 sps:$4 sm:$0xff]   ;;  %v9113_v54 = vld [vmem:[%s11763_s5 + $0x484] ss:$16 sps:$4 sm:$0xff]  }
 0x1f9   : > { %6792 = vmatprep.subr.bf16.mxu0 %v9029_v55  ;;  %7325 = vmatprep.subr.bf16.mxu1 %v9032_v56  ;;  %v9116_v55 = vld [vmem:[%s11763_s5 + $0x48c] ss:$16 sps:$4 sm:$0xff]   ;;  %v9111_v56 = vld [vmem:[%s11763_s5 + $0x480] ss:$16 sps:$4 sm:$0xff]  }
 0x1fc   : > { %6793 = vmatpush1.bf16.msra.mxu0 %v9027_v57  ;;  %7326 = vmatpush1.bf16.msra.mxu1 %v9030_v58  ;;  %v9114_v57 = vld [vmem:[%s11763_s5 + $0x488] ss:$16 sps:$4 sm:$0xff]   ;;  %v9119_v58 = vld [vmem:[%s11763_s5 + $0x4a4] ss:$16 sps:$4 sm:$0xff]  }
 0x1fd   : > { %6794 = vmatprep.subr.bf16.mxu0 %v9035_v59  ;;  %7327 = vmatprep.subr.bf16.mxu1 %v9038_v60  ;;  %v9122_v59 = vld [vmem:[%s11763_s5 + $0x4ac] ss:$16 sps:$4 sm:$0xff]   ;;  %v9117_v60 = vld [vmem:[%s11763_s5 + $0x4a0] ss:$16 sps:$4 sm:$0xff]  }
 0x200   : > { %6795 = vmatpush1.bf16.msra.mxu0 %v9033_v61  ;;  %7328 = vmatpush1.bf16.msra.mxu1 %v9036_v62  ;;  %v9120_v61 = vld [vmem:[%s11763_s5 + $0x4a8] ss:$16 sps:$4 sm:$0xff]   ;;  %v9125_v62 = vld [vmem:[%s11763_s5 + $0x4c4] ss:$16 sps:$4 sm:$0xff]  }
 0x201   : > { %6796 = vmatprep.subr.bf16.mxu0 %v9041_v63  ;;  %7329 = vmatprep.subr.bf16.mxu1 %v9044_v0  ;;  %v9128_v63 = vld [vmem:[%s11763_s5 + $0x4cc] ss:$16 sps:$4 sm:$0xff]   ;;  %v9123_v0 = vld [vmem:[%s11763_s5 + $0x4c0] ss:$16 sps:$4 sm:$0xff]  }
 0x204   : > { %6797 = vmatpush1.bf16.msra.mxu0 %v9039_v1  ;;  %7330 = vmatpush1.bf16.msra.mxu1 %v9042_v2  ;;  %v9126_v1 = vld [vmem:[%s11763_s5 + $0x4c8] ss:$16 sps:$4 sm:$0xff]   ;;  %v9131_v2 = vld [vmem:[%s11763_s5 + $0x4e4] ss:$16 sps:$4 sm:$0xff]  }
 0x205   : > { %6798 = vmatprep.subr.bf16.mxu0 %v9047_v3  ;;  %7331 = vmatprep.subr.bf16.mxu1 %v9050_v4  ;;  %v9134_v3 = vld [vmem:[%s11763_s5 + $0x4ec] ss:$16 sps:$4 sm:$0xff]   ;;  %v9129_v4 = vld [vmem:[%s11763_s5 + $0x4e0] ss:$16 sps:$4 sm:$0xff]  }
 0x208   : > { %6799 = vmatpush1.bf16.msra.mxu0 %v9045_v5  ;;  %7332 = vmatpush1.bf16.msra.mxu1 %v9048_v6  ;;  %v9132_v5 = vld [vmem:[%s11763_s5 + $0x4e8] ss:$16 sps:$4 sm:$0xff]   ;;  %v9137_v6 = vld [vmem:[%s11763_s5 + $0x504] ss:$16 sps:$4 sm:$0xff]  }
 0x209   : > { %6800 = vmatprep.subr.bf16.mxu0 %v9053_v7  ;;  %7333 = vmatprep.subr.bf16.mxu1 %v9056_v8  ;;  %v9140_v7 = vld [vmem:[%s11763_s5 + $0x50c] ss:$16 sps:$4 sm:$0xff]   ;;  %v9135_v8 = vld [vmem:[%s11763_s5 + $0x500] ss:$16 sps:$4 sm:$0xff]  }
 0x20c   : > { %6801 = vmatpush1.bf16.msra.mxu0 %v9051_v9  ;;  %7334 = vmatpush1.bf16.msra.mxu1 %v9054_v10  ;;  %v9138_v9 = vld [vmem:[%s11763_s5 + $0x508] ss:$16 sps:$4 sm:$0xff]   ;;  %v9143_v10 = vld [vmem:[%s11763_s5 + $0x524] ss:$16 sps:$4 sm:$0xff]  }
 0x20d   : > { %6802 = vmatprep.subr.bf16.mxu0 %v9059_v11  ;;  %7335 = vmatprep.subr.bf16.mxu1 %v9062_v12  ;;  %v9146_v11 = vld [vmem:[%s11763_s5 + $0x52c] ss:$16 sps:$4 sm:$0xff]   ;;  %v9141_v12 = vld [vmem:[%s11763_s5 + $0x520] ss:$16 sps:$4 sm:$0xff]  }
 0x210   : > { %6803 = vmatpush1.bf16.msra.mxu0 %v9057_v13  ;;  %7336 = vmatpush1.bf16.msra.mxu1 %v9060_v14  ;;  %v9144_v13 = vld [vmem:[%s11763_s5 + $0x528] ss:$16 sps:$4 sm:$0xff]   ;;  %v9149_v14 = vld [vmem:[%s11763_s5 + $0x544] ss:$16 sps:$4 sm:$0xff]  }
 0x211   : > { %6804 = vmatprep.subr.bf16.mxu0 %v9065_v15  ;;  %7337 = vmatprep.subr.bf16.mxu1 %v9068_v16  ;;  %v9152_v15 = vld [vmem:[%s11763_s5 + $0x54c] ss:$16 sps:$4 sm:$0xff]   ;;  %v9147_v16 = vld [vmem:[%s11763_s5 + $0x540] ss:$16 sps:$4 sm:$0xff]  }
 0x214   : > { %6805 = vmatpush1.bf16.msra.mxu0 %v9063_v17  ;;  %7338 = vmatpush1.bf16.msra.mxu1 %v9066_v18  ;;  %v9150_v17 = vld [vmem:[%s11763_s5 + $0x548] ss:$16 sps:$4 sm:$0xff]   ;;  %v9155_v18 = vld [vmem:[%s11763_s5 + $0x564] ss:$16 sps:$4 sm:$0xff]  }
 0x215   : > { %6806 = vmatprep.subr.bf16.mxu0 %v9071_v21  ;;  %7339 = vmatprep.subr.bf16.mxu1 %v9074_v22  ;;  %v9158_v21 = vld [vmem:[%s11763_s5 + $0x56c] ss:$16 sps:$4 sm:$0xff]   ;;  %v9153_v22 = vld [vmem:[%s11763_s5 + $0x560] ss:$16 sps:$4 sm:$0xff]  }
 0x218   : > { %6807 = vmatpush1.bf16.msra.mxu0 %v9069_v23  ;;  %7340 = vmatpush1.bf16.msra.mxu1 %v9072_v25  ;;  %v9156_v23 = vld [vmem:[%s11763_s5 + $0x568] ss:$16 sps:$4 sm:$0xff]   ;;  %v9161_v25 = vld [vmem:[%s11763_s5 + $0x584] ss:$16 sps:$4 sm:$0xff]  }
 0x219   : > { %6808 = vmatprep.subr.bf16.mxu0 %v9077_v26  ;;  %7341 = vmatprep.subr.bf16.mxu1 %v9080_v27  ;;  %v9164_v26 = vld [vmem:[%s11763_s5 + $0x58c] ss:$16 sps:$4 sm:$0xff]   ;;  %v9159_v27 = vld [vmem:[%s11763_s5 + $0x580] ss:$16 sps:$4 sm:$0xff]  }
 0x21c   : > { %6809 = vmatpush1.bf16.msra.mxu0 %v9075_v30  ;;  %7342 = vmatpush1.bf16.msra.mxu1 %v9078_v31  ;;  %v9167_v30 = vld [vmem:[%s11763_s5 + $0x5a4] ss:$16 sps:$4 sm:$0xff]   ;;  %v9170_v31 = vld [vmem:[%s11763_s5 + $0x5ac] ss:$16 sps:$4 sm:$0xff]  }
 0x21d   : > { %6810 = vmatprep.subr.bf16.mxu0 %v9083_v32  ;;  %7343 = vmatprep.subr.bf16.mxu1 %v9086_v33  ;;  %v9165_v32 = vld [vmem:[%s11763_s5 + $0x5a0] ss:$16 sps:$4 sm:$0xff]   ;;  %v9168_v33 = vld [vmem:[%s11763_s5 + $0x5a8] ss:$16 sps:$4 sm:$0xff]  }
 0x220   : > { %6811 = vmatpush1.bf16.msra.mxu0 %v9081_v36  ;;  %7344 = vmatpush1.bf16.msra.mxu1 %v9084_v38  ;;  %v9173_v36 = vld [vmem:[%s11763_s5 + $0x5c4] ss:$16 sps:$4 sm:$0xff]   ;;  %v9176_v38 = vld [vmem:[%s11763_s5 + $0x5cc] ss:$16 sps:$4 sm:$0xff]  }
 0x221   : > { %6821 = vmatprep.subr.bf16.mxu0 %v9089_v20  ;;  %7354 = vmatprep.subr.bf16.mxu1 %v9092_v39  ;;  %v9171_v20 = vld [vmem:[%s11763_s5 + $0x5c0] ss:$16 sps:$4 sm:$0xff]   ;;  %v9174_v39 = vld [vmem:[%s11763_s5 + $0x5c8] ss:$16 sps:$4 sm:$0xff]  }
 0x223   : > { %6813 = vmatmul.mubr.bf16.vlgmr.msra.gmra.mrb[0].mxu0 %v2675_v37  ;;  %7346 = vmatmul.mubr.bf16.vlgmr.msra.gmra.mrb[0].mxu1 %v2675_v37  ;;  %v9180_v37 = vld [vmem:[%s11763_s5 + $0x5e8] ss:$16 sps:$4 sm:$0xff]  }
 0x224   : > { %6822 = vmatpush1.bf16.msra.mxu0 %v9087_v40  ;;  %7355 = vmatpush1.bf16.msra.mxu1 %v9090_v41  ;;  %v9182_v40 = vld [vmem:[%s11763_s5 + $0x5ec] ss:$16 sps:$4 sm:$0xff]   ;;  %v9177_v41 = vld [vmem:[%s11763_s5 + $0x5e0] ss:$16 sps:$4 sm:$0xff]  }
 0x225   : > { %6823 = vmatprep.subr.bf16.mxu0 %v9095_v42  ;;  %7356 = vmatprep.subr.bf16.mxu1 %v9098_v43  ;;  %v9186_v42 = vld [vmem:[%s11763_s5 + $0x604] ss:$16 sps:$4 sm:$0xff]   ;;  %v9189_v43 = vld [vmem:[%s11763_s5 + $0x60c] ss:$16 sps:$4 sm:$0xff]  }
 0x226   : > { %6853 = vmatprep.mubr.bf16.mxu0 %v11931_v44  ;;  %7386 = vmatprep.mubr.bf16.mxu1 %v11931_v44 }
 0x228   : > { %6824 = vmatpush1.bf16.msra.mxu0 %v9093_v45  ;;  %7357 = vmatpush1.bf16.msra.mxu1 %v9096_v46  ;;  %v9184_v45 = vld [vmem:[%s11763_s5 + $0x600] ss:$16 sps:$4 sm:$0xff]   ;;  %v9187_v46 = vld [vmem:[%s11763_s5 + $0x608] ss:$16 sps:$4 sm:$0xff]  }
 0x229   : > { %6825 = vmatprep.subr.bf16.mxu0 %v9101_v34  ;;  %7358 = vmatprep.subr.bf16.mxu1 %v9104_v47  ;;  %v11999_v34 = vrot.slane %v11916_v35, %v11768_v24  ;;  %v9192_v47 = vld [vmem:[%s11763_s5 + $0x624] ss:$16 sps:$4 sm:$0xff]   ;;  %v9193_v35 = vld [vmem:[%s11763_s5 + $0x628] ss:$16 sps:$4 sm:$0xff]  }
 0x22c   : > { %6826 = vmatpush1.bf16.msra.mxu0 %v9099_v48  ;;  %7359 = vmatpush1.bf16.msra.mxu1 %v9102_v49  ;;  %v9195_v48 = vld [vmem:[%s11763_s5 + $0x62c] ss:$16 sps:$4 sm:$0xff]   ;;  %v2678_v49 = vcombine.high %v11931_v44, %v11931_v44  ;;  %v9196_v44 = vld [vmem:[%s11763_s5 + $0x640] ss:$16 sps:$4 sm:$0xff]  }
 0x22d   : > { %6827 = vmatprep.subr.bf16.mxu0 %v9107_v50  ;;  %7360 = vmatprep.subr.bf16.mxu1 %v9110_v51  ;;  %v9190_v50 = vld [vmem:[%s11763_s5 + $0x620] ss:$16 sps:$4 sm:$0xff]   ;;  %v9198_v51 = vld [vmem:[%s11763_s5 + $0x644] ss:$16 sps:$4 sm:$0xff]  }
 0x230   : > { %6828 = vmatpush1.bf16.msra.mxu0 %v9105_v52  ;;  %7361 = vmatpush1.bf16.msra.mxu1 %v9108_v53  ;;  %v9201_v52 = vld [vmem:[%s11763_s5 + $0x64c] ss:$16 sps:$4 sm:$0xff]   ;;  %v9199_v53 = vld [vmem:[%s11763_s5 + $0x648] ss:$16 sps:$4 sm:$0xff]  }
 0x231   : > { %6829 = vmatprep.subr.bf16.mxu0 %v9113_v54  ;;  %7362 = vmatprep.subr.bf16.mxu1 %v9116_v55  ;;  %v9204_v54 = vld [vmem:[%s11763_s5 + $0x664] ss:$16 sps:$4 sm:$0xff]   ;;  %v9207_v55 = vld [vmem:[%s11763_s5 + $0x66c] ss:$16 sps:$4 sm:$0xff]  }
 0x234   : > { %6830 = vmatpush1.bf16.msra.mxu0 %v9111_v56  ;;  %7363 = vmatpush1.bf16.msra.mxu1 %v9114_v57  ;;  %v9202_v56 = vld [vmem:[%s11763_s5 + $0x660] ss:$16 sps:$4 sm:$0xff]   ;;  %v9205_v57 = vld [vmem:[%s11763_s5 + $0x668] ss:$16 sps:$4 sm:$0xff]  }
 0x235   : > { %6831 = vmatprep.subr.bf16.mxu0 %v9119_v58  ;;  %7364 = vmatprep.subr.bf16.mxu1 %v9122_v59  ;;  %v9210_v58 = vld [vmem:[%s11763_s5 + $0x684] ss:$16 sps:$4 sm:$0xff]   ;;  %v9213_v59 = vld [vmem:[%s11763_s5 + $0x68c] ss:$16 sps:$4 sm:$0xff]  }
 0x238   : > { %6832 = vmatpush1.bf16.msra.mxu0 %v9117_v60  ;;  %7365 = vmatpush1.bf16.msra.mxu1 %v9120_v61  ;;  %v9208_v60 = vld [vmem:[%s11763_s5 + $0x680] ss:$16 sps:$4 sm:$0xff]   ;;  %v9211_v61 = vld [vmem:[%s11763_s5 + $0x688] ss:$16 sps:$4 sm:$0xff]  }
 0x239   : > { %6833 = vmatprep.subr.bf16.mxu0 %v9125_v62  ;;  %7366 = vmatprep.subr.bf16.mxu1 %v9128_v63  ;;  %v9216_v62 = vld [vmem:[%s11763_s5 + $0x6a4] ss:$16 sps:$4 sm:$0xff]   ;;  %v9219_v63 = vld [vmem:[%s11763_s5 + $0x6ac] ss:$16 sps:$4 sm:$0xff]  }
 0x23c   : > { %6834 = vmatpush1.bf16.msra.mxu0 %v9123_v0  ;;  %7367 = vmatpush1.bf16.msra.mxu1 %v9126_v1  ;;  %v9214_v0 = vld [vmem:[%s11763_s5 + $0x6a0] ss:$16 sps:$4 sm:$0xff]   ;;  %v9217_v1 = vld [vmem:[%s11763_s5 + $0x6a8] ss:$16 sps:$4 sm:$0xff]  }
 0x23d   : > { %6835 = vmatprep.subr.bf16.mxu0 %v9131_v2  ;;  %7368 = vmatprep.subr.bf16.mxu1 %v9134_v3  ;;  %v9222_v2 = vld [vmem:[%s11763_s5 + $0x6c4] ss:$16 sps:$4 sm:$0xff]   ;;  %v9225_v3 = vld [vmem:[%s11763_s5 + $0x6cc] ss:$16 sps:$4 sm:$0xff]  }
 0x240   : > { %6836 = vmatpush1.bf16.msra.mxu0 %v9129_v4  ;;  %7369 = vmatpush1.bf16.msra.mxu1 %v9132_v5  ;;  %v9220_v4 = vld [vmem:[%s11763_s5 + $0x6c0] ss:$16 sps:$4 sm:$0xff]   ;;  %v9223_v5 = vld [vmem:[%s11763_s5 + $0x6c8] ss:$16 sps:$4 sm:$0xff]  }
 0x241   : > { %6837 = vmatprep.subr.bf16.mxu0 %v9137_v6  ;;  %7370 = vmatprep.subr.bf16.mxu1 %v9140_v7  ;;  %v9228_v6 = vld [vmem:[%s11763_s5 + $0x6e4] ss:$16 sps:$4 sm:$0xff]   ;;  %v9231_v7 = vld [vmem:[%s11763_s5 + $0x6ec] ss:$16 sps:$4 sm:$0xff]  }
 0x244   : > { %6838 = vmatpush1.bf16.msra.mxu0 %v9135_v8  ;;  %7371 = vmatpush1.bf16.msra.mxu1 %v9138_v9  ;;  %v9226_v8 = vld [vmem:[%s11763_s5 + $0x6e0] ss:$16 sps:$4 sm:$0xff]   ;;  %v9229_v9 = vld [vmem:[%s11763_s5 + $0x6e8] ss:$16 sps:$4 sm:$0xff]  }
 0x245   : > { %6839 = vmatprep.subr.bf16.mxu0 %v9143_v10  ;;  %7372 = vmatprep.subr.bf16.mxu1 %v9146_v11  ;;  %v9234_v10 = vld [vmem:[%s11763_s5 + $0x704] ss:$16 sps:$4 sm:$0xff]   ;;  %v9237_v11 = vld [vmem:[%s11763_s5 + $0x70c] ss:$16 sps:$4 sm:$0xff]  }
 0x248   : > { %6840 = vmatpush1.bf16.msra.mxu0 %v9141_v12  ;;  %7373 = vmatpush1.bf16.msra.mxu1 %v9144_v13  ;;  %v9232_v12 = vld [vmem:[%s11763_s5 + $0x700] ss:$16 sps:$4 sm:$0xff]   ;;  %v9235_v13 = vld [vmem:[%s11763_s5 + $0x708] ss:$16 sps:$4 sm:$0xff]  }
 0x249   : > { %6841 = vmatprep.subr.bf16.mxu0 %v9149_v14  ;;  %7374 = vmatprep.subr.bf16.mxu1 %v9152_v15  ;;  %v9240_v14 = vld [vmem:[%s11763_s5 + $0x724] ss:$16 sps:$4 sm:$0xff]   ;;  %v9243_v15 = vld [vmem:[%s11763_s5 + $0x72c] ss:$16 sps:$4 sm:$0xff]  }
 0x24c   : > { %6842 = vmatpush1.bf16.msra.mxu0 %v9147_v16  ;;  %7375 = vmatpush1.bf16.msra.mxu1 %v9150_v17  ;;  %v9238_v16 = vld [vmem:[%s11763_s5 + $0x720] ss:$16 sps:$4 sm:$0xff]   ;;  %v9241_v17 = vld [vmem:[%s11763_s5 + $0x728] ss:$16 sps:$4 sm:$0xff]  }
 0x24d   : > { %6843 = vmatprep.subr.bf16.mxu0 %v9155_v18  ;;  %7376 = vmatprep.subr.bf16.mxu1 %v9158_v21  ;;  %v9246_v18 = vld [vmem:[%s11763_s5 + $0x744] ss:$16 sps:$4 sm:$0xff]   ;;  %v9249_v21 = vld [vmem:[%s11763_s5 + $0x74c] ss:$16 sps:$4 sm:$0xff]  }
 0x250   : > { %6844 = vmatpush1.bf16.msra.mxu0 %v9153_v22  ;;  %7377 = vmatpush1.bf16.msra.mxu1 %v9156_v23  ;;  %v9244_v22 = vld [vmem:[%s11763_s5 + $0x740] ss:$16 sps:$4 sm:$0xff]   ;;  %v9247_v23 = vld [vmem:[%s11763_s5 + $0x748] ss:$16 sps:$4 sm:$0xff]  }
 0x251   : > { %6845 = vmatprep.subr.bf16.mxu0 %v9161_v25  ;;  %7378 = vmatprep.subr.bf16.mxu1 %v9164_v26  ;;  %v9252_v25 = vld [vmem:[%s11763_s5 + $0x764] ss:$16 sps:$4 sm:$0xff]   ;;  %v9255_v26 = vld [vmem:[%s11763_s5 + $0x76c] ss:$16 sps:$4 sm:$0xff]  }
 0x254   : > { %6846 = vmatpush1.bf16.msra.mxu0 %v9159_v27  ;;  %7379 = vmatpush1.bf16.msra.mxu1 %v9162_v29  ;;  %v9250_v27 = vld [vmem:[%s11763_s5 + $0x760] ss:$16 sps:$4 sm:$0xff]   ;;  %v9253_v29 = vld [vmem:[%s11763_s5 + $0x768] ss:$16 sps:$4 sm:$0xff]  }
 0x255   : > { %6847 = vmatprep.subr.bf16.mxu0 %v9167_v30  ;;  %7380 = vmatprep.subr.bf16.mxu1 %v9170_v31  ;;  %v9258_v30 = vld [vmem:[%s11763_s5 + $0x784] ss:$16 sps:$4 sm:$0xff]   ;;  %v9261_v31 = vld [vmem:[%s11763_s5 + $0x78c] ss:$16 sps:$4 sm:$0xff]  }
 0x258   : > { %6848 = vmatpush1.bf16.msra.mxu0 %v9165_v32  ;;  %7381 = vmatpush1.bf16.msra.mxu1 %v9168_v33  ;;  %v9256_v32 = vld [vmem:[%s11763_s5 + $0x780] ss:$16 sps:$4 sm:$0xff]   ;;  %v9259_v33 = vld [vmem:[%s11763_s5 + $0x788] ss:$16 sps:$4 sm:$0xff]  }
 0x259   : > { %6849 = vmatprep.subr.bf16.mxu0 %v9173_v36  ;;  %7382 = vmatprep.subr.bf16.mxu1 %v9176_v38  ;;  %v9264_v36 = vld [vmem:[%s11763_s5 + $0x7a4] ss:$16 sps:$4 sm:$0xff]   ;;  %v9267_v38 = vld [vmem:[%s11763_s5 + $0x7ac] ss:$16 sps:$4 sm:$0xff]  }
 0x25c   : > { %6850 = vmatpush1.bf16.msra.mxu0 %v9171_v20  ;;  %7383 = vmatpush1.bf16.msra.mxu1 %v9174_v39  ;;  %v9262_v20 = vld [vmem:[%s11763_s5 + $0x7a0] ss:$16 sps:$4 sm:$0xff]   ;;  %v9265_v39 = vld [vmem:[%s11763_s5 + $0x7a8] ss:$16 sps:$4 sm:$0xff]  }
 0x25d   : > { %6851 = vmatprep.subr.bf16.mxu0 %v9179_v28  ;;  %7384 = vmatprep.subr.bf16.mxu1 %v9182_v40  ;;  %v9270_v28 = vld [vmem:[%s11763_s5 + $0x7c4] ss:$16 sps:$4 sm:$0xff]   ;;  %v9273_v40 = vld [vmem:[%s11763_s5 + $0x7cc] ss:$16 sps:$4 sm:$0xff]  }
 0x260   : > { %6852 = vmatpush1.bf16.msra.mxu0 %v9177_v41  ;;  %7385 = vmatpush1.bf16.msra.mxu1 %v9180_v37  ;;  %v9268_v41 = vld [vmem:[%s11763_s5 + $0x7c0] ss:$16 sps:$4 sm:$0xff]   ;;  %v12063_v37 = vld.sshfl [vmem:[%s12724_s0 + $0x8] sm:$0xff pattern:$0x75316420] }
 0x261   : > { %6862 = vmatprep.subr.bf16.mxu0 %v9186_v42  ;;  %7395 = vmatprep.subr.bf16.mxu1 %v9189_v43  ;;  %v9271_v42 = vld [vmem:[%s11763_s5 + $0x7c8] ss:$16 sps:$4 sm:$0xff]   ;;  %v9276_v43 = vld [vmem:[%s11763_s5 + $0x7e4] ss:$16 sps:$4 sm:$0xff]  }
 0x263   : > { %6854 = vmatmul.mubr.bf16.vlgmr.msra.gmra.mrb[0].mxu0 %v11999_v34  ;;  %7387 = vmatmul.mubr.bf16.vlgmr.msra.gmra.mrb[0].mxu1 %v11999_v34 }
 0x264   : > { %6863 = vmatpush1.bf16.msra.mxu0 %v9184_v45  ;;  %7396 = vmatpush1.bf16.msra.mxu1 %v9187_v46  ;;  %v9279_v45 = vld [vmem:[%s11763_s5 + $0x7ec] ss:$16 sps:$4 sm:$0xff]   ;;  %v9274_v46 = vld [vmem:[%s11763_s5 + $0x7e0] ss:$16 sps:$4 sm:$0xff]  }
 0x265   : > { %6864 = vmatprep.subr.bf16.mxu0 %v9192_v47  ;;  %7397 = vmatprep.subr.bf16.mxu1 %v9195_v48  ;;  %v9277_v47 = vld [vmem:[%s11763_s5 + $0x7e8] ss:$16 sps:$4 sm:$0xff]   ;;  %v9282_v48 = vld [vmem:[%s11763_s5 + $0x804] ss:$16 sps:$4 sm:$0xff]  }
 0x266   : > { %6894 = vmatprep.mubr.bf16.mxu0 %v2678_v49  ;;  %7427 = vmatprep.mubr.bf16.mxu1 %v2678_v49  ;;  %v9285_v49 = vld [vmem:[%s11763_s5 + $0x80c] ss:$16 sps:$4 sm:$0xff]  }
 0x268   : > { %6865 = vmatpush1.bf16.msra.mxu0 %v9190_v50  ;;  %7398 = vmatpush1.bf16.msra.mxu1 %v9193_v35  ;;  %v2694_v50 = vcombine.high %v12063_v37, %v12063_v37  ;;  %v9280_v35 = vld [vmem:[%s11763_s5 + $0x800] ss:$16 sps:$4 sm:$0xff]  }
 0x269   : > { %6866 = vmatprep.subr.bf16.mxu0 %v9198_v51  ;;  %7399 = vmatprep.subr.bf16.mxu1 %v9201_v52  ;;  %v2676_v51 = vcombine.high %v11999_v34, %v11999_v34  ;;  %v9283_v52 = vld [vmem:[%s11763_s5 + $0x808] ss:$16 sps:$4 sm:$0xff]   ;;  %v9286_v34 = vld [vmem:[%s11763_s5 + $0x820] ss:$16 sps:$4 sm:$0xff]  }
 0x26c   : > { %6867 = vmatpush1.bf16.msra.mxu0 %v9196_v44  ;;  %7400 = vmatpush1.bf16.msra.mxu1 %v9199_v53  ;;  %v9288_v44 = vld [vmem:[%s11763_s5 + $0x824] ss:$16 sps:$4 sm:$0xff]   ;;  %v9291_v53 = vld [vmem:[%s11763_s5 + $0x82c] ss:$16 sps:$4 sm:$0xff]  }
 0x26d   : > { %6868 = vmatprep.subr.bf16.mxu0 %v9204_v54  ;;  %7401 = vmatprep.subr.bf16.mxu1 %v9207_v55  ;;  %v12081_v54 = vrot.slane %v2694_v50, %v11768_v24  ;;  %v9289_v55 = vld [vmem:[%s11763_s5 + $0x828] ss:$16 sps:$4 sm:$0xff]   ;;  %v9372_v50 = vld [vmem:[%s11763_s5 + $0x9e4] ss:$16 sps:$4 sm:$0xff]  }
 0x270   : > { %6869 = vmatpush1.bf16.msra.mxu0 %v9202_v56  ;;  %7402 = vmatpush1.bf16.msra.mxu1 %v9205_v57  ;;  %v9294_v56 = vld [vmem:[%s11763_s5 + $0x844] ss:$16 sps:$4 sm:$0xff]   ;;  %v9297_v57 = vld [vmem:[%s11763_s5 + $0x84c] ss:$16 sps:$4 sm:$0xff]  }
 0x271   : > { %6870 = vmatprep.subr.bf16.mxu0 %v9210_v58  ;;  %7403 = vmatprep.subr.bf16.mxu1 %v9213_v59  ;;  %v9292_v58 = vld [vmem:[%s11763_s5 + $0x840] ss:$16 sps:$4 sm:$0xff]   ;;  %v9295_v59 = vld [vmem:[%s11763_s5 + $0x848] ss:$16 sps:$4 sm:$0xff]  }
 0x274   : > { %6871 = vmatpush1.bf16.msra.mxu0 %v9208_v60  ;;  %7404 = vmatpush1.bf16.msra.mxu1 %v9211_v61  ;;  %v9300_v60 = vld [vmem:[%s11763_s5 + $0x864] ss:$16 sps:$4 sm:$0xff]   ;;  %v9303_v61 = vld [vmem:[%s11763_s5 + $0x86c] ss:$16 sps:$4 sm:$0xff]  }
 0x275   : > { %6872 = vmatprep.subr.bf16.mxu0 %v9216_v62  ;;  %7405 = vmatprep.subr.bf16.mxu1 %v9219_v63  ;;  %v9298_v62 = vld [vmem:[%s11763_s5 + $0x860] ss:$16 sps:$4 sm:$0xff]   ;;  %v9301_v63 = vld [vmem:[%s11763_s5 + $0x868] ss:$16 sps:$4 sm:$0xff]  }
 0x278   : > { %6873 = vmatpush1.bf16.msra.mxu0 %v9214_v0  ;;  %7406 = vmatpush1.bf16.msra.mxu1 %v9217_v1  ;;  %v9306_v0 = vld [vmem:[%s11763_s5 + $0x884] ss:$16 sps:$4 sm:$0xff]   ;;  %v9309_v1 = vld [vmem:[%s11763_s5 + $0x88c] ss:$16 sps:$4 sm:$0xff]  }
 0x279   : > { %6874 = vmatprep.subr.bf16.mxu0 %v9222_v2  ;;  %7407 = vmatprep.subr.bf16.mxu1 %v9225_v3  ;;  %v9304_v2 = vld [vmem:[%s11763_s5 + $0x880] ss:$16 sps:$4 sm:$0xff]   ;;  %v9307_v3 = vld [vmem:[%s11763_s5 + $0x888] ss:$16 sps:$4 sm:$0xff]  }
 0x27c   : > { %6875 = vmatpush1.bf16.msra.mxu0 %v9220_v4  ;;  %7408 = vmatpush1.bf16.msra.mxu1 %v9223_v5  ;;  %v9312_v4 = vld [vmem:[%s11763_s5 + $0x8a4] ss:$16 sps:$4 sm:$0xff]   ;;  %v9315_v5 = vld [vmem:[%s11763_s5 + $0x8ac] ss:$16 sps:$4 sm:$0xff]  }
 0x27d   : > { %6876 = vmatprep.subr.bf16.mxu0 %v9228_v6  ;;  %7409 = vmatprep.subr.bf16.mxu1 %v9231_v7  ;;  %v9310_v6 = vld [vmem:[%s11763_s5 + $0x8a0] ss:$16 sps:$4 sm:$0xff]   ;;  %v9313_v7 = vld [vmem:[%s11763_s5 + $0x8a8] ss:$16 sps:$4 sm:$0xff]  }
 0x280   : > { %6877 = vmatpush1.bf16.msra.mxu0 %v9226_v8  ;;  %7410 = vmatpush1.bf16.msra.mxu1 %v9229_v9  ;;  %v9318_v8 = vld [vmem:[%s11763_s5 + $0x8c4] ss:$16 sps:$4 sm:$0xff]   ;;  %v9321_v9 = vld [vmem:[%s11763_s5 + $0x8cc] ss:$16 sps:$4 sm:$0xff]  }
 0x281   : > { %6878 = vmatprep.subr.bf16.mxu0 %v9234_v10  ;;  %7411 = vmatprep.subr.bf16.mxu1 %v9237_v11  ;;  %v9316_v10 = vld [vmem:[%s11763_s5 + $0x8c0] ss:$16 sps:$4 sm:$0xff]   ;;  %v9319_v11 = vld [vmem:[%s11763_s5 + $0x8c8] ss:$16 sps:$4 sm:$0xff]  }
 0x284   : > { %6879 = vmatpush1.bf16.msra.mxu0 %v9232_v12  ;;  %7412 = vmatpush1.bf16.msra.mxu1 %v9235_v13  ;;  %v9324_v12 = vld [vmem:[%s11763_s5 + $0x8e4] ss:$16 sps:$4 sm:$0xff]   ;;  %v9327_v13 = vld [vmem:[%s11763_s5 + $0x8ec] ss:$16 sps:$4 sm:$0xff]  }
 0x285   : > { %6880 = vmatprep.subr.bf16.mxu0 %v9240_v14  ;;  %7413 = vmatprep.subr.bf16.mxu1 %v9243_v15  ;;  %v9322_v14 = vld [vmem:[%s11763_s5 + $0x8e0] ss:$16 sps:$4 sm:$0xff]   ;;  %v9325_v15 = vld [vmem:[%s11763_s5 + $0x8e8] ss:$16 sps:$4 sm:$0xff]  }
 0x288   : > { %6881 = vmatpush1.bf16.msra.mxu0 %v9238_v16  ;;  %7414 = vmatpush1.bf16.msra.mxu1 %v9241_v17  ;;  %v9330_v16 = vld [vmem:[%s11763_s5 + $0x904] ss:$16 sps:$4 sm:$0xff]   ;;  %v9333_v17 = vld [vmem:[%s11763_s5 + $0x90c] ss:$16 sps:$4 sm:$0xff]  }
 0x289   : > { %6882 = vmatprep.subr.bf16.mxu0 %v9246_v18  ;;  %7415 = vmatprep.subr.bf16.mxu1 %v9249_v21  ;;  %v9328_v18 = vld [vmem:[%s11763_s5 + $0x900] ss:$16 sps:$4 sm:$0xff]   ;;  %v9331_v21 = vld [vmem:[%s11763_s5 + $0x908] ss:$16 sps:$4 sm:$0xff]  }
 0x28c   : > { %6883 = vmatpush1.bf16.msra.mxu0 %v9244_v22  ;;  %7416 = vmatpush1.bf16.msra.mxu1 %v9247_v23  ;;  %v9336_v22 = vld [vmem:[%s11763_s5 + $0x924] ss:$16 sps:$4 sm:$0xff]   ;;  %v9339_v23 = vld [vmem:[%s11763_s5 + $0x92c] ss:$16 sps:$4 sm:$0xff]  }
 0x28d   : > { %6884 = vmatprep.subr.bf16.mxu0 %v9252_v25  ;;  %7417 = vmatprep.subr.bf16.mxu1 %v9255_v26  ;;  %v9334_v25 = vld [vmem:[%s11763_s5 + $0x920] ss:$16 sps:$4 sm:$0xff]   ;;  %v9337_v26 = vld [vmem:[%s11763_s5 + $0x928] ss:$16 sps:$4 sm:$0xff]  }
 0x290   : > { %6885 = vmatpush1.bf16.msra.mxu0 %v9250_v27  ;;  %7418 = vmatpush1.bf16.msra.mxu1 %v9253_v29  ;;  %v9342_v27 = vld [vmem:[%s11763_s5 + $0x944] ss:$16 sps:$4 sm:$0xff]   ;;  %v9345_v29 = vld [vmem:[%s11763_s5 + $0x94c] ss:$16 sps:$4 sm:$0xff]  }
 0x291   : > { %6886 = vmatprep.subr.bf16.mxu0 %v9258_v30  ;;  %7419 = vmatprep.subr.bf16.mxu1 %v9261_v31  ;;  %v9340_v30 = vld [vmem:[%s11763_s5 + $0x940] ss:$16 sps:$4 sm:$0xff]   ;;  %v9343_v31 = vld [vmem:[%s11763_s5 + $0x948] ss:$16 sps:$4 sm:$0xff]  }
 0x294   : > { %6887 = vmatpush1.bf16.msra.mxu0 %v9256_v32  ;;  %7420 = vmatpush1.bf16.msra.mxu1 %v9259_v33  ;;  %v9348_v32 = vld [vmem:[%s11763_s5 + $0x964] ss:$16 sps:$4 sm:$0xff]   ;;  %v9351_v33 = vld [vmem:[%s11763_s5 + $0x96c] ss:$16 sps:$4 sm:$0xff]  }
 0x295   : > { %6888 = vmatprep.subr.bf16.mxu0 %v9264_v36  ;;  %7421 = vmatprep.subr.bf16.mxu1 %v9267_v38  ;;  %v9346_v36 = vld [vmem:[%s11763_s5 + $0x960] ss:$16 sps:$4 sm:$0xff]   ;;  %v9349_v38 = vld [vmem:[%s11763_s5 + $0x968] ss:$16 sps:$4 sm:$0xff]  }
 0x298   : > { %6889 = vmatpush1.bf16.msra.mxu0 %v9262_v20  ;;  %7422 = vmatpush1.bf16.msra.mxu1 %v9265_v39  ;;  %v9354_v20 = vld [vmem:[%s11763_s5 + $0x984] ss:$16 sps:$4 sm:$0xff]   ;;  %v9357_v39 = vld [vmem:[%s11763_s5 + $0x98c] ss:$16 sps:$4 sm:$0xff]  }
 0x299   : > { %6890 = vmatprep.subr.bf16.mxu0 %v9270_v28  ;;  %7423 = vmatprep.subr.bf16.mxu1 %v9273_v40  ;;  %v9352_v28 = vld [vmem:[%s11763_s5 + $0x980] ss:$16 sps:$4 sm:$0xff]   ;;  %v9355_v40 = vld [vmem:[%s11763_s5 + $0x988] ss:$16 sps:$4 sm:$0xff]  }
 0x29c   : > { %6891 = vmatpush1.bf16.msra.mxu0 %v9268_v41  ;;  %7424 = vmatpush1.bf16.msra.mxu1 %v9271_v42  ;;  %v9360_v41 = vld [vmem:[%s11763_s5 + $0x9a4] ss:$16 sps:$4 sm:$0xff]   ;;  %v9363_v42 = vld [vmem:[%s11763_s5 + $0x9ac] ss:$16 sps:$4 sm:$0xff]  }
 0x29d   : > { %6892 = vmatprep.subr.bf16.mxu0 %v9276_v43  ;;  %7425 = vmatprep.subr.bf16.mxu1 %v9279_v45  ;;  %v9358_v43 = vld [vmem:[%s11763_s5 + $0x9a0] ss:$16 sps:$4 sm:$0xff]   ;;  %v9361_v45 = vld [vmem:[%s11763_s5 + $0x9a8] ss:$16 sps:$4 sm:$0xff]  }
 0x2a0   : > { %6893 = vmatpush1.bf16.msra.mxu0 %v9274_v46  ;;  %7426 = vmatpush1.bf16.msra.mxu1 %v9277_v47  ;;  %v9366_v46 = vld [vmem:[%s11763_s5 + $0x9c4] ss:$16 sps:$4 sm:$0xff]   ;;  %v9369_v47 = vld [vmem:[%s11763_s5 + $0x9cc] ss:$16 sps:$4 sm:$0xff]  }
 0x2a1   : > { %6903 = vmatprep.subr.bf16.mxu0 %v9282_v48  ;;  %7436 = vmatprep.subr.bf16.mxu1 %v9285_v49  ;;  %v9364_v48 = vld [vmem:[%s11763_s5 + $0x9c0] ss:$16 sps:$4 sm:$0xff]   ;;  %v9367_v49 = vld [vmem:[%s11763_s5 + $0x9c8] ss:$16 sps:$4 sm:$0xff]  }
 0x2a3   : > { %6895 = vmatmul.mubr.bf16.vlgmr.msra.gmra.mrb[0].mxu0 %v2676_v51  ;;  %7428 = vmatmul.mubr.bf16.vlgmr.msra.gmra.mrb[0].mxu1 %v2676_v51  ;;  %v9370_v51 = vld [vmem:[%s11763_s5 + $0x9e0] ss:$16 sps:$4 sm:$0xff]  }
 0x2a4   : > { %6904 = vmatpush1.bf16.msra.mxu0 %v9280_v35  ;;  %7437 = vmatpush1.bf16.msra.mxu1 %v9283_v52  ;;  %v9375_v35 = vld [vmem:[%s11763_s5 + $0x9ec] ss:$16 sps:$4 sm:$0xff]   ;;  %v9373_v52 = vld [vmem:[%s11763_s5 + $0x9e8] ss:$16 sps:$4 sm:$0xff]  }
 0x2a5   : > { %6905 = vmatprep.subr.bf16.mxu0 %v9288_v44  ;;  %7438 = vmatprep.subr.bf16.mxu1 %v9291_v53  ;;  %v9378_v44 = vld [vmem:[%s11763_s5 + $0xa04] ss:$16 sps:$4 sm:$0xff]   ;;  %v9381_v53 = vld [vmem:[%s11763_s5 + $0xa0c] ss:$16 sps:$4 sm:$0xff]  }
 0x2a6   : > { %6935 = vmatprep.mubr.bf16.mxu0 %v12081_v54  ;;  %7468 = vmatprep.mubr.bf16.mxu1 %v12081_v54 }
 0x2a8   : > { %6906 = vmatpush1.bf16.msra.mxu0 %v9286_v34  ;;  %7439 = vmatpush1.bf16.msra.mxu1 %v9289_v55  ;;  %v12147_v34 = vrot.slane %v12063_v37, %v11768_v24  ;;  %v9376_v55 = vld [vmem:[%s11763_s5 + $0xa00] ss:$16 sps:$4 sm:$0xff]  }
 0x2a9   : > { %6907 = vmatprep.subr.bf16.mxu0 %v9294_v56  ;;  %7440 = vmatprep.subr.bf16.mxu1 %v9297_v57  ;;  %v9379_v56 = vld [vmem:[%s11763_s5 + $0xa08] ss:$16 sps:$4 sm:$0xff]   ;;  %v9384_v57 = vld [vmem:[%s11763_s5 + $0xa24] ss:$16 sps:$4 sm:$0xff]   ;;  %v9382_v37 = vld [vmem:[%s11763_s5 + $0xa20] ss:$16 sps:$4 sm:$0xff]  }
 0x2ac   : > { %6908 = vmatpush1.bf16.msra.mxu0 %v9292_v58  ;;  %7441 = vmatpush1.bf16.msra.mxu1 %v9295_v59  ;;  %v9387_v58 = vld [vmem:[%s11763_s5 + $0xa2c] ss:$16 sps:$4 sm:$0xff]   ;;  %v2726_v59 = vcombine.high %v12081_v54, %v12081_v54  ;;  %v9388_v54 = vld [vmem:[%s11763_s5 + $0xa40] ss:$16 sps:$4 sm:$0xff]  }
 0x2ad   : > { %6909 = vmatprep.subr.bf16.mxu0 %v9300_v60  ;;  %7442 = vmatprep.subr.bf16.mxu1 %v9303_v61  ;;  %v9385_v60 = vld [vmem:[%s11763_s5 + $0xa28] ss:$16 sps:$4 sm:$0xff]   ;;  %v9390_v61 = vld [vmem:[%s11763_s5 + $0xa44] ss:$16 sps:$4 sm:$0xff]  }
 0x2b0   : > { %6910 = vmatpush1.bf16.msra.mxu0 %v9298_v62  ;;  %7443 = vmatpush1.bf16.msra.mxu1 %v9301_v63  ;;  %v9393_v62 = vld [vmem:[%s11763_s5 + $0xa4c] ss:$16 sps:$4 sm:$0xff]   ;;  %v9391_v63 = vld [vmem:[%s11763_s5 + $0xa48] ss:$16 sps:$4 sm:$0xff]  }
 0x2b1   : > { %6911 = vmatprep.subr.bf16.mxu0 %v9306_v0  ;;  %7444 = vmatprep.subr.bf16.mxu1 %v9309_v1  ;;  %v9396_v0 = vld [vmem:[%s11763_s5 + $0xa64] ss:$16 sps:$4 sm:$0xff]   ;;  %v9399_v1 = vld [vmem:[%s11763_s5 + $0xa6c] ss:$16 sps:$4 sm:$0xff]  }
 0x2b4   : > { %6912 = vmatpush1.bf16.msra.mxu0 %v9304_v2  ;;  %7445 = vmatpush1.bf16.msra.mxu1 %v9307_v3  ;;  %v9394_v2 = vld [vmem:[%s11763_s5 + $0xa60] ss:$16 sps:$4 sm:$0xff]   ;;  %v9397_v3 = vld [vmem:[%s11763_s5 + $0xa68] ss:$16 sps:$4 sm:$0xff]  }
 0x2b5   : > { %6913 = vmatprep.subr.bf16.mxu0 %v9312_v4  ;;  %7446 = vmatprep.subr.bf16.mxu1 %v9315_v5  ;;  %v9402_v4 = vld [vmem:[%s11763_s5 + $0xa84] ss:$16 sps:$4 sm:$0xff]   ;;  %v9405_v5 = vld [vmem:[%s11763_s5 + $0xa8c] ss:$16 sps:$4 sm:$0xff]  }
 0x2b8   : > { %6914 = vmatpush1.bf16.msra.mxu0 %v9310_v6  ;;  %7447 = vmatpush1.bf16.msra.mxu1 %v9313_v7  ;;  %v9400_v6 = vld [vmem:[%s11763_s5 + $0xa80] ss:$16 sps:$4 sm:$0xff]   ;;  %v9403_v7 = vld [vmem:[%s11763_s5 + $0xa88] ss:$16 sps:$4 sm:$0xff]  }
 0x2b9   : > { %6915 = vmatprep.subr.bf16.mxu0 %v9318_v8  ;;  %7448 = vmatprep.subr.bf16.mxu1 %v9321_v9  ;;  %v9408_v8 = vld [vmem:[%s11763_s5 + $0xaa4] ss:$16 sps:$4 sm:$0xff]   ;;  %v9411_v9 = vld [vmem:[%s11763_s5 + $0xaac] ss:$16 sps:$4 sm:$0xff]  }
 0x2bc   : > { %6916 = vmatpush1.bf16.msra.mxu0 %v9316_v10  ;;  %7449 = vmatpush1.bf16.msra.mxu1 %v9319_v11  ;;  %v9406_v10 = vld [vmem:[%s11763_s5 + $0xaa0] ss:$16 sps:$4 sm:$0xff]   ;;  %v9409_v11 = vld [vmem:[%s11763_s5 + $0xaa8] ss:$16 sps:$4 sm:$0xff]  }
 0x2bd   : > { %6917 = vmatprep.subr.bf16.mxu0 %v9324_v12  ;;  %7450 = vmatprep.subr.bf16.mxu1 %v9327_v13  ;;  %v9414_v12 = vld [vmem:[%s11763_s5 + $0xac4] ss:$16 sps:$4 sm:$0xff]   ;;  %v9417_v13 = vld [vmem:[%s11763_s5 + $0xacc] ss:$16 sps:$4 sm:$0xff]  }
 0x2c0   : > { %6918 = vmatpush1.bf16.msra.mxu0 %v9322_v14  ;;  %7451 = vmatpush1.bf16.msra.mxu1 %v9325_v15  ;;  %v9412_v14 = vld [vmem:[%s11763_s5 + $0xac0] ss:$16 sps:$4 sm:$0xff]   ;;  %v9415_v15 = vld [vmem:[%s11763_s5 + $0xac8] ss:$16 sps:$4 sm:$0xff]  }
 0x2c1   : > { %6919 = vmatprep.subr.bf16.mxu0 %v9330_v16  ;;  %7452 = vmatprep.subr.bf16.mxu1 %v9333_v17  ;;  %v9420_v16 = vld [vmem:[%s11763_s5 + $0xae4] ss:$16 sps:$4 sm:$0xff]   ;;  %v9423_v17 = vld [vmem:[%s11763_s5 + $0xaec] ss:$16 sps:$4 sm:$0xff]  }
 0x2c4   : > { %6920 = vmatpush1.bf16.msra.mxu0 %v9328_v18  ;;  %7453 = vmatpush1.bf16.msra.mxu1 %v9331_v21  ;;  %v9418_v18 = vld [vmem:[%s11763_s5 + $0xae0] ss:$16 sps:$4 sm:$0xff]   ;;  %v9421_v21 = vld [vmem:[%s11763_s5 + $0xae8] ss:$16 sps:$4 sm:$0xff]  }
 0x2c5   : > { %6921 = vmatprep.subr.bf16.mxu0 %v9336_v22  ;;  %7454 = vmatprep.subr.bf16.mxu1 %v9339_v23  ;;  %v9426_v22 = vld [vmem:[%s11763_s5 + $0xb04] ss:$16 sps:$4 sm:$0xff]   ;;  %v9429_v23 = vld [vmem:[%s11763_s5 + $0xb0c] ss:$16 sps:$4 sm:$0xff]  }
 0x2c8   : > { %6922 = vmatpush1.bf16.msra.mxu0 %v9334_v25  ;;  %7455 = vmatpush1.bf16.msra.mxu1 %v9337_v26  ;;  %v9424_v25 = vld [vmem:[%s11763_s5 + $0xb00] ss:$16 sps:$4 sm:$0xff]   ;;  %v9427_v26 = vld [vmem:[%s11763_s5 + $0xb08] ss:$16 sps:$4 sm:$0xff]  }
 0x2c9   : > { %6923 = vmatprep.subr.bf16.mxu0 %v9342_v27  ;;  %7456 = vmatprep.subr.bf16.mxu1 %v9345_v29  ;;  %v9432_v27 = vld [vmem:[%s11763_s5 + $0xb24] ss:$16 sps:$4 sm:$0xff]   ;;  %v9435_v29 = vld [vmem:[%s11763_s5 + $0xb2c] ss:$16 sps:$4 sm:$0xff]  }
 0x2cc   : > { %6924 = vmatpush1.bf16.msra.mxu0 %v9340_v30  ;;  %7457 = vmatpush1.bf16.msra.mxu1 %v9343_v31  ;;  %v9430_v30 = vld [vmem:[%s11763_s5 + $0xb20] ss:$16 sps:$4 sm:$0xff]   ;;  %v9433_v31 = vld [vmem:[%s11763_s5 + $0xb28] ss:$16 sps:$4 sm:$0xff]  }
 0x2cd   : > { %6925 = vmatprep.subr.bf16.mxu0 %v9348_v32  ;;  %7458 = vmatprep.subr.bf16.mxu1 %v9351_v33  ;;  %v9438_v32 = vld [vmem:[%s11763_s5 + $0xb44] ss:$16 sps:$4 sm:$0xff]   ;;  %v9441_v33 = vld [vmem:[%s11763_s5 + $0xb4c] ss:$16 sps:$4 sm:$0xff]  }
 0x2d0   : > { %6926 = vmatpush1.bf16.msra.mxu0 %v9346_v36  ;;  %7459 = vmatpush1.bf16.msra.mxu1 %v9349_v38  ;;  %v9436_v36 = vld [vmem:[%s11763_s5 + $0xb40] ss:$16 sps:$4 sm:$0xff]   ;;  %v9439_v38 = vld [vmem:[%s11763_s5 + $0xb48] ss:$16 sps:$4 sm:$0xff]  }
 0x2d1   : > { %6927 = vmatprep.subr.bf16.mxu0 %v9354_v20  ;;  %7460 = vmatprep.subr.bf16.mxu1 %v9357_v39  ;;  %v9444_v20 = vld [vmem:[%s11763_s5 + $0xb64] ss:$16 sps:$4 sm:$0xff]   ;;  %v9447_v39 = vld [vmem:[%s11763_s5 + $0xb6c] ss:$16 sps:$4 sm:$0xff]  }
 0x2d4   : > { %6928 = vmatpush1.bf16.msra.mxu0 %v9352_v28  ;;  %7461 = vmatpush1.bf16.msra.mxu1 %v9355_v40  ;;  %v9442_v28 = vld [vmem:[%s11763_s5 + $0xb60] ss:$16 sps:$4 sm:$0xff]   ;;  %v9445_v40 = vld [vmem:[%s11763_s5 + $0xb68] ss:$16 sps:$4 sm:$0xff]  }
 0x2d5   : > { %6929 = vmatprep.subr.bf16.mxu0 %v9360_v41  ;;  %7462 = vmatprep.subr.bf16.mxu1 %v9363_v42  ;;  %v9450_v41 = vld [vmem:[%s11763_s5 + $0xb84] ss:$16 sps:$4 sm:$0xff]   ;;  %v9453_v42 = vld [vmem:[%s11763_s5 + $0xb8c] ss:$16 sps:$4 sm:$0xff]  }
 0x2d8   : > { %6930 = vmatpush1.bf16.msra.mxu0 %v9358_v43  ;;  %7463 = vmatpush1.bf16.msra.mxu1 %v9361_v45  ;;  %v9448_v43 = vld [vmem:[%s11763_s5 + $0xb80] ss:$16 sps:$4 sm:$0xff]   ;;  %v9451_v45 = vld [vmem:[%s11763_s5 + $0xb88] ss:$16 sps:$4 sm:$0xff]  }
 0x2d9   : > { %6931 = vmatprep.subr.bf16.mxu0 %v9366_v46  ;;  %7464 = vmatprep.subr.bf16.mxu1 %v9369_v47  ;;  %v9456_v46 = vld [vmem:[%s11763_s5 + $0xba4] ss:$16 sps:$4 sm:$0xff]   ;;  %v9459_v47 = vld [vmem:[%s11763_s5 + $0xbac] ss:$16 sps:$4 sm:$0xff]  }
 0x2dc   : > { %6932 = vmatpush1.bf16.msra.mxu0 %v9364_v48  ;;  %7465 = vmatpush1.bf16.msra.mxu1 %v9367_v49  ;;  %v9454_v48 = vld [vmem:[%s11763_s5 + $0xba0] ss:$16 sps:$4 sm:$0xff]   ;;  %v9457_v49 = vld [vmem:[%s11763_s5 + $0xba8] ss:$16 sps:$4 sm:$0xff]  }
 0x2dd   : > { %6933 = vmatprep.subr.bf16.mxu0 %v9372_v50  ;;  %7466 = vmatprep.subr.bf16.mxu1 %v9375_v35  ;;  %v9462_v50 = vld [vmem:[%s11763_s5 + $0xbc4] ss:$16 sps:$4 sm:$0xff]   ;;  %v9465_v35 = vld [vmem:[%s11763_s5 + $0xbcc] ss:$16 sps:$4 sm:$0xff]  }
 0x2e0   : > { %6934 = vmatpush1.bf16.msra.mxu0 %v9370_v51  ;;  %7467 = vmatpush1.bf16.msra.mxu1 %v9373_v52  ;;  %v10074_v51 = vld [vmem:[%s12724_s0 + $0x8] sm:$0xff] }
 0x2e1   : > { %6944 = vmatprep.subr.bf16.mxu0 %v9378_v44  ;;  %7477 = vmatprep.subr.bf16.mxu1 %v9381_v53  ;;  %v2679_v52 = vcombine.high %v10074_v51, %v10074_v51  ;;  %v9460_v44 = vld [vmem:[%s11763_s5 + $0xbc0] ss:$16 sps:$4 sm:$0xff]   ;;  %v9463_v53 = vld [vmem:[%s11763_s5 + $0xbc8] ss:$16 sps:$4 sm:$0xff]  }
 0x2e2   : > { %v9544_v51 = vld [vmem:[%s11763_s5 + $0xd80] ss:$16 sps:$4 sm:$0xff]  }
 0x2e3   : > { %6936 = vmatmul.mubr.bf16.vlgmr.msra.gmra.mrb[0].mxu0 %v12147_v34  ;;  %7469 = vmatmul.mubr.bf16.vlgmr.msra.gmra.mrb[0].mxu1 %v12147_v34 }
 0x2e4   : > { %6945 = vmatpush1.bf16.msra.mxu0 %v9376_v55  ;;  %7478 = vmatpush1.bf16.msra.mxu1 %v9379_v56  ;;  %v9468_v55 = vld [vmem:[%s11763_s5 + $0xbe4] ss:$16 sps:$4 sm:$0xff]   ;;  %v9471_v56 = vld [vmem:[%s11763_s5 + $0xbec] ss:$16 sps:$4 sm:$0xff]  }
 0x2e5   : > { %6946 = vmatprep.subr.bf16.mxu0 %v9384_v57  ;;  %7479 = vmatprep.subr.bf16.mxu1 %v9387_v58  ;;  %v12217_v57 = vrot.slane %v2679_v52, %v11768_v24  ;;  %v9466_v58 = vld [vmem:[%s11763_s5 + $0xbe0] ss:$16 sps:$4 sm:$0xff]   ;;  %v9547_v52 = vld [vmem:[%s11763_s5 + $0xd88] ss:$16 sps:$4 sm:$0xff]  }
 0x2e6   : > { %6976 = vmatprep.mubr.bf16.mxu0 %v2726_v59  ;;  %7509 = vmatprep.mubr.bf16.mxu1 %v2726_v59  ;;  %v9469_v59 = vld [vmem:[%s11763_s5 + $0xbe8] ss:$16 sps:$4 sm:$0xff]  }
 0x2e8   : > { %6947 = vmatpush1.bf16.msra.mxu0 %v9382_v37  ;;  %7480 = vmatpush1.bf16.msra.mxu1 %v9385_v60  ;;  %v9474_v37 = vld [vmem:[%s11763_s5 + $0xc04] ss:$16 sps:$4 sm:$0xff]   ;;  %v9477_v60 = vld [vmem:[%s11763_s5 + $0xc0c] ss:$16 sps:$4 sm:$0xff]  }
 0x2e9   : > { %6948 = vmatprep.subr.bf16.mxu0 %v9390_v61  ;;  %7481 = vmatprep.subr.bf16.mxu1 %v9393_v62  ;;  %v2695_v61 = vcombine.high %v12217_v57, %v12217_v57  ;;  %v2724_v62 = vcombine.high %v12147_v34, %v12147_v34  ;;  %v9478_v34 = vld [vmem:[%s11763_s5 + $0xc20] ss:$16 sps:$4 sm:$0xff]  }
 0x2ec   : > { %6949 = vmatpush1.bf16.msra.mxu0 %v9388_v54  ;;  %7482 = vmatpush1.bf16.msra.mxu1 %v9391_v63  ;;  %v9472_v54 = vld [vmem:[%s11763_s5 + $0xc00] ss:$16 sps:$4 sm:$0xff]   ;;  %v9475_v63 = vld [vmem:[%s11763_s5 + $0xc08] ss:$16 sps:$4 sm:$0xff]  }
 0x2ed   : > { %6950 = vmatprep.subr.bf16.mxu0 %v9396_v0  ;;  %7483 = vmatprep.subr.bf16.mxu1 %v9399_v1  ;;  %v9480_v0 = vld [vmem:[%s11763_s5 + $0xc24] ss:$16 sps:$4 sm:$0xff]   ;;  %v9483_v1 = vld [vmem:[%s11763_s5 + $0xc2c] ss:$16 sps:$4 sm:$0xff]  }
 0x2f0   : > { %6951 = vmatpush1.bf16.msra.mxu0 %v9394_v2  ;;  %7484 = vmatpush1.bf16.msra.mxu1 %v9397_v3  ;;  %v12232_v2 = vrot.slane %v2695_v61, %v11768_v24  ;;  %v9481_v3 = vld [vmem:[%s11763_s5 + $0xc28] ss:$16 sps:$4 sm:$0xff]   ;;  %v9564_v61 = vld [vmem:[%s11763_s5 + $0xde4] ss:$16 sps:$4 sm:$0xff]  }
 0x2f1   : > { %6952 = vmatprep.subr.bf16.mxu0 %v9402_v4  ;;  %7485 = vmatprep.subr.bf16.mxu1 %v9405_v5  ;;  %v9486_v4 = vld [vmem:[%s11763_s5 + $0xc44] ss:$16 sps:$4 sm:$0xff]   ;;  %v9489_v5 = vld [vmem:[%s11763_s5 + $0xc4c] ss:$16 sps:$4 sm:$0xff]  }
 0x2f4   : > { %6953 = vmatpush1.bf16.msra.mxu0 %v9400_v6  ;;  %7486 = vmatpush1.bf16.msra.mxu1 %v9403_v7  ;;  %v9484_v6 = vld [vmem:[%s11763_s5 + $0xc40] ss:$16 sps:$4 sm:$0xff]   ;;  %v9487_v7 = vld [vmem:[%s11763_s5 + $0xc48] ss:$16 sps:$4 sm:$0xff]  }
 0x2f5   : > { %6954 = vmatprep.subr.bf16.mxu0 %v9408_v8  ;;  %7487 = vmatprep.subr.bf16.mxu1 %v9411_v9  ;;  %v9492_v8 = vld [vmem:[%s11763_s5 + $0xc64] ss:$16 sps:$4 sm:$0xff]   ;;  %v9495_v9 = vld [vmem:[%s11763_s5 + $0xc6c] ss:$16 sps:$4 sm:$0xff]  }
 0x2f8   : > { %6955 = vmatpush1.bf16.msra.mxu0 %v9406_v10  ;;  %7488 = vmatpush1.bf16.msra.mxu1 %v9409_v11  ;;  %v9490_v10 = vld [vmem:[%s11763_s5 + $0xc60] ss:$16 sps:$4 sm:$0xff]   ;;  %v9493_v11 = vld [vmem:[%s11763_s5 + $0xc68] ss:$16 sps:$4 sm:$0xff]  }
 0x2f9   : > { %6956 = vmatprep.subr.bf16.mxu0 %v9414_v12  ;;  %7489 = vmatprep.subr.bf16.mxu1 %v9417_v13  ;;  %v9498_v12 = vld [vmem:[%s11763_s5 + $0xc84] ss:$16 sps:$4 sm:$0xff]   ;;  %v9501_v13 = vld [vmem:[%s11763_s5 + $0xc8c] ss:$16 sps:$4 sm:$0xff]  }
 0x2fc   : > { %6957 = vmatpush1.bf16.msra.mxu0 %v9412_v14  ;;  %7490 = vmatpush1.bf16.msra.mxu1 %v9415_v15  ;;  %v9496_v14 = vld [vmem:[%s11763_s5 + $0xc80] ss:$16 sps:$4 sm:$0xff]   ;;  %v9499_v15 = vld [vmem:[%s11763_s5 + $0xc88] ss:$16 sps:$4 sm:$0xff]  }
 0x2fd   : > { %6958 = vmatprep.subr.bf16.mxu0 %v9420_v16  ;;  %7491 = vmatprep.subr.bf16.mxu1 %v9423_v17  ;;  %v9504_v16 = vld [vmem:[%s11763_s5 + $0xca4] ss:$16 sps:$4 sm:$0xff]   ;;  %v9507_v17 = vld [vmem:[%s11763_s5 + $0xcac] ss:$16 sps:$4 sm:$0xff]  }
 0x300   : > { %6959 = vmatpush1.bf16.msra.mxu0 %v9418_v18  ;;  %7492 = vmatpush1.bf16.msra.mxu1 %v9421_v21  ;;  %v9502_v18 = vld [vmem:[%s11763_s5 + $0xca0] ss:$16 sps:$4 sm:$0xff]   ;;  %v9505_v21 = vld [vmem:[%s11763_s5 + $0xca8] ss:$16 sps:$4 sm:$0xff]  }
 0x301   : > { %6960 = vmatprep.subr.bf16.mxu0 %v9426_v22  ;;  %7493 = vmatprep.subr.bf16.mxu1 %v9429_v23  ;;  %v9510_v22 = vld [vmem:[%s11763_s5 + $0xcc4] ss:$16 sps:$4 sm:$0xff]   ;;  %v9513_v23 = vld [vmem:[%s11763_s5 + $0xccc] ss:$16 sps:$4 sm:$0xff]  }
 0x304   : > { %6961 = vmatpush1.bf16.msra.mxu0 %v9424_v25  ;;  %7494 = vmatpush1.bf16.msra.mxu1 %v9427_v26  ;;  %v9508_v25 = vld [vmem:[%s11763_s5 + $0xcc0] ss:$16 sps:$4 sm:$0xff]   ;;  %v9511_v26 = vld [vmem:[%s11763_s5 + $0xcc8] ss:$16 sps:$4 sm:$0xff]  }
 0x305   : > { %6962 = vmatprep.subr.bf16.mxu0 %v9432_v27  ;;  %7495 = vmatprep.subr.bf16.mxu1 %v9435_v29  ;;  %v9516_v27 = vld [vmem:[%s11763_s5 + $0xce4] ss:$16 sps:$4 sm:$0xff]   ;;  %v9519_v29 = vld [vmem:[%s11763_s5 + $0xcec] ss:$16 sps:$4 sm:$0xff]  }
 0x308   : > { %6963 = vmatpush1.bf16.msra.mxu0 %v9430_v30  ;;  %7496 = vmatpush1.bf16.msra.mxu1 %v9433_v31  ;;  %v9514_v30 = vld [vmem:[%s11763_s5 + $0xce0] ss:$16 sps:$4 sm:$0xff]   ;;  %v9517_v31 = vld [vmem:[%s11763_s5 + $0xce8] ss:$16 sps:$4 sm:$0xff]  }
 0x309   : > { %6964 = vmatprep.subr.bf16.mxu0 %v9438_v32  ;;  %7497 = vmatprep.subr.bf16.mxu1 %v9441_v33  ;;  %v9522_v32 = vld [vmem:[%s11763_s5 + $0xd04] ss:$16 sps:$4 sm:$0xff]   ;;  %v9525_v33 = vld [vmem:[%s11763_s5 + $0xd0c] ss:$16 sps:$4 sm:$0xff]  }
 0x30c   : > { %6965 = vmatpush1.bf16.msra.mxu0 %v9436_v36  ;;  %7498 = vmatpush1.bf16.msra.mxu1 %v9439_v38  ;;  %v9520_v36 = vld [vmem:[%s11763_s5 + $0xd00] ss:$16 sps:$4 sm:$0xff]   ;;  %v9523_v38 = vld [vmem:[%s11763_s5 + $0xd08] ss:$16 sps:$4 sm:$0xff]  }
 0x30d   : > { %6966 = vmatprep.subr.bf16.mxu0 %v9444_v20  ;;  %7499 = vmatprep.subr.bf16.mxu1 %v9447_v39  ;;  %v9528_v20 = vld [vmem:[%s11763_s5 + $0xd24] ss:$16 sps:$4 sm:$0xff]   ;;  %v9531_v39 = vld [vmem:[%s11763_s5 + $0xd2c] ss:$16 sps:$4 sm:$0xff]  }
 0x310   : > { %6967 = vmatpush1.bf16.msra.mxu0 %v9442_v28  ;;  %7500 = vmatpush1.bf16.msra.mxu1 %v9445_v40  ;;  %v9526_v28 = vld [vmem:[%s11763_s5 + $0xd20] ss:$16 sps:$4 sm:$0xff]   ;;  %v9529_v40 = vld [vmem:[%s11763_s5 + $0xd28] ss:$16 sps:$4 sm:$0xff]  }
 0x311   : > { %6968 = vmatprep.subr.bf16.mxu0 %v9450_v41  ;;  %7501 = vmatprep.subr.bf16.mxu1 %v9453_v42  ;;  %v9534_v41 = vld [vmem:[%s11763_s5 + $0xd44] ss:$16 sps:$4 sm:$0xff]   ;;  %v9537_v42 = vld [vmem:[%s11763_s5 + $0xd4c] ss:$16 sps:$4 sm:$0xff]  }
 0x314   : > { %6969 = vmatpush1.bf16.msra.mxu0 %v9448_v43  ;;  %7502 = vmatpush1.bf16.msra.mxu1 %v9451_v45  ;;  %v9532_v43 = vld [vmem:[%s11763_s5 + $0xd40] ss:$16 sps:$4 sm:$0xff]   ;;  %v9535_v45 = vld [vmem:[%s11763_s5 + $0xd48] ss:$16 sps:$4 sm:$0xff]  }
 0x315   : > { %6970 = vmatprep.subr.bf16.mxu0 %v9456_v46  ;;  %7503 = vmatprep.subr.bf16.mxu1 %v9459_v47  ;;  %v9540_v46 = vld [vmem:[%s11763_s5 + $0xd64] ss:$16 sps:$4 sm:$0xff]   ;;  %v9543_v47 = vld [vmem:[%s11763_s5 + $0xd6c] ss:$16 sps:$4 sm:$0xff]  }
 0x318   : > { %6971 = vmatpush1.bf16.msra.mxu0 %v9454_v48  ;;  %7504 = vmatpush1.bf16.msra.mxu1 %v9457_v49  ;;  %v9538_v48 = vld [vmem:[%s11763_s5 + $0xd60] ss:$16 sps:$4 sm:$0xff]   ;;  %v9541_v49 = vld [vmem:[%s11763_s5 + $0xd68] ss:$16 sps:$4 sm:$0xff]  }
 0x319   : > { %6972 = vmatprep.subr.bf16.mxu0 %v9462_v50  ;;  %7505 = vmatprep.subr.bf16.mxu1 %v9465_v35  ;;  %v9546_v50 = vld [vmem:[%s11763_s5 + $0xd84] ss:$16 sps:$4 sm:$0xff]   ;;  %v9549_v35 = vld [vmem:[%s11763_s5 + $0xd8c] ss:$16 sps:$4 sm:$0xff]  }
 0x31c   : > { %6973 = vmatpush1.bf16.msra.mxu0 %v9460_v44  ;;  %7506 = vmatpush1.bf16.msra.mxu1 %v9463_v53  ;;  %v9552_v44 = vld [vmem:[%s11763_s5 + $0xda4] ss:$16 sps:$4 sm:$0xff]   ;;  %v9555_v53 = vld [vmem:[%s11763_s5 + $0xdac] ss:$16 sps:$4 sm:$0xff]  }
 0x31d   : > { %6974 = vmatprep.subr.bf16.mxu0 %v9468_v55  ;;  %7507 = vmatprep.subr.bf16.mxu1 %v9471_v56  ;;  %v9550_v55 = vld [vmem:[%s11763_s5 + $0xda0] ss:$16 sps:$4 sm:$0xff]   ;;  %v9553_v56 = vld [vmem:[%s11763_s5 + $0xda8] ss:$16 sps:$4 sm:$0xff]  }
 0x320   : > { %6975 = vmatpush1.bf16.msra.mxu0 %v9466_v58  ;;  %7508 = vmatpush1.bf16.msra.mxu1 %v9469_v59  ;;  %v9558_v58 = vld [vmem:[%s11763_s5 + $0xdc4] ss:$16 sps:$4 sm:$0xff]   ;;  %v9561_v59 = vld [vmem:[%s11763_s5 + $0xdcc] ss:$16 sps:$4 sm:$0xff]  }
 0x321   : > { %6985 = vmatprep.subr.bf16.mxu0 %v9474_v37  ;;  %7518 = vmatprep.subr.bf16.mxu1 %v9477_v60  ;;  %v9556_v37 = vld [vmem:[%s11763_s5 + $0xdc0] ss:$16 sps:$4 sm:$0xff]   ;;  %v9559_v60 = vld [vmem:[%s11763_s5 + $0xdc8] ss:$16 sps:$4 sm:$0xff]  }
 0x323   : > { %6977 = vmatmul.mubr.bf16.vlgmr.msra.gmra.mrb[0].mxu0 %v2724_v62  ;;  %7510 = vmatmul.mubr.bf16.vlgmr.msra.gmra.mrb[0].mxu1 %v2724_v62  ;;  %v9567_v62 = vld [vmem:[%s11763_s5 + $0xdec] ss:$16 sps:$4 sm:$0xff]  }
 0x324   : > { %6986 = vmatpush1.bf16.msra.mxu0 %v9472_v54  ;;  %7519 = vmatpush1.bf16.msra.mxu1 %v9475_v63  ;;  %v9562_v54 = vld [vmem:[%s11763_s5 + $0xde0] ss:$16 sps:$4 sm:$0xff]   ;;  %v9565_v63 = vld [vmem:[%s11763_s5 + $0xde8] ss:$16 sps:$4 sm:$0xff]  }
 0x325   : > { %6987 = vmatprep.subr.bf16.mxu0 %v9480_v0  ;;  %7520 = vmatprep.subr.bf16.mxu1 %v9483_v1  ;;  %v9571_v0 = vld [vmem:[%s11763_s5 + $0xe04] ss:$16 sps:$4 sm:$0xff]   ;;  %v9574_v1 = vld [vmem:[%s11763_s5 + $0xe0c] ss:$16 sps:$4 sm:$0xff]  }
 0x326   : > { %7017 = vmatprep.mubr.bf16.mxu0 %v12232_v2  ;;  %7550 = vmatprep.mubr.bf16.mxu1 %v12232_v2 }
 0x328   : > { %6988 = vmatpush1.bf16.msra.mxu0 %v9478_v34  ;;  %7521 = vmatpush1.bf16.msra.mxu1 %v9481_v3  ;;  %v12298_v34 = vrot.slane %v12217_v57, %v11768_v24  ;;  %v9569_v3 = vld [vmem:[%s11763_s5 + $0xe00] ss:$16 sps:$4 sm:$0xff]  }
 0x329   : > { %6989 = vmatprep.subr.bf16.mxu0 %v9486_v4  ;;  %7522 = vmatprep.subr.bf16.mxu1 %v9489_v5  ;;  %v9572_v4 = vld [vmem:[%s11763_s5 + $0xe08] ss:$16 sps:$4 sm:$0xff]   ;;  %v9577_v5 = vld [vmem:[%s11763_s5 + $0xe24] ss:$16 sps:$4 sm:$0xff]   ;;  %v9575_v57 = vld [vmem:[%s11763_s5 + $0xe20] ss:$16 sps:$4 sm:$0xff]  }
 0x32c   : > { %6990 = vmatpush1.bf16.msra.mxu0 %v9484_v6  ;;  %7523 = vmatpush1.bf16.msra.mxu1 %v9487_v7  ;;  %v9580_v6 = vld [vmem:[%s11763_s5 + $0xe2c] ss:$16 sps:$4 sm:$0xff]   ;;  %v2727_v7 = vcombine.high %v12232_v2, %v12232_v2  ;;  %v9581_v2 = vld [vmem:[%s11763_s5 + $0xe40] ss:$16 sps:$4 sm:$0xff]  }
 0x32d   : > { %6991 = vmatprep.subr.bf16.mxu0 %v9492_v8  ;;  %7524 = vmatprep.subr.bf16.mxu1 %v9495_v9  ;;  %v9578_v8 = vld [vmem:[%s11763_s5 + $0xe28] ss:$16 sps:$4 sm:$0xff]   ;;  %v9583_v9 = vld [vmem:[%s11763_s5 + $0xe44] ss:$16 sps:$4 sm:$0xff]  }
 0x330   : > { %6992 = vmatpush1.bf16.msra.mxu0 %v9490_v10  ;;  %7525 = vmatpush1.bf16.msra.mxu1 %v9493_v11  ;;  %v9586_v10 = vld [vmem:[%s11763_s5 + $0xe4c] ss:$16 sps:$4 sm:$0xff]   ;;  %v9584_v11 = vld [vmem:[%s11763_s5 + $0xe48] ss:$16 sps:$4 sm:$0xff]  }
 0x331   : > { %6993 = vmatprep.subr.bf16.mxu0 %v9498_v12  ;;  %7526 = vmatprep.subr.bf16.mxu1 %v9501_v13  ;;  %v9589_v12 = vld [vmem:[%s11763_s5 + $0xe64] ss:$16 sps:$4 sm:$0xff]   ;;  %v9592_v13 = vld [vmem:[%s11763_s5 + $0xe6c] ss:$16 sps:$4 sm:$0xff]  }
 0x334   : > { %6994 = vmatpush1.bf16.msra.mxu0 %v9496_v14  ;;  %7527 = vmatpush1.bf16.msra.mxu1 %v9499_v15  ;;  %v9587_v14 = vld [vmem:[%s11763_s5 + $0xe60] ss:$16 sps:$4 sm:$0xff]   ;;  %v9590_v15 = vld [vmem:[%s11763_s5 + $0xe68] ss:$16 sps:$4 sm:$0xff]  }
 0x335   : > { %6995 = vmatprep.subr.bf16.mxu0 %v9504_v16  ;;  %7528 = vmatprep.subr.bf16.mxu1 %v9507_v17  ;;  %v9595_v16 = vld [vmem:[%s11763_s5 + $0xe84] ss:$16 sps:$4 sm:$0xff]   ;;  %v9598_v17 = vld [vmem:[%s11763_s5 + $0xe8c] ss:$16 sps:$4 sm:$0xff]  }
 0x338   : > { %6996 = vmatpush1.bf16.msra.mxu0 %v9502_v18  ;;  %7529 = vmatpush1.bf16.msra.mxu1 %v9505_v21  ;;  %v9593_v18 = vld [vmem:[%s11763_s5 + $0xe80] ss:$16 sps:$4 sm:$0xff]   ;;  %v9596_v21 = vld [vmem:[%s11763_s5 + $0xe88] ss:$16 sps:$4 sm:$0xff]  }
 0x339   : > { %6997 = vmatprep.subr.bf16.mxu0 %v9510_v22  ;;  %7530 = vmatprep.subr.bf16.mxu1 %v9513_v23  ;;  %v9601_v22 = vld [vmem:[%s11763_s5 + $0xea4] ss:$16 sps:$4 sm:$0xff]   ;;  %v9604_v23 = vld [vmem:[%s11763_s5 + $0xeac] ss:$16 sps:$4 sm:$0xff]  }
 0x33c   : > { %6998 = vmatpush1.bf16.msra.mxu0 %v9508_v25  ;;  %7531 = vmatpush1.bf16.msra.mxu1 %v9511_v26  ;;  %v9599_v25 = vld [vmem:[%s11763_s5 + $0xea0] ss:$16 sps:$4 sm:$0xff]   ;;  %v9602_v26 = vld [vmem:[%s11763_s5 + $0xea8] ss:$16 sps:$4 sm:$0xff]  }
 0x33d   : > { %6999 = vmatprep.subr.bf16.mxu0 %v9516_v27  ;;  %7532 = vmatprep.subr.bf16.mxu1 %v9519_v29  ;;  %v9607_v27 = vld [vmem:[%s11763_s5 + $0xec4] ss:$16 sps:$4 sm:$0xff]   ;;  %v9610_v29 = vld [vmem:[%s11763_s5 + $0xecc] ss:$16 sps:$4 sm:$0xff]  }
 0x340   : > { %7000 = vmatpush1.bf16.msra.mxu0 %v9514_v30  ;;  %7533 = vmatpush1.bf16.msra.mxu1 %v9517_v31  ;;  %v9605_v30 = vld [vmem:[%s11763_s5 + $0xec0] ss:$16 sps:$4 sm:$0xff]   ;;  %v9608_v31 = vld [vmem:[%s11763_s5 + $0xec8] ss:$16 sps:$4 sm:$0xff]  }
 0x341   : > { %7001 = vmatprep.subr.bf16.mxu0 %v9522_v32  ;;  %7534 = vmatprep.subr.bf16.mxu1 %v9525_v33  ;;  %v9613_v32 = vld [vmem:[%s11763_s5 + $0xee4] ss:$16 sps:$4 sm:$0xff]   ;;  %v9616_v33 = vld [vmem:[%s11763_s5 + $0xeec] ss:$16 sps:$4 sm:$0xff]  }
 0x344   : > { %7002 = vmatpush1.bf16.msra.mxu0 %v9520_v36  ;;  %7535 = vmatpush1.bf16.msra.mxu1 %v9523_v38  ;;  %v9611_v36 = vld [vmem:[%s11763_s5 + $0xee0] ss:$16 sps:$4 sm:$0xff]   ;;  %v9614_v38 = vld [vmem:[%s11763_s5 + $0xee8] ss:$16 sps:$4 sm:$0xff]  }
 0x345   : > { %7003 = vmatprep.subr.bf16.mxu0 %v9528_v20  ;;  %7536 = vmatprep.subr.bf16.mxu1 %v9531_v39  ;;  %v9619_v20 = vld [vmem:[%s11763_s5 + $0xf04] ss:$16 sps:$4 sm:$0xff]   ;;  %v9622_v39 = vld [vmem:[%s11763_s5 + $0xf0c] ss:$16 sps:$4 sm:$0xff]  }
 0x348   : > { %7004 = vmatpush1.bf16.msra.mxu0 %v9526_v28  ;;  %7537 = vmatpush1.bf16.msra.mxu1 %v9529_v40  ;;  %v9617_v28 = vld [vmem:[%s11763_s5 + $0xf00] ss:$16 sps:$4 sm:$0xff]   ;;  %v9620_v40 = vld [vmem:[%s11763_s5 + $0xf08] ss:$16 sps:$4 sm:$0xff]  }
 0x349   : > { %7005 = vmatprep.subr.bf16.mxu0 %v9534_v41  ;;  %7538 = vmatprep.subr.bf16.mxu1 %v9537_v42  ;;  %v9625_v41 = vld [vmem:[%s11763_s5 + $0xf24] ss:$16 sps:$4 sm:$0xff]   ;;  %v9628_v42 = vld [vmem:[%s11763_s5 + $0xf2c] ss:$16 sps:$4 sm:$0xff]  }
 0x34c   : > { %7006 = vmatpush1.bf16.msra.mxu0 %v9532_v43  ;;  %7539 = vmatpush1.bf16.msra.mxu1 %v9535_v45  ;;  %v9623_v43 = vld [vmem:[%s11763_s5 + $0xf20] ss:$16 sps:$4 sm:$0xff]   ;;  %v9626_v45 = vld [vmem:[%s11763_s5 + $0xf28] ss:$16 sps:$4 sm:$0xff]  }
 0x34d   : > { %7007 = vmatprep.subr.bf16.mxu0 %v9540_v46  ;;  %7540 = vmatprep.subr.bf16.mxu1 %v9543_v47  ;;  %v9631_v46 = vld [vmem:[%s11763_s5 + $0xf44] ss:$16 sps:$4 sm:$0xff]   ;;  %v9634_v47 = vld [vmem:[%s11763_s5 + $0xf4c] ss:$16 sps:$4 sm:$0xff]  }
 0x350   : > { %7008 = vmatpush1.bf16.msra.mxu0 %v9538_v48  ;;  %7541 = vmatpush1.bf16.msra.mxu1 %v9541_v49  ;;  %v9629_v48 = vld [vmem:[%s11763_s5 + $0xf40] ss:$16 sps:$4 sm:$0xff]   ;;  %v9632_v49 = vld [vmem:[%s11763_s5 + $0xf48] ss:$16 sps:$4 sm:$0xff]  }
 0x351   : > { %7009 = vmatprep.subr.bf16.mxu0 %v9546_v50  ;;  %7542 = vmatprep.subr.bf16.mxu1 %v9549_v35  ;;  %v9637_v50 = vld [vmem:[%s11763_s5 + $0xf64] ss:$16 sps:$4 sm:$0xff]   ;;  %v9640_v35 = vld [vmem:[%s11763_s5 + $0xf6c] ss:$16 sps:$4 sm:$0xff]  }
 0x354   : > { %7010 = vmatpush1.bf16.msra.mxu0 %v9544_v51  ;;  %7543 = vmatpush1.bf16.msra.mxu1 %v9547_v52  ;;  %v9635_v51 = vld [vmem:[%s11763_s5 + $0xf60] ss:$16 sps:$4 sm:$0xff]   ;;  %v9638_v52 = vld [vmem:[%s11763_s5 + $0xf68] ss:$16 sps:$4 sm:$0xff]  }
 0x355   : > { %7011 = vmatprep.subr.bf16.mxu0 %v9552_v44  ;;  %7544 = vmatprep.subr.bf16.mxu1 %v9555_v53  ;;  %v9643_v44 = vld [vmem:[%s11763_s5 + $0xf84] ss:$16 sps:$4 sm:$0xff]   ;;  %v9646_v53 = vld [vmem:[%s11763_s5 + $0xf8c] ss:$16 sps:$4 sm:$0xff]  }
 0x358   : > { %7012 = vmatpush1.bf16.msra.mxu0 %v9550_v55  ;;  %7545 = vmatpush1.bf16.msra.mxu1 %v9553_v56  ;;  %v9641_v55 = vld [vmem:[%s11763_s5 + $0xf80] ss:$16 sps:$4 sm:$0xff]   ;;  %v9644_v56 = vld [vmem:[%s11763_s5 + $0xf88] ss:$16 sps:$4 sm:$0xff]  }
 0x359   : > { %7013 = vmatprep.subr.bf16.mxu0 %v9558_v58  ;;  %7546 = vmatprep.subr.bf16.mxu1 %v9561_v59  ;;  %v9649_v58 = vld [vmem:[%s11763_s5 + $0xfa4] ss:$16 sps:$4 sm:$0xff]   ;;  %v9652_v59 = vld [vmem:[%s11763_s5 + $0xfac] ss:$16 sps:$4 sm:$0xff]  }
 0x35c   : > { %7014 = vmatpush1.bf16.msra.mxu0 %v9556_v37  ;;  %7547 = vmatpush1.bf16.msra.mxu1 %v9559_v60  ;;  %v9647_v37 = vld [vmem:[%s11763_s5 + $0xfa0] ss:$16 sps:$4 sm:$0xff]   ;;  %v9650_v60 = vld [vmem:[%s11763_s5 + $0xfa8] ss:$16 sps:$4 sm:$0xff]  }
 0x35d   : > { %7015 = vmatprep.subr.bf16.mxu0 %v9564_v61  ;;  %7548 = vmatprep.subr.bf16.mxu1 %v9567_v62  ;;  %v9655_v61 = vld [vmem:[%s11763_s5 + $0xfc4] ss:$16 sps:$4 sm:$0xff]   ;;  %v9658_v62 = vld [vmem:[%s11763_s5 + $0xfcc] ss:$16 sps:$4 sm:$0xff]  }
 0x360   : > { %7016 = vmatpush1.bf16.msra.mxu0 %v9562_v54  ;;  %7549 = vmatpush1.bf16.msra.mxu1 %v9565_v63  ;;  %v12363_v54 = vld [vmem:[%s12724_s0 + $0x10] sm:$0xff] }
 0x361   : > { %7026 = vmatprep.subr.bf16.mxu0 %v9571_v0  ;;  %7559 = vmatprep.subr.bf16.mxu1 %v9574_v1  ;;  %v9653_v63 = vld [vmem:[%s11763_s5 + $0xfc0] ss:$16 sps:$4 sm:$0xff]   ;;  %v9656_v0 = vld [vmem:[%s11763_s5 + $0xfc8] ss:$16 sps:$4 sm:$0xff]   ;;  %v9661_v1 = vld [vmem:[%s11763_s5 + $0xfe4] ss:$16 sps:$4 sm:$0xff]  }
 0x363   : > { %7018 = vmatmul.mubr.bf16.vlgmr.msra.gmra.mrb[0].mxu0 %v12298_v34  ;;  %7551 = vmatmul.mubr.bf16.vlgmr.msra.gmra.mrb[0].mxu1 %v12298_v34 }
 0x364   : > { %7027 = vmatpush1.bf16.msra.mxu0 %v9569_v3  ;;  %7560 = vmatpush1.bf16.msra.mxu1 %v9572_v4  ;;  %v9664_v3 = vld [vmem:[%s11763_s5 + $0xfec] ss:$16 sps:$4 sm:$0xff]   ;;  %v12371_v4 = vrot.slane %v12363_v54, %v11768_v24 }
 0x365   : > { %7028 = vmatprep.subr.bf16.mxu0 %v9577_v5  ;;  %7561 = vmatprep.subr.bf16.mxu1 %v9580_v6  ;;  %v9659_v5 = vld [vmem:[%s11763_s5 + $0xfe0] ss:$16 sps:$4 sm:$0xff]   ;;  %v9662_v6 = vld [vmem:[%s11763_s5 + $0xfe8] ss:$16 sps:$4 sm:$0xff]  }
 0x366   : > { %7058 = vmatprep.mubr.bf16.mxu0 %v2727_v7  ;;  %7591 = vmatprep.mubr.bf16.mxu1 %v2727_v7  ;;  %v9667_v7 = vld [vmem:[%s11763_s5 + $0x1004] ss:$16 sps:$4 sm:$0xff]  }
 0x368   : > { %7029 = vmatpush1.bf16.msra.mxu0 %v9575_v57  ;;  %7562 = vmatpush1.bf16.msra.mxu1 %v9578_v8  ;;  %v9670_v57 = vld [vmem:[%s11763_s5 + $0x100c] ss:$16 sps:$4 sm:$0xff]   ;;  %v2743_v8 = vcombine.high %v12371_v4, %v12371_v4 }
 0x369   : > { %7030 = vmatprep.subr.bf16.mxu0 %v9583_v9  ;;  %7563 = vmatprep.subr.bf16.mxu1 %v9586_v10  ;;  %v2725_v9 = vcombine.high %v12298_v34, %v12298_v34  ;;  %v9665_v10 = vld [vmem:[%s11763_s5 + $0x1000] ss:$16 sps:$4 sm:$0xff]  }
 0x36a   : > { %v9671_v34 = vld [vmem:[%s11763_s5 + $0x1020] ss:$16 sps:$4 sm:$0xff]  }
 0x36c   : > { %7031 = vmatpush1.bf16.msra.mxu0 %v9581_v2  ;;  %7564 = vmatpush1.bf16.msra.mxu1 %v9584_v11  ;;  %v9668_v2 = vld [vmem:[%s11763_s5 + $0x1008] ss:$16 sps:$4 sm:$0xff]   ;;  %v9673_v11 = vld [vmem:[%s11763_s5 + $0x1024] ss:$16 sps:$4 sm:$0xff]  }
 0x36d   : > { %7032 = vmatprep.subr.bf16.mxu0 %v9589_v12  ;;  %7565 = vmatprep.subr.bf16.mxu1 %v9592_v13  ;;  %v9676_v12 = vld [vmem:[%s11763_s5 + $0x102c] ss:$16 sps:$4 sm:$0xff]   ;;  %v12386_v13 = vrot.slane %v2743_v8, %v11768_v24  ;;  %v9752_v8 = vld [vmem:[%s11763_s5 + $0x11c8] ss:$16 sps:$4 sm:$0xff]  }
 0x370   : > { %7033 = vmatpush1.bf16.msra.mxu0 %v9587_v14  ;;  %7566 = vmatpush1.bf16.msra.mxu1 %v9590_v15  ;;  %v9674_v14 = vld [vmem:[%s11763_s5 + $0x1028] ss:$16 sps:$4 sm:$0xff]   ;;  %v9679_v15 = vld [vmem:[%s11763_s5 + $0x1044] ss:$16 sps:$4 sm:$0xff]  }
 0x371   : > { %7034 = vmatprep.subr.bf16.mxu0 %v9595_v16  ;;  %7567 = vmatprep.subr.bf16.mxu1 %v9598_v17  ;;  %v9682_v16 = vld [vmem:[%s11763_s5 + $0x104c] ss:$16 sps:$4 sm:$0xff]   ;;  %v9677_v17 = vld [vmem:[%s11763_s5 + $0x1040] ss:$16 sps:$4 sm:$0xff]  }
 0x374   : > { %7035 = vmatpush1.bf16.msra.mxu0 %v9593_v18  ;;  %7568 = vmatpush1.bf16.msra.mxu1 %v9596_v21  ;;  %v9680_v18 = vld [vmem:[%s11763_s5 + $0x1048] ss:$16 sps:$4 sm:$0xff]   ;;  %v9685_v21 = vld [vmem:[%s11763_s5 + $0x1064] ss:$16 sps:$4 sm:$0xff]  }
 0x375   : > { %7036 = vmatprep.subr.bf16.mxu0 %v9601_v22  ;;  %7569 = vmatprep.subr.bf16.mxu1 %v9604_v23  ;;  %v9688_v22 = vld [vmem:[%s11763_s5 + $0x106c] ss:$16 sps:$4 sm:$0xff]   ;;  %v9683_v23 = vld [vmem:[%s11763_s5 + $0x1060] ss:$16 sps:$4 sm:$0xff]  }
 0x378   : > { %7037 = vmatpush1.bf16.msra.mxu0 %v9599_v25  ;;  %7570 = vmatpush1.bf16.msra.mxu1 %v9602_v26  ;;  %v9686_v25 = vld [vmem:[%s11763_s5 + $0x1068] ss:$16 sps:$4 sm:$0xff]   ;;  %v9691_v26 = vld [vmem:[%s11763_s5 + $0x1084] ss:$16 sps:$4 sm:$0xff]  }
 0x379   : > { %7038 = vmatprep.subr.bf16.mxu0 %v9607_v27  ;;  %7571 = vmatprep.subr.bf16.mxu1 %v9610_v29  ;;  %v9694_v27 = vld [vmem:[%s11763_s5 + $0x108c] ss:$16 sps:$4 sm:$0xff]   ;;  %v9689_v29 = vld [vmem:[%s11763_s5 + $0x1080] ss:$16 sps:$4 sm:$0xff]  }
 0x37c   : > { %7039 = vmatpush1.bf16.msra.mxu0 %v9605_v30  ;;  %7572 = vmatpush1.bf16.msra.mxu1 %v9608_v31  ;;  %v9692_v30 = vld [vmem:[%s11763_s5 + $0x1088] ss:$16 sps:$4 sm:$0xff]   ;;  %v9697_v31 = vld [vmem:[%s11763_s5 + $0x10a4] ss:$16 sps:$4 sm:$0xff]  }
 0x37d   : > { %7040 = vmatprep.subr.bf16.mxu0 %v9613_v32  ;;  %7573 = vmatprep.subr.bf16.mxu1 %v9616_v33  ;;  %v9700_v32 = vld [vmem:[%s11763_s5 + $0x10ac] ss:$16 sps:$4 sm:$0xff]   ;;  %v9695_v33 = vld [vmem:[%s11763_s5 + $0x10a0] ss:$16 sps:$4 sm:$0xff]  }
 0x380   : > { %7041 = vmatpush1.bf16.msra.mxu0 %v9611_v36  ;;  %7574 = vmatpush1.bf16.msra.mxu1 %v9614_v38  ;;  %v9698_v36 = vld [vmem:[%s11763_s5 + $0x10a8] ss:$16 sps:$4 sm:$0xff]   ;;  %v9703_v38 = vld [vmem:[%s11763_s5 + $0x10c4] ss:$16 sps:$4 sm:$0xff]  }
 0x381   : > { %7042 = vmatprep.subr.bf16.mxu0 %v9619_v20  ;;  %7575 = vmatprep.subr.bf16.mxu1 %v9622_v39  ;;  %v9706_v20 = vld [vmem:[%s11763_s5 + $0x10cc] ss:$16 sps:$4 sm:$0xff]   ;;  %v9701_v39 = vld [vmem:[%s11763_s5 + $0x10c0] ss:$16 sps:$4 sm:$0xff]  }
 0x384   : > { %7043 = vmatpush1.bf16.msra.mxu0 %v9617_v28  ;;  %7576 = vmatpush1.bf16.msra.mxu1 %v9620_v40  ;;  %v9704_v28 = vld [vmem:[%s11763_s5 + $0x10c8] ss:$16 sps:$4 sm:$0xff]   ;;  %v9709_v40 = vld [vmem:[%s11763_s5 + $0x10e4] ss:$16 sps:$4 sm:$0xff]  }
 0x385   : > { %7044 = vmatprep.subr.bf16.mxu0 %v9625_v41  ;;  %7577 = vmatprep.subr.bf16.mxu1 %v9628_v42  ;;  %v9712_v41 = vld [vmem:[%s11763_s5 + $0x10ec] ss:$16 sps:$4 sm:$0xff]   ;;  %v9707_v42 = vld [vmem:[%s11763_s5 + $0x10e0] ss:$16 sps:$4 sm:$0xff]  }
 0x388   : > { %7045 = vmatpush1.bf16.msra.mxu0 %v9623_v43  ;;  %7578 = vmatpush1.bf16.msra.mxu1 %v9626_v45  ;;  %v9710_v43 = vld [vmem:[%s11763_s5 + $0x10e8] ss:$16 sps:$4 sm:$0xff]   ;;  %v9715_v45 = vld [vmem:[%s11763_s5 + $0x1104] ss:$16 sps:$4 sm:$0xff]  }
 0x389   : > { %7046 = vmatprep.subr.bf16.mxu0 %v9631_v46  ;;  %7579 = vmatprep.subr.bf16.mxu1 %v9634_v47  ;;  %v9718_v46 = vld [vmem:[%s11763_s5 + $0x110c] ss:$16 sps:$4 sm:$0xff]   ;;  %v9713_v47 = vld [vmem:[%s11763_s5 + $0x1100] ss:$16 sps:$4 sm:$0xff]  }
 0x38c   : > { %7047 = vmatpush1.bf16.msra.mxu0 %v9629_v48  ;;  %7580 = vmatpush1.bf16.msra.mxu1 %v9632_v49  ;;  %v9716_v48 = vld [vmem:[%s11763_s5 + $0x1108] ss:$16 sps:$4 sm:$0xff]   ;;  %v9721_v49 = vld [vmem:[%s11763_s5 + $0x1124] ss:$16 sps:$4 sm:$0xff]  }
 0x38d   : > { %7048 = vmatprep.subr.bf16.mxu0 %v9637_v50  ;;  %7581 = vmatprep.subr.bf16.mxu1 %v9640_v35  ;;  %v9724_v50 = vld [vmem:[%s11763_s5 + $0x112c] ss:$16 sps:$4 sm:$0xff]   ;;  %v9719_v35 = vld [vmem:[%s11763_s5 + $0x1120] ss:$16 sps:$4 sm:$0xff]  }
 0x390   : > { %7049 = vmatpush1.bf16.msra.mxu0 %v9635_v51  ;;  %7582 = vmatpush1.bf16.msra.mxu1 %v9638_v52  ;;  %v9722_v51 = vld [vmem:[%s11763_s5 + $0x1128] ss:$16 sps:$4 sm:$0xff]   ;;  %v9727_v52 = vld [vmem:[%s11763_s5 + $0x1144] ss:$16 sps:$4 sm:$0xff]  }
 0x391   : > { %7050 = vmatprep.subr.bf16.mxu0 %v9643_v44  ;;  %7583 = vmatprep.subr.bf16.mxu1 %v9646_v53  ;;  %v9730_v44 = vld [vmem:[%s11763_s5 + $0x114c] ss:$16 sps:$4 sm:$0xff]   ;;  %v9725_v53 = vld [vmem:[%s11763_s5 + $0x1140] ss:$16 sps:$4 sm:$0xff]  }
 0x394   : > { %7051 = vmatpush1.bf16.msra.mxu0 %v9641_v55  ;;  %7584 = vmatpush1.bf16.msra.mxu1 %v9644_v56  ;;  %v9728_v55 = vld [vmem:[%s11763_s5 + $0x1148] ss:$16 sps:$4 sm:$0xff]   ;;  %v9733_v56 = vld [vmem:[%s11763_s5 + $0x1164] ss:$16 sps:$4 sm:$0xff]  }
 0x395   : > { %7052 = vmatprep.subr.bf16.mxu0 %v9649_v58  ;;  %7585 = vmatprep.subr.bf16.mxu1 %v9652_v59  ;;  %v9736_v58 = vld [vmem:[%s11763_s5 + $0x116c] ss:$16 sps:$4 sm:$0xff]   ;;  %v9731_v59 = vld [vmem:[%s11763_s5 + $0x1160] ss:$16 sps:$4 sm:$0xff]  }
 0x398   : > { %7053 = vmatpush1.bf16.msra.mxu0 %v9647_v37  ;;  %7586 = vmatpush1.bf16.msra.mxu1 %v9650_v60  ;;  %v9734_v37 = vld [vmem:[%s11763_s5 + $0x1168] ss:$16 sps:$4 sm:$0xff]   ;;  %v9739_v60 = vld [vmem:[%s11763_s5 + $0x1184] ss:$16 sps:$4 sm:$0xff]  }
 0x399   : > { %7054 = vmatprep.subr.bf16.mxu0 %v9655_v61  ;;  %7587 = vmatprep.subr.bf16.mxu1 %v9658_v62  ;;  %v9742_v61 = vld [vmem:[%s11763_s5 + $0x118c] ss:$16 sps:$4 sm:$0xff]   ;;  %v9737_v62 = vld [vmem:[%s11763_s5 + $0x1180] ss:$16 sps:$4 sm:$0xff]  }
 0x39c   : > { %7055 = vmatpush1.bf16.msra.mxu0 %v9653_v63  ;;  %7588 = vmatpush1.bf16.msra.mxu1 %v9656_v0  ;;  %v9740_v63 = vld [vmem:[%s11763_s5 + $0x1188] ss:$16 sps:$4 sm:$0xff]   ;;  %v9745_v0 = vld [vmem:[%s11763_s5 + $0x11a4] ss:$16 sps:$4 sm:$0xff]  }
 0x39d   : > { %7056 = vmatprep.subr.bf16.mxu0 %v9661_v1  ;;  %7589 = vmatprep.subr.bf16.mxu1 %v9664_v3  ;;  %v9748_v1 = vld [vmem:[%s11763_s5 + $0x11ac] ss:$16 sps:$4 sm:$0xff]   ;;  %v9743_v3 = vld [vmem:[%s11763_s5 + $0x11a0] ss:$16 sps:$4 sm:$0xff]  }
 0x3a0   : > { %7057 = vmatpush1.bf16.msra.mxu0 %v9659_v5  ;;  %7590 = vmatpush1.bf16.msra.mxu1 %v9662_v6  ;;  %v9746_v5 = vld [vmem:[%s11763_s5 + $0x11a8] ss:$16 sps:$4 sm:$0xff]   ;;  %v9751_v6 = vld [vmem:[%s11763_s5 + $0x11c4] ss:$16 sps:$4 sm:$0xff]  }
 0x3a1   : > { %7067 = vmatprep.subr.bf16.mxu0 %v9667_v7  ;;  %7600 = vmatprep.subr.bf16.mxu1 %v9670_v57  ;;  %v9754_v7 = vld [vmem:[%s11763_s5 + $0x11cc] ss:$16 sps:$4 sm:$0xff]   ;;  %v9749_v57 = vld [vmem:[%s11763_s5 + $0x11c0] ss:$16 sps:$4 sm:$0xff]  }
 0x3a3   : > { %7059 = vmatmul.mubr.bf16.vlgmr.msra.gmra.mrb[0].mxu0 %v2725_v9  ;;  %7592 = vmatmul.mubr.bf16.vlgmr.msra.gmra.mrb[0].mxu1 %v2725_v9  ;;  %v9757_v9 = vld [vmem:[%s11763_s5 + $0x11e4] ss:$16 sps:$4 sm:$0xff]  }
 0x3a4   : > { %7068 = vmatpush1.bf16.msra.mxu0 %v9665_v10  ;;  %7601 = vmatpush1.bf16.msra.mxu1 %v9668_v2  ;;  %v9760_v10 = vld [vmem:[%s11763_s5 + $0x11ec] ss:$16 sps:$4 sm:$0xff]   ;;  %v9755_v2 = vld [vmem:[%s11763_s5 + $0x11e0] ss:$16 sps:$4 sm:$0xff]  }
 0x3a5   : > { %7069 = vmatprep.subr.bf16.mxu0 %v9673_v11  ;;  %7602 = vmatprep.subr.bf16.mxu1 %v9676_v12  ;;  %v9758_v11 = vld [vmem:[%s11763_s5 + $0x11e8] ss:$16 sps:$4 sm:$0xff]   ;;  %v9763_v12 = vld [vmem:[%s11763_s5 + $0x1204] ss:$16 sps:$4 sm:$0xff]  }
 0x3a6   : > { %7099 = vmatprep.mubr.bf16.mxu0 %v12386_v13  ;;  %7632 = vmatprep.mubr.bf16.mxu1 %v12386_v13 }
 0x3a8   : > { %7070 = vmatpush1.bf16.msra.mxu0 %v9671_v34  ;;  %7603 = vmatpush1.bf16.msra.mxu1 %v9674_v14  ;;  %v9766_v34 = vld [vmem:[%s11763_s5 + $0x120c] ss:$16 sps:$4 sm:$0xff]   ;;  %v12452_v14 = vrot.slane %v12371_v4, %v11768_v24  ;;  %v9767_v4 = vld [vmem:[%s11763_s5 + $0x1220] ss:$16 sps:$4 sm:$0xff]  }
 0x3a9   : > { %7071 = vmatprep.subr.bf16.mxu0 %v9679_v15  ;;  %7604 = vmatprep.subr.bf16.mxu1 %v9682_v16  ;;  %v9761_v15 = vld [vmem:[%s11763_s5 + $0x1200] ss:$16 sps:$4 sm:$0xff]   ;;  %v9764_v16 = vld [vmem:[%s11763_s5 + $0x1208] ss:$16 sps:$4 sm:$0xff]  }
 0x3ac   : > { %7072 = vmatpush1.bf16.msra.mxu0 %v9677_v17  ;;  %7605 = vmatpush1.bf16.msra.mxu1 %v9680_v18  ;;  %v9769_v17 = vld [vmem:[%s11763_s5 + $0x1224] ss:$16 sps:$4 sm:$0xff]   ;;  %v9772_v18 = vld [vmem:[%s11763_s5 + $0x122c] ss:$16 sps:$4 sm:$0xff]  }
 0x3ad   : > { %7073 = vmatprep.subr.bf16.mxu0 %v9685_v21  ;;  %7606 = vmatprep.subr.bf16.mxu1 %v9688_v22  ;;  %v2775_v21 = vcombine.high %v12386_v13, %v12386_v13  ;;  %v9770_v22 = vld [vmem:[%s11763_s5 + $0x1228] ss:$16 sps:$4 sm:$0xff]   ;;  %v9773_v13 = vld [vmem:[%s11763_s5 + $0x1240] ss:$16 sps:$4 sm:$0xff]  }
 0x3b0   : > { %7074 = vmatpush1.bf16.msra.mxu0 %v9683_v23  ;;  %7607 = vmatpush1.bf16.msra.mxu1 %v9686_v25  ;;  %v9775_v23 = vld [vmem:[%s11763_s5 + $0x1244] ss:$16 sps:$4 sm:$0xff]   ;;  %v9778_v25 = vld [vmem:[%s11763_s5 + $0x124c] ss:$16 sps:$4 sm:$0xff]  }
 0x3b1   : > { %7075 = vmatprep.subr.bf16.mxu0 %v9691_v26  ;;  %7608 = vmatprep.subr.bf16.mxu1 %v9694_v27  ;;  %v9776_v26 = vld [vmem:[%s11763_s5 + $0x1248] ss:$16 sps:$4 sm:$0xff]   ;;  %v9781_v27 = vld [vmem:[%s11763_s5 + $0x1264] ss:$16 sps:$4 sm:$0xff]  }
 0x3b4   : > { %7076 = vmatpush1.bf16.msra.mxu0 %v9689_v29  ;;  %7609 = vmatpush1.bf16.msra.mxu1 %v9692_v30  ;;  %v9784_v29 = vld [vmem:[%s11763_s5 + $0x126c] ss:$16 sps:$4 sm:$0xff]   ;;  %v9779_v30 = vld [vmem:[%s11763_s5 + $0x1260] ss:$16 sps:$4 sm:$0xff]  }
 0x3b5   : > { %7077 = vmatprep.subr.bf16.mxu0 %v9697_v31  ;;  %7610 = vmatprep.subr.bf16.mxu1 %v9700_v32  ;;  %v9782_v31 = vld [vmem:[%s11763_s5 + $0x1268] ss:$16 sps:$4 sm:$0xff]   ;;  %v9787_v32 = vld [vmem:[%s11763_s5 + $0x1284] ss:$16 sps:$4 sm:$0xff]  }
 0x3b8   : > { %7078 = vmatpush1.bf16.msra.mxu0 %v9695_v33  ;;  %7611 = vmatpush1.bf16.msra.mxu1 %v9698_v36  ;;  %v9790_v33 = vld [vmem:[%s11763_s5 + $0x128c] ss:$16 sps:$4 sm:$0xff]   ;;  %v9785_v36 = vld [vmem:[%s11763_s5 + $0x1280] ss:$16 sps:$4 sm:$0xff]  }
 0x3b9   : > { %7079 = vmatprep.subr.bf16.mxu0 %v9703_v38  ;;  %7612 = vmatprep.subr.bf16.mxu1 %v9706_v20  ;;  %v9788_v38 = vld [vmem:[%s11763_s5 + $0x1288] ss:$16 sps:$4 sm:$0xff]   ;;  %v9793_v20 = vld [vmem:[%s11763_s5 + $0x12a4] ss:$16 sps:$4 sm:$0xff]  }
 0x3bc   : > { %7080 = vmatpush1.bf16.msra.mxu0 %v9701_v39  ;;  %7613 = vmatpush1.bf16.msra.mxu1 %v9704_v28  ;;  %v9796_v39 = vld [vmem:[%s11763_s5 + $0x12ac] ss:$16 sps:$4 sm:$0xff]   ;;  %v9791_v28 = vld [vmem:[%s11763_s5 + $0x12a0] ss:$16 sps:$4 sm:$0xff]  }
 0x3bd   : > { %7081 = vmatprep.subr.bf16.mxu0 %v9709_v40  ;;  %7614 = vmatprep.subr.bf16.mxu1 %v9712_v41  ;;  %v9794_v40 = vld [vmem:[%s11763_s5 + $0x12a8] ss:$16 sps:$4 sm:$0xff]   ;;  %v9799_v41 = vld [vmem:[%s11763_s5 + $0x12c4] ss:$16 sps:$4 sm:$0xff]  }
 0x3c0   : > { %7082 = vmatpush1.bf16.msra.mxu0 %v9707_v42  ;;  %7615 = vmatpush1.bf16.msra.mxu1 %v9710_v43  ;;  %v9802_v42 = vld [vmem:[%s11763_s5 + $0x12cc] ss:$16 sps:$4 sm:$0xff]   ;;  %v9797_v43 = vld [vmem:[%s11763_s5 + $0x12c0] ss:$16 sps:$4 sm:$0xff]  }
 0x3c1   : > { %7083 = vmatprep.subr.bf16.mxu0 %v9715_v45  ;;  %7616 = vmatprep.subr.bf16.mxu1 %v9718_v46  ;;  %v9800_v45 = vld [vmem:[%s11763_s5 + $0x12c8] ss:$16 sps:$4 sm:$0xff]   ;;  %v9805_v46 = vld [vmem:[%s11763_s5 + $0x12e4] ss:$16 sps:$4 sm:$0xff]  }
 0x3c4   : > { %7084 = vmatpush1.bf16.msra.mxu0 %v9713_v47  ;;  %7617 = vmatpush1.bf16.msra.mxu1 %v9716_v48  ;;  %v9808_v47 = vld [vmem:[%s11763_s5 + $0x12ec] ss:$16 sps:$4 sm:$0xff]   ;;  %v9803_v48 = vld [vmem:[%s11763_s5 + $0x12e0] ss:$16 sps:$4 sm:$0xff]  }
 0x3c5   : > { %7085 = vmatprep.subr.bf16.mxu0 %v9721_v49  ;;  %7618 = vmatprep.subr.bf16.mxu1 %v9724_v50  ;;  %v9806_v49 = vld [vmem:[%s11763_s5 + $0x12e8] ss:$16 sps:$4 sm:$0xff]   ;;  %v9811_v50 = vld [vmem:[%s11763_s5 + $0x1304] ss:$16 sps:$4 sm:$0xff]  }
 0x3c8   : > { %7086 = vmatpush1.bf16.msra.mxu0 %v9719_v35  ;;  %7619 = vmatpush1.bf16.msra.mxu1 %v9722_v51  ;;  %v9814_v35 = vld [vmem:[%s11763_s5 + $0x130c] ss:$16 sps:$4 sm:$0xff]   ;;  %v9809_v51 = vld [vmem:[%s11763_s5 + $0x1300] ss:$16 sps:$4 sm:$0xff]  }
 0x3c9   : > { %7087 = vmatprep.subr.bf16.mxu0 %v9727_v52  ;;  %7620 = vmatprep.subr.bf16.mxu1 %v9730_v44  ;;  %v9812_v52 = vld [vmem:[%s11763_s5 + $0x1308] ss:$16 sps:$4 sm:$0xff]   ;;  %v9817_v44 = vld [vmem:[%s11763_s5 + $0x1324] ss:$16 sps:$4 sm:$0xff]  }
 0x3cc   : > { %7088 = vmatpush1.bf16.msra.mxu0 %v9725_v53  ;;  %7621 = vmatpush1.bf16.msra.mxu1 %v9728_v55  ;;  %v9820_v53 = vld [vmem:[%s11763_s5 + $0x132c] ss:$16 sps:$4 sm:$0xff]   ;;  %v9815_v55 = vld [vmem:[%s11763_s5 + $0x1320] ss:$16 sps:$4 sm:$0xff]  }
 0x3cd   : > { %7089 = vmatprep.subr.bf16.mxu0 %v9733_v56  ;;  %7622 = vmatprep.subr.bf16.mxu1 %v9736_v58  ;;  %v9818_v56 = vld [vmem:[%s11763_s5 + $0x1328] ss:$16 sps:$4 sm:$0xff]   ;;  %v9823_v58 = vld [vmem:[%s11763_s5 + $0x1344] ss:$16 sps:$4 sm:$0xff]  }
 0x3d0   : > { %7090 = vmatpush1.bf16.msra.mxu0 %v9731_v59  ;;  %7623 = vmatpush1.bf16.msra.mxu1 %v9734_v37  ;;  %v9826_v59 = vld [vmem:[%s11763_s5 + $0x134c] ss:$16 sps:$4 sm:$0xff]   ;;  %v9821_v37 = vld [vmem:[%s11763_s5 + $0x1340] ss:$16 sps:$4 sm:$0xff]  }
 0x3d1   : > { %7091 = vmatprep.subr.bf16.mxu0 %v9739_v60  ;;  %7624 = vmatprep.subr.bf16.mxu1 %v9742_v61  ;;  %v9824_v60 = vld [vmem:[%s11763_s5 + $0x1348] ss:$16 sps:$4 sm:$0xff]   ;;  %v9829_v61 = vld [vmem:[%s11763_s5 + $0x1364] ss:$16 sps:$4 sm:$0xff]  }
 0x3d4   : > { %7092 = vmatpush1.bf16.msra.mxu0 %v9737_v62  ;;  %7625 = vmatpush1.bf16.msra.mxu1 %v9740_v63  ;;  %v9832_v62 = vld [vmem:[%s11763_s5 + $0x136c] ss:$16 sps:$4 sm:$0xff]   ;;  %v9827_v63 = vld [vmem:[%s11763_s5 + $0x1360] ss:$16 sps:$4 sm:$0xff]  }
 0x3d5   : > { %7093 = vmatprep.subr.bf16.mxu0 %v9745_v0  ;;  %7626 = vmatprep.subr.bf16.mxu1 %v9748_v1  ;;  %v9830_v0 = vld [vmem:[%s11763_s5 + $0x1368] ss:$16 sps:$4 sm:$0xff]   ;;  %v9835_v1 = vld [vmem:[%s11763_s5 + $0x1384] ss:$16 sps:$4 sm:$0xff]  }
 0x3d8   : > { %7094 = vmatpush1.bf16.msra.mxu0 %v9743_v3  ;;  %7627 = vmatpush1.bf16.msra.mxu1 %v9746_v5  ;;  %v9838_v3 = vld [vmem:[%s11763_s5 + $0x138c] ss:$16 sps:$4 sm:$0xff]   ;;  %v9833_v5 = vld [vmem:[%s11763_s5 + $0x1380] ss:$16 sps:$4 sm:$0xff]  }
 0x3d9   : > { %7095 = vmatprep.subr.bf16.mxu0 %v9751_v6  ;;  %7628 = vmatprep.subr.bf16.mxu1 %v9754_v7  ;;  %v9836_v6 = vld [vmem:[%s11763_s5 + $0x1388] ss:$16 sps:$4 sm:$0xff]   ;;  %v9841_v7 = vld [vmem:[%s11763_s5 + $0x13a4] ss:$16 sps:$4 sm:$0xff]  }
 0x3dc   : > { %7096 = vmatpush1.bf16.msra.mxu0 %v9749_v57  ;;  %7629 = vmatpush1.bf16.msra.mxu1 %v9752_v8  ;;  %v9844_v57 = vld [vmem:[%s11763_s5 + $0x13ac] ss:$16 sps:$4 sm:$0xff]   ;;  %v9839_v8 = vld [vmem:[%s11763_s5 + $0x13a0] ss:$16 sps:$4 sm:$0xff]  }
 0x3dd   : > { %7097 = vmatprep.subr.bf16.mxu0 %v9757_v9  ;;  %7630 = vmatprep.subr.bf16.mxu1 %v9760_v10  ;;  %v9842_v9 = vld [vmem:[%s11763_s5 + $0x13a8] ss:$16 sps:$4 sm:$0xff]   ;;  %v9847_v10 = vld [vmem:[%s11763_s5 + $0x13c4] ss:$16 sps:$4 sm:$0xff]  }
 0x3e0   : > { %7098 = vmatpush1.bf16.msra.mxu0 %v9755_v2  ;;  %7631 = vmatpush1.bf16.msra.mxu1 %v9758_v11  ;;  %v9850_v2 = vld [vmem:[%s11763_s5 + $0x13cc] ss:$16 sps:$4 sm:$0xff]   ;;  %v2728_v11 = vcombine.high %v12363_v54, %v12363_v54  ;;  %v9851_v54 = vld [vmem:[%s11763_s5 + $0x13e0] ss:$16 sps:$4 sm:$0xff]  }
 0x3e1   : > { %7108 = vmatprep.subr.bf16.mxu0 %v9763_v12  ;;  %7641 = vmatprep.subr.bf16.mxu1 %v9766_v34  ;;  %v9845_v12 = vld [vmem:[%s11763_s5 + $0x13c0] ss:$16 sps:$4 sm:$0xff]   ;;  %v9848_v34 = vld [vmem:[%s11763_s5 + $0x13c8] ss:$16 sps:$4 sm:$0xff]  }
 0x3e3   : > { %7100 = vmatmul.mubr.bf16.vlgmr.msra.gmra.mrb[0].mxu0 %v12452_v14  ;;  %7633 = vmatmul.mubr.bf16.vlgmr.msra.gmra.mrb[0].mxu1 %v12452_v14 }
 0x3e4   : > { %7109 = vmatpush1.bf16.msra.mxu0 %v9761_v15  ;;  %7642 = vmatpush1.bf16.msra.mxu1 %v9764_v16  ;;  %v9853_v15 = vld [vmem:[%s11763_s5 + $0x13e4] ss:$16 sps:$4 sm:$0xff]   ;;  %v9856_v16 = vld [vmem:[%s11763_s5 + $0x13ec] ss:$16 sps:$4 sm:$0xff]  }
 0x3e5   : > { %7110 = vmatprep.subr.bf16.mxu0 %v9769_v17  ;;  %7643 = vmatprep.subr.bf16.mxu1 %v9772_v18  ;;  %v12521_v17 = vrot.slane %v2728_v11, %v11768_v24  ;;  %v9854_v18 = vld [vmem:[%s11763_s5 + $0x13e8] ss:$16 sps:$4 sm:$0xff]  }
 0x3e6   : > { %7140 = vmatprep.mubr.bf16.mxu0 %v2775_v21  ;;  %7673 = vmatprep.mubr.bf16.mxu1 %v2775_v21  ;;  %v9859_v21 = vld [vmem:[%s11763_s5 + $0x1404] ss:$16 sps:$4 sm:$0xff]   ;;  %v9932_v11 = vld [vmem:[%s11763_s5 + $0x1588] ss:$16 sps:$4 sm:$0xff]  }
 0x3e8   : > { %7111 = vmatpush1.bf16.msra.mxu0 %v9767_v4  ;;  %7644 = vmatpush1.bf16.msra.mxu1 %v9770_v22  ;;  %v9862_v4 = vld [vmem:[%s11763_s5 + $0x140c] ss:$16 sps:$4 sm:$0xff]   ;;  %v2744_v22 = vcombine.high %v12521_v17, %v12521_v17 }
 0x3e9   : > { %7112 = vmatprep.subr.bf16.mxu0 %v9775_v23  ;;  %7645 = vmatprep.subr.bf16.mxu1 %v9778_v25  ;;  %v2773_v23 = vcombine.high %v12452_v14, %v12452_v14  ;;  %v9857_v25 = vld [vmem:[%s11763_s5 + $0x1400] ss:$16 sps:$4 sm:$0xff]  }
 0x3ea   : > { %v9863_v14 = vld [vmem:[%s11763_s5 + $0x1420] ss:$16 sps:$4 sm:$0xff]  }
 0x3ec   : > { %7113 = vmatpush1.bf16.msra.mxu0 %v9773_v13  ;;  %7646 = vmatpush1.bf16.msra.mxu1 %v9776_v26  ;;  %v9860_v13 = vld [vmem:[%s11763_s5 + $0x1408] ss:$16 sps:$4 sm:$0xff]   ;;  %v9865_v26 = vld [vmem:[%s11763_s5 + $0x1424] ss:$16 sps:$4 sm:$0xff]  }
 0x3ed   : > { %7114 = vmatprep.subr.bf16.mxu0 %v9781_v27  ;;  %7647 = vmatprep.subr.bf16.mxu1 %v9784_v29  ;;  %v9868_v27 = vld [vmem:[%s11763_s5 + $0x142c] ss:$16 sps:$4 sm:$0xff]   ;;  %v12536_v29 = vrot.slane %v2744_v22, %v11768_v24  ;;  %v9949_v22 = vld [vmem:[%s11763_s5 + $0x15e4] ss:$16 sps:$4 sm:$0xff]  }
 0x3f0   : > { %7115 = vmatpush1.bf16.msra.mxu0 %v9779_v30  ;;  %7648 = vmatpush1.bf16.msra.mxu1 %v9782_v31  ;;  %v9866_v30 = vld [vmem:[%s11763_s5 + $0x1428] ss:$16 sps:$4 sm:$0xff]   ;;  %v9871_v31 = vld [vmem:[%s11763_s5 + $0x1444] ss:$16 sps:$4 sm:$0xff]  }
 0x3f1   : > { %7116 = vmatprep.subr.bf16.mxu0 %v9787_v32  ;;  %7649 = vmatprep.subr.bf16.mxu1 %v9790_v33  ;;  %v9874_v32 = vld [vmem:[%s11763_s5 + $0x144c] ss:$16 sps:$4 sm:$0xff]   ;;  %v9869_v33 = vld [vmem:[%s11763_s5 + $0x1440] ss:$16 sps:$4 sm:$0xff]  }
 0x3f4   : > { %7117 = vmatpush1.bf16.msra.mxu0 %v9785_v36  ;;  %7650 = vmatpush1.bf16.msra.mxu1 %v9788_v38  ;;  %v9872_v36 = vld [vmem:[%s11763_s5 + $0x1448] ss:$16 sps:$4 sm:$0xff]   ;;  %v9877_v38 = vld [vmem:[%s11763_s5 + $0x1464] ss:$16 sps:$4 sm:$0xff]  }
 0x3f5   : > { %7118 = vmatprep.subr.bf16.mxu0 %v9793_v20  ;;  %7651 = vmatprep.subr.bf16.mxu1 %v9796_v39  ;;  %v9880_v20 = vld [vmem:[%s11763_s5 + $0x146c] ss:$16 sps:$4 sm:$0xff]   ;;  %v9875_v39 = vld [vmem:[%s11763_s5 + $0x1460] ss:$16 sps:$4 sm:$0xff]  }
 0x3f8   : > { %7119 = vmatpush1.bf16.msra.mxu0 %v9791_v28  ;;  %7652 = vmatpush1.bf16.msra.mxu1 %v9794_v40  ;;  %v9878_v28 = vld [vmem:[%s11763_s5 + $0x1468] ss:$16 sps:$4 sm:$0xff]   ;;  %v9883_v40 = vld [vmem:[%s11763_s5 + $0x1484] ss:$16 sps:$4 sm:$0xff]  }
 0x3f9   : > { %7120 = vmatprep.subr.bf16.mxu0 %v9799_v41  ;;  %7653 = vmatprep.subr.bf16.mxu1 %v9802_v42  ;;  %v9886_v41 = vld [vmem:[%s11763_s5 + $0x148c] ss:$16 sps:$4 sm:$0xff]   ;;  %v9881_v42 = vld [vmem:[%s11763_s5 + $0x1480] ss:$16 sps:$4 sm:$0xff]  }
 0x3fc   : > { %7121 = vmatpush1.bf16.msra.mxu0 %v9797_v43  ;;  %7654 = vmatpush1.bf16.msra.mxu1 %v9800_v45  ;;  %v9884_v43 = vld [vmem:[%s11763_s5 + $0x1488] ss:$16 sps:$4 sm:$0xff]   ;;  %v9889_v45 = vld [vmem:[%s11763_s5 + $0x14a4] ss:$16 sps:$4 sm:$0xff]  }
 0x3fd   : > { %7122 = vmatprep.subr.bf16.mxu0 %v9805_v46  ;;  %7655 = vmatprep.subr.bf16.mxu1 %v9808_v47  ;;  %v9892_v46 = vld [vmem:[%s11763_s5 + $0x14ac] ss:$16 sps:$4 sm:$0xff]   ;;  %v9887_v47 = vld [vmem:[%s11763_s5 + $0x14a0] ss:$16 sps:$4 sm:$0xff]  }
 0x400   : > { %7123 = vmatpush1.bf16.msra.mxu0 %v9803_v48  ;;  %7656 = vmatpush1.bf16.msra.mxu1 %v9806_v49  ;;  %v9890_v48 = vld [vmem:[%s11763_s5 + $0x14a8] ss:$16 sps:$4 sm:$0xff]   ;;  %v9895_v49 = vld [vmem:[%s11763_s5 + $0x14c4] ss:$16 sps:$4 sm:$0xff]  }
 0x401   : > { %7124 = vmatprep.subr.bf16.mxu0 %v9811_v50  ;;  %7657 = vmatprep.subr.bf16.mxu1 %v9814_v35  ;;  %v9898_v50 = vld [vmem:[%s11763_s5 + $0x14cc] ss:$16 sps:$4 sm:$0xff]   ;;  %v9893_v35 = vld [vmem:[%s11763_s5 + $0x14c0] ss:$16 sps:$4 sm:$0xff]  }
 0x404   : > { %7125 = vmatpush1.bf16.msra.mxu0 %v9809_v51  ;;  %7658 = vmatpush1.bf16.msra.mxu1 %v9812_v52  ;;  %v9896_v51 = vld [vmem:[%s11763_s5 + $0x14c8] ss:$16 sps:$4 sm:$0xff]   ;;  %v9901_v52 = vld [vmem:[%s11763_s5 + $0x14e4] ss:$16 sps:$4 sm:$0xff]  }
 0x405   : > { %7126 = vmatprep.subr.bf16.mxu0 %v9817_v44  ;;  %7659 = vmatprep.subr.bf16.mxu1 %v9820_v53  ;;  %v9904_v44 = vld [vmem:[%s11763_s5 + $0x14ec] ss:$16 sps:$4 sm:$0xff]   ;;  %v9899_v53 = vld [vmem:[%s11763_s5 + $0x14e0] ss:$16 sps:$4 sm:$0xff]  }
 0x408   : > { %7127 = vmatpush1.bf16.msra.mxu0 %v9815_v55  ;;  %7660 = vmatpush1.bf16.msra.mxu1 %v9818_v56  ;;  %v9902_v55 = vld [vmem:[%s11763_s5 + $0x14e8] ss:$16 sps:$4 sm:$0xff]   ;;  %v9907_v56 = vld [vmem:[%s11763_s5 + $0x1504] ss:$16 sps:$4 sm:$0xff]  }
 0x409   : > { %7128 = vmatprep.subr.bf16.mxu0 %v9823_v58  ;;  %7661 = vmatprep.subr.bf16.mxu1 %v9826_v59  ;;  %v9910_v58 = vld [vmem:[%s11763_s5 + $0x150c] ss:$16 sps:$4 sm:$0xff]   ;;  %v9905_v59 = vld [vmem:[%s11763_s5 + $0x1500] ss:$16 sps:$4 sm:$0xff]  }
 0x40c   : > { %7129 = vmatpush1.bf16.msra.mxu0 %v9821_v37  ;;  %7662 = vmatpush1.bf16.msra.mxu1 %v9824_v60  ;;  %v9908_v37 = vld [vmem:[%s11763_s5 + $0x1508] ss:$16 sps:$4 sm:$0xff]   ;;  %v9913_v60 = vld [vmem:[%s11763_s5 + $0x1524] ss:$16 sps:$4 sm:$0xff]  }
 0x40d   : > { %7130 = vmatprep.subr.bf16.mxu0 %v9829_v61  ;;  %7663 = vmatprep.subr.bf16.mxu1 %v9832_v62  ;;  %v9916_v61 = vld [vmem:[%s11763_s5 + $0x152c] ss:$16 sps:$4 sm:$0xff]   ;;  %v9911_v62 = vld [vmem:[%s11763_s5 + $0x1520] ss:$16 sps:$4 sm:$0xff]  }
 0x410   : > { %7131 = vmatpush1.bf16.msra.mxu0 %v9827_v63  ;;  %7664 = vmatpush1.bf16.msra.mxu1 %v9830_v0  ;;  %v9914_v63 = vld [vmem:[%s11763_s5 + $0x1528] ss:$16 sps:$4 sm:$0xff]   ;;  %v9919_v0 = vld [vmem:[%s11763_s5 + $0x1544] ss:$16 sps:$4 sm:$0xff]  }
 0x411   : > { %7132 = vmatprep.subr.bf16.mxu0 %v9835_v1  ;;  %7665 = vmatprep.subr.bf16.mxu1 %v9838_v3  ;;  %v9922_v1 = vld [vmem:[%s11763_s5 + $0x154c] ss:$16 sps:$4 sm:$0xff]   ;;  %v9917_v3 = vld [vmem:[%s11763_s5 + $0x1540] ss:$16 sps:$4 sm:$0xff]  }
 0x414   : > { %7133 = vmatpush1.bf16.msra.mxu0 %v9833_v5  ;;  %7666 = vmatpush1.bf16.msra.mxu1 %v9836_v6  ;;  %v9920_v5 = vld [vmem:[%s11763_s5 + $0x1548] ss:$16 sps:$4 sm:$0xff]   ;;  %v9925_v6 = vld [vmem:[%s11763_s5 + $0x1564] ss:$16 sps:$4 sm:$0xff]  }
 0x415   : > { %7134 = vmatprep.subr.bf16.mxu0 %v9841_v7  ;;  %7667 = vmatprep.subr.bf16.mxu1 %v9844_v57  ;;  %v9928_v7 = vld [vmem:[%s11763_s5 + $0x156c] ss:$16 sps:$4 sm:$0xff]   ;;  %v9923_v57 = vld [vmem:[%s11763_s5 + $0x1560] ss:$16 sps:$4 sm:$0xff]  }
 0x418   : > { %7135 = vmatpush1.bf16.msra.mxu0 %v9839_v8  ;;  %7668 = vmatpush1.bf16.msra.mxu1 %v9842_v9  ;;  %v9926_v8 = vld [vmem:[%s11763_s5 + $0x1568] ss:$16 sps:$4 sm:$0xff]   ;;  %v9931_v9 = vld [vmem:[%s11763_s5 + $0x1584] ss:$16 sps:$4 sm:$0xff]  }
 0x419   : > { %7136 = vmatprep.subr.bf16.mxu0 %v9847_v10  ;;  %7669 = vmatprep.subr.bf16.mxu1 %v9850_v2  ;;  %v9934_v10 = vld [vmem:[%s11763_s5 + $0x158c] ss:$16 sps:$4 sm:$0xff]   ;;  %v9929_v2 = vld [vmem:[%s11763_s5 + $0x1580] ss:$16 sps:$4 sm:$0xff]  }
 0x41c   : > { %7137 = vmatpush1.bf16.msra.mxu0 %v9845_v12  ;;  %7670 = vmatpush1.bf16.msra.mxu1 %v9848_v34  ;;  %v9937_v12 = vld [vmem:[%s11763_s5 + $0x15a4] ss:$16 sps:$4 sm:$0xff]   ;;  %v9940_v34 = vld [vmem:[%s11763_s5 + $0x15ac] ss:$16 sps:$4 sm:$0xff]  }
 0x41d   : > { %7138 = vmatprep.subr.bf16.mxu0 %v9853_v15  ;;  %7671 = vmatprep.subr.bf16.mxu1 %v9856_v16  ;;  %v9935_v15 = vld [vmem:[%s11763_s5 + $0x15a0] ss:$16 sps:$4 sm:$0xff]   ;;  %v9938_v16 = vld [vmem:[%s11763_s5 + $0x15a8] ss:$16 sps:$4 sm:$0xff]  }
 0x420   : > { %7139 = vmatpush1.bf16.msra.mxu0 %v9851_v54  ;;  %7672 = vmatpush1.bf16.msra.mxu1 %v9854_v18  ;;  %v9943_v54 = vld [vmem:[%s11763_s5 + $0x15c4] ss:$16 sps:$4 sm:$0xff]   ;;  %v9946_v18 = vld [vmem:[%s11763_s5 + $0x15cc] ss:$16 sps:$4 sm:$0xff]  }
 0x421   : > { %7149 = vmatprep.subr.bf16.mxu0 %v9859_v21  ;;  %7682 = vmatprep.subr.bf16.mxu1 %v9862_v4  ;;  %v9941_v21 = vld [vmem:[%s11763_s5 + $0x15c0] ss:$16 sps:$4 sm:$0xff]   ;;  %v9944_v4 = vld [vmem:[%s11763_s5 + $0x15c8] ss:$16 sps:$4 sm:$0xff]  }
 0x423   : > { %7141 = vmatmul.mubr.bf16.vlgmr.msra.gmra.mrb[0].mxu0 %v2773_v23  ;;  %7674 = vmatmul.mubr.bf16.vlgmr.msra.gmra.mrb[0].mxu1 %v2773_v23  ;;  %v9952_v23 = vld [vmem:[%s11763_s5 + $0x15ec] ss:$16 sps:$4 sm:$0xff]  }
 0x424   : > { %7150 = vmatpush1.bf16.msra.mxu0 %v9857_v25  ;;  %7683 = vmatpush1.bf16.msra.mxu1 %v9860_v13  ;;  %v9947_v25 = vld [vmem:[%s11763_s5 + $0x15e0] ss:$16 sps:$4 sm:$0xff]   ;;  %v9950_v13 = vld [vmem:[%s11763_s5 + $0x15e8] ss:$16 sps:$4 sm:$0xff]  }
 0x425   : > { %7151 = vmatprep.subr.bf16.mxu0 %v9865_v26  ;;  %7684 = vmatprep.subr.bf16.mxu1 %v9868_v27  ;;  %v9956_v26 = vld [vmem:[%s11763_s5 + $0x1604] ss:$16 sps:$4 sm:$0xff]   ;;  %v9959_v27 = vld [vmem:[%s11763_s5 + $0x160c] ss:$16 sps:$4 sm:$0xff]  }
 0x426   : > { %7181 = vmatprep.mubr.bf16.mxu0 %v12536_v29  ;;  %7714 = vmatprep.mubr.bf16.mxu1 %v12536_v29 }
 0x428   : > { %7152 = vmatpush1.bf16.msra.mxu0 %v9863_v14  ;;  %7685 = vmatpush1.bf16.msra.mxu1 %v9866_v30  ;;  %v12602_v14 = vrot.slane %v12521_v17, %v11768_v24  ;;  %v9954_v30 = vld [vmem:[%s11763_s5 + $0x1600] ss:$16 sps:$4 sm:$0xff]  }
 0x429   : > { %7153 = vmatprep.subr.bf16.mxu0 %v9871_v31  ;;  %7686 = vmatprep.subr.bf16.mxu1 %v9874_v32  ;;  %v9957_v31 = vld [vmem:[%s11763_s5 + $0x1608] ss:$16 sps:$4 sm:$0xff]   ;;  %v9962_v32 = vld [vmem:[%s11763_s5 + $0x1624] ss:$16 sps:$4 sm:$0xff]   ;;  %v9960_v17 = vld [vmem:[%s11763_s5 + $0x1620] ss:$16 sps:$4 sm:$0xff]  }
 0x42c   : > { %7154 = vmatpush1.bf16.msra.mxu0 %v9869_v33  ;;  %7687 = vmatpush1.bf16.msra.mxu1 %v9872_v36  ;;  %v9965_v33 = vld [vmem:[%s11763_s5 + $0x162c] ss:$16 sps:$4 sm:$0xff]   ;;  %v2776_v36 = vcombine.high %v12536_v29, %v12536_v29  ;;  %v9966_v29 = vld [vmem:[%s11763_s5 + $0x1640] ss:$16 sps:$4 sm:$0xff]  }
 0x42d   : > { %7155 = vmatprep.subr.bf16.mxu0 %v9877_v38  ;;  %7688 = vmatprep.subr.bf16.mxu1 %v9880_v20  ;;  %v9963_v38 = vld [vmem:[%s11763_s5 + $0x1628] ss:$16 sps:$4 sm:$0xff]   ;;  %v9968_v20 = vld [vmem:[%s11763_s5 + $0x1644] ss:$16 sps:$4 sm:$0xff]  }
 0x430   : > { %7156 = vmatpush1.bf16.msra.mxu0 %v9875_v39  ;;  %7689 = vmatpush1.bf16.msra.mxu1 %v9878_v28  ;;  %v9971_v39 = vld [vmem:[%s11763_s5 + $0x164c] ss:$16 sps:$4 sm:$0xff]   ;;  %v9969_v28 = vld [vmem:[%s11763_s5 + $0x1648] ss:$16 sps:$4 sm:$0xff]  }
 0x431   : > { %7157 = vmatprep.subr.bf16.mxu0 %v9883_v40  ;;  %7690 = vmatprep.subr.bf16.mxu1 %v9886_v41  ;;  %v9974_v40 = vld [vmem:[%s11763_s5 + $0x1664] ss:$16 sps:$4 sm:$0xff]   ;;  %v9977_v41 = vld [vmem:[%s11763_s5 + $0x166c] ss:$16 sps:$4 sm:$0xff]  }
 0x434   : > { %7158 = vmatpush1.bf16.msra.mxu0 %v9881_v42  ;;  %7691 = vmatpush1.bf16.msra.mxu1 %v9884_v43  ;;  %v9972_v42 = vld [vmem:[%s11763_s5 + $0x1660] ss:$16 sps:$4 sm:$0xff]   ;;  %v9975_v43 = vld [vmem:[%s11763_s5 + $0x1668] ss:$16 sps:$4 sm:$0xff]  }
 0x435   : > { %7159 = vmatprep.subr.bf16.mxu0 %v9889_v45  ;;  %7692 = vmatprep.subr.bf16.mxu1 %v9892_v46  ;;  %v9980_v45 = vld [vmem:[%s11763_s5 + $0x1684] ss:$16 sps:$4 sm:$0xff]   ;;  %v9983_v46 = vld [vmem:[%s11763_s5 + $0x168c] ss:$16 sps:$4 sm:$0xff]  }
 0x438   : > { %7160 = vmatpush1.bf16.msra.mxu0 %v9887_v47  ;;  %7693 = vmatpush1.bf16.msra.mxu1 %v9890_v48  ;;  %v9978_v47 = vld [vmem:[%s11763_s5 + $0x1680] ss:$16 sps:$4 sm:$0xff]   ;;  %v9981_v48 = vld [vmem:[%s11763_s5 + $0x1688] ss:$16 sps:$4 sm:$0xff]  }
 0x439   : > { %7161 = vmatprep.subr.bf16.mxu0 %v9895_v49  ;;  %7694 = vmatprep.subr.bf16.mxu1 %v9898_v50  ;;  %v9986_v49 = vld [vmem:[%s11763_s5 + $0x16a4] ss:$16 sps:$4 sm:$0xff]   ;;  %v9989_v50 = vld [vmem:[%s11763_s5 + $0x16ac] ss:$16 sps:$4 sm:$0xff]  }
 0x43c   : > { %7162 = vmatpush1.bf16.msra.mxu0 %v9893_v35  ;;  %7695 = vmatpush1.bf16.msra.mxu1 %v9896_v51  ;;  %v9984_v35 = vld [vmem:[%s11763_s5 + $0x16a0] ss:$16 sps:$4 sm:$0xff]   ;;  %v9987_v51 = vld [vmem:[%s11763_s5 + $0x16a8] ss:$16 sps:$4 sm:$0xff]  }
 0x43d   : > { %7163 = vmatprep.subr.bf16.mxu0 %v9901_v52  ;;  %7696 = vmatprep.subr.bf16.mxu1 %v9904_v44  ;;  %v9992_v52 = vld [vmem:[%s11763_s5 + $0x16c4] ss:$16 sps:$4 sm:$0xff]   ;;  %v9995_v44 = vld [vmem:[%s11763_s5 + $0x16cc] ss:$16 sps:$4 sm:$0xff]  }
 0x440   : > { %7164 = vmatpush1.bf16.msra.mxu0 %v9899_v53  ;;  %7697 = vmatpush1.bf16.msra.mxu1 %v9902_v55  ;;  %v9990_v53 = vld [vmem:[%s11763_s5 + $0x16c0] ss:$16 sps:$4 sm:$0xff]   ;;  %v9993_v55 = vld [vmem:[%s11763_s5 + $0x16c8] ss:$16 sps:$4 sm:$0xff]  }
 0x441   : > { %7165 = vmatprep.subr.bf16.mxu0 %v9907_v56  ;;  %7698 = vmatprep.subr.bf16.mxu1 %v9910_v58  ;;  %v9998_v56 = vld [vmem:[%s11763_s5 + $0x16e4] ss:$16 sps:$4 sm:$0xff]   ;;  %v10001_v58 = vld [vmem:[%s11763_s5 + $0x16ec] ss:$16 sps:$4 sm:$0xff]  }
 0x444   : > { %7166 = vmatpush1.bf16.msra.mxu0 %v9905_v59  ;;  %7699 = vmatpush1.bf16.msra.mxu1 %v9908_v37  ;;  %v9996_v59 = vld [vmem:[%s11763_s5 + $0x16e0] ss:$16 sps:$4 sm:$0xff]   ;;  %v9999_v37 = vld [vmem:[%s11763_s5 + $0x16e8] ss:$16 sps:$4 sm:$0xff]  }
 0x445   : > { %7167 = vmatprep.subr.bf16.mxu0 %v9913_v60  ;;  %7700 = vmatprep.subr.bf16.mxu1 %v9916_v61  ;;  %v10004_v60 = vld [vmem:[%s11763_s5 + $0x1704] ss:$16 sps:$4 sm:$0xff]   ;;  %v10007_v61 = vld [vmem:[%s11763_s5 + $0x170c] ss:$16 sps:$4 sm:$0xff]  }
 0x448   : > { %7168 = vmatpush1.bf16.msra.mxu0 %v9911_v62  ;;  %7701 = vmatpush1.bf16.msra.mxu1 %v9914_v63  ;;  %v10002_v62 = vld [vmem:[%s11763_s5 + $0x1700] ss:$16 sps:$4 sm:$0xff]   ;;  %v10005_v63 = vld [vmem:[%s11763_s5 + $0x1708] ss:$16 sps:$4 sm:$0xff]  }
 0x449   : > { %7169 = vmatprep.subr.bf16.mxu0 %v9919_v0  ;;  %7702 = vmatprep.subr.bf16.mxu1 %v9922_v1  ;;  %v10010_v0 = vld [vmem:[%s11763_s5 + $0x1724] ss:$16 sps:$4 sm:$0xff]   ;;  %v10013_v1 = vld [vmem:[%s11763_s5 + $0x172c] ss:$16 sps:$4 sm:$0xff]  }
 0x44c   : > { %7170 = vmatpush1.bf16.msra.mxu0 %v9917_v3  ;;  %7703 = vmatpush1.bf16.msra.mxu1 %v9920_v5  ;;  %v10008_v3 = vld [vmem:[%s11763_s5 + $0x1720] ss:$16 sps:$4 sm:$0xff]   ;;  %v10011_v5 = vld [vmem:[%s11763_s5 + $0x1728] ss:$16 sps:$4 sm:$0xff]  }
 0x44d   : > { %7171 = vmatprep.subr.bf16.mxu0 %v9925_v6  ;;  %7704 = vmatprep.subr.bf16.mxu1 %v9928_v7  ;;  %v10016_v6 = vld [vmem:[%s11763_s5 + $0x1744] ss:$16 sps:$4 sm:$0xff]   ;;  %v10019_v7 = vld [vmem:[%s11763_s5 + $0x174c] ss:$16 sps:$4 sm:$0xff]  }
 0x450   : > { %7172 = vmatpush1.bf16.msra.mxu0 %v9923_v57  ;;  %7705 = vmatpush1.bf16.msra.mxu1 %v9926_v8  ;;  %v10014_v57 = vld [vmem:[%s11763_s5 + $0x1740] ss:$16 sps:$4 sm:$0xff]   ;;  %v10017_v8 = vld [vmem:[%s11763_s5 + $0x1748] ss:$16 sps:$4 sm:$0xff]  }
 0x451   : > { %7173 = vmatprep.subr.bf16.mxu0 %v9931_v9  ;;  %7706 = vmatprep.subr.bf16.mxu1 %v9934_v10  ;;  %v10022_v9 = vld [vmem:[%s11763_s5 + $0x1764] ss:$16 sps:$4 sm:$0xff]   ;;  %v10025_v10 = vld [vmem:[%s11763_s5 + $0x176c] ss:$16 sps:$4 sm:$0xff]  }
 0x454   : > { %7174 = vmatpush1.bf16.msra.mxu0 %v9929_v2  ;;  %7707 = vmatpush1.bf16.msra.mxu1 %v9932_v11  ;;  %v10020_v2 = vld [vmem:[%s11763_s5 + $0x1760] ss:$16 sps:$4 sm:$0xff]   ;;  %v10023_v11 = vld [vmem:[%s11763_s5 + $0x1768] ss:$16 sps:$4 sm:$0xff]  }
 0x455   : > { %7175 = vmatprep.subr.bf16.mxu0 %v9937_v12  ;;  %7708 = vmatprep.subr.bf16.mxu1 %v9940_v34  ;;  %v10028_v12 = vld [vmem:[%s11763_s5 + $0x1784] ss:$16 sps:$4 sm:$0xff]   ;;  %v10031_v34 = vld [vmem:[%s11763_s5 + $0x178c] ss:$16 sps:$4 sm:$0xff]  }
 0x458   : > { %7176 = vmatpush1.bf16.msra.mxu0 %v9935_v15  ;;  %7709 = vmatpush1.bf16.msra.mxu1 %v9938_v16  ;;  %v10026_v15 = vld [vmem:[%s11763_s5 + $0x1780] ss:$16 sps:$4 sm:$0xff]   ;;  %v10029_v16 = vld [vmem:[%s11763_s5 + $0x1788] ss:$16 sps:$4 sm:$0xff]  }
 0x459   : > { %7177 = vmatprep.subr.bf16.mxu0 %v9943_v54  ;;  %7710 = vmatprep.subr.bf16.mxu1 %v9946_v18  ;;  %v10034_v54 = vld [vmem:[%s11763_s5 + $0x17a4] ss:$16 sps:$4 sm:$0xff]   ;;  %v10037_v18 = vld [vmem:[%s11763_s5 + $0x17ac] ss:$16 sps:$4 sm:$0xff]  }
 0x45c   : > { %7178 = vmatpush1.bf16.msra.mxu0 %v9941_v21  ;;  %7711 = vmatpush1.bf16.msra.mxu1 %v9944_v4  ;;  %v10032_v21 = vld [vmem:[%s11763_s5 + $0x17a0] ss:$16 sps:$4 sm:$0xff]   ;;  %v10035_v4 = vld [vmem:[%s11763_s5 + $0x17a8] ss:$16 sps:$4 sm:$0xff]  }
 0x45d   : > { %7179 = vmatprep.subr.bf16.mxu0 %v9949_v22  ;;  %7712 = vmatprep.subr.bf16.mxu1 %v9952_v23  ;;  %v10040_v22 = vld [vmem:[%s11763_s5 + $0x17c4] ss:$16 sps:$4 sm:$0xff]   ;;  %v10043_v23 = vld [vmem:[%s11763_s5 + $0x17cc] ss:$16 sps:$4 sm:$0xff]  }
 0x460   : > { %7180 = vmatpush1.bf16.msra.mxu0 %v9947_v25  ;;  %7713 = vmatpush1.bf16.msra.mxu1 %v9950_v13  ;;  %v10038_v25 = vld [vmem:[%s11763_s5 + $0x17c0] ss:$16 sps:$4 sm:$0xff]   ;;  %v10041_v13 = vld [vmem:[%s11763_s5 + $0x17c8] ss:$16 sps:$4 sm:$0xff]  }
 0x461   : > { %7190 = vmatprep.subr.bf16.mxu0 %v9956_v26  ;;  %7723 = vmatprep.subr.bf16.mxu1 %v9959_v27  ;;  %v10046_v26 = vld [vmem:[%s11763_s5 + $0x17e4] ss:$16 sps:$4 sm:$0xff]   ;;  %v10049_v27 = vld [vmem:[%s11763_s5 + $0x17ec] ss:$16 sps:$4 sm:$0xff]  }
 0x463   : > { %7182 = vmatmul.mubr.bf16.vlgmr.msra.gmra.mrb[0].mxu0 %v12602_v14  ;;  %7715 = vmatmul.mubr.bf16.vlgmr.msra.gmra.mrb[0].mxu1 %v12602_v14 }
 0x464   : > { %7191 = vmatpush1.bf16.msra.mxu0 %v9954_v30  ;;  %7724 = vmatpush1.bf16.msra.mxu1 %v9957_v31  ;;  %v10044_v30 = vld [vmem:[%s11763_s5 + $0x17e0] ss:$16 sps:$4 sm:$0xff]   ;;  %v10047_v31 = vld [vmem:[%s11763_s5 + $0x17e8] ss:$16 sps:$4 sm:$0xff]  }
 0x465   : > { %7192 = vmatprep.subr.bf16.mxu0 %v9962_v32  ;;  %7725 = vmatprep.subr.bf16.mxu1 %v9965_v33  ;;  %v10052_v32 = vld [vmem:[%s11763_s5 + $0x1804] ss:$16 sps:$4 sm:$0xff]   ;;  %v10055_v33 = vld [vmem:[%s11763_s5 + $0x180c] ss:$16 sps:$4 sm:$0xff]  }
 0x466   : > { %7222 = vmatprep.mubr.bf16.mxu0 %v2776_v36  ;;  %7755 = vmatprep.mubr.bf16.mxu1 %v2776_v36  ;;  %v2774_v36 = vcombine.high %v12602_v14, %v12602_v14  ;;  %v10059_v14 = vld [vmem:[%s11763_s5 + $0x1828] ss:$16 sps:$4 sm:$0xff]  }
 0x468   : > { %7193 = vmatpush1.bf16.msra.mxu0 %v9960_v17  ;;  %7726 = vmatpush1.bf16.msra.mxu1 %v9963_v38  ;;  %v10050_v17 = vld [vmem:[%s11763_s5 + $0x1800] ss:$16 sps:$4 sm:$0xff]   ;;  %v10053_v38 = vld [vmem:[%s11763_s5 + $0x1808] ss:$16 sps:$4 sm:$0xff]  }
 0x469   : > { %7194 = vmatprep.subr.bf16.mxu0 %v9968_v20  ;;  %7727 = vmatprep.subr.bf16.mxu1 %v9971_v39  ;;  %v10058_v20 = vld [vmem:[%s11763_s5 + $0x1824] ss:$16 sps:$4 sm:$0xff]   ;;  %v10061_v39 = vld [vmem:[%s11763_s5 + $0x182c] ss:$16 sps:$4 sm:$0xff]  }
 0x46c   : > { %7195 = vmatpush1.bf16.msra.mxu0 %v9966_v29  ;;  %7728 = vmatpush1.bf16.msra.mxu1 %v9969_v28  ;;  %v10056_v29 = vld [vmem:[%s11763_s5 + $0x1820] ss:$16 sps:$4 sm:$0xff]   ;;  %v10064_v28 = vld [vmem:[%s11763_s5 + $0x1844] ss:$16 sps:$4 sm:$0xff]  }
 0x46d   : > { %7196 = vmatprep.subr.bf16.mxu0 %v9974_v40  ;;  %7729 = vmatprep.subr.bf16.mxu1 %v9977_v41  ;;  %v10067_v40 = vld [vmem:[%s11763_s5 + $0x184c] ss:$16 sps:$4 sm:$0xff]   ;;  %v10117_v41 = vmov 0  }
 0x470   : > { %7197 = vmatpush1.bf16.msra.mxu0 %v9972_v42  ;;  %7730 = vmatpush1.bf16.msra.mxu1 %v9975_v43  ;;  %v10062_v42 = vld [vmem:[%s11763_s5 + $0x1840] ss:$16 sps:$4 sm:$0xff]   ;;  %v10065_v43 = vld [vmem:[%s11763_s5 + $0x1848] ss:$16 sps:$4 sm:$0xff]  }
 0x471   : > { %7198 = vmatprep.subr.bf16.mxu0 %v9980_v45  ;;  %7731 = vmatprep.subr.bf16.mxu1 %v9983_v46  ;;  %v10070_v45 = vld [vmem:[%s11763_s5 + $0x1864] ss:$16 sps:$4 sm:$0xff]   ;;  %v10073_v46 = vld [vmem:[%s11763_s5 + $0x186c] ss:$16 sps:$4 sm:$0xff]  }
 0x474   : > { %7199 = vmatpush1.bf16.msra.mxu0 %v9978_v47  ;;  %7732 = vmatpush1.bf16.msra.mxu1 %v9981_v48  ;;  %v10068_v47 = vld [vmem:[%s11763_s5 + $0x1860] ss:$16 sps:$4 sm:$0xff]   ;;  %v10071_v48 = vld [vmem:[%s11763_s5 + $0x1868] ss:$16 sps:$4 sm:$0xff]  }
 0x475   : > { %7200 = vmatprep.subr.bf16.mxu0 %v9986_v49  ;;  %7733 = vmatprep.subr.bf16.mxu1 %v9989_v50  ;;  %v7958_v49 = vld.sshfl [vmem:[%s12724_s0 + $0x18] sm:$0x1 pattern:$0x75316420] }
 0x476   : > { %v2790_v50 = vrot.slane %v7958_v49, %v11768_v24 }
 0x478   : > { %7201 = vmatpush1.bf16.msra.mxu0 %v9984_v35  ;;  %7734 = vmatpush1.bf16.msra.mxu1 %v9987_v51  ;;  %v2608_v35 = vsub.s32 0, %v11756_v19  ;;  %v2616_v51 = vsub.s32 2, %v11756_v19 }
 0x479   : > { %7202 = vmatprep.subr.bf16.mxu0 %v9992_v52  ;;  %7735 = vmatprep.subr.bf16.mxu1 %v9995_v44  ;;  %v2604_v52 = vld [vmem:[%s1804_s23] sm:$0xf]  ;;  %v2612_v44 = vsub.s32 1, %v11756_v19 }
 0x47c   : > { %7203 = vmatpush1.bf16.msra.mxu0 %v9990_v53  ;;  %7736 = vmatpush1.bf16.msra.mxu1 %v9993_v55  ;;  %v2620_v53 = vsub.s32 3, %v11756_v19  ;;  %v2609_v55 = vrot.slane %v2604_v52, %v2608_v35 }
 0x47d   : > { %7204 = vmatprep.subr.bf16.mxu0 %v9998_v56  ;;  %7737 = vmatprep.subr.bf16.mxu1 %v10001_v58  ;;  %v2617_v56 = vrot.slane %v2604_v52, %v2616_v51  ;;  %v2613_v58 = vrot.slane %v2604_v52, %v2612_v44 }
 0x480   : > { %7205 = vmatpush1.bf16.msra.mxu0 %v9996_v59  ;;  %7738 = vmatpush1.bf16.msra.mxu1 %v9999_v37  ;;  %v2621_v59 = vrot.slane %v2604_v52, %v2620_v53 }
 0x481   : > { %7206 = vmatprep.subr.bf16.mxu0 %v10004_v60  ;;  %7739 = vmatprep.subr.bf16.mxu1 %v10007_v61 }
 0x484   : > { %7207 = vmatpush1.bf16.msra.mxu0 %v10002_v62  ;;  %7740 = vmatpush1.bf16.msra.mxu1 %v10005_v63 }
 0x485   : > { %7208 = vmatprep.subr.bf16.mxu0 %v10010_v0  ;;  %7741 = vmatprep.subr.bf16.mxu1 %v10013_v1 }
 0x488   : > { %7209 = vmatpush1.bf16.msra.mxu0 %v10008_v3  ;;  %7742 = vmatpush1.bf16.msra.mxu1 %v10011_v5 }
 0x489   : > { %7210 = vmatprep.subr.bf16.mxu0 %v10016_v6  ;;  %7743 = vmatprep.subr.bf16.mxu1 %v10019_v7 }
 0x48c   : > { %7211 = vmatpush1.bf16.msra.mxu0 %v10014_v57  ;;  %7744 = vmatpush1.bf16.msra.mxu1 %v10017_v8 }
 0x48d   : > { %7212 = vmatprep.subr.bf16.mxu0 %v10022_v9  ;;  %7745 = vmatprep.subr.bf16.mxu1 %v10025_v10 }
 0x490   : > { %7213 = vmatpush1.bf16.msra.mxu0 %v10020_v2  ;;  %7746 = vmatpush1.bf16.msra.mxu1 %v10023_v11 }
 0x491   : > { %7214 = vmatprep.subr.bf16.mxu0 %v10028_v12  ;;  %7747 = vmatprep.subr.bf16.mxu1 %v10031_v34 }
 0x494   : > { %7215 = vmatpush1.bf16.msra.mxu0 %v10026_v15  ;;  %7748 = vmatpush1.bf16.msra.mxu1 %v10029_v16 }
 0x495   : > { %7216 = vmatprep.subr.bf16.mxu0 %v10034_v54  ;;  %7749 = vmatprep.subr.bf16.mxu1 %v10037_v18 }
 0x498   : > { %7217 = vmatpush1.bf16.msra.mxu0 %v10032_v21  ;;  %7750 = vmatpush1.bf16.msra.mxu1 %v10035_v4 }
 0x499   : > { %7218 = vmatprep.subr.bf16.mxu0 %v10040_v22  ;;  %7751 = vmatprep.subr.bf16.mxu1 %v10043_v23 }
 0x49c   : > { %7219 = vmatpush1.bf16.msra.mxu0 %v10038_v25  ;;  %7752 = vmatpush1.bf16.msra.mxu1 %v10041_v13 }
 0x49d   : > { %7220 = vmatprep.subr.bf16.mxu0 %v10046_v26  ;;  %7753 = vmatprep.subr.bf16.mxu1 %v10049_v27 }
 0x4a0   : > { %7221 = vmatpush1.bf16.msra.mxu0 %v10044_v30  ;;  %7754 = vmatpush1.bf16.msra.mxu1 %v10047_v31 }
 0x4a1   : > { %7231 = vmatprep.subr.bf16.mxu0 %v10052_v32  ;;  %7764 = vmatprep.subr.bf16.mxu1 %v10055_v33 }
 0x4a3   : > { %7223 = vmatmul.mubr.bf16.vlgmr.msra.gmra.mrb[0].mxu0 %v2774_v36  ;;  %7756 = vmatmul.mubr.bf16.vlgmr.msra.gmra.mrb[0].mxu1 %v2774_v36 }
 0x4a4   : > { %7232 = vmatpush1.bf16.msra.mxu0 %v10050_v17  ;;  %7765 = vmatpush1.bf16.msra.mxu1 %v10053_v38 }
 0x4a5   : > { %7233 = vmatprep.subr.bf16.mxu0 %v10058_v20  ;;  %7766 = vmatprep.subr.bf16.mxu1 %v10061_v39 }
 0x4a6   : > { %7263 = vmatprep.mubr.bf16.mxu0 %v10117_v41  ;;  %7796 = vmatprep.mubr.bf16.mxu1 %v10117_v41 }
 0x4a8   : > { %7234 = vmatpush1.bf16.msra.mxu0 %v10056_v29  ;;  %7767 = vmatpush1.bf16.msra.mxu1 %v10059_v14 }
 0x4a9   : > { %7235 = vmatprep.subr.bf16.mxu0 %v10064_v28  ;;  %7768 = vmatprep.subr.bf16.mxu1 %v10067_v40 }
 0x4ac   : > { %7236 = vmatpush1.bf16.msra.mxu0 %v10062_v42  ;;  %7769 = vmatpush1.bf16.msra.mxu1 %v10065_v43 }
 0x4ad   : > { %7237 = vmatprep.subr.bf16.mxu0 %v10070_v45  ;;  %7770 = vmatprep.subr.bf16.mxu1 %v10073_v46 }
 0x4b0   : > { %7238 = vmatpush1.bf16.msra.mxu0 %v10068_v47  ;;  %7771 = vmatpush1.bf16.msra.mxu1 %v10071_v48 }
 0x4b3   : > { %8743 = vmatmul.mubr.msk.bf16.vlgmr.msra.gmra.mrb[0].mxu0 %vm6735_vm0, %v2790_v50  ;;  %8744 = vmatmul.mubr.msk.bf16.vlgmr.msra.gmra.mrb[0].mxu1 %vm6735_vm0, %v2790_v50 }
 0x586   : > { %v7265_v37 = vpop.f32.mrb[0].mxu0  ;;  %v7798_v60 = vpop.f32.mrb[0].mxu1 }
 0x587   : > { %v8751_v61 = vadd.f32 %v7265_v37, %v2609_v55  ;;  %v8753_v62 = vadd.f32 %v7798_v60, %v2617_v56  ;;  %v7267_v63 = vpop.f32.mrb[1].mxu0  ;;  %v7800_v0 = vpop.f32.mrb[1].mxu1 }
 0x588   : > { %v8752_v1 = vadd.f32 %v7267_v63, %v2613_v58  ;;  %v8754_v3 = vadd.f32 %v7800_v0, %v2621_v59  ;;  %v7269_v5 = vpop.f32.mrb[2].mxu0  ;;  %v7802_v6 = vpop.f32.mrb[2].mxu1 }
 0x589   : > { %v7805_v7 = vmax.f32 %v8751_v61, 0.0  ;;  %v7807_v57 = vmax.f32 %v8753_v62, 0.0  ;;  %v7270_v8 = vpop.f32.mrb[3].mxu0  ;;  %v7803_v9 = vpop.f32.mrb[3].mxu1 }
 0x58a   : > { %v7806_v19 = vmax.f32 %v8752_v1, 0.0  ;;  %v7808_v10 = vmax.f32 %v8754_v3, 0.0 }
 0x58c   : > { %v8745_v2 = vpack.c.bf16 %v7806_v19, %v7805_v7  ;;  %v8746_v11 = vpack.c.bf16 %v7808_v10, %v7807_v57 }
 0x58e   : > { %v7825_v12 = vrot.slane %v8745_v2, %v11768_v24  ;;  %v7832_v34 = vrot.slane %v8746_v11, %v11768_v24 }
 0x590   : > { %v7833_v15 = vcombine.low %v7825_v12, %v7832_v34 }
 0x592   : > { %8747 = vst.sshfl [vmem:[%s1813_s25] sm:$0x55 pattern:$0x73625140] %v7833_v15 }
 0x593 PF: > { %s13_s16 = sadd.s32 1, %s10114_s16   ;;  %s12728_s12 = smov %s10102_s13 }
 0x594   : > { %p10_p10 = scmp.ge.s32.totalorder %s13_s16, 4   ;;  %s12729_s13 = smov %s10173_s20 }
 0x595   : > { %s12730_s14 = smov %s10110_s15  ;;  %s12731_s15 = smov %s12733_s17 }
 0x596   :  { %12 = sbr.rel (!%p10_p10) target bundleno = 3 (0x3), region = 96 }

</bundles_post_ra>
